<compile_context>
chip_gen: v7x
topology: tpu7x:2x2x1
jax: 0.10.0
libtpu: 0.0.40
codegen_flags: <defaults>
</compile_context>

<pallas_src>
import jax
import jax.numpy as jnp
from jax.experimental import pallas as pl
from jax.experimental.pallas import tpu as pltpu


C = 128          # padded channel / feature width (lane-dense)
MAX_BLOCK_B = 32 # images per grid step (amortizes ~0.35us step overhead)


# ---------------------------------------------------------------------------
# Fused Pallas kernel: conv1 -> pool1 -> conv2 -> pool2 -> fc1/fc2/fc3 -> lsm
# Activations live in (H, W, B, C) layout: pooling / window slicing touch
# only leading dims, channels stay on the 128-lane axis.
# ---------------------------------------------------------------------------
def _lenet5_fused_kernel(p1_ref, w1_ref, b1_ref, w2_ref, b2_ref,
                         wf1_ref, bf1_ref, wf2_ref, bf2_ref, wf3_ref, bf3_ref,
                         out_ref):
    BB = p1_ref.shape[2]          # batch images in this grid step

    # ---- conv1 (5x5, 1->6) as one im2col matmul, bias + ReLU fused.
    #      Output channels are replicated into 5 six-lane groups (done in the
    #      weights), so conv2's (kw, cin) lane-packing below needs no rolls.
    p1 = p1_ref[...].reshape(24 * 24 * BB, 32)              # bf16 from wrapper
    h = jnp.dot(p1, w1_ref[...], preferred_element_type=jnp.float32)
    h = jnp.maximum(h + b1_ref[...], 0.0).astype(jnp.bfloat16)   # early bf16

    # ---- maxpool 2x2 in bf16 (exact; leading-dim reshapes only) ------------
    h = h.reshape(12, 2, 24, BB, C)
    h = jnp.maximum(h[:, 0], h[:, 1])                        # pool H
    h = h.reshape(12, 12, 2, BB, C)
    h = jnp.maximum(h[:, :, 0], h[:, :, 1])                  # (12, 12, BB, C)

    # ---- lane-pack conv2's 5 kw taps: masked select per lane group ---------
    # packed[r, ow, b, kw*6+cin] = pooled[r, ow+kw, b, cin]
    lanes = jax.lax.broadcasted_iota(jnp.int32, (12 * 8 * BB, C), 1)
    packed = None
    for kw in range(5):
        slab = h[:, kw:kw + 8].reshape(12 * 8 * BB, C)
        sel = jnp.logical_and(lanes >= kw * 6, lanes < (kw + 1) * 6)
        slab = jnp.where(sel, slab, jnp.zeros_like(slab))
        packed = slab if packed is None else packed + slab    # disjoint lanes
    packed = packed.reshape(12, 8, BB, C)

    # ---- conv2 (5x5, 6->16): 5 row-offset matmuls, dense packed K ----------
    acc = jnp.zeros((8 * 8 * BB, C), jnp.float32)
    for kh in range(5):
        lhs = packed[kh:kh + 8].reshape(8 * 8 * BB, C)
        acc = acc + jnp.dot(lhs, w2_ref[kh],
                            preferred_element_type=jnp.float32)
    h = jnp.maximum(acc + b2_ref[...], 0.0).astype(jnp.bfloat16)  # (64*BB, C)

    # ---- maxpool 2x2 --------------------------------------------------------
    h = h.reshape(4, 2, 8, BB, C)
    h = jnp.maximum(h[:, 0], h[:, 1])
    h = h.reshape(4, 4, 2, BB, C)
    h = jnp.maximum(h[:, :, 0], h[:, :, 1])                  # (4, 4, BB, C)

    # ---- fc1 (256->120): one K=2048 matmul over lane-concatenated pixels.
    #      wf1 rows were pre-permuted host-side so PyTorch's view(-1, 256)
    #      NCHW-flatten semantics are preserved exactly.
    flat = jnp.concatenate([h[hh, ww] for hh in range(4) for ww in range(4)],
                           axis=1)                            # (BB, 16*C)
    h = jnp.dot(flat, wf1_ref[...], preferred_element_type=jnp.float32)
    h = jnp.maximum(h + bf1_ref[...], 0.0).astype(jnp.bfloat16)

    # ---- fc2 (120->84) + ReLU ----------------------------------------------
    h = jnp.dot(h, wf2_ref[...], preferred_element_type=jnp.float32)
    h = jnp.maximum(h + bf2_ref[...], 0.0).astype(jnp.bfloat16)

    # ---- fc3 (84->10) + log_softmax in f32, masked to the 10 real classes --
    z = jnp.dot(h, wf3_ref[...], preferred_element_type=jnp.float32) + bf3_ref[...]
    col = jax.lax.broadcasted_iota(jnp.int32, z.shape, 1)
    valid = col < 10
    zm = jnp.where(valid, z, -1e30)
    m = jnp.max(zm, axis=1, keepdims=True)
    e = jnp.where(valid, jnp.exp(zm - m), 0.0)
    lse = jnp.log(jnp.sum(e, axis=1, keepdims=True)) + m
    out_ref[...] = z - lse                                   # (BB, 128)


# ---------------------------------------------------------------------------
# Wrapper: tiny input prep + single pallas_call
# ---------------------------------------------------------------------------
def lenet5_forward(x, params):
    w1, b1, w2, b2, wf1, bf1, wf2, bf2, wf3, bf3 = params
    B = x.shape[0]

    # Block size: 32 when the batch gives >=2 grid steps (v7x second TC),
    # shrinking for small batches.
    bb = MAX_BLOCK_B
    while bb > 8 and B < 2 * bb:
        bb //= 2
    B_pad = max(pl.cdiv(B, bb) * bb, bb)

    # conv1 im2col on the raw 1-channel input, laid out (oh, ow, b, k) so the
    # kernel's matmul rows are (oh, ow, b)-major with batch on sublanes.
    # K padded 25 -> 32; shipped in bf16 (only per-step HBM stream).
    # TODO(synk): the patch gather could move in-kernel to avoid the 23x
    # inflated HBM round-trip entirely.
    xs = x.reshape(B, 28, 28)
    cols = [xs[:, i:i + 24, j:j + 24] for i in range(5) for j in range(5)]
    p1 = jnp.stack(cols, axis=-1)                            # (B, 24, 24, 25)
    p1 = jnp.transpose(p1, (1, 2, 0, 3))                     # (24, 24, B, 25)
    p1 = jnp.pad(p1, ((0, 0), (0, 0), (0, B_pad - B), (0, 32 - 25)))
    p1 = p1.astype(jnp.bfloat16)

    def full(arr):   # whole-array block, resident across all grid steps
        nd = arr.ndim
        return pl.BlockSpec(arr.shape, lambda b, nd=nd: (0,) * nd)

    out = pl.pallas_call(
        _lenet5_fused_kernel,
        out_shape=jax.ShapeDtypeStruct((B_pad, C), jnp.float32),
        grid=(B_pad // bb,),
        in_specs=[pl.BlockSpec((24, 24, bb, 32), lambda b: (0, 0, b, 0)),
                  full(w1), full(b1), full(w2), full(b2),
                  full(wf1), full(bf1), full(wf2), full(bf2),
                  full(wf3), full(bf3)],
        out_specs=pl.BlockSpec((bb, C), lambda b: (b, 0)),
        compiler_params=pltpu.CompilerParams(
            dimension_semantics=("parallel",),
            vmem_limit_bytes=48 * 1024 * 1024),
    )(p1, w1, b1, w2, b2, wf1, bf1, wf2, bf2, wf3, bf3)

    return out[:B, :10]


# ---------------------------------------------------------------------------
# Parameters: PyTorch-layout init + host-side packing (pad/permute/bf16 cast)
# ---------------------------------------------------------------------------
def init_params(key):
    keys = jax.random.split(key, 10)

    def u(k, shape, fan_in):
        bound = 1.0 / float(fan_in) ** 0.5
        return jax.random.uniform(k, shape, jnp.float32, -bound, bound)

    w1c = u(keys[0], (6, 1, 5, 5), 25)
    b1c = u(keys[1], (6,), 25)
    w2c = u(keys[2], (16, 6, 5, 5), 150)
    b2c = u(keys[3], (16,), 150)
    wf1 = u(keys[4], (120, 256), 256)
    bf1 = u(keys[5], (120,), 256)
    wf2 = u(keys[6], (84, 120), 120)
    bf2 = u(keys[7], (84,), 120)
    wf3 = u(keys[8], (10, 84), 84)
    bf3 = u(keys[9], (10,), 84)
    return (w1c, b1c, w2c, b2c, wf1, bf1, wf2, bf2, wf3, bf3)


def pack_params(raw):
    """Zero-pad / permute / replicate PyTorch-layout params into the kernel
    layout (free, host-side, once).  Matmul weights -> bfloat16, biases f32."""
    w1c, b1c, w2c, b2c, wf1, bf1, wf2, bf2, wf3, bf3 = raw

    # conv1: (6,1,5,5) -> (K=32, C=128); K index = kh*5+kw (matches im2col).
    # Output channels replicated into 5 six-lane groups (lanes kw*6+cin) so
    # conv2's lane-packing needs no rolls.
    w1_mat = w1c.reshape(6, 25).T                            # (25, 6)
    w1p = jnp.zeros((32, C), jnp.float32)
    b1p = jnp.zeros((1, C), jnp.float32)
    for kw in range(5):
        w1p = w1p.at[:25, kw * 6:kw * 6 + 6].set(w1_mat)
        b1p = b1p.at[0, kw * 6:kw * 6 + 6].set(b1c)

    # conv2: (16,6,5,5) -> (5, K=128, C=128); packed K index = kw*6+cin.
    w2t = jnp.transpose(w2c, (2, 3, 1, 0)).reshape(5, 30, 16)  # (kh, kw*6+cin, cout)
    w2p = jnp.zeros((5, C, C), jnp.float32).at[:, :30, :16].set(w2t)
    b2p = jnp.zeros((1, C), jnp.float32).at[0, :16].set(b2c)

    # fc1: (120,256) with input index c*16+h*4+w (PyTorch NCHW flatten)
    #      -> (2048, 128): row index = (hh*4+ww)*128 + cin.
    wf1t = jnp.transpose(wf1.reshape(120, 16, 4, 4), (2, 3, 1, 0))  # (hh,ww,cin,cout)
    wf1p = jnp.zeros((4, 4, C, C), jnp.float32).at[:, :, :16, :120].set(wf1t)
    wf1p = wf1p.reshape(16 * C, C)
    bf1p = jnp.zeros((1, C), jnp.float32).at[0, :120].set(bf1)

    wf2p = jnp.zeros((C, C), jnp.float32).at[:120, :84].set(wf2.T)
    bf2p = jnp.zeros((1, C), jnp.float32).at[0, :84].set(bf2)

    wf3p = jnp.zeros((C, C), jnp.float32).at[:84, :10].set(wf3.T)
    bf3p = jnp.zeros((1, C), jnp.float32).at[0, :10].set(bf3)

    bf16 = jnp.bfloat16
    return (w1p.astype(bf16), b1p, w2p.astype(bf16), b2p,
            wf1p.astype(bf16), bf1p, wf2p.astype(bf16), bf2p,
            wf3p.astype(bf16), bf3p)


# ---------------------------------------------------------------------------
# Pure-JAX f32 reference (PyTorch semantics) for a sanity check
# ---------------------------------------------------------------------------
def lenet5_reference(x, raw):
    w1c, b1c, w2c, b2c, wf1, bf1, wf2, bf2, wf3, bf3 = raw

    def conv(h, w, b):
        y = jax.lax.conv_general_dilated(
            h, w, window_strides=(1, 1), padding="VALID",
            dimension_numbers=("NCHW", "OIHW", "NCHW"))
        return y + b.reshape(1, -1, 1, 1)

    def pool(h):
        n, c, hh, ww = h.shape
        return h.reshape(n, c, hh // 2, 2, ww // 2, 2).max(axis=(3, 5))

    h = pool(jnp.maximum(conv(x, w1c, b1c), 0.0))
    h = pool(jnp.maximum(conv(h, w2c, b2c), 0.0))
    h = h.reshape(h.shape[0], -1)                      # == x.view(-1, 256)
    h = jnp.maximum(h @ wf1.T + bf1, 0.0)
    h = jnp.maximum(h @ wf2.T + bf2, 0.0)
    z = h @ wf3.T + bf3
    m = jnp.max(z, axis=1, keepdims=True)
    return z - (jnp.log(jnp.sum(jnp.exp(z - m), axis=1, keepdims=True)) + m)


if __name__ == "__main__":
    key = jax.random.PRNGKey(0)
    pkey, xkey = jax.random.split(key)
    raw = init_params(pkey)
    params = pack_params(raw)
    x = jax.random.normal(xkey, (2, 1, 28, 28), jnp.float32)

    out = jax.jit(lenet5_forward)(x, params)
    out = jax.block_until_ready(out)

    assert out.shape == (2, 10)
    # log_softmax rows must (exp-)sum to ~1
    assert bool(jnp.allclose(jnp.sum(jnp.exp(out), axis=1), 1.0, atol=1e-3))
    # matches the f32 reference up to bf16 MXU rounding
    ref = lenet5_reference(x, raw)
    assert bool(jnp.allclose(out, ref, atol=1e-1))
    print("KERNEL_OK")
</pallas_src>

<mosaic_0001>
module attributes {stable_mosaic.version = 11 : i64} {
  func.func @_lenet5_fused_kernel(%arg0: i32, %arg1: memref<24x24x8x32xbf16, #tpu.memory_space<vmem>>, %arg2: memref<32x128xbf16, #tpu.memory_space<vmem>>, %arg3: memref<1x128xf32, #tpu.memory_space<vmem>>, %arg4: memref<5x128x128xbf16, #tpu.memory_space<vmem>>, %arg5: memref<1x128xf32, #tpu.memory_space<vmem>>, %arg6: memref<2048x128xbf16, #tpu.memory_space<vmem>>, %arg7: memref<1x128xf32, #tpu.memory_space<vmem>>, %arg8: memref<128x128xbf16, #tpu.memory_space<vmem>>, %arg9: memref<1x128xf32, #tpu.memory_space<vmem>>, %arg10: memref<128x128xbf16, #tpu.memory_space<vmem>>, %arg11: memref<1x128xf32, #tpu.memory_space<vmem>>, %arg12: memref<8x128xf32, #tpu.memory_space<vmem>>) attributes {dimension_semantics = [#tpu.dimension_semantics<parallel>], iteration_bounds = array<i64: 1>, scalar_prefetch = 0 : i64, scratch_operands = 0 : i64, tpu.core_type = #tpu.core_type<tc>, window_params = [{transform_indices = @transform_0, window_bounds = array<i64: 24, 24, 8, 32>}, {pipeline_mode = #tpu.pipeline_mode<synchronous>, transform_indices = @transform_1, window_bounds = array<i64: 32, 128>}, {pipeline_mode = #tpu.pipeline_mode<synchronous>, transform_indices = @transform_2, window_bounds = array<i64: 1, 128>}, {pipeline_mode = #tpu.pipeline_mode<synchronous>, transform_indices = @transform_3, window_bounds = array<i64: 5, 128, 128>}, {pipeline_mode = #tpu.pipeline_mode<synchronous>, transform_indices = @transform_4, window_bounds = array<i64: 1, 128>}, {pipeline_mode = #tpu.pipeline_mode<synchronous>, transform_indices = @transform_5, window_bounds = array<i64: 2048, 128>}, {pipeline_mode = #tpu.pipeline_mode<synchronous>, transform_indices = @transform_6, window_bounds = array<i64: 1, 128>}, {pipeline_mode = #tpu.pipeline_mode<synchronous>, transform_indices = @transform_7, window_bounds = array<i64: 128, 128>}, {pipeline_mode = #tpu.pipeline_mode<synchronous>, transform_indices = @transform_8, window_bounds = array<i64: 1, 128>}, {pipeline_mode = #tpu.pipeline_mode<synchronous>, transform_indices = @transform_9, window_bounds = array<i64: 128, 128>}, {pipeline_mode = #tpu.pipeline_mode<synchronous>, transform_indices = @transform_10, window_bounds = array<i64: 1, 128>}, {transform_indices = @transform_11, window_bounds = array<i64: 8, 128>}]} {
    %c0 = arith.constant 0 : index
    %c0_0 = arith.constant 0 : index
    %c0_1 = arith.constant 0 : index
    %c0_2 = arith.constant 0 : index
    %0 = vector.load %arg1[%c0, %c0_0, %c0_1, %c0_2] : memref<24x24x8x32xbf16, #tpu.memory_space<vmem>>, vector<24x24x8x32xbf16>
    %1 = vector.shape_cast %0 : vector<24x24x8x32xbf16> to vector<4608x32xbf16>
    %c0_3 = arith.constant 0 : index
    %c0_4 = arith.constant 0 : index
    %2 = vector.load %arg2[%c0_3, %c0_4] : memref<32x128xbf16, #tpu.memory_space<vmem>>, vector<32x128xbf16>
    %cst = arith.constant dense<0.000000e+00> : vector<4608x128xf32>
    %3 = tpu.matmul %1, %2, %cst {dimension_numbers = #tpu.dot_dimension_numbers<[1], [0], [0], [1], [0, 0, 1, 1], [], []>} : vector<4608x32xbf16>, vector<32x128xbf16>, vector<4608x128xf32> -> vector<4608x128xf32>
    %c0_5 = arith.constant 0 : index
    %c0_6 = arith.constant 0 : index
    %4 = vector.load %arg3[%c0_5, %c0_6] : memref<1x128xf32, #tpu.memory_space<vmem>>, vector<1x128xf32>
    %5 = vector.broadcast %4 : vector<1x128xf32> to vector<4608x128xf32>
    %6 = arith.addf %3, %5 : vector<4608x128xf32>
    %cst_7 = arith.constant 0.000000e+00 : f32
    %7 = vector.broadcast %cst_7 : f32 to vector<4608x128xf32>
    %8 = arith.maximumf %6, %7 : vector<4608x128xf32>
    %9 = arith.truncf %8 : vector<4608x128xf32> to vector<4608x128xbf16>
    %10 = vector.shape_cast %9 : vector<4608x128xbf16> to vector<12x2x24x8x128xbf16>
    %11 = vector.extract_strided_slice %10 {offsets = [0, 0, 0, 0, 0], sizes = [12, 1, 24, 8, 128], strides = [1, 1, 1, 1, 1]} : vector<12x2x24x8x128xbf16> to vector<12x1x24x8x128xbf16>
    %12 = vector.shape_cast %11 : vector<12x1x24x8x128xbf16> to vector<12x24x8x128xbf16>
    %13 = vector.extract_strided_slice %10 {offsets = [0, 1, 0, 0, 0], sizes = [12, 1, 24, 8, 128], strides = [1, 1, 1, 1, 1]} : vector<12x2x24x8x128xbf16> to vector<12x1x24x8x128xbf16>
    %14 = vector.shape_cast %13 : vector<12x1x24x8x128xbf16> to vector<12x24x8x128xbf16>
    %15 = arith.maximumf %12, %14 : vector<12x24x8x128xbf16>
    %16 = vector.shape_cast %15 : vector<12x24x8x128xbf16> to vector<12x12x2x8x128xbf16>
    %17 = vector.extract_strided_slice %16 {offsets = [0, 0, 0, 0, 0], sizes = [12, 12, 1, 8, 128], strides = [1, 1, 1, 1, 1]} : vector<12x12x2x8x128xbf16> to vector<12x12x1x8x128xbf16>
    %18 = vector.shape_cast %17 : vector<12x12x1x8x128xbf16> to vector<12x12x8x128xbf16>
    %19 = vector.extract_strided_slice %16 {offsets = [0, 0, 1, 0, 0], sizes = [12, 12, 1, 8, 128], strides = [1, 1, 1, 1, 1]} : vector<12x12x2x8x128xbf16> to vector<12x12x1x8x128xbf16>
    %20 = vector.shape_cast %19 : vector<12x12x1x8x128xbf16> to vector<12x12x8x128xbf16>
    %21 = arith.maximumf %18, %20 : vector<12x12x8x128xbf16>
    %22 = tpu.iota {dimensions = array<i32: 1>} : vector<768x128xi32>
    %23 = vector.extract_strided_slice %21 {offsets = [0, 0, 0, 0], sizes = [12, 8, 8, 128], strides = [1, 1, 1, 1]} : vector<12x12x8x128xbf16> to vector<12x8x8x128xbf16>
    %24 = vector.shape_cast %23 : vector<12x8x8x128xbf16> to vector<768x128xbf16>
    %c0_i32 = arith.constant 0 : i32
    %25 = vector.broadcast %c0_i32 : i32 to vector<768x128xi32>
    %26 = arith.cmpi sge, %22, %25 : vector<768x128xi32>
    %c6_i32 = arith.constant 6 : i32
    %27 = vector.broadcast %c6_i32 : i32 to vector<768x128xi32>
    %28 = arith.cmpi slt, %22, %27 : vector<768x128xi32>
    %29 = arith.andi %26, %28 : vector<768x128xi1>
    %cst_8 = arith.constant 0.000000e+00 : bf16
    %30 = vector.broadcast %cst_8 : bf16 to vector<768x128xbf16>
    %31 = arith.select %29, %24, %30 : vector<768x128xi1>, vector<768x128xbf16>
    %32 = vector.extract_strided_slice %21 {offsets = [0, 1, 0, 0], sizes = [12, 8, 8, 128], strides = [1, 1, 1, 1]} : vector<12x12x8x128xbf16> to vector<12x8x8x128xbf16>
    %33 = vector.shape_cast %32 : vector<12x8x8x128xbf16> to vector<768x128xbf16>
    %c6_i32_9 = arith.constant 6 : i32
    %34 = vector.broadcast %c6_i32_9 : i32 to vector<768x128xi32>
    %35 = arith.cmpi sge, %22, %34 : vector<768x128xi32>
    %c12_i32 = arith.constant 12 : i32
    %36 = vector.broadcast %c12_i32 : i32 to vector<768x128xi32>
    %37 = arith.cmpi slt, %22, %36 : vector<768x128xi32>
    %38 = arith.andi %35, %37 : vector<768x128xi1>
    %cst_10 = arith.constant 0.000000e+00 : bf16
    %39 = vector.broadcast %cst_10 : bf16 to vector<768x128xbf16>
    %40 = arith.select %38, %33, %39 : vector<768x128xi1>, vector<768x128xbf16>
    %41 = arith.addf %31, %40 : vector<768x128xbf16>
    %42 = vector.extract_strided_slice %21 {offsets = [0, 2, 0, 0], sizes = [12, 8, 8, 128], strides = [1, 1, 1, 1]} : vector<12x12x8x128xbf16> to vector<12x8x8x128xbf16>
    %43 = vector.shape_cast %42 : vector<12x8x8x128xbf16> to vector<768x128xbf16>
    %c12_i32_11 = arith.constant 12 : i32
    %44 = vector.broadcast %c12_i32_11 : i32 to vector<768x128xi32>
    %45 = arith.cmpi sge, %22, %44 : vector<768x128xi32>
    %c18_i32 = arith.constant 18 : i32
    %46 = vector.broadcast %c18_i32 : i32 to vector<768x128xi32>
    %47 = arith.cmpi slt, %22, %46 : vector<768x128xi32>
    %48 = arith.andi %45, %47 : vector<768x128xi1>
    %cst_12 = arith.constant 0.000000e+00 : bf16
    %49 = vector.broadcast %cst_12 : bf16 to vector<768x128xbf16>
    %50 = arith.select %48, %43, %49 : vector<768x128xi1>, vector<768x128xbf16>
    %51 = arith.addf %41, %50 : vector<768x128xbf16>
    %52 = vector.extract_strided_slice %21 {offsets = [0, 3, 0, 0], sizes = [12, 8, 8, 128], strides = [1, 1, 1, 1]} : vector<12x12x8x128xbf16> to vector<12x8x8x128xbf16>
    %53 = vector.shape_cast %52 : vector<12x8x8x128xbf16> to vector<768x128xbf16>
    %c18_i32_13 = arith.constant 18 : i32
    %54 = vector.broadcast %c18_i32_13 : i32 to vector<768x128xi32>
    %55 = arith.cmpi sge, %22, %54 : vector<768x128xi32>
    %c24_i32 = arith.constant 24 : i32
    %56 = vector.broadcast %c24_i32 : i32 to vector<768x128xi32>
    %57 = arith.cmpi slt, %22, %56 : vector<768x128xi32>
    %58 = arith.andi %55, %57 : vector<768x128xi1>
    %cst_14 = arith.constant 0.000000e+00 : bf16
    %59 = vector.broadcast %cst_14 : bf16 to vector<768x128xbf16>
    %60 = arith.select %58, %53, %59 : vector<768x128xi1>, vector<768x128xbf16>
    %61 = arith.addf %51, %60 : vector<768x128xbf16>
    %62 = vector.extract_strided_slice %21 {offsets = [0, 4, 0, 0], sizes = [12, 8, 8, 128], strides = [1, 1, 1, 1]} : vector<12x12x8x128xbf16> to vector<12x8x8x128xbf16>
    %63 = vector.shape_cast %62 : vector<12x8x8x128xbf16> to vector<768x128xbf16>
    %c24_i32_15 = arith.constant 24 : i32
    %64 = vector.broadcast %c24_i32_15 : i32 to vector<768x128xi32>
    %65 = arith.cmpi sge, %22, %64 : vector<768x128xi32>
    %c30_i32 = arith.constant 30 : i32
    %66 = vector.broadcast %c30_i32 : i32 to vector<768x128xi32>
    %67 = arith.cmpi slt, %22, %66 : vector<768x128xi32>
    %68 = arith.andi %65, %67 : vector<768x128xi1>
    %cst_16 = arith.constant 0.000000e+00 : bf16
    %69 = vector.broadcast %cst_16 : bf16 to vector<768x128xbf16>
    %70 = arith.select %68, %63, %69 : vector<768x128xi1>, vector<768x128xbf16>
    %71 = arith.addf %61, %70 : vector<768x128xbf16>
    %72 = vector.shape_cast %71 : vector<768x128xbf16> to vector<12x8x8x128xbf16>
    %cst_17 = arith.constant 0.000000e+00 : f32
    %73 = vector.broadcast %cst_17 : f32 to vector<512x128xf32>
    %74 = vector.extract_strided_slice %72 {offsets = [0, 0, 0, 0], sizes = [8, 8, 8, 128], strides = [1, 1, 1, 1]} : vector<12x8x8x128xbf16> to vector<8x8x8x128xbf16>
    %75 = vector.shape_cast %74 : vector<8x8x8x128xbf16> to vector<512x128xbf16>
    %c0_18 = arith.constant 0 : index
    %c0_19 = arith.constant 0 : index
    %c0_20 = arith.constant 0 : index
    %76 = vector.load %arg4[%c0_18, %c0_19, %c0_20] : memref<5x128x128xbf16, #tpu.memory_space<vmem>>, vector<1x128x128xbf16>
    %77 = vector.shape_cast %76 : vector<1x128x128xbf16> to vector<128x128xbf16>
    %cst_21 = arith.constant dense<0.000000e+00> : vector<512x128xf32>
    %78 = tpu.matmul %75, %77, %cst_21 {dimension_numbers = #tpu.dot_dimension_numbers<[1], [0], [0], [1], [0, 0, 1, 1], [], []>} : vector<512x128xbf16>, vector<128x128xbf16>, vector<512x128xf32> -> vector<512x128xf32>
    %79 = arith.addf %73, %78 : vector<512x128xf32>
    %80 = vector.extract_strided_slice %72 {offsets = [1, 0, 0, 0], sizes = [8, 8, 8, 128], strides = [1, 1, 1, 1]} : vector<12x8x8x128xbf16> to vector<8x8x8x128xbf16>
    %81 = vector.shape_cast %80 : vector<8x8x8x128xbf16> to vector<512x128xbf16>
    %c1 = arith.constant 1 : index
    %c0_22 = arith.constant 0 : index
    %c0_23 = arith.constant 0 : index
    %82 = vector.load %arg4[%c1, %c0_22, %c0_23] : memref<5x128x128xbf16, #tpu.memory_space<vmem>>, vector<1x128x128xbf16>
    %83 = vector.shape_cast %82 : vector<1x128x128xbf16> to vector<128x128xbf16>
    %cst_24 = arith.constant dense<0.000000e+00> : vector<512x128xf32>
    %84 = tpu.matmul %81, %83, %cst_24 {dimension_numbers = #tpu.dot_dimension_numbers<[1], [0], [0], [1], [0, 0, 1, 1], [], []>} : vector<512x128xbf16>, vector<128x128xbf16>, vector<512x128xf32> -> vector<512x128xf32>
    %85 = arith.addf %79, %84 : vector<512x128xf32>
    %86 = vector.extract_strided_slice %72 {offsets = [2, 0, 0, 0], sizes = [8, 8, 8, 128], strides = [1, 1, 1, 1]} : vector<12x8x8x128xbf16> to vector<8x8x8x128xbf16>
    %87 = vector.shape_cast %86 : vector<8x8x8x128xbf16> to vector<512x128xbf16>
    %c2 = arith.constant 2 : index
    %c0_25 = arith.constant 0 : index
    %c0_26 = arith.constant 0 : index
    %88 = vector.load %arg4[%c2, %c0_25, %c0_26] : memref<5x128x128xbf16, #tpu.memory_space<vmem>>, vector<1x128x128xbf16>
    %89 = vector.shape_cast %88 : vector<1x128x128xbf16> to vector<128x128xbf16>
    %cst_27 = arith.constant dense<0.000000e+00> : vector<512x128xf32>
    %90 = tpu.matmul %87, %89, %cst_27 {dimension_numbers = #tpu.dot_dimension_numbers<[1], [0], [0], [1], [0, 0, 1, 1], [], []>} : vector<512x128xbf16>, vector<128x128xbf16>, vector<512x128xf32> -> vector<512x128xf32>
    %91 = arith.addf %85, %90 : vector<512x128xf32>
    %92 = vector.extract_strided_slice %72 {offsets = [3, 0, 0, 0], sizes = [8, 8, 8, 128], strides = [1, 1, 1, 1]} : vector<12x8x8x128xbf16> to vector<8x8x8x128xbf16>
    %93 = vector.shape_cast %92 : vector<8x8x8x128xbf16> to vector<512x128xbf16>
    %c3 = arith.constant 3 : index
    %c0_28 = arith.constant 0 : index
    %c0_29 = arith.constant 0 : index
    %94 = vector.load %arg4[%c3, %c0_28, %c0_29] : memref<5x128x128xbf16, #tpu.memory_space<vmem>>, vector<1x128x128xbf16>
    %95 = vector.shape_cast %94 : vector<1x128x128xbf16> to vector<128x128xbf16>
    %cst_30 = arith.constant dense<0.000000e+00> : vector<512x128xf32>
    %96 = tpu.matmul %93, %95, %cst_30 {dimension_numbers = #tpu.dot_dimension_numbers<[1], [0], [0], [1], [0, 0, 1, 1], [], []>} : vector<512x128xbf16>, vector<128x128xbf16>, vector<512x128xf32> -> vector<512x128xf32>
    %97 = arith.addf %91, %96 : vector<512x128xf32>
    %98 = vector.extract_strided_slice %72 {offsets = [4, 0, 0, 0], sizes = [8, 8, 8, 128], strides = [1, 1, 1, 1]} : vector<12x8x8x128xbf16> to vector<8x8x8x128xbf16>
    %99 = vector.shape_cast %98 : vector<8x8x8x128xbf16> to vector<512x128xbf16>
    %c4 = arith.constant 4 : index
    %c0_31 = arith.constant 0 : index
    %c0_32 = arith.constant 0 : index
    %100 = vector.load %arg4[%c4, %c0_31, %c0_32] : memref<5x128x128xbf16, #tpu.memory_space<vmem>>, vector<1x128x128xbf16>
    %101 = vector.shape_cast %100 : vector<1x128x128xbf16> to vector<128x128xbf16>
    %cst_33 = arith.constant dense<0.000000e+00> : vector<512x128xf32>
    %102 = tpu.matmul %99, %101, %cst_33 {dimension_numbers = #tpu.dot_dimension_numbers<[1], [0], [0], [1], [0, 0, 1, 1], [], []>} : vector<512x128xbf16>, vector<128x128xbf16>, vector<512x128xf32> -> vector<512x128xf32>
    %103 = arith.addf %97, %102 : vector<512x128xf32>
    %c0_34 = arith.constant 0 : index
    %c0_35 = arith.constant 0 : index
    %104 = vector.load %arg5[%c0_34, %c0_35] : memref<1x128xf32, #tpu.memory_space<vmem>>, vector<1x128xf32>
    %105 = vector.broadcast %104 : vector<1x128xf32> to vector<512x128xf32>
    %106 = arith.addf %103, %105 : vector<512x128xf32>
    %cst_36 = arith.constant 0.000000e+00 : f32
    %107 = vector.broadcast %cst_36 : f32 to vector<512x128xf32>
    %108 = arith.maximumf %106, %107 : vector<512x128xf32>
    %109 = arith.truncf %108 : vector<512x128xf32> to vector<512x128xbf16>
    %110 = vector.shape_cast %109 : vector<512x128xbf16> to vector<4x2x8x8x128xbf16>
    %111 = vector.extract_strided_slice %110 {offsets = [0, 0, 0, 0, 0], sizes = [4, 1, 8, 8, 128], strides = [1, 1, 1, 1, 1]} : vector<4x2x8x8x128xbf16> to vector<4x1x8x8x128xbf16>
    %112 = vector.shape_cast %111 : vector<4x1x8x8x128xbf16> to vector<4x8x8x128xbf16>
    %113 = vector.extract_strided_slice %110 {offsets = [0, 1, 0, 0, 0], sizes = [4, 1, 8, 8, 128], strides = [1, 1, 1, 1, 1]} : vector<4x2x8x8x128xbf16> to vector<4x1x8x8x128xbf16>
    %114 = vector.shape_cast %113 : vector<4x1x8x8x128xbf16> to vector<4x8x8x128xbf16>
    %115 = arith.maximumf %112, %114 : vector<4x8x8x128xbf16>
    %116 = vector.shape_cast %115 : vector<4x8x8x128xbf16> to vector<4x4x2x8x128xbf16>
    %117 = vector.extract_strided_slice %116 {offsets = [0, 0, 0, 0, 0], sizes = [4, 4, 1, 8, 128], strides = [1, 1, 1, 1, 1]} : vector<4x4x2x8x128xbf16> to vector<4x4x1x8x128xbf16>
    %118 = vector.shape_cast %117 : vector<4x4x1x8x128xbf16> to vector<4x4x8x128xbf16>
    %119 = vector.extract_strided_slice %116 {offsets = [0, 0, 1, 0, 0], sizes = [4, 4, 1, 8, 128], strides = [1, 1, 1, 1, 1]} : vector<4x4x2x8x128xbf16> to vector<4x4x1x8x128xbf16>
    %120 = vector.shape_cast %119 : vector<4x4x1x8x128xbf16> to vector<4x4x8x128xbf16>
    %121 = arith.maximumf %118, %120 : vector<4x4x8x128xbf16>
    %122 = vector.extract_strided_slice %121 {offsets = [0, 0, 0, 0], sizes = [1, 1, 8, 128], strides = [1, 1, 1, 1]} : vector<4x4x8x128xbf16> to vector<1x1x8x128xbf16>
    %123 = vector.shape_cast %122 : vector<1x1x8x128xbf16> to vector<8x128xbf16>
    %124 = vector.extract_strided_slice %121 {offsets = [0, 1, 0, 0], sizes = [1, 1, 8, 128], strides = [1, 1, 1, 1]} : vector<4x4x8x128xbf16> to vector<1x1x8x128xbf16>
    %125 = vector.shape_cast %124 : vector<1x1x8x128xbf16> to vector<8x128xbf16>
    %126 = vector.extract_strided_slice %121 {offsets = [0, 2, 0, 0], sizes = [1, 1, 8, 128], strides = [1, 1, 1, 1]} : vector<4x4x8x128xbf16> to vector<1x1x8x128xbf16>
    %127 = vector.shape_cast %126 : vector<1x1x8x128xbf16> to vector<8x128xbf16>
    %128 = vector.extract_strided_slice %121 {offsets = [0, 3, 0, 0], sizes = [1, 1, 8, 128], strides = [1, 1, 1, 1]} : vector<4x4x8x128xbf16> to vector<1x1x8x128xbf16>
    %129 = vector.shape_cast %128 : vector<1x1x8x128xbf16> to vector<8x128xbf16>
    %130 = vector.extract_strided_slice %121 {offsets = [1, 0, 0, 0], sizes = [1, 1, 8, 128], strides = [1, 1, 1, 1]} : vector<4x4x8x128xbf16> to vector<1x1x8x128xbf16>
    %131 = vector.shape_cast %130 : vector<1x1x8x128xbf16> to vector<8x128xbf16>
    %132 = vector.extract_strided_slice %121 {offsets = [1, 1, 0, 0], sizes = [1, 1, 8, 128], strides = [1, 1, 1, 1]} : vector<4x4x8x128xbf16> to vector<1x1x8x128xbf16>
    %133 = vector.shape_cast %132 : vector<1x1x8x128xbf16> to vector<8x128xbf16>
    %134 = vector.extract_strided_slice %121 {offsets = [1, 2, 0, 0], sizes = [1, 1, 8, 128], strides = [1, 1, 1, 1]} : vector<4x4x8x128xbf16> to vector<1x1x8x128xbf16>
    %135 = vector.shape_cast %134 : vector<1x1x8x128xbf16> to vector<8x128xbf16>
    %136 = vector.extract_strided_slice %121 {offsets = [1, 3, 0, 0], sizes = [1, 1, 8, 128], strides = [1, 1, 1, 1]} : vector<4x4x8x128xbf16> to vector<1x1x8x128xbf16>
    %137 = vector.shape_cast %136 : vector<1x1x8x128xbf16> to vector<8x128xbf16>
    %138 = vector.extract_strided_slice %121 {offsets = [2, 0, 0, 0], sizes = [1, 1, 8, 128], strides = [1, 1, 1, 1]} : vector<4x4x8x128xbf16> to vector<1x1x8x128xbf16>
    %139 = vector.shape_cast %138 : vector<1x1x8x128xbf16> to vector<8x128xbf16>
    %140 = vector.extract_strided_slice %121 {offsets = [2, 1, 0, 0], sizes = [1, 1, 8, 128], strides = [1, 1, 1, 1]} : vector<4x4x8x128xbf16> to vector<1x1x8x128xbf16>
    %141 = vector.shape_cast %140 : vector<1x1x8x128xbf16> to vector<8x128xbf16>
    %142 = vector.extract_strided_slice %121 {offsets = [2, 2, 0, 0], sizes = [1, 1, 8, 128], strides = [1, 1, 1, 1]} : vector<4x4x8x128xbf16> to vector<1x1x8x128xbf16>
    %143 = vector.shape_cast %142 : vector<1x1x8x128xbf16> to vector<8x128xbf16>
    %144 = vector.extract_strided_slice %121 {offsets = [2, 3, 0, 0], sizes = [1, 1, 8, 128], strides = [1, 1, 1, 1]} : vector<4x4x8x128xbf16> to vector<1x1x8x128xbf16>
    %145 = vector.shape_cast %144 : vector<1x1x8x128xbf16> to vector<8x128xbf16>
    %146 = vector.extract_strided_slice %121 {offsets = [3, 0, 0, 0], sizes = [1, 1, 8, 128], strides = [1, 1, 1, 1]} : vector<4x4x8x128xbf16> to vector<1x1x8x128xbf16>
    %147 = vector.shape_cast %146 : vector<1x1x8x128xbf16> to vector<8x128xbf16>
    %148 = vector.extract_strided_slice %121 {offsets = [3, 1, 0, 0], sizes = [1, 1, 8, 128], strides = [1, 1, 1, 1]} : vector<4x4x8x128xbf16> to vector<1x1x8x128xbf16>
    %149 = vector.shape_cast %148 : vector<1x1x8x128xbf16> to vector<8x128xbf16>
    %150 = vector.extract_strided_slice %121 {offsets = [3, 2, 0, 0], sizes = [1, 1, 8, 128], strides = [1, 1, 1, 1]} : vector<4x4x8x128xbf16> to vector<1x1x8x128xbf16>
    %151 = vector.shape_cast %150 : vector<1x1x8x128xbf16> to vector<8x128xbf16>
    %152 = vector.extract_strided_slice %121 {offsets = [3, 3, 0, 0], sizes = [1, 1, 8, 128], strides = [1, 1, 1, 1]} : vector<4x4x8x128xbf16> to vector<1x1x8x128xbf16>
    %153 = vector.shape_cast %152 : vector<1x1x8x128xbf16> to vector<8x128xbf16>
    %154 = tpu.concatenate %123, %125, %127, %129, %131, %133, %135, %137, %139, %141, %143, %145, %147, %149, %151, %153 in 1 : vector<8x128xbf16>, vector<8x128xbf16>, vector<8x128xbf16>, vector<8x128xbf16>, vector<8x128xbf16>, vector<8x128xbf16>, vector<8x128xbf16>, vector<8x128xbf16>, vector<8x128xbf16>, vector<8x128xbf16>, vector<8x128xbf16>, vector<8x128xbf16>, vector<8x128xbf16>, vector<8x128xbf16>, vector<8x128xbf16>, vector<8x128xbf16> -> vector<8x2048xbf16>
    %c0_37 = arith.constant 0 : index
    %c0_38 = arith.constant 0 : index
    %155 = vector.load %arg6[%c0_37, %c0_38] : memref<2048x128xbf16, #tpu.memory_space<vmem>>, vector<2048x128xbf16>
    %cst_39 = arith.constant dense<0.000000e+00> : vector<8x128xf32>
    %156 = tpu.matmul %154, %155, %cst_39 {dimension_numbers = #tpu.dot_dimension_numbers<[1], [0], [0], [1], [0, 0, 1, 1], [], []>} : vector<8x2048xbf16>, vector<2048x128xbf16>, vector<8x128xf32> -> vector<8x128xf32>
    %c0_40 = arith.constant 0 : index
    %c0_41 = arith.constant 0 : index
    %157 = vector.load %arg7[%c0_40, %c0_41] : memref<1x128xf32, #tpu.memory_space<vmem>>, vector<1x128xf32>
    %158 = vector.broadcast %157 : vector<1x128xf32> to vector<8x128xf32>
    %159 = arith.addf %156, %158 : vector<8x128xf32>
    %cst_42 = arith.constant 0.000000e+00 : f32
    %160 = vector.broadcast %cst_42 : f32 to vector<8x128xf32>
    %161 = arith.maximumf %159, %160 : vector<8x128xf32>
    %162 = arith.truncf %161 : vector<8x128xf32> to vector<8x128xbf16>
    %c0_43 = arith.constant 0 : index
    %c0_44 = arith.constant 0 : index
    %163 = vector.load %arg8[%c0_43, %c0_44] : memref<128x128xbf16, #tpu.memory_space<vmem>>, vector<128x128xbf16>
    %cst_45 = arith.constant dense<0.000000e+00> : vector<8x128xf32>
    %164 = tpu.matmul %162, %163, %cst_45 {dimension_numbers = #tpu.dot_dimension_numbers<[1], [0], [0], [1], [0, 0, 1, 1], [], []>} : vector<8x128xbf16>, vector<128x128xbf16>, vector<8x128xf32> -> vector<8x128xf32>
    %c0_46 = arith.constant 0 : index
    %c0_47 = arith.constant 0 : index
    %165 = vector.load %arg9[%c0_46, %c0_47] : memref<1x128xf32, #tpu.memory_space<vmem>>, vector<1x128xf32>
    %166 = vector.broadcast %165 : vector<1x128xf32> to vector<8x128xf32>
    %167 = arith.addf %164, %166 : vector<8x128xf32>
    %cst_48 = arith.constant 0.000000e+00 : f32
    %168 = vector.broadcast %cst_48 : f32 to vector<8x128xf32>
    %169 = arith.maximumf %167, %168 : vector<8x128xf32>
    %170 = arith.truncf %169 : vector<8x128xf32> to vector<8x128xbf16>
    %c0_49 = arith.constant 0 : index
    %c0_50 = arith.constant 0 : index
    %171 = vector.load %arg10[%c0_49, %c0_50] : memref<128x128xbf16, #tpu.memory_space<vmem>>, vector<128x128xbf16>
    %cst_51 = arith.constant dense<0.000000e+00> : vector<8x128xf32>
    %172 = tpu.matmul %170, %171, %cst_51 {dimension_numbers = #tpu.dot_dimension_numbers<[1], [0], [0], [1], [0, 0, 1, 1], [], []>} : vector<8x128xbf16>, vector<128x128xbf16>, vector<8x128xf32> -> vector<8x128xf32>
    %c0_52 = arith.constant 0 : index
    %c0_53 = arith.constant 0 : index
    %173 = vector.load %arg11[%c0_52, %c0_53] : memref<1x128xf32, #tpu.memory_space<vmem>>, vector<1x128xf32>
    %174 = vector.broadcast %173 : vector<1x128xf32> to vector<8x128xf32>
    %175 = arith.addf %172, %174 : vector<8x128xf32>
    %176 = tpu.iota {dimensions = array<i32: 1>} : vector<8x128xi32>
    %c10_i32 = arith.constant 10 : i32
    %177 = vector.broadcast %c10_i32 : i32 to vector<8x128xi32>
    %178 = arith.cmpi slt, %176, %177 : vector<8x128xi32>
    %cst_54 = arith.constant -1.000000e+30 : f32
    %179 = vector.broadcast %cst_54 : f32 to vector<8x128xf32>
    %180 = arith.select %178, %175, %179 : vector<8x128xi1>, vector<8x128xf32>
    %cst_55 = arith.constant dense<0xFF800000> : vector<8xf32>
    %181 = vector.multi_reduction <maximumf>, %180, %cst_55 [1] : vector<8x128xf32> to vector<8xf32>
    %182 = vector.shape_cast %181 : vector<8xf32> to vector<8x1xf32>
    %183 = vector.broadcast %182 : vector<8x1xf32> to vector<8x128xf32>
    %184 = arith.subf %180, %183 : vector<8x128xf32>
    %185 = math.exp %184 : vector<8x128xf32>
    %cst_56 = arith.constant 0.000000e+00 : f32
    %186 = vector.broadcast %cst_56 : f32 to vector<8x128xf32>
    %187 = arith.select %178, %185, %186 : vector<8x128xi1>, vector<8x128xf32>
    %cst_57 = arith.constant dense<0.000000e+00> : vector<8xf32>
    %188 = vector.multi_reduction <add>, %187, %cst_57 [1] : vector<8x128xf32> to vector<8xf32>
    %189 = vector.shape_cast %188 : vector<8xf32> to vector<8x1xf32>
    %190 = math.log %189 : vector<8x1xf32>
    %191 = arith.addf %190, %182 : vector<8x1xf32>
    %192 = vector.broadcast %191 : vector<8x1xf32> to vector<8x128xf32>
    %193 = arith.subf %175, %192 : vector<8x128xf32>
    %c0_58 = arith.constant 0 : index
    %c0_59 = arith.constant 0 : index
    %194 = vector.load %arg12[%c0_58, %c0_59] : memref<8x128xf32, #tpu.memory_space<vmem>>, vector<8x128xf32>
    tpu.vector_store %arg12[%c0_58, %c0_59], %193 {strides = array<i32>} : memref<8x128xf32, #tpu.memory_space<vmem>>, vector<8x128xf32>,
    return
  }
  func.func @transform_0(%arg0: i32) -> (i32, i32, i32, i32) {
    %c0_i32 = arith.constant 0 : i32
    %c0_i32_0 = arith.constant 0 : i32
    %c0_i32_1 = arith.constant 0 : i32
    %c0_i32_2 = arith.constant 0 : i32
    return %c0_i32, %c0_i32_0, %arg0, %c0_i32_1 : i32, i32, i32, i32
  }
  func.func @transform_1(%arg0: i32) -> (i32, i32) {
    %c0_i32 = arith.constant 0 : i32
    %c0_i32_0 = arith.constant 0 : i32
    %c0_i32_1 = arith.constant 0 : i32
    return %c0_i32, %c0_i32_0 : i32, i32
  }
  func.func @transform_2(%arg0: i32) -> (i32, i32) {
    %c0_i32 = arith.constant 0 : i32
    %c0_i32_0 = arith.constant 0 : i32
    %c0_i32_1 = arith.constant 0 : i32
    return %c0_i32, %c0_i32_0 : i32, i32
  }
  func.func @transform_3(%arg0: i32) -> (i32, i32, i32) {
    %c0_i32 = arith.constant 0 : i32
    %c0_i32_0 = arith.constant 0 : i32
    %c0_i32_1 = arith.constant 0 : i32
    %c0_i32_2 = arith.constant 0 : i32
    return %c0_i32, %c0_i32_0, %c0_i32_1 : i32, i32, i32
  }
  func.func @transform_4(%arg0: i32) -> (i32, i32) {
    %c0_i32 = arith.constant 0 : i32
    %c0_i32_0 = arith.constant 0 : i32
    %c0_i32_1 = arith.constant 0 : i32
    return %c0_i32, %c0_i32_0 : i32, i32
  }
  func.func @transform_5(%arg0: i32) -> (i32, i32) {
    %c0_i32 = arith.constant 0 : i32
    %c0_i32_0 = arith.constant 0 : i32
    %c0_i32_1 = arith.constant 0 : i32
    return %c0_i32, %c0_i32_0 : i32, i32
  }
  func.func @transform_6(%arg0: i32) -> (i32, i32) {
    %c0_i32 = arith.constant 0 : i32
    %c0_i32_0 = arith.constant 0 : i32
    %c0_i32_1 = arith.constant 0 : i32
    return %c0_i32, %c0_i32_0 : i32, i32
  }
  func.func @transform_7(%arg0: i32) -> (i32, i32) {
    %c0_i32 = arith.constant 0 : i32
    %c0_i32_0 = arith.constant 0 : i32
    %c0_i32_1 = arith.constant 0 : i32
    return %c0_i32, %c0_i32_0 : i32, i32
  }
  func.func @transform_8(%arg0: i32) -> (i32, i32) {
    %c0_i32 = arith.constant 0 : i32
    %c0_i32_0 = arith.constant 0 : i32
    %c0_i32_1 = arith.constant 0 : i32
    return %c0_i32, %c0_i32_0 : i32, i32
  }
  func.func @transform_9(%arg0: i32) -> (i32, i32) {
    %c0_i32 = arith.constant 0 : i32
    %c0_i32_0 = arith.constant 0 : i32
    %c0_i32_1 = arith.constant 0 : i32
    return %c0_i32, %c0_i32_0 : i32, i32
  }
  func.func @transform_10(%arg0: i32) -> (i32, i32) {
    %c0_i32 = arith.constant 0 : i32
    %c0_i32_0 = arith.constant 0 : i32
    %c0_i32_1 = arith.constant 0 : i32
    return %c0_i32, %c0_i32_0 : i32, i32
  }
  func.func @transform_11(%arg0: i32) -> (i32, i32) {
    %c0_i32 = arith.constant 0 : i32
    %c0_i32_0 = arith.constant 0 : i32
    return %arg0, %c0_i32 : i32, i32
  }
}

</mosaic_0001>

<bundles_post_ra>
// kernel: lenet5_forward.1
= control target key start
LH: loop header
LB: loop body
LE: loop exit
PB: predicated region body
PF: predicated region fallthrough
CT: control target
= control target key end

     0   :  { %vm2078_vm0 = vcmask 261120   ;;  %s24331_s1 = inlined_call_operand.vmem [shape: bf16[32,128], index: 1, kind: input, shape index: {}]   ;;  %s24332_s0 = inlined_call_operand.vmem [shape: bf16[24,24,8,32], index: 0, kind: input, shape index: {}]   ;;  %s24333_s3 = inlined_call_operand.vmem [shape: bf16[5,128,128], index: 3, kind: input, shape index: {}]   ;;  %s24334_s2 = inlined_call_operand.vmem [shape: f32[1,128], index: 2, kind: input, shape index: {}]   ;;  %s24335_s5 = inlined_call_operand.vmem [shape: bf16[2048,128], index: 5, kind: input, shape index: {}]   ;;  %s24336_s4 = inlined_call_operand.vmem [shape: f32[1,128], index: 4, kind: input, shape index: {}]   ;;  %s24337_s6 = inlined_call_operand.vmem [shape: f32[1,128], index: 6, kind: input, shape index: {}]   ;;  %s24338_s7 = inlined_call_operand.vmem [shape: bf16[128,128], index: 7, kind: input, shape index: {}]   ;;  %s24339_s9 = inlined_call_operand.vmem [shape: bf16[128,128], index: 9, kind: input, shape index: {}]   ;;  %s24340_s8 = inlined_call_operand.vmem [shape: f32[1,128], index: 8, kind: input, shape index: {}]   ;;  %s24341_s10 = inlined_call_operand.vmem [shape: f32[1,128], index: 10, kind: input, shape index: {}]   ;;  %s24342_s11 = inlined_call_operand.vmem [shape: f32[8,128], index: 11, kind: output, shape index: {}]  }
   0x1   :  { %v17887_v0 = vld [vmem:[%s24331_s1] sm:$0xff]   ;;  %v17888_v1 = vld [vmem:[%s24331_s1 + $0x8] sm:$0xff]   ;;  %v17891_v4 = vld [vmem:[%s24332_s0 + $0x10] sm:$0xff]  }
   0x2   :  { %16605 = vmatprep.subr.bf16.mxu0 %v17887_v0  ;;  %v17889_v2 = vld [vmem:[%s24332_s0] sm:$0xff]   ;;  %17625 = vmatprep.subr.bf16.mxu1 %v17887_v0  ;;  %v17890_v3 = vld [vmem:[%s24332_s0 + $0x8] sm:$0xff]   ;;  %v17892_v5 = vld [vmem:[%s24332_s0 + $0x18] sm:$0xff]  }
   0x3   :  { %16606 = vmatpush3.bf16.msra.mxu0 %v17887_v0  ;;  %17627 = vmatpush3.bf16.msra.mxu1 %v17887_v0  ;;  %v17893_v6 = vld [vmem:[%s24332_s0 + $0x20] sm:$0xff]   ;;  %v17894_v7 = vld [vmem:[%s24332_s0 + $0x28] sm:$0xff]   ;;  %v17895_v8 = vld [vmem:[%s24332_s0 + $0x30] sm:$0xff]  }
   0x4   :  { %16607 = vmatprep.subr.bf16.mxu0 %v17888_v1  ;;  %16609 = vmatprep.mubr.msk.bf16.mxu0 %vm2078_vm0, %v17889_v2  ;;  %v17896_v9 = vld [vmem:[%s24332_s0 + $0x38] sm:$0xff]   ;;  %v17897_v10 = vld [vmem:[%s24332_s0 + $0x40] sm:$0xff]   ;;  %v17898_v11 = vld [vmem:[%s24332_s0 + $0x48] sm:$0xff]  }
   0x5   :  { %17626 = vmatprep.subr.bf16.mxu1 %v17888_v1  ;;  %v17899_v12 = vld [vmem:[%s24332_s0 + $0x50] sm:$0xff]   ;;  %v17900_v13 = vld [vmem:[%s24332_s0 + $0x58] sm:$0xff]   ;;  %v17901_v14 = vld [vmem:[%s24332_s0 + $0x60] sm:$0xff]  }
   0x6   :  { %v17902_v15 = vld [vmem:[%s24332_s0 + $0x68] sm:$0xff]   ;;  %v17903_v16 = vld [vmem:[%s24332_s0 + $0x70] sm:$0xff]   ;;  %v17904_v17 = vld [vmem:[%s24332_s0 + $0x78] sm:$0xff]  }
   0x7   :  { %16608 = vmatpush3.bf16.msra.mxu0 %v17888_v1  ;;  %17628 = vmatpush3.bf16.msra.mxu1 %v17888_v1  ;;  %v17905_v18 = vld [vmem:[%s24332_s0 + $0x80] sm:$0xff]   ;;  %v17906_v19 = vld [vmem:[%s24332_s0 + $0x88] sm:$0xff]   ;;  %v17907_v20 = vld [vmem:[%s24332_s0 + $0x90] sm:$0xff]  }
   0x8   :  { %v17908_v21 = vld [vmem:[%s24332_s0 + $0x98] sm:$0xff]   ;;  %v17909_v22 = vld [vmem:[%s24332_s0 + $0xa0] sm:$0xff]   ;;  %v17910_v23 = vld [vmem:[%s24332_s0 + $0xa8] sm:$0xff]  }
   0x9   :  { %v17911_v24 = vld [vmem:[%s24332_s0 + $0xb0] sm:$0xff]   ;;  %v17912_v25 = vld [vmem:[%s24332_s0 + $0xb8] sm:$0xff]   ;;  %v17913_v26 = vld [vmem:[%s24332_s0 + $0xc0] sm:$0xff]  }
   0xa   :  { %16610 = vmatmul.mubr.msk.bf16.vlgmr.msra.gmra.mrb[0].mxu0 %vm2078_vm0, %v17890_v3  ;;  %v17914_v27 = vld [vmem:[%s24332_s0 + $0xc8] sm:$0xff]   ;;  %v17915_v28 = vld [vmem:[%s24332_s0 + $0xd0] sm:$0xff]   ;;  %v17916_v29 = vld [vmem:[%s24332_s0 + $0xd8] sm:$0xff]  }
   0xb   :  { %16613 = vmatprep.mubr.msk.bf16.mxu0 %vm2078_vm0, %v17891_v4  ;;  %v17917_v30 = vld [vmem:[%s24332_s0 + $0xe0] sm:$0xff]   ;;  %v17918_v31 = vld [vmem:[%s24332_s0 + $0xe8] sm:$0xff]   ;;  %v17919_v32 = vld [vmem:[%s24332_s0 + $0xf0] sm:$0xff]  }
   0xc   :  { %v17920_v33 = vld [vmem:[%s24332_s0 + $0xf8] sm:$0xff]   ;;  %v17921_v34 = vld [vmem:[%s24332_s0 + $0x100] sm:$0xff]   ;;  %v17922_v35 = vld [vmem:[%s24332_s0 + $0x108] sm:$0xff]  }
   0xd   :  { %v17923_v36 = vld [vmem:[%s24332_s0 + $0x110] sm:$0xff]   ;;  %v17924_v37 = vld [vmem:[%s24332_s0 + $0x118] sm:$0xff]   ;;  %v17925_v38 = vld [vmem:[%s24332_s0 + $0x120] sm:$0xff]  }
   0xe   :  { %v17926_v39 = vld [vmem:[%s24332_s0 + $0x128] sm:$0xff]   ;;  %v17927_v40 = vld [vmem:[%s24332_s0 + $0x130] sm:$0xff]   ;;  %v17928_v41 = vld [vmem:[%s24332_s0 + $0x138] sm:$0xff]  }
   0xf   :  { %v17929_v42 = vld [vmem:[%s24332_s0 + $0x140] sm:$0xff]   ;;  %v17930_v43 = vld [vmem:[%s24332_s0 + $0x148] sm:$0xff]   ;;  %v17931_v44 = vld [vmem:[%s24332_s0 + $0x150] sm:$0xff]  }
  0x10   :  { %v17932_v45 = vld [vmem:[%s24332_s0 + $0x158] sm:$0xff]   ;;  %v17963_v46 = vld [vmem:[%s24332_s0 + $0x830] sm:$0xff]   ;;  %v17933_v47 = vld [vmem:[%s24332_s0 + $0x160] sm:$0xff]  }
  0x11   :  { %v17965_v48 = vld [vmem:[%s24332_s0 + $0x838] sm:$0xff]   ;;  %17133 = vmatprep.mubr.msk.bf16.mxu1 %vm2078_vm0, %v17963_v46  ;;  %v17934_v49 = vld [vmem:[%s24332_s0 + $0x168] sm:$0xff]   ;;  %v17967_v50 = vld [vmem:[%s24332_s0 + $0x840] sm:$0xff]   ;;  %v8592_v46 = vlaneseq }
  0x12   :  { %16614 = vmatmul.mubr.msk.bf16.gmra.mrb[4].mxu0 %vm2078_vm0, %v17892_v5  ;;  %17134 = vmatmul.mubr.msk.bf16.vlgmr.msra.gmra.mrb[0].mxu1 %vm2078_vm0, %v17965_v48  ;;  %v17935_v51 = vld [vmem:[%s24332_s0 + $0x170] sm:$0xff]   ;;  %v17969_v52 = vld [vmem:[%s24332_s0 + $0x848] sm:$0xff]   ;;  %v17936_v53 = vld [vmem:[%s24332_s0 + $0x178] sm:$0xff]  }
  0x13   :  { %16617 = vmatprep.mubr.msk.bf16.mxu0 %vm2078_vm0, %v17893_v6  ;;  %17137 = vmatprep.mubr.msk.bf16.mxu1 %vm2078_vm0, %v17967_v50  ;;  %v17971_v54 = vld [vmem:[%s24332_s0 + $0x850] sm:$0xff]   ;;  %v17937_v55 = vld [vmem:[%s24332_s0 + $0x180] sm:$0xff]   ;;  %v17973_v56 = vld [vmem:[%s24332_s0 + $0x858] sm:$0xff]  }
  0x14   :  { %v17938_v57 = vld [vmem:[%s24332_s0 + $0x188] sm:$0xff]   ;;  %v17975_v58 = vld [vmem:[%s24332_s0 + $0x860] sm:$0xff]   ;;  %v17939_v59 = vld [vmem:[%s24332_s0 + $0x190] sm:$0xff]  }
  0x15   :  { %v17977_v60 = vld [vmem:[%s24332_s0 + $0x868] sm:$0xff]   ;;  %v17940_v61 = vld [vmem:[%s24332_s0 + $0x198] sm:$0xff]   ;;  %v17979_v62 = vld [vmem:[%s24332_s0 + $0x870] sm:$0xff]  }
  0x16   :  { %v17941_v63 = vld [vmem:[%s24332_s0 + $0x1a0] sm:$0xff]   ;;  %v17981_v0 = vld [vmem:[%s24332_s0 + $0x878] sm:$0xff]   ;;  %v17942_v1 = vld [vmem:[%s24332_s0 + $0x1a8] sm:$0xff]  }
  0x17   :  { %v17983_v2 = vld [vmem:[%s24332_s0 + $0x880] sm:$0xff]   ;;  %v17943_v3 = vld [vmem:[%s24332_s0 + $0x1b0] sm:$0xff]   ;;  %v17985_v4 = vld [vmem:[%s24332_s0 + $0x888] sm:$0xff]  }
  0x18   :  { %v17944_v6 = vld [vmem:[%s24332_s0 + $0x1b8] sm:$0xff]   ;;  %v18009_v50 = vld [vmem:[%s24333_s3 + $0x50] sm:$0xff]  }
  0x1a   :  { %16618 = vmatmul.mubr.msk.bf16.gmra.mrb[8].mxu0 %vm2078_vm0, %v17894_v7  ;;  %17138 = vmatmul.mubr.msk.bf16.gmra.mrb[4].mxu1 %vm2078_vm0, %v17969_v52 }
  0x1b   :  { %16621 = vmatprep.mubr.msk.bf16.mxu0 %vm2078_vm0, %v17895_v8  ;;  %17141 = vmatprep.mubr.msk.bf16.mxu1 %vm2078_vm0, %v17971_v54  ;;  %v17987_v8 = vld [vmem:[%s24332_s0 + $0x890] sm:$0xff]   ;;  %v18852_v54 = vand.u32 127, %v8592_v46 }
  0x1c   :  { %v18017_v46 = vld [vmem:[%s24332_s0 + $0x8f0] sm:$0xff]  }
  0x1d   :  { %24428 = vst [vmem:[#allocation2_spill] sm:$0xff] %v18852_v54  ;;  %vm8694_vm1 = vcmp.ge.s32.totalorder %v18852_v54, 6  ;;  %vm8695_vm2 = vcmp.lt.s32.totalorder %v18852_v54, 12  ;;  %vm8595_vm3 = vcmp.lt.s32.totalorder %v18852_v54, 6  ;;  %vm8890_vm5 = vcmp.ge.s32.totalorder %v18852_v54, 12 }
  0x1e   :  { %vm18980_vm4 = vmand %vm8694_vm1, %vm8695_vm2  ;;  %vm8891_vm6 = vcmp.lt.s32.totalorder %v18852_v54, 18  ;;  %vm9086_vm7 = vcmp.ge.s32.totalorder %v18852_v54, 18  ;;  %vm9087_vm8 = vcmp.lt.s32.totalorder %v18852_v54, 24  ;;  %vm9282_vm11 = vcmp.ge.s32.totalorder %v18852_v54, 24 }
  0x1f   :  { %vm19015_vm9 = vmpackc.low %vm18980_vm4, %vm18980_vm4  ;;  %vm9283_vm12 = vcmp.lt.s32.totalorder %v18852_v54, 30 }
  0x20   :  { %vm19028_vm10 = vmpackc.low %vm8595_vm3, %vm8595_vm3 }
  0x21   :  { %vm19077_vm13 = vmand %vm8890_vm5, %vm8891_vm6 }
  0x22   :  { %16622 = vmatmul.mubr.msk.bf16.gmra.mrb[12].mxu0 %vm2078_vm0, %v17896_v9  ;;  %17142 = vmatmul.mubr.msk.bf16.gmra.mrb[8].mxu1 %vm2078_vm0, %v17973_v56  ;;  %vm9088_vm14 = vmand %vm9086_vm7, %vm9087_vm8 }
  0x23   :  { %16625 = vmatprep.mubr.msk.bf16.mxu0 %vm2078_vm0, %v17897_v10  ;;  %17145 = vmatprep.mubr.msk.bf16.mxu1 %vm2078_vm0, %v17975_v58  ;;  %v17945_v10 = vld [vmem:[%s24332_s0 + $0x1c0] sm:$0xff]   ;;  %v17954_v58 = vld [vmem:[%s24332_s0 + $0x208] sm:$0xff]   ;;  %vm19103_vm15 = vmpackc.low %vm19077_vm13, %vm19077_vm13 }
  0x24   :  { %vm19110_vm1 = vmpackc.low %vm9088_vm14, %vm9088_vm14 }
  0x25   :  { %vm19121_vm2 = vmand %vm9282_vm11, %vm9283_vm12 }
  0x26   :  { %vm19146_vm3 = vmpackc.low %vm19121_vm2, %vm19121_vm2 }
  0x2a   :  { %16626 = vmatmul.mubr.msk.bf16.gmra.mrb[16].mxu0 %vm2078_vm0, %v17898_v11  ;;  %17146 = vmatmul.mubr.msk.bf16.gmra.mrb[12].mxu1 %vm2078_vm0, %v17977_v60  ;;  %v17989_v11 = vld [vmem:[%s24332_s0 + $0x898] sm:$0xff]  }
  0x2b   :  { %16629 = vmatprep.mubr.msk.bf16.mxu0 %vm2078_vm0, %v17899_v12  ;;  %17149 = vmatprep.mubr.msk.bf16.mxu1 %vm2078_vm0, %v17979_v62 }
  0x32   :  { %16630 = vmatmul.mubr.msk.bf16.gmra.mrb[20].mxu0 %vm2078_vm0, %v17900_v13  ;;  %17150 = vmatmul.mubr.msk.bf16.gmra.mrb[16].mxu1 %vm2078_vm0, %v17981_v0  ;;  %v17955_v0 = vld [vmem:[%s24332_s0 + $0x210] sm:$0xff]  }
  0x33   :  { %16633 = vmatprep.mubr.msk.bf16.mxu0 %vm2078_vm0, %v17901_v14  ;;  %17153 = vmatprep.mubr.msk.bf16.mxu1 %vm2078_vm0, %v17983_v2  ;;  %v17946_v14 = vld [vmem:[%s24332_s0 + $0x1c8] sm:$0xff]  }
  0x3a   :  { %16634 = vmatmul.mubr.msk.bf16.gmra.mrb[24].mxu0 %vm2078_vm0, %v17902_v15  ;;  %17154 = vmatmul.mubr.msk.bf16.gmra.mrb[20].mxu1 %vm2078_vm0, %v17985_v4  ;;  %v18011_v4 = vld [vmem:[%s24332_s0 + $0x8e0] sm:$0xff]  }
  0x3b   :  { %16637 = vmatprep.mubr.msk.bf16.mxu0 %vm2078_vm0, %v17903_v16  ;;  %17157 = vmatprep.mubr.msk.bf16.mxu1 %vm2078_vm0, %v17987_v8  ;;  %v17991_v16 = vld [vmem:[%s24332_s0 + $0x8a0] sm:$0xff]  }
  0x42   :  { %16638 = vmatmul.mubr.msk.bf16.gmra.mrb[28].mxu0 %vm2078_vm0, %v17904_v17  ;;  %17158 = vmatmul.mubr.msk.bf16.gmra.mrb[24].mxu1 %vm2078_vm0, %v17989_v11 }
  0x43   :  { %16641 = vmatprep.mubr.msk.bf16.mxu0 %vm2078_vm0, %v17905_v18  ;;  %v17947_v18 = vld [vmem:[%s24332_s0 + $0x1d0] sm:$0xff]   ;;  %17161 = vmatprep.mubr.msk.bf16.mxu1 %vm2078_vm0, %v17991_v16 }
  0x4a   :  { %16642 = vmatmul.mubr.msk.bf16.gmra.mrb[32].mxu0 %vm2078_vm0, %v17906_v19  ;;  %v17993_v19 = vld [vmem:[%s24332_s0 + $0x8a8] sm:$0xff]  }
  0x4b   :  { %16645 = vmatprep.mubr.msk.bf16.mxu0 %vm2078_vm0, %v17907_v20  ;;  %17162 = vmatmul.mubr.msk.bf16.gmra.mrb[28].mxu1 %vm2078_vm0, %v17993_v19 }
  0x52   :  { %16646 = vmatmul.mubr.msk.bf16.gmra.mrb[36].mxu0 %vm2078_vm0, %v17908_v21 }
  0x53   :  { %16649 = vmatprep.mubr.msk.bf16.mxu0 %vm2078_vm0, %v17909_v22 }
  0x5a   :  { %16650 = vmatmul.mubr.msk.bf16.gmra.mrb[40].mxu0 %vm2078_vm0, %v17910_v23  ;;  %v17948_v23 = vld [vmem:[%s24332_s0 + $0x1d8] sm:$0xff]  }
  0x5b   :  { %16653 = vmatprep.mubr.msk.bf16.mxu0 %vm2078_vm0, %v17911_v24  ;;  %v17995_v24 = vld [vmem:[%s24332_s0 + $0x8b0] sm:$0xff]  }
  0x5c   :  { %17165 = vmatprep.mubr.msk.bf16.mxu1 %vm2078_vm0, %v17995_v24 }
  0x62   :  { %16654 = vmatmul.mubr.msk.bf16.gmra.mrb[44].mxu0 %vm2078_vm0, %v17912_v25 }
  0x63   :  { %16657 = vmatprep.mubr.msk.bf16.mxu0 %vm2078_vm0, %v17913_v26  ;;  %v17949_v26 = vld [vmem:[%s24332_s0 + $0x1e0] sm:$0xff]  }
  0x6a   :  { %16658 = vmatmul.mubr.msk.bf16.gmra.mrb[48].mxu0 %vm2078_vm0, %v17914_v27  ;;  %v17997_v27 = vld [vmem:[%s24332_s0 + $0x8b8] sm:$0xff]  }
  0x6b   :  { %16661 = vmatprep.mubr.msk.bf16.mxu0 %vm2078_vm0, %v17915_v28  ;;  %17166 = vmatmul.mubr.msk.bf16.gmra.mrb[32].mxu1 %vm2078_vm0, %v17997_v27 }
  0x72   :  { %16662 = vmatmul.mubr.msk.bf16.gmra.mrb[52].mxu0 %vm2078_vm0, %v17916_v29 }
  0x73   :  { %16665 = vmatprep.mubr.msk.bf16.mxu0 %vm2078_vm0, %v17917_v30 }
  0x7a   :  { %16666 = vmatmul.mubr.msk.bf16.gmra.mrb[56].mxu0 %vm2078_vm0, %v17918_v31  ;;  %v17950_v31 = vld [vmem:[%s24332_s0 + $0x1e8] sm:$0xff]  }
  0x7b   :  { %16669 = vmatprep.mubr.msk.bf16.mxu0 %vm2078_vm0, %v17919_v32  ;;  %v17999_v32 = vld [vmem:[%s24332_s0 + $0x8c0] sm:$0xff]  }
  0x7c   :  { %17169 = vmatprep.mubr.msk.bf16.mxu1 %vm2078_vm0, %v17999_v32 }
  0x82   :  { %16670 = vmatmul.mubr.msk.bf16.gmra.mrb[60].mxu0 %vm2078_vm0, %v17920_v33 }
  0x83   :  { %16673 = vmatprep.mubr.msk.bf16.mxu0 %vm2078_vm0, %v17921_v34  ;;  %v17951_v34 = vld [vmem:[%s24332_s0 + $0x1f0] sm:$0xff]  }
  0x8a   :  { %16674 = vmatmul.mubr.msk.bf16.gmra.mrb[64].mxu0 %vm2078_vm0, %v17922_v35  ;;  %v18001_v35 = vld [vmem:[%s24332_s0 + $0x8c8] sm:$0xff]  }
  0x8b   :  { %16677 = vmatprep.mubr.msk.bf16.mxu0 %vm2078_vm0, %v17923_v36  ;;  %17170 = vmatmul.mubr.msk.bf16.gmra.mrb[36].mxu1 %vm2078_vm0, %v18001_v35 }
  0x92   :  { %16678 = vmatmul.mubr.msk.bf16.gmra.mrb[68].mxu0 %vm2078_vm0, %v17924_v37  ;;  %v18003_v37 = vld [vmem:[%s24333_s3 + $0x40] sm:$0xff]  }
  0x93   :  { %16681 = vmatprep.mubr.msk.bf16.mxu0 %vm2078_vm0, %v17925_v38  ;;  %17185 = vmatprep.subr.bf16.mxu1 %v18003_v37  ;;  %v18811_v38 = vld [vmem:[%s24334_s2] ss:$0 sm:$0xff] }
  0x94   :  { %17186 = vmatpush3.bf16.msra.mxu1 %v18003_v37 }
  0x9a   :  { %16682 = vmatmul.mubr.msk.bf16.gmra.mrb[72].mxu0 %vm2078_vm0, %v17926_v39  ;;  %v18004_v39 = vld [vmem:[%s24333_s3 + $0x48] sm:$0xff]  }
  0x9b   :  { %16685 = vmatprep.mubr.msk.bf16.mxu0 %vm2078_vm0, %v17927_v40  ;;  %17187 = vmatprep.subr.bf16.mxu1 %v18004_v39 }
  0x9c   :  { %17188 = vmatpush3.bf16.msra.mxu1 %v18004_v39 }
  0x9d   :  { %17189 = vmatprep.subr.bf16.mxu1 %v18009_v50 }
  0xa0   :  { %17190 = vmatpush3.bf16.msra.mxu1 %v18009_v50 }
  0xa2   :  { %16686 = vmatmul.mubr.msk.bf16.gmra.mrb[76].mxu0 %vm2078_vm0, %v17928_v41  ;;  %v17952_v41 = vld [vmem:[%s24332_s0 + $0x1f8] sm:$0xff]  }
  0xa3   :  { %16689 = vmatprep.mubr.msk.bf16.mxu0 %vm2078_vm0, %v17929_v42 }
  0xaa   :  { %16690 = vmatmul.mubr.msk.bf16.gmra.mrb[80].mxu0 %vm2078_vm0, %v17930_v43  ;;  %v18005_v43 = vld [vmem:[%s24332_s0 + $0x8d0] sm:$0xff]  }
  0xab   :  { %16693 = vmatprep.mubr.msk.bf16.mxu0 %vm2078_vm0, %v17931_v44  ;;  %17173 = vmatprep.mubr.msk.bf16.mxu1 %vm2078_vm0, %v18005_v43 }
  0xb2   :  { %16694 = vmatmul.mubr.msk.bf16.gmra.mrb[84].mxu0 %vm2078_vm0, %v17932_v45  ;;  %v17953_v45 = vld [vmem:[%s24332_s0 + $0x200] sm:$0xff]  }
  0xb3   :  { %16697 = vmatprep.mubr.msk.bf16.mxu0 %vm2078_vm0, %v17933_v47  ;;  %v18007_v47 = vld [vmem:[%s24332_s0 + $0x8d8] sm:$0xff]  }
  0xb4   :  { %17174 = vmatmul.mubr.msk.bf16.gmra.mrb[40].mxu1 %vm2078_vm0, %v18007_v47 }
  0xb5   :  { %17177 = vmatprep.mubr.msk.bf16.mxu1 %vm2078_vm0, %v18011_v4 }
  0xba   :  { %16698 = vmatmul.mubr.msk.bf16.gmra.mrb[88].mxu0 %vm2078_vm0, %v17934_v49 }
  0xbb   :  { %16701 = vmatprep.mubr.msk.bf16.mxu0 %vm2078_vm0, %v17935_v51 }
  0xc2   :  { %16702 = vmatmul.mubr.msk.bf16.gmra.mrb[92].mxu0 %vm2078_vm0, %v17936_v53 }
  0xc3   :  { %16705 = vmatprep.mubr.msk.bf16.mxu0 %vm2078_vm0, %v17937_v55 }
  0xca   :  { %16706 = vmatmul.mubr.msk.bf16.gmra.mrb[96].mxu0 %vm2078_vm0, %v17938_v57 }
  0xcb   :  { %16709 = vmatprep.mubr.msk.bf16.mxu0 %vm2078_vm0, %v17939_v59  ;;  %v18010_v59 = vld [vmem:[%s24333_s3 + $0x58] sm:$0xff]  }
  0xcc   :  { %17191 = vmatprep.subr.bf16.mxu1 %v18010_v59 }
  0xcd   :  { %17192 = vmatpush3.bf16.msra.mxu1 %v18010_v59 }
  0xd2   :  { %16710 = vmatmul.mubr.msk.bf16.gmra.mrb[100].mxu0 %vm2078_vm0, %v17940_v61 }
  0xd3   :  { %16713 = vmatprep.mubr.msk.bf16.mxu0 %vm2078_vm0, %v17941_v63 }
  0xda   :  { %16714 = vmatmul.mubr.msk.bf16.gmra.mrb[104].mxu0 %vm2078_vm0, %v17942_v1 }
  0xdb   :  { %16717 = vmatprep.mubr.msk.bf16.mxu0 %vm2078_vm0, %v17943_v3 }
  0xdd   :  { %v18710_v5 = vpop.f32.mrb[0].mxu0 }
  0xde   :  { %v18715_v7 = vpop.f32.mrb[1].mxu0  ;;  %v2986_v48 = vadd.f32 %v18710_v5, %v18811_v38 }
  0xdf   :  { %v18720_v9 = vpop.f32.mrb[2].mxu0  ;;  %v2978_v51 = vadd.f32 %v18811_v38, %v18715_v7 }
  0xe0   :  { %v18728_v12 = vpop.f32.mrb[3].mxu0  ;;  %v2989_v52 = vadd.f32 %v18720_v9, %v18811_v38  ;;  %v5282_v55 = vmax.f32 %v2986_v48, 0.0  ;;  %v18013_v9 = vld [vmem:[%s24332_s0 + $0x8e8] sm:$0xff]  }
  0xe1   :  { %v2981_v53 = vadd.f32 %v18811_v38, %v18728_v12  ;;  %v5280_v60 = vmax.f32 %v2978_v51, 0.0  ;;  %17178 = vmatmul.mubr.msk.bf16.gmra.mrb[44].mxu1 %vm2078_vm0, %v18013_v9 }
  0xe2   :  { %16718 = vmatmul.mubr.msk.bf16.gmra.mrb[108].mxu0 %vm2078_vm0, %v17944_v6  ;;  %v5283_v5 = vmax.f32 %v2989_v52, 0.0  ;;  %v17957_v52 = vld [vmem:[%s24332_s0 + $0x220] sm:$0xff]   ;;  %17181 = vmatprep.mubr.msk.bf16.mxu1 %vm2078_vm0, %v18017_v46 }
  0xe3   :  { %16721 = vmatprep.mubr.msk.bf16.mxu0 %vm2078_vm0, %v17945_v10  ;;  %v5281_v6 = vmax.f32 %v2981_v53, 0.0  ;;  %v18019_v53 = vld [vmem:[%s24332_s0 + $0x8f8] sm:$0xff]  }
  0xe5   :  { %v18734_v13 = vpop.f32.mrb[4].mxu0 }
  0xe6   :  { %v18739_v15 = vpop.f32.mrb[5].mxu0  ;;  %v3002_v56 = vadd.f32 %v18734_v13, %v18811_v38 }
  0xe7   :  { %v18744_v17 = vpop.f32.mrb[6].mxu0  ;;  %v2994_v57 = vadd.f32 %v18811_v38, %v18739_v15 }
  0xe8   :  { %v18752_v20 = vpop.f32.mrb[7].mxu0  ;;  %v3005_v61 = vadd.f32 %v18744_v17, %v18811_v38  ;;  %v5286_v10 = vmax.f32 %v3002_v56, 0.0 }
  0xe9   :  { %v2997_v62 = vadd.f32 %v18811_v38, %v18752_v20  ;;  %v5284_v11 = vmax.f32 %v2994_v57, 0.0  ;;  %17182 = vmatmul.mubr.msk.bf16.gmra.mrb[48].mxu1 %vm2078_vm0, %v18019_v53 }
  0xea   :  { %16722 = vmatmul.mubr.msk.bf16.gmra.mrb[112].mxu0 %vm2078_vm0, %v17946_v14  ;;  %v18015_v14 = vld [vmem:[%s24333_s3 + $0x60] sm:$0xff]   ;;  %v5287_v15 = vmax.f32 %v3005_v61, 0.0 }
  0xeb   :  { %16725 = vmatprep.mubr.msk.bf16.mxu0 %vm2078_vm0, %v17947_v18  ;;  %v5285_v16 = vmax.f32 %v2997_v62, 0.0  ;;  %v18902_v18 = vpack.c.bf16 %v5282_v55, %v5282_v55  ;;  %17193 = vmatprep.subr.bf16.mxu1 %v18015_v14 }
  0xec   :  { %17194 = vmatpush3.bf16.msra.mxu1 %v18015_v14  ;;  %v18926_v32 = vpack.c.bf16 %v5287_v15, %v5287_v15  ;;  %v17958_v14 = vld [vmem:[%s24332_s0 + $0x228] sm:$0xff]  }
  0xed   :  { %v18758_v21 = vpop.f32.mrb[8].mxu0 }
  0xee   :  { %v18760_v22 = vpop.f32.mrb[9].mxu0  ;;  %v3018_v1 = vadd.f32 %v18758_v21, %v18811_v38  ;;  %v18905_v21 = vpack.c.bf16 %v5280_v60, %v5280_v60 }
  0xef   :  { %v18768_v25 = vpop.f32.mrb[10].mxu0  ;;  %v3010_v2 = vadd.f32 %v18811_v38, %v18760_v22  ;;  %v18907_v22 = vpack.c.bf16 %v5283_v5, %v5283_v5 }
  0xf0   :  { %v18776_v28 = vpop.f32.mrb[11].mxu0  ;;  %v3021_v7 = vadd.f32 %v18768_v25, %v18811_v38  ;;  %v5290_v19 = vmax.f32 %v3018_v1, 0.0  ;;  %v18912_v25 = vpack.c.bf16 %v5281_v6, %v5281_v6 }
  0xf1   :  { %v3013_v12 = vadd.f32 %v18811_v38, %v18776_v28  ;;  %v5288_v20 = vmax.f32 %v3010_v2, 0.0 }
  0xf2   :  { %16726 = vmatmul.mubr.msk.bf16.gmra.mrb[116].mxu0 %vm2078_vm0, %v17948_v23  ;;  %v5291_v23 = vmax.f32 %v3021_v7, 0.0  ;;  %v18933_v39 = vpack.c.bf16 %v5290_v19, %v5290_v19 }
  0xf3   :  { %16729 = vmatprep.mubr.msk.bf16.mxu0 %vm2078_vm0, %v17949_v26  ;;  %v18914_v26 = vpack.c.bf16 %v5286_v10, %v5286_v10  ;;  %v5289_v27 = vmax.f32 %v3013_v12, 0.0 }
  0xf4   :  { %v18941_v47 = vpack.c.bf16 %v5291_v23, %v5291_v23 }
  0xf5   :  { %v18782_v29 = vpop.f32.mrb[12].mxu0  ;;  %v18952_v55 = vpack.c.bf16 %v5289_v27, %v5289_v27 }
  0xf6   :  { %v18784_v30 = vpop.f32.mrb[13].mxu0  ;;  %v3034_v17 = vadd.f32 %v18782_v29, %v18811_v38  ;;  %v17956_v29 = vld [vmem:[%s24332_s0 + $0x218] sm:$0xff]  }
  0xf7   :  { %v18792_v33 = vpop.f32.mrb[14].mxu0  ;;  %v3026_v24 = vadd.f32 %v18811_v38, %v18784_v30  ;;  %v18924_v30 = vpack.c.bf16 %v5284_v11, %v5284_v11 }
  0xf8   :  { %v18800_v36 = vpop.f32.mrb[15].mxu0  ;;  %v3037_v28 = vadd.f32 %v18792_v33, %v18811_v38  ;;  %v18931_v33 = vpack.c.bf16 %v5285_v16, %v5285_v16 }
  0xf9   :  { %v3029_v35 = vadd.f32 %v18811_v38, %v18800_v36  ;;  %v5292_v36 = vmax.f32 %v3026_v24, 0.0 }
  0xfa   :  { %16730 = vmatmul.mubr.msk.bf16.gmra.mrb[120].mxu0 %vm2078_vm0, %v17950_v31  ;;  %v18016_v31 = vld [vmem:[%s24333_s3 + $0x68] sm:$0xff]   ;;  %v5295_v56 = vmax.f32 %v3037_v28, 0.0 }
  0xfb   :  { %16733 = vmatprep.mubr.msk.bf16.mxu0 %vm2078_vm0, %v17951_v34  ;;  %v5294_v34 = vmax.f32 %v3034_v17, 0.0  ;;  %17195 = vmatprep.subr.bf16.mxu1 %v18016_v31  ;;  %v5293_v60 = vmax.f32 %v3029_v35, 0.0  ;;  %v18985_v10 = vpack.c.bf16 %v5292_v36, %v5292_v36 }
  0xfc   :  { %17196 = vmatpush3.bf16.msra.mxu1 %v18016_v31  ;;  %v18987_v11 = vpack.c.bf16 %v5295_v56, %v5295_v56 }
  0xfd   :  { %v18817_v40 = vpop.f32.mrb[16].mxu0  ;;  %v18965_v1 = vpack.c.bf16 %v5294_v34, %v5294_v34  ;;  %v18995_v15 = vpack.c.bf16 %v5293_v60, %v5293_v60 }
  0xfe   :  { %v18822_v42 = vpop.f32.mrb[17].mxu0  ;;  %v3050_v48 = vadd.f32 %v18817_v40, %v18811_v38  ;;  %v18021_v40 = vld [vmem:[%s24333_s3 + $0x70] sm:$0xff]  }
  0xff   :  { %v18827_v44 = vpop.f32.mrb[18].mxu0  ;;  %v18961_v61 = vadd.f32 %v18811_v38, %v18822_v42  ;;  %17197 = vmatprep.subr.bf16.mxu1 %v18021_v40 }
 0x100   :  { %v18837_v49 = vpop.f32.mrb[19].mxu0  ;;  %v18969_v2 = vadd.f32 %v18827_v44, %v18811_v38  ;;  %v5298_v6 = vmax.f32 %v3050_v48, 0.0  ;;  %17198 = vmatpush3.bf16.msra.mxu1 %v18021_v40 }
 0x101   :  { %v18974_v42 = vadd.f32 %v18811_v38, %v18837_v49  ;;  %v5296_v16 = vmax.f32 %v18961_v61, 0.0 }
 0x102   :  { %16734 = vmatmul.mubr.msk.bf16.gmra.mrb[124].mxu0 %vm2078_vm0, %v17952_v41  ;;  %v18935_v41 = vpack.c.bf16 %v5288_v20, %v5288_v20  ;;  %v5299_v23 = vmax.f32 %v18969_v2, 0.0 }
 0x103   :  { %16737 = vmatprep.mubr.msk.bf16.mxu0 %vm2078_vm0, %v17953_v45  ;;  %v5297_v31 = vmax.f32 %v18974_v42, 0.0 }
 0x104   :  { %v19059_v9 = vpack.c.bf16 %v5299_v23, %v5299_v23 }
 0x105   :  { %v18868_v63 = vpop.f32.mrb[20].mxu0 }
 0x106   :  { %v18877_v3 = vpop.f32.mrb[21].mxu0  ;;  %v3066_v24 = vadd.f32 %v18868_v63, %v18811_v38 }
 0x107   :  { %v18884_v8 = vpop.f32.mrb[22].mxu0 }
 0x108   :  { %v18891_v13 = vpop.f32.mrb[23].mxu0  ;;  %v5302_v53 = vmax.f32 %v3066_v24, 0.0 }
 0x10a   :  { %16738 = vmatmul.mubr.msk.bf16.gmra.mrb[128].mxu0 %vm2078_vm0, %v17954_v58 }
 0x10b   :  { %16741 = vmatprep.mubr.msk.bf16.mxu0 %vm2078_vm0, %v17955_v0 }
 0x10d   :  { %v16635_v37 = vpop.f32.mrb[24].mxu0 }
 0x10e   :  { %v3082_v43 = vadd.f32 %v16635_v37, %v18811_v38  ;;  %v3073_v45 = vpop.f32.mrb[25].mxu0 }
 0x10f   :  { %v3074_v50 = vadd.f32 %v18811_v38, %v3073_v45  ;;  %v16636_v51 = vpop.f32.mrb[26].mxu0 }
 0x110   :  { %v5306_v57 = vmax.f32 %v3082_v43, 0.0  ;;  %v3085_v58 = vadd.f32 %v16636_v51, %v18811_v38  ;;  %v3076_v59 = vpop.f32.mrb[27].mxu0 }
 0x111   :  { %v5304_v62 = vmax.f32 %v3074_v50, 0.0  ;;  %v3077_v0 = vadd.f32 %v18811_v38, %v3076_v59 }
 0x112   :  { %v15307_v4 = vpack.c.bf16 %v5306_v57, %v5306_v57  ;;  %v5307_v5 = vmax.f32 %v3085_v58, 0.0  ;;  %16742 = vmatmul.mubr.msk.bf16.gmra.mrb[132].mxu0 %vm2078_vm0, %v17956_v29  ;;  %v19009_v29 = vpack.c.bf16 %v5298_v6, %v5298_v6 }
 0x113   :  { %v15305_v7 = vpack.c.bf16 %v5304_v62, %v5304_v62  ;;  %v5305_v44 = vmax.f32 %v3077_v0, 0.0  ;;  %16745 = vmatprep.mubr.msk.bf16.mxu0 %vm2078_vm0, %v17957_v52  ;;  %v18022_v52 = vld [vmem:[%s24333_s3 + $0x78] sm:$0xff]  }
 0x114   :  { %v8162_v49 = vmax.bf16 %v15307_v4, %v18902_v18  ;;  %v15308_v12 = vpack.c.bf16 %v5307_v5, %v5307_v5  ;;  %v17959_v18 = vld [vmem:[%s24332_s0 + $0x230] sm:$0xff]   ;;  %17199 = vmatprep.subr.bf16.mxu1 %v18022_v52  ;;  %v17960_v4 = vld [vmem:[%s24332_s0 + $0x238] sm:$0xff]  }
 0x115   :  { %v8160_v17 = vmax.bf16 %v15305_v7, %v18905_v21  ;;  %v15306_v19 = vpack.c.bf16 %v5305_v44, %v5305_v44  ;;  %v16639_v20 = vpop.f32.mrb[28].mxu0  ;;  %17200 = vmatpush3.bf16.msra.mxu1 %v18022_v52  ;;  %v19061_v44 = vpack.c.bf16 %v5297_v31, %v5297_v31 }
 0x116   :  { %v8163_v27 = vmax.bf16 %v15308_v12, %v18907_v22  ;;  %v3098_v28 = vadd.f32 %v16639_v20, %v18811_v38  ;;  %v3089_v21 = vpop.f32.mrb[29].mxu0  ;;  %v3058_v22 = vadd.f32 %v18811_v38, %v18877_v3 }
 0x117   :  { %v8161_v35 = vmax.bf16 %v15306_v19, %v18912_v25  ;;  %v3090_v63 = vadd.f32 %v18811_v38, %v3089_v21  ;;  %v16640_v37 = vpop.f32.mrb[30].mxu0  ;;  %v3069_v25 = vadd.f32 %v18884_v8, %v18811_v38  ;;  %v19047_v8 = vadd.f32 %v18811_v38, %v18891_v13 }
 0x118   :  { %v19023_v43 = vmax.bf16 %v8163_v27, %v8162_v49  ;;  %v5310_v46 = vmax.f32 %v3098_v28, 0.0  ;;  %v3101_v36 = vadd.f32 %v16640_v37, %v18811_v38  ;;  %v3092_v48 = vpop.f32.mrb[31].mxu0  ;;  %v5300_v61 = vmax.f32 %v3058_v22, 0.0 }
 0x119   :  { %v8448_v50 = vmax.bf16 %v8161_v35, %v8160_v17  ;;  %v5308_v51 = vmax.f32 %v3090_v63, 0.0  ;;  %v3093_v3 = vadd.f32 %v18811_v38, %v3092_v48  ;;  %v19056_v13 = vpack.c.bf16 %v5296_v16, %v5296_v16 }
 0x11a   :  { %v8698_v56 = vsel %vm19015_vm9, %v19023_v43, 0  ;;  %v15311_v57 = vpack.c.bf16 %v5310_v46, %v5310_v46  ;;  %v5311_v58 = vmax.f32 %v3101_v36, 0.0  ;;  %16746 = vmatmul.mubr.msk.bf16.gmra.mrb[136].mxu0 %vm2078_vm0, %v17958_v14  ;;  %v5303_v5 = vmax.f32 %v3069_v25, 0.0  ;;  %v17961_v14 = vld [vmem:[%s24332_s0 + $0x240] sm:$0xff]  }
 0x11b   :  { %v8598_v59 = vsel %vm19028_vm10, %v8448_v50, 0  ;;  %v15309_v40 = vpack.c.bf16 %v5308_v51, %v5308_v51  ;;  %v5309_v60 = vmax.f32 %v3093_v3, 0.0  ;;  %16749 = vmatprep.mubr.msk.bf16.mxu0 %vm2078_vm0, %v17959_v18  ;;  %v19068_v16 = vpack.c.bf16 %v5302_v53, %v5302_v53 }
 0x11c   :  { %v8794_v62 = vadd.bf16 %v8698_v56, %v8598_v59  ;;  %v8166_v0 = vmax.bf16 %v15311_v57, %v18914_v26  ;;  %v15312_v2 = vpack.c.bf16 %v5311_v58, %v5311_v58  ;;  %v5301_v17 = vmax.f32 %v19047_v8, 0.0 }
 0x11d   :  { %v8164_v6 = vmax.bf16 %v15309_v40, %v18924_v30  ;;  %v15310_v42 = vpack.c.bf16 %v5309_v60, %v5309_v60  ;;  %v16643_v7 = vpop.f32.mrb[32].mxu0  ;;  %v19081_v18 = vpack.c.bf16 %v5300_v61, %v5300_v61  ;;  %v8599_v63 = vsel %vm19028_vm10, %v19023_v43, 0 }
 0x11e   :  { %v8167_v49 = vmax.bf16 %v15312_v2, %v18926_v32  ;;  %v3114_v26 = vadd.f32 %v16643_v7, %v18811_v38  ;;  %v3105_v12 = vpop.f32.mrb[33].mxu0  ;;  %v17962_v2 = vld [vmem:[%s24332_s0 + $0x248] sm:$0xff]  }
 0x11f   :  { %v8165_v30 = vmax.bf16 %v15310_v42, %v18931_v33  ;;  %v3106_v19 = vadd.f32 %v18811_v38, %v3105_v12  ;;  %v16644_v20 = vpop.f32.mrb[34].mxu0  ;;  %v19090_v33 = vpack.c.bf16 %v5303_v5, %v5303_v5  ;;  %v19136_v5 = vpack.c.bf16 %v5301_v17, %v5301_v17 }
 0x120   :  { %v19083_v23 = vmax.bf16 %v8167_v49, %v8166_v0  ;;  %v5314_v24 = vmax.f32 %v3114_v26, 0.0  ;;  %v3117_v27 = vadd.f32 %v16644_v20, %v18811_v38  ;;  %v3108_v28 = vpop.f32.mrb[35].mxu0 }
 0x121   :  { %v8450_v21 = vmax.bf16 %v8165_v30, %v8164_v6  ;;  %v5312_v31 = vmax.f32 %v3106_v19, 0.0  ;;  %v3109_v35 = vadd.f32 %v18811_v38, %v3108_v28 }
 0x122   :  { %v8700_v37 = vsel %vm19015_vm9, %v19083_v23, 0  ;;  %v15315_v22 = vpack.c.bf16 %v5314_v24, %v5314_v24  ;;  %v5315_v46 = vmax.f32 %v3117_v27, 0.0  ;;  %16750 = vmatmul.mubr.msk.bf16.gmra.mrb[140].mxu0 %vm2078_vm0, %v17960_v4  ;;  %v8601_v30 = vsel %vm19028_vm10, %v19083_v23, 0 }
 0x123   :  { %v8600_v48 = vsel %vm19028_vm10, %v8450_v21, 0  ;;  %v15313_v25 = vpack.c.bf16 %v5312_v31, %v5312_v31  ;;  %v5313_v43 = vmax.f32 %v3109_v35, 0.0  ;;  %16753 = vmatprep.mubr.msk.bf16.mxu0 %vm2078_vm0, %v17961_v14  ;;  %v8699_v51 = vsel %vm19015_vm9, %v8450_v21, 0 }
 0x124   :  { %v8796_v3 = vadd.bf16 %v8700_v37, %v8600_v48  ;;  %v8170_v52 = vmax.bf16 %v15315_v22, %v18933_v39  ;;  %v15316_v53 = vpack.c.bf16 %v5315_v46, %v5315_v46  ;;  %v8795_v57 = vadd.bf16 %v8699_v51, %v8599_v63 }
 0x125   :  { %v8168_v58 = vmax.bf16 %v15313_v25, %v18935_v41  ;;  %v15314_v8 = vpack.c.bf16 %v5313_v43, %v5313_v43  ;;  %v16647_v59 = vpop.f32.mrb[36].mxu0  ;;  %v8894_v40 = vsel %vm19103_vm15, %v8450_v21, 0  ;;  %v8895_v39 = vsel %vm19103_vm15, %v19083_v23, 0 }
 0x126   :  { %v8171_v60 = vmax.bf16 %v15316_v53, %v18941_v47  ;;  %v3130_v61 = vadd.f32 %v16647_v59, %v18811_v38  ;;  %v3121_v0 = vpop.f32.mrb[37].mxu0  ;;  %v8990_v4 = vadd.bf16 %v8894_v40, %v8794_v62  ;;  %v8991_v41 = vadd.bf16 %v8895_v39, %v8795_v57  ;;  %v17964_v47 = vld [vmem:[%s24332_s0 + $0x250] sm:$0xff]  }
 0x127   :  { %v8169_v6 = vmax.bf16 %v15314_v8, %v18952_v55  ;;  %v3122_v42 = vadd.f32 %v18811_v38, %v3121_v0  ;;  %v16648_v7 = vpop.f32.mrb[38].mxu0  ;;  %v9090_v62 = vsel %vm19110_vm1, %v19083_v23, 0 }
 0x128   :  { %v19153_v26 = vmax.bf16 %v8171_v60, %v8170_v52  ;;  %v5318_v55 = vmax.f32 %v3130_v61, 0.0  ;;  %v3133_v12 = vadd.f32 %v16648_v7, %v18811_v38  ;;  %v3124_v14 = vpop.f32.mrb[39].mxu0  ;;  %v9186_v17 = vadd.bf16 %v9090_v62, %v8990_v4  ;;  %v17968_v60 = vld [vmem:[%s24332_s0 + $0x260] sm:$0xff]  }
 0x129   :  { %v19159_v19 = vmax.bf16 %v8169_v6, %v8168_v58  ;;  %v5316_v20 = vmax.f32 %v3122_v42, 0.0  ;;  %v3125_v32 = vadd.f32 %v18811_v38, %v3124_v14  ;;  %v17966_v58 = vld [vmem:[%s24332_s0 + $0x258] sm:$0xff]  }
 0x12a   :  { %v15319_v24 = vpack.c.bf16 %v5318_v55, %v5318_v55  ;;  %v5319_v27 = vmax.f32 %v3133_v12, 0.0  ;;  %16754 = vmatmul.mubr.msk.bf16.gmra.mrb[144].mxu0 %vm2078_vm0, %v17962_v2  ;;  %v9287_v28 = vsel %vm19146_vm3, %v19153_v26, 0  ;;  %v8897_v21 = vsel %vm19103_vm15, %v19153_v26, 0 }
 0x12b   :  { %v15317_v31 = vpack.c.bf16 %v5316_v20, %v5316_v20  ;;  %v5317_v35 = vmax.f32 %v3125_v32, 0.0  ;;  %16757 = vmatprep.mubr.msk.bf16.mxu0 %vm2078_vm0, %v17964_v47  ;;  %v9091_v23 = vsel %vm19110_vm1, %v19159_v19, 0  ;;  %v9286_v63 = vsel %vm19146_vm3, %v19159_v19, 0 }
 0x12c   :  { %v8174_v37 = vmax.bf16 %v15319_v24, %v18965_v1  ;;  %v15320_v22 = vpack.c.bf16 %v5319_v27, %v5319_v27  ;;  %v9187_v46 = vadd.bf16 %v9091_v23, %v8991_v41  ;;  %v19177_v48 = vadd.bf16 %v9286_v63, %v9186_v17 }
 0x12d   :  { %v8172_v25 = vmax.bf16 %v15317_v31, %v18985_v10  ;;  %v15318_v43 = vpack.c.bf16 %v5317_v35, %v5317_v35  ;;  %v16651_v51 = vpop.f32.mrb[40].mxu0  ;;  %v8701_v52 = vsel %vm19015_vm9, %v19159_v19, 0  ;;  %v8896_v53 = vsel %vm19103_vm15, %v19159_v19, 0 }
 0x12e   :  { %24445 = vst [vmem:[#allocation3_spill] sm:$0xff] %v19177_v48  ;;  %v8175_v56 = vmax.bf16 %v15320_v22, %v18987_v11  ;;  %v3146_v1 = vadd.f32 %v16651_v51, %v18811_v38  ;;  %v3137_v57 = vpop.f32.mrb[41].mxu0  ;;  %v19191_v10 = vadd.bf16 %v9287_v28, %v9187_v46  ;;  %v8797_v8 = vadd.bf16 %v8701_v52, %v8601_v30  ;;  %v17970_v46 = vld [vmem:[%s24332_s0 + $0x268] sm:$0xff]  }
 0x12f   :  { %v8173_v59 = vmax.bf16 %v15318_v43, %v18995_v15  ;;  %v3138_v40 = vadd.f32 %v18811_v38, %v3137_v57  ;;  %v16652_v39 = vpop.f32.mrb[42].mxu0  ;;  %v8992_v11 = vadd.bf16 %v8896_v53, %v8796_v3  ;;  %v9092_v61 = vsel %vm19110_vm1, %v19153_v26, 0 }
 0x130   :  { %24446 = vst [vmem:[#allocation4_spill] sm:$0xff] %v19191_v10  ;;  %v19201_v0 = vmax.bf16 %v8175_v56, %v8174_v37  ;;  %v5322_v2 = vmax.f32 %v3146_v1, 0.0  ;;  %v3149_v4 = vadd.f32 %v16652_v39, %v18811_v38  ;;  %v3140_v41 = vpop.f32.mrb[43].mxu0  ;;  %v8993_v47 = vadd.bf16 %v8897_v21, %v8797_v8 }
 0x131   :  { %v19206_v6 = vmax.bf16 %v8173_v59, %v8172_v25  ;;  %v5320_v42 = vmax.f32 %v3138_v40, 0.0  ;;  %v3141_v7 = vadd.f32 %v18811_v38, %v3140_v41  ;;  %v9188_v55 = vadd.bf16 %v9092_v61, %v8992_v11 }
 0x132   :  { %v15323_v3 = vpack.c.bf16 %v5322_v2, %v5322_v2  ;;  %v5323_v62 = vmax.f32 %v3149_v4, 0.0  ;;  %16758 = vmatmul.mubr.msk.bf16.gmra.mrb[148].mxu0 %vm2078_vm0, %v17966_v58  ;;  %v9289_v12 = vsel %vm19146_vm3, %v19201_v0, 0  ;;  %v8602_v23 = vsel %vm19028_vm10, %v19159_v19, 0 }
 0x133   :  { %v15321_v14 = vpack.c.bf16 %v5320_v42, %v5320_v42  ;;  %v5321_v17 = vmax.f32 %v3141_v7, 0.0  ;;  %16761 = vmatprep.mubr.msk.bf16.mxu0 %vm2078_vm0, %v17968_v60  ;;  %v9093_v30 = vsel %vm19110_vm1, %v19206_v6, 0  ;;  %v9288_v20 = vsel %vm19146_vm3, %v19206_v6, 0 }
 0x134   :  { %v8178_v32 = vmax.bf16 %v15323_v3, %v19009_v29  ;;  %v15324_v24 = vpack.c.bf16 %v5323_v62, %v5323_v62  ;;  %v9189_v27 = vadd.bf16 %v9093_v30, %v8993_v47  ;;  %v19221_v28 = vadd.bf16 %v9288_v20, %v9188_v55 }
 0x135   :  { %v8176_v21 = vmax.bf16 %v15321_v14, %v19056_v13  ;;  %v15322_v31 = vpack.c.bf16 %v5321_v17, %v5321_v17  ;;  %v16655_v35 = vpop.f32.mrb[44].mxu0  ;;  %v8603_v63 = vsel %vm19028_vm10, %v19153_v26, 0  ;;  %v8702_v25 = vsel %vm19015_vm9, %v19153_v26, 0 }
 0x136   :  { %24447 = vst [vmem:[#allocation5_spill] sm:$0xff] %v19221_v28  ;;  %v8179_v37 = vmax.bf16 %v15324_v24, %v19059_v9  ;;  %v3162_v29 = vadd.f32 %v16655_v35, %v18811_v38  ;;  %v3153_v22 = vpop.f32.mrb[45].mxu0  ;;  %v19235_v13 = vadd.bf16 %v9289_v12, %v9189_v27  ;;  %v17972_v9 = vld [vmem:[%s24332_s0 + $0x270] sm:$0xff]   ;;  %v8703_v52 = vsel %vm19015_vm9, %v19206_v6, 0 }
 0x137   :  { %v8177_v19 = vmax.bf16 %v15322_v31, %v19061_v44  ;;  %v3154_v43 = vadd.f32 %v18811_v38, %v3153_v22  ;;  %v16656_v51 = vpop.f32.mrb[46].mxu0  ;;  %v8798_v53 = vadd.bf16 %v8702_v25, %v8602_v23  ;;  %v8799_v40 = vadd.bf16 %v8703_v52, %v8603_v63 }
 0x138   :  { %24448 = vst [vmem:[#allocation6_spill] sm:$0xff] %v19235_v13  ;;  %v19248_v56 = vmax.bf16 %v8179_v37, %v8178_v32  ;;  %v5326_v1 = vmax.f32 %v3162_v29, 0.0  ;;  %v3165_v57 = vadd.f32 %v16656_v51, %v18811_v38  ;;  %v3156_v26 = vpop.f32.mrb[47].mxu0  ;;  %v8898_v11 = vsel %vm19103_vm15, %v19206_v6, 0  ;;  %v18192_v13 = vld [vmem:[%s24333_s3 + $0x38] sm:$0xff]  }
 0x139   :  { %v8456_v58 = vmax.bf16 %v8177_v19, %v8176_v21  ;;  %v5324_v8 = vmax.f32 %v3154_v43, 0.0  ;;  %v3157_v59 = vadd.f32 %v18811_v38, %v3156_v26  ;;  %v8899_v61 = vsel %vm19103_vm15, %v19201_v0, 0 }
 0x13a   :  { %v15327_v39 = vpack.c.bf16 %v5326_v1, %v5326_v1  ;;  %v5327_v60 = vmax.f32 %v3165_v57, 0.0  ;;  %16762 = vmatmul.mubr.msk.bf16.gmra.mrb[152].mxu0 %vm2078_vm0, %v17970_v46  ;;  %v8994_v41 = vadd.bf16 %v8898_v11, %v8798_v53  ;;  %v8995_v42 = vadd.bf16 %v8899_v61, %v8799_v40 }
 0x13b   :  { %v15325_v2 = vpack.c.bf16 %v5324_v8, %v5324_v8  ;;  %v5325_v4 = vmax.f32 %v3157_v59, 0.0  ;;  %16765 = vmatprep.mubr.msk.bf16.mxu0 %vm2078_vm0, %v17972_v9  ;;  %v9094_v3 = vsel %vm19110_vm1, %v19201_v0, 0  ;;  %v9095_v62 = vsel %vm19110_vm1, %v8456_v58, 0  ;;  %v17980_v59 = vld [vmem:[%s24332_s0 + $0x290] sm:$0xff]  }
 0x13c   :  { %v8182_v7 = vmax.bf16 %v15327_v39, %v19068_v16  ;;  %v15328_v47 = vpack.c.bf16 %v5327_v60, %v5327_v60  ;;  %v9190_v17 = vadd.bf16 %v9094_v3, %v8994_v41  ;;  %v9191_v30 = vadd.bf16 %v9095_v62, %v8995_v42  ;;  %v17974_v16 = vld [vmem:[%s24332_s0 + $0x278] sm:$0xff]  }
 0x13d   :  { %v8180_v55 = vmax.bf16 %v15325_v2, %v19081_v18  ;;  %v15326_v12 = vpack.c.bf16 %v5325_v4, %v5325_v4  ;;  %v19269_v14 = vpop.f32.mrb[48].mxu0  ;;  %v9290_v24 = vsel %vm19146_vm3, %v8456_v58, 0  ;;  %v9291_v18 = vsel %vm19146_vm3, %v19248_v56, 0  ;;  %v17982_v42 = vld [vmem:[%s24332_s0 + $0x298] sm:$0xff]  }
 0x13e   :  { %v8183_v20 = vmax.bf16 %v15328_v47, %v19090_v33  ;;  %v19272_v32 = vpop.f32.mrb[49].mxu0  ;;  %v17976_v33 = vld [vmem:[%s24332_s0 + $0x280] sm:$0xff]   ;;  %v19286_v31 = vadd.bf16 %v9290_v24, %v9190_v17  ;;  %v19288_v35 = vadd.bf16 %v9291_v18, %v9191_v30  ;;  %v8604_v37 = vsel %vm19028_vm10, %v19206_v6, 0  ;;  %v17988_v30 = vld [vmem:[%s24332_s0 + $0x2b0] sm:$0xff]   ;;  %v17990_v18 = vld [vmem:[%s24332_s0 + $0x2b8] sm:$0xff]  }
 0x13f   :  { %v8181_v27 = vmax.bf16 %v15326_v12, %v19136_v5  ;;  %v16660_v21 = vpop.f32.mrb[50].mxu0  ;;  %v8704_v5 = vsel %vm19015_vm9, %v19201_v0, 0  ;;  %v8605_v46 = vsel %vm19028_vm10, %v19201_v0, 0  ;;  %v8705_v25 = vsel %vm19015_vm9, %v8456_v58, 0  ;;  %v17978_v0 = vld [vmem:[%s24332_s0 + $0x288] sm:$0xff]   ;;  %v17984_v47 = vld [vmem:[%s24332_s0 + $0x2a0] sm:$0xff]  }
 0x140   :  { %24449 = vst [vmem:[#allocation7_spill] sm:$0xff] %v19286_v31  ;;  %24450 = vst [vmem:[#allocation8_spill] sm:$0xff] %v19288_v35  ;;  %v8459_v23 = vmax.bf16 %v8183_v20, %v8182_v7  ;;  %v3172_v63 = vpop.f32.mrb[51].mxu0  ;;  %v8800_v6 = vadd.bf16 %v8704_v5, %v8604_v37  ;;  %v8801_v19 = vadd.bf16 %v8705_v25, %v8605_v46  ;;  %v8900_v43 = vsel %vm19103_vm15, %v8456_v58, 0  ;;  %v17986_v12 = vld [vmem:[%s24332_s0 + $0x2a8] sm:$0xff]  }
 0x141   :  { %v8458_v29 = vmax.bf16 %v8181_v27, %v8180_v55  ;;  %v8901_v9 = vsel %vm19103_vm15, %v19248_v56, 0  ;;  %v9096_v26 = vsel %vm19110_vm1, %v19248_v56, 0  ;;  %v3178_v37 = vadd.f32 %v19269_v14, %v18811_v38 }
 0x142   :  { %16766 = vmatmul.mubr.msk.bf16.gmra.mrb[156].mxu0 %vm2078_vm0, %v17974_v16  ;;  %v8996_v52 = vadd.bf16 %v8900_v43, %v8800_v6  ;;  %v8997_v57 = vadd.bf16 %v8901_v9, %v8801_v19  ;;  %v9293_v11 = vsel %vm19146_vm3, %v8459_v23, 0  ;;  %v3181_v5 = vadd.f32 %v16660_v21, %v18811_v38  ;;  %v17994_v21 = vld [vmem:[%s24332_s0 + $0x2c8] sm:$0xff]  }
 0x143   :  { %16769 = vmatprep.mubr.msk.bf16.mxu0 %vm2078_vm0, %v17976_v33  ;;  %v9097_v53 = vsel %vm19110_vm1, %v8458_v29, 0  ;;  %v9292_v58 = vsel %vm19146_vm3, %v8458_v29, 0  ;;  %v17992_v33 = vld [vmem:[%s24332_s0 + $0x2c0] sm:$0xff]   ;;  %v3170_v29 = vadd.f32 %v18811_v38, %v19272_v32  ;;  %v3173_v46 = vadd.f32 %v18811_v38, %v3172_v63 }
 0x144   :  { %v9192_v40 = vadd.bf16 %v9096_v26, %v8996_v52  ;;  %v9193_v60 = vadd.bf16 %v9097_v53, %v8997_v57  ;;  %v5330_v9 = vmax.f32 %v3178_v37, 0.0  ;;  %v5331_v63 = vmax.f32 %v3181_v5, 0.0  ;;  %v17996_v57 = vld [vmem:[%s24332_s0 + $0x2d0] sm:$0xff]  }
 0x145   :  { %v16663_v51 = vpop.f32.mrb[52].mxu0  ;;  %v5328_v32 = vmax.f32 %v3170_v29, 0.0  ;;  %v5329_v26 = vmax.f32 %v3173_v46, 0.0 }
 0x146   :  { %v3185_v1 = vpop.f32.mrb[53].mxu0  ;;  %v19325_v61 = vadd.bf16 %v9292_v58, %v9192_v40  ;;  %v19328_v2 = vadd.bf16 %v9293_v11, %v9193_v60  ;;  %v3194_v25 = vadd.f32 %v16663_v51, %v18811_v38  ;;  %v19396_v11 = vpack.c.bf16 %v5330_v9, %v5330_v9 }
 0x147   :  { %v16664_v8 = vpop.f32.mrb[54].mxu0  ;;  %v3186_v6 = vadd.f32 %v18811_v38, %v3185_v1 }
 0x148   :  { %v3188_v39 = vpop.f32.mrb[55].mxu0  ;;  %24451 = vst [vmem:[#allocation9_spill] sm:$0xff] %v19325_v61  ;;  %24452 = vst [vmem:[#allocation10_spill] sm:$0xff] %v19328_v2  ;;  %v3197_v19 = vadd.f32 %v16664_v8, %v18811_v38  ;;  %v5334_v58 = vmax.f32 %v3194_v25, 0.0  ;;  %v19391_v8 = vld [vmem:[%s24334_s2] ss:$0 sm:$0xff] }
 0x149   :  { %v3189_v43 = vadd.f32 %v18811_v38, %v3188_v39  ;;  %v5332_v39 = vmax.f32 %v3186_v6, 0.0 }
 0x14a   :  { %16770 = vmatmul.mubr.msk.bf16.gmra.mrb[160].mxu0 %vm2078_vm0, %v17978_v0  ;;  %v5335_v60 = vmax.f32 %v3197_v19, 0.0 }
 0x14b   :  { %16773 = vmatprep.mubr.msk.bf16.mxu0 %vm2078_vm0, %v17980_v59  ;;  %v19411_v29 = vpack.c.bf16 %v5332_v39, %v5332_v39 }
 0x14d   :  { %v16667_v4 = vpop.f32.mrb[56].mxu0 }
 0x14e   :  { %v3201_v41 = vpop.f32.mrb[57].mxu0  ;;  %v3210_v52 = vadd.f32 %v16667_v4, %v18811_v38  ;;  %v19398_v4 = vpack.c.bf16 %v5328_v32, %v5328_v32 }
 0x14f   :  { %v16668_v7 = vpop.f32.mrb[58].mxu0  ;;  %v3202_v51 = vadd.f32 %v18811_v38, %v3201_v41 }
 0x150   :  { %v3204_v3 = vpop.f32.mrb[59].mxu0  ;;  %v3213_v1 = vadd.f32 %v16668_v7, %v18811_v38  ;;  %v5333_v38 = vmax.f32 %v3189_v43, 0.0  ;;  %v5338_v41 = vmax.f32 %v3210_v52, 0.0  ;;  %v19402_v7 = vpack.c.bf16 %v5331_v63, %v5331_v63 }
 0x151   :  { %v3205_v59 = vadd.f32 %v19391_v8, %v3204_v3 }
 0x152   :  { %16774 = vmatmul.mubr.msk.bf16.gmra.mrb[164].mxu0 %vm2078_vm0, %v17982_v42  ;;  %v19415_v5 = vpack.c.bf16 %v5333_v38, %v5333_v38  ;;  %v19418_v6 = vpack.c.bf16 %v5338_v41, %v5338_v41 }
 0x153   :  { %16777 = vmatprep.mubr.msk.bf16.mxu0 %vm2078_vm0, %v17984_v47  ;;  %v5336_v47 = vmax.f32 %v3202_v51, 0.0  ;;  %v18000_v51 = vld [vmem:[%s24332_s0 + $0x2e0] sm:$0xff]  }
 0x155   :  { %v16671_v62 = vpop.f32.mrb[60].mxu0  ;;  %v19425_v32 = vpack.c.bf16 %v5336_v47, %v5336_v47 }
 0x156   :  { %v3217_v55 = vpop.f32.mrb[61].mxu0  ;;  %v3226_v42 = vadd.f32 %v19391_v8, %v16671_v62  ;;  %v19413_v62 = vpack.c.bf16 %v5335_v60, %v5335_v60 }
 0x157   :  { %v16672_v17 = vpop.f32.mrb[62].mxu0  ;;  %v3218_v3 = vadd.f32 %v19391_v8, %v3217_v55 }
 0x158   :  { %v3220_v20 = vpop.f32.mrb[63].mxu0  ;;  %v3229_v37 = vadd.f32 %v19391_v8, %v16672_v17  ;;  %v5342_v55 = vmax.f32 %v3226_v42, 0.0  ;;  %v17998_v17 = vld [vmem:[%s24332_s0 + $0x2d8] sm:$0xff]  }
 0x159   :  { %v3221_v46 = vadd.f32 %v19391_v8, %v3220_v20 }
 0x15a   :  { %16778 = vmatmul.mubr.msk.bf16.gmra.mrb[168].mxu0 %vm2078_vm0, %v17986_v12  ;;  %v5339_v12 = vmax.f32 %v3213_v1, 0.0  ;;  %v5343_v1 = vmax.f32 %v3229_v37, 0.0  ;;  %v19439_v41 = vpack.c.bf16 %v5342_v55, %v5342_v55 }
 0x15b   :  { %16781 = vmatprep.mubr.msk.bf16.mxu0 %vm2078_vm0, %v17988_v30  ;;  %v19406_v30 = vpack.c.bf16 %v5329_v26, %v5329_v26 }
 0x15c   :  { %v19427_v52 = vpack.c.bf16 %v5339_v12, %v5339_v12 }
 0x15d   :  { %v16675_v16 = vpop.f32.mrb[64].mxu0 }
 0x15e   :  { %v19349_v24 = vpop.f32.mrb[65].mxu0  ;;  %v3242_v19 = vadd.f32 %v19391_v8, %v16675_v16 }
 0x15f   :  { %v19354_v27 = vpop.f32.mrb[66].mxu0  ;;  %v3234_v39 = vadd.f32 %v19391_v8, %v19349_v24  ;;  %v19447_v24 = vpack.c.bf16 %v5343_v1, %v5343_v1 }
 0x160   :  { %v19359_v23 = vpop.f32.mrb[67].mxu0  ;;  %v5346_v42 = vmax.f32 %v3242_v19, 0.0 }
 0x162   :  { %16782 = vmatmul.mubr.msk.bf16.gmra.mrb[172].mxu0 %vm2078_vm0, %v17990_v18  ;;  %v19408_v18 = vpack.c.bf16 %v5334_v58, %v5334_v58 }
 0x163   :  { %16785 = vmatprep.mubr.msk.bf16.mxu0 %vm2078_vm0, %v17992_v33  ;;  %v5337_v33 = vmax.f32 %v3205_v59, 0.0  ;;  %v5341_v59 = vmax.f32 %v3221_v46, 0.0 }
 0x165   :  { %v19373_v14 = vpop.f32.mrb[68].mxu0  ;;  %v19433_v16 = vpack.c.bf16 %v5337_v33, %v5337_v33  ;;  %v3245_v33 = vadd.f32 %v19391_v8, %v19354_v27  ;;  %v19455_v27 = vpack.c.bf16 %v5346_v42, %v5346_v42 }
 0x166   :  { %v19376_v53 = vpop.f32.mrb[69].mxu0 }
 0x167   :  { %v19383_v0 = vpop.f32.mrb[70].mxu0 }
 0x168   :  { %v19394_v40 = vpop.f32.mrb[71].mxu0 }
 0x16a   :  { %16786 = vmatmul.mubr.msk.bf16.gmra.mrb[176].mxu0 %vm2078_vm0, %v17994_v21  ;;  %v5340_v21 = vmax.f32 %v3218_v3, 0.0 }
 0x16b   :  { %16789 = vmatprep.mubr.msk.bf16.mxu0 %vm2078_vm0, %v17996_v57 }
 0x16c   :  { %v19442_v3 = vpack.c.bf16 %v5340_v21, %v5340_v21 }
 0x16d   :  { %v16683_v25 = vpop.f32.mrb[72].mxu0 }
 0x16e   :  { %v3274_v43 = vadd.f32 %v19391_v8, %v16683_v25  ;;  %v3265_v9 = vpop.f32.mrb[73].mxu0  ;;  %v3237_v25 = vadd.f32 %v19391_v8, %v19359_v23 }
 0x16f   :  { %v3266_v20 = vadd.f32 %v19391_v8, %v3265_v9  ;;  %v16684_v63 = vpop.f32.mrb[74].mxu0  ;;  %v5344_v9 = vmax.f32 %v3234_v39, 0.0 }
 0x170   :  { %v5354_v57 = vmax.f32 %v3274_v43, 0.0  ;;  %v3277_v26 = vadd.f32 %v19391_v8, %v16684_v63  ;;  %v3268_v58 = vpop.f32.mrb[75].mxu0  ;;  %v19452_v43 = vpack.c.bf16 %v5341_v59, %v5341_v59  ;;  %v3258_v63 = vadd.f32 %v19391_v8, %v19373_v14  ;;  %v18006_v14 = vld [vmem:[%s24332_s0 + $0x2f0] sm:$0xff]  }
 0x171   :  { %v5352_v60 = vmax.f32 %v3266_v20, 0.0  ;;  %v3269_v38 = vadd.f32 %v19391_v8, %v3268_v58 }
 0x172   :  { %v15355_v47 = vpack.c.bf16 %v5354_v57, %v5354_v57  ;;  %v5355_v12 = vmax.f32 %v3277_v26, 0.0  ;;  %16790 = vmatmul.mubr.msk.bf16.gmra.mrb[180].mxu0 %vm2078_vm0, %v17998_v17  ;;  %v5347_v57 = vmax.f32 %v3245_v33, 0.0  ;;  %v5350_v33 = vmax.f32 %v3258_v63, 0.0 }
 0x173   :  { %v15353_v37 = vpack.c.bf16 %v5352_v60, %v5352_v60  ;;  %v5353_v46 = vmax.f32 %v3269_v38, 0.0  ;;  %16793 = vmatprep.mubr.msk.bf16.mxu0 %vm2078_vm0, %v18000_v51 }
 0x174   :  { %v8186_v55 = vmax.bf16 %v15355_v47, %v19396_v11  ;;  %v15356_v19 = vpack.c.bf16 %v5355_v12, %v5355_v12  ;;  %v18002_v11 = vld [vmem:[%s24332_s0 + $0x2e8] sm:$0xff]   ;;  %v3261_v47 = vadd.f32 %v19391_v8, %v19383_v0  ;;  %v3253_v0 = vadd.f32 %v19391_v8, %v19394_v40 }
 0x175   :  { %v8184_v17 = vmax.bf16 %v15353_v37, %v19398_v4  ;;  %v15354_v21 = vpack.c.bf16 %v5353_v46, %v5353_v46  ;;  %v16687_v20 = vpop.f32.mrb[76].mxu0  ;;  %v3250_v4 = vadd.f32 %v19391_v8, %v19376_v53 }
 0x176   :  { %v8187_v51 = vmax.bf16 %v15356_v19, %v19402_v7  ;;  %v3290_v1 = vadd.f32 %v19391_v8, %v16687_v20  ;;  %v3281_v23 = vpop.f32.mrb[77].mxu0  ;;  %v5345_v7 = vmax.f32 %v3237_v25, 0.0 }
 0x177   :  { %v8185_v26 = vmax.bf16 %v15354_v21, %v19406_v30  ;;  %v3282_v58 = vadd.f32 %v19391_v8, %v3281_v23  ;;  %v16688_v59 = vpop.f32.mrb[78].mxu0  ;;  %v5348_v25 = vmax.f32 %v3250_v4, 0.0  ;;  %v5351_v23 = vmax.f32 %v3261_v47, 0.0 }
 0x178   :  { %v8461_v39 = vmax.bf16 %v8187_v51, %v8186_v55  ;;  %v5358_v60 = vmax.f32 %v3290_v1, 0.0  ;;  %v3293_v38 = vadd.f32 %v19391_v8, %v16688_v59  ;;  %v3284_v42 = vpop.f32.mrb[79].mxu0  ;;  %v19484_v1 = vpack.c.bf16 %v5344_v9, %v5344_v9 }
 0x179   :  { %v8460_v12 = vmax.bf16 %v8185_v26, %v8184_v17  ;;  %v5356_v53 = vmax.f32 %v3282_v58, 0.0  ;;  %v3285_v30 = vadd.f32 %v19391_v8, %v3284_v42  ;;  %v19487_v58 = vpack.c.bf16 %v5347_v57, %v5347_v57 }
 0x17a   :  { %v8706_v37 = vsel %vm19015_vm9, %v8461_v39, 0  ;;  %v15359_v46 = vpack.c.bf16 %v5358_v60, %v5358_v60  ;;  %v5359_v19 = vmax.f32 %v3293_v38, 0.0  ;;  %16794 = vmatmul.mubr.msk.bf16.gmra.mrb[184].mxu0 %vm2078_vm0, %v18002_v11  ;;  %v19489_v59 = vpack.c.bf16 %v5345_v7, %v5345_v7 }
 0x17b   :  { %v8606_v55 = vsel %vm19028_vm10, %v8460_v12, 0  ;;  %v15357_v21 = vpack.c.bf16 %v5356_v53, %v5356_v53  ;;  %v5357_v20 = vmax.f32 %v3285_v30, 0.0  ;;  %16797 = vmatprep.mubr.msk.bf16.mxu0 %vm2078_vm0, %v18006_v14  ;;  %v19496_v9 = vpack.c.bf16 %v5350_v33, %v5350_v33 }
 0x17c   :  { %v8802_v17 = vadd.bf16 %v8706_v37, %v8606_v55  ;;  %v8190_v63 = vmax.bf16 %v15359_v46, %v19408_v18  ;;  %v15360_v51 = vpack.c.bf16 %v5359_v19, %v5359_v19  ;;  %v18008_v18 = vld [vmem:[%s24332_s0 + $0x2f8] sm:$0xff]   ;;  %v19498_v38 = vpack.c.bf16 %v5348_v25, %v5348_v25 }
 0x17d   :  { %v8188_v11 = vmax.bf16 %v15357_v21, %v19411_v29  ;;  %v15358_v4 = vpack.c.bf16 %v5357_v20, %v5357_v20  ;;  %v16691_v26 = vpop.f32.mrb[80].mxu0  ;;  %v5349_v7 = vmax.f32 %v3253_v0, 0.0  ;;  %v19508_v33 = vpack.c.bf16 %v5351_v23, %v5351_v23 }
 0x17e   :  { %v8191_v14 = vmax.bf16 %v15360_v51, %v19413_v62  ;;  %v3306_v60 = vadd.f32 %v19391_v8, %v16691_v26  ;;  %v3297_v40 = vpop.f32.mrb[81].mxu0  ;;  %v18012_v62 = vld [vmem:[%s24332_s0 + $0x300] sm:$0xff]   ;;  %v8607_v19 = vsel %vm19028_vm10, %v8461_v39, 0 }
 0x17f   :  { %v8189_v29 = vmax.bf16 %v15358_v4, %v19415_v5  ;;  %v3298_v57 = vadd.f32 %v19391_v8, %v3297_v40  ;;  %v16692_v42 = vpop.f32.mrb[82].mxu0 }
 0x180   :  { %v19505_v47 = vmax.bf16 %v8191_v14, %v8190_v63  ;;  %v5362_v12 = vmax.f32 %v3306_v60, 0.0  ;;  %v3309_v53 = vadd.f32 %v19391_v8, %v16692_v42  ;;  %v3300_v30 = vpop.f32.mrb[83].mxu0 }
 0x181   :  { %v8462_v37 = vmax.bf16 %v8189_v29, %v8188_v11  ;;  %v5360_v46 = vmax.f32 %v3298_v57, 0.0  ;;  %v3301_v5 = vadd.f32 %v19391_v8, %v3300_v30 }
 0x182   :  { %v8708_v25 = vsel %vm19015_vm9, %v19505_v47, 0  ;;  %v15363_v55 = vpack.c.bf16 %v5362_v12, %v5362_v12  ;;  %v5363_v21 = vmax.f32 %v3309_v53, 0.0  ;;  %16798 = vmatmul.mubr.msk.bf16.gmra.mrb[188].mxu0 %vm2078_vm0, %v18008_v18  ;;  %v8903_v18 = vsel %vm19103_vm15, %v19505_v47, 0 }
 0x183   :  { %v8608_v20 = vsel %vm19028_vm10, %v8462_v37, 0  ;;  %v15361_v0 = vpack.c.bf16 %v5360_v46, %v5360_v46  ;;  %v5361_v63 = vmax.f32 %v3301_v5, 0.0  ;;  %16801 = vmatprep.mubr.msk.bf16.mxu0 %vm2078_vm0, %v18012_v62  ;;  %v8707_v51 = vsel %vm19015_vm9, %v8462_v37, 0 }
 0x184   :  { %v8804_v23 = vadd.bf16 %v8708_v25, %v8608_v20  ;;  %v8194_v39 = vmax.bf16 %v15363_v55, %v19418_v6  ;;  %v15364_v11 = vpack.c.bf16 %v5363_v21, %v5363_v21  ;;  %v8803_v4 = vadd.bf16 %v8707_v51, %v8607_v19  ;;  %v18014_v6 = vld [vmem:[%s24332_s0 + $0x308] sm:$0xff]  }
 0x185   :  { %v8192_v26 = vmax.bf16 %v15361_v0, %v19425_v32  ;;  %v15362_v14 = vpack.c.bf16 %v5361_v63, %v5361_v63  ;;  %v16695_v60 = vpop.f32.mrb[84].mxu0  ;;  %v8902_v40 = vsel %vm19103_vm15, %v8462_v37, 0  ;;  %v19534_v12 = vpack.c.bf16 %v5349_v7, %v5349_v7 }
 0x186   :  { %v8195_v29 = vmax.bf16 %v15364_v11, %v19427_v52  ;;  %v3322_v57 = vadd.f32 %v19391_v8, %v16695_v60  ;;  %v3313_v42 = vpop.f32.mrb[85].mxu0  ;;  %v8998_v62 = vadd.bf16 %v8902_v40, %v8802_v17  ;;  %v8999_v32 = vadd.bf16 %v8903_v18, %v8803_v4  ;;  %v18018_v52 = vld [vmem:[%s24332_s0 + $0x310] sm:$0xff]  }
 0x187   :  { %v8193_v53 = vmax.bf16 %v15362_v14, %v19433_v16  ;;  %v3314_v30 = vadd.f32 %v19391_v8, %v3313_v42  ;;  %v16696_v37 = vpop.f32.mrb[86].mxu0  ;;  %v9098_v46 = vsel %vm19110_vm1, %v19505_v47, 0  ;;  %v8609_v16 = vsel %vm19028_vm10, %v19505_v47, 0 }
 0x188   :  { %v19544_v5 = vmax.bf16 %v8195_v29, %v8194_v39  ;;  %v5366_v19 = vmax.f32 %v3322_v57, 0.0  ;;  %v3325_v17 = vadd.f32 %v19391_v8, %v16696_v37  ;;  %v3316_v7 = vpop.f32.mrb[87].mxu0  ;;  %v9194_v25 = vadd.bf16 %v9098_v46, %v8998_v62 }
 0x189   :  { %v19550_v55 = vmax.bf16 %v8193_v53, %v8192_v26  ;;  %v5364_v21 = vmax.f32 %v3314_v30, 0.0  ;;  %v3317_v20 = vadd.f32 %v19391_v8, %v3316_v7 }
 0x18a   :  { %v15367_v0 = vpack.c.bf16 %v5366_v19, %v5366_v19  ;;  %v5367_v63 = vmax.f32 %v3325_v17, 0.0  ;;  %16802 = vmatmul.mubr.msk.bf16.gmra.mrb[192].mxu0 %vm2078_vm0, %v18014_v6  ;;  %v9295_v51 = vsel %vm19146_vm3, %v19544_v5, 0  ;;  %v8905_v39 = vsel %vm19103_vm15, %v19544_v5, 0  ;;  %v18023_v17 = vld [vmem:[%s24332_s0 + $0x320] sm:$0xff]  }
 0x18b   :  { %v15365_v11 = vpack.c.bf16 %v5364_v21, %v5364_v21  ;;  %v5365_v4 = vmax.f32 %v3317_v20, 0.0  ;;  %16805 = vmatprep.mubr.msk.bf16.mxu0 %vm2078_vm0, %v18018_v52  ;;  %v9099_v47 = vsel %vm19110_vm1, %v19550_v55, 0  ;;  %v9294_v26 = vsel %vm19146_vm3, %v19550_v55, 0 }
 0x18c   :  { %v8198_v14 = vmax.bf16 %v15367_v0, %v19439_v41  ;;  %v15368_v60 = vpack.c.bf16 %v5367_v63, %v5367_v63  ;;  %v9195_v40 = vadd.bf16 %v9099_v47, %v8999_v32  ;;  %v9390_v18 = vadd.bf16 %v9294_v26, %v9194_v25  ;;  %v18020_v32 = vld [vmem:[%s24332_s0 + $0x318] sm:$0xff]  }
 0x18d   :  { %v8196_v29 = vmax.bf16 %v15365_v11, %v19442_v3  ;;  %v15366_v57 = vpack.c.bf16 %v5365_v4, %v5365_v4  ;;  %v16699_v42 = vpop.f32.mrb[88].mxu0  ;;  %v8709_v6 = vsel %vm19015_vm9, %v19550_v55, 0  ;;  %v8904_v62 = vsel %vm19103_vm15, %v19550_v55, 0 }
 0x18e   :  { %v8199_v53 = vmax.bf16 %v15368_v60, %v19447_v24  ;;  %v3338_v30 = vadd.f32 %v19391_v8, %v16699_v42  ;;  %v3329_v41 = vpop.f32.mrb[89].mxu0  ;;  %v9391_v3 = vadd.bf16 %v9295_v51, %v9195_v40  ;;  %v8805_v37 = vadd.bf16 %v8709_v6, %v8609_v16 }
 0x18f   :  { %v8197_v52 = vmax.bf16 %v15366_v57, %v19452_v43  ;;  %v3330_v46 = vadd.f32 %v19391_v8, %v3329_v41  ;;  %v16700_v19 = vpop.f32.mrb[90].mxu0  ;;  %v9000_v7 = vadd.bf16 %v8904_v62, %v8804_v23  ;;  %v9100_v24 = vsel %vm19110_vm1, %v19544_v5, 0 }
 0x190   :  { %v19588_v25 = vmax.bf16 %v8199_v53, %v8198_v14  ;;  %v5370_v21 = vmax.f32 %v3338_v30, 0.0  ;;  %v3341_v20 = vadd.f32 %v19391_v8, %v16700_v19  ;;  %v3332_v16 = vpop.f32.mrb[91].mxu0  ;;  %v19591_v0 = vcombine.low %v9390_v18, %v9391_v3 }
 0x191   :  { %v19593_v43 = vmax.bf16 %v8197_v52, %v8196_v29  ;;  %v5368_v63 = vmax.f32 %v3330_v46, 0.0  ;;  %v3333_v51 = vadd.f32 %v19391_v8, %v3332_v16  ;;  %v9001_v11 = vadd.bf16 %v8905_v39, %v8805_v37  ;;  %v18024_v37 = vld [vmem:[%s24332_s0 + $0x328] sm:$0xff]  }
 0x192   :  { %24453 = vst [vmem:[#allocation11_spill] sm:$0xff] %v19591_v0  ;;  %v15371_v4 = vpack.c.bf16 %v5370_v21, %v5370_v21  ;;  %v5371_v23 = vmax.f32 %v3341_v20, 0.0  ;;  %16806 = vmatmul.mubr.msk.bf16.gmra.mrb[196].mxu0 %vm2078_vm0, %v18020_v32  ;;  %17201 = vmatprep.mubr.bf16.mxu1 %v19591_v0  ;;  %v9196_v47 = vadd.bf16 %v9100_v24, %v9000_v7  ;;  %v9297_v26 = vsel %vm19146_vm3, %v19588_v25, 0 }
 0x193   :  { %v15369_v14 = vpack.c.bf16 %v5368_v63, %v5368_v63  ;;  %v5369_v60 = vmax.f32 %v3333_v51, 0.0  ;;  %16809 = vmatprep.mubr.msk.bf16.mxu0 %vm2078_vm0, %v18023_v17  ;;  %v9101_v40 = vsel %vm19110_vm1, %v19593_v43, 0  ;;  %v9296_v39 = vsel %vm19146_vm3, %v19593_v43, 0 }
 0x194   :  { %v8202_v18 = vmax.bf16 %v15371_v4, %v19455_v27  ;;  %v15372_v29 = vpack.c.bf16 %v5371_v23, %v5371_v23  ;;  %v9197_v57 = vadd.bf16 %v9101_v40, %v9001_v11  ;;  %v9392_v42 = vadd.bf16 %v9296_v39, %v9196_v47 }
 0x195   :  { %v8200_v6 = vmax.bf16 %v15369_v14, %v19484_v1  ;;  %v15370_v62 = vpack.c.bf16 %v5369_v60, %v5369_v60  ;;  %v16703_v53 = vpop.f32.mrb[92].mxu0  ;;  %v8610_v30 = vsel %vm19028_vm10, %v19550_v55, 0  ;;  %v8611_v41 = vsel %vm19028_vm10, %v19544_v5, 0 }
 0x196   :  { %v8203_v32 = vmax.bf16 %v15372_v29, %v19487_v58  ;;  %v3354_v3 = vadd.f32 %v19391_v8, %v16703_v53  ;;  %v3345_v27 = vpop.f32.mrb[93].mxu0  ;;  %v9393_v1 = vadd.bf16 %v9297_v26, %v9197_v57  ;;  %v8710_v52 = vsel %vm19015_vm9, %v19544_v5, 0  ;;  %v18025_v58 = vld [vmem:[%s24332_s0 + $0x330] sm:$0xff]  }
 0x197   :  { %v8201_v55 = vmax.bf16 %v15370_v62, %v19489_v59  ;;  %v3346_v46 = vadd.f32 %v19391_v8, %v3345_v27  ;;  %v16704_v19 = vpop.f32.mrb[94].mxu0  ;;  %v8711_v17 = vsel %vm19015_vm9, %v19593_v43, 0  ;;  %v8806_v7 = vadd.bf16 %v8710_v52, %v8610_v30 }
 0x198   :  { %v19632_v24 = vmax.bf16 %v8203_v32, %v8202_v18  ;;  %v5374_v21 = vmax.f32 %v3354_v3, 0.0  ;;  %v3357_v20 = vadd.f32 %v19391_v8, %v16704_v19  ;;  %v3348_v5 = vpop.f32.mrb[95].mxu0  ;;  %v19635_v16 = vcombine.low %v9392_v42, %v9393_v1 }
 0x199   :  { %v8468_v59 = vmax.bf16 %v8201_v55, %v8200_v6  ;;  %v5372_v63 = vmax.f32 %v3346_v46, 0.0  ;;  %v3349_v51 = vadd.f32 %v19391_v8, %v3348_v5  ;;  %v8807_v11 = vadd.bf16 %v8711_v17, %v8611_v41 }
 0x19a   :  { %24454 = vst [vmem:[#allocation12_spill] sm:$0xff] %v19635_v16  ;;  %v15375_v4 = vpack.c.bf16 %v5374_v21, %v5374_v21  ;;  %v5375_v23 = vmax.f32 %v3357_v20, 0.0  ;;  %16810 = vmatmul.mubr.msk.bf16.gmra.mrb[200].mxu0 %vm2078_vm0, %v18024_v37  ;;  %17202 = vmatmul.mubr.bf16.vlgmr.msra.gmra.mrb[52].mxu1 %v19635_v16  ;;  %v8906_v47 = vsel %vm19103_vm15, %v19593_v43, 0  ;;  %v8907_v26 = vsel %vm19103_vm15, %v19588_v25, 0 }
 0x19b   :  { %v15373_v14 = vpack.c.bf16 %v5372_v63, %v5372_v63  ;;  %v5373_v60 = vmax.f32 %v3349_v51, 0.0  ;;  %16813 = vmatprep.mubr.msk.bf16.mxu0 %vm2078_vm0, %v18025_v58  ;;  %v9002_v40 = vadd.bf16 %v8906_v47, %v8806_v7  ;;  %v9003_v39 = vadd.bf16 %v8907_v26, %v8807_v11 }
 0x19c   :  { %v8206_v18 = vmax.bf16 %v15375_v4, %v19496_v9  ;;  %v15376_v29 = vpack.c.bf16 %v5375_v23, %v5375_v23  ;;  %v9102_v57 = vsel %vm19110_vm1, %v19588_v25, 0  ;;  %v9103_v42 = vsel %vm19110_vm1, %v8468_v59, 0  ;;  %v18026_v9 = vld [vmem:[%s24332_s0 + $0x338] sm:$0xff]  }
 0x19d   :  { %v8204_v6 = vmax.bf16 %v15373_v14, %v19498_v38  ;;  %v15374_v62 = vpack.c.bf16 %v5373_v60, %v5373_v60  ;;  %v19654_v53 = vpop.f32.mrb[96].mxu0  ;;  %v9198_v30 = vadd.bf16 %v9102_v57, %v9002_v40  ;;  %v9199_v41 = vadd.bf16 %v9103_v42, %v9003_v39  ;;  %v18029_v39 = vld [vmem:[%s24332_s0 + $0x350] sm:$0xff]  }
 0x19e   :  { %v8207_v32 = vmax.bf16 %v15376_v29, %v19508_v33  ;;  %v19657_v3 = vpop.f32.mrb[97].mxu0  ;;  %v9298_v27 = vsel %vm19146_vm3, %v8468_v59, 0  ;;  %v9299_v38 = vsel %vm19146_vm3, %v19632_v24, 0  ;;  %v18027_v33 = vld [vmem:[%s24332_s0 + $0x340] sm:$0xff]   ;;  %v8612_v58 = vsel %vm19028_vm10, %v19593_v43, 0 }
 0x19f   :  { %v8205_v37 = vmax.bf16 %v15374_v62, %v19534_v12  ;;  %v19668_v1 = vpop.f32.mrb[98].mxu0  ;;  %v9394_v52 = vadd.bf16 %v9298_v27, %v9198_v30  ;;  %v9395_v55 = vadd.bf16 %v9299_v38, %v9199_v41  ;;  %v8712_v12 = vsel %vm19015_vm9, %v19588_v25, 0  ;;  %v18030_v41 = vld [vmem:[%s24332_s0 + $0x358] sm:$0xff]  }
 0x1a0   :  { %v8471_v46 = vmax.bf16 %v8207_v32, %v8206_v18  ;;  %v3364_v19 = vpop.f32.mrb[99].mxu0  ;;  %v8613_v21 = vsel %vm19028_vm10, %v19588_v25, 0  ;;  %v8713_v43 = vsel %vm19015_vm9, %v8468_v59, 0  ;;  %v8808_v20 = vadd.bf16 %v8712_v12, %v8612_v58  ;;  %v18028_v25 = vld [vmem:[%s24332_s0 + $0x348] sm:$0xff]   ;;  %v18034_v12 = vld [vmem:[%s24332_s0 + $0x378] sm:$0xff]  }
 0x1a1   :  { %v8470_v17 = vmax.bf16 %v8205_v37, %v8204_v6  ;;  %v19676_v7 = vcombine.low %v9394_v52, %v9395_v55  ;;  %v8809_v5 = vadd.bf16 %v8713_v43, %v8613_v21  ;;  %v8908_v63 = vsel %vm19103_vm15, %v8468_v59, 0  ;;  %v18032_v52 = vld [vmem:[%s24332_s0 + $0x368] sm:$0xff]   ;;  %v18035_v43 = vld [vmem:[%s24332_s0 + $0x380] sm:$0xff]  }
 0x1a2   :  { %16814 = vmatmul.mubr.msk.bf16.gmra.mrb[204].mxu0 %vm2078_vm0, %v18026_v9  ;;  %v8909_v11 = vsel %vm19103_vm15, %v19632_v24, 0  ;;  %v9004_v4 = vadd.bf16 %v8908_v63, %v8808_v20  ;;  %v9104_v14 = vsel %vm19110_vm1, %v19632_v24, 0  ;;  %v9301_v57 = vsel %vm19146_vm3, %v8471_v46, 0  ;;  %v18031_v9 = vld [vmem:[%s24332_s0 + $0x360] sm:$0xff]  }
 0x1a3   :  { %24455 = vst [vmem:[#allocation13_spill] sm:$0xff] %v19676_v7  ;;  %17205 = vmatprep.mubr.bf16.mxu1 %v19676_v7  ;;  %16817 = vmatprep.mubr.msk.bf16.mxu0 %vm2078_vm0, %v18027_v33  ;;  %v9105_v23 = vsel %vm19110_vm1, %v8470_v17, 0  ;;  %v9005_v26 = vadd.bf16 %v8909_v11, %v8809_v5  ;;  %v9300_v59 = vsel %vm19146_vm3, %v8470_v17, 0  ;;  %v18033_v33 = vld [vmem:[%s24332_s0 + $0x370] sm:$0xff]   ;;  %v3370_v5 = vadd.f32 %v19391_v8, %v19654_v53 }
 0x1a4   :  { %v9200_v40 = vadd.bf16 %v9104_v14, %v9004_v4  ;;  %v3362_v63 = vadd.f32 %v19391_v8, %v19657_v3  ;;  %v3373_v11 = vadd.f32 %v19391_v8, %v19668_v1  ;;  %v3365_v4 = vadd.f32 %v19391_v8, %v3364_v19  ;;  %v18036_v1 = vld [vmem:[%s24332_s0 + $0x388] sm:$0xff]  }
 0x1a5   :  { %v16711_v51 = vpop.f32.mrb[100].mxu0  ;;  %v9201_v29 = vadd.bf16 %v9105_v23, %v9005_v26  ;;  %v5378_v3 = vmax.f32 %v3370_v5, 0.0 }
 0x1a6   :  { %v3377_v47 = vpop.f32.mrb[101].mxu0  ;;  %v9396_v42 = vadd.bf16 %v9300_v59, %v9200_v40  ;;  %v3386_v23 = vadd.f32 %v19391_v8, %v16711_v51  ;;  %v5376_v59 = vmax.f32 %v3362_v63, 0.0  ;;  %v5379_v19 = vmax.f32 %v3373_v11, 0.0 }
 0x1a7   :  { %v16712_v60 = vpop.f32.mrb[102].mxu0  ;;  %v9397_v6 = vadd.bf16 %v9301_v57, %v9201_v29  ;;  %v5377_v29 = vmax.f32 %v3365_v4, 0.0 }
 0x1a8   :  { %v3380_v18 = vpop.f32.mrb[103].mxu0  ;;  %v3389_v26 = vadd.f32 %v19391_v8, %v16712_v60  ;;  %v5382_v57 = vmax.f32 %v3386_v23, 0.0 }
 0x1a9   :  { %v19711_v24 = vcombine.low %v9396_v42, %v9397_v6  ;;  %v3381_v53 = vadd.f32 %v19391_v8, %v3380_v18  ;;  %v18037_v18 = vld [vmem:[%s24332_s0 + $0x390] sm:$0xff]   ;;  %v19783_v63 = vpack.c.bf16 %v5377_v29, %v5377_v29 }
 0x1aa   :  { %16818 = vmatmul.mubr.msk.bf16.gmra.mrb[208].mxu0 %vm2078_vm0, %v18028_v25  ;;  %v3378_v25 = vadd.f32 %v19391_v8, %v3377_v47  ;;  %v19785_v11 = vpack.c.bf16 %v5382_v57, %v5382_v57  ;;  %v18039_v57 = vld [vmem:[%s24332_s0 + $0x3a0] sm:$0xff]  }
 0x1ab   :  { %16821 = vmatprep.mubr.msk.bf16.mxu0 %vm2078_vm0, %v18029_v39  ;;  %24456 = vst [vmem:[#allocation14_spill] sm:$0xff] %v19711_v24  ;;  %17206 = vmatmul.mubr.bf16.gmra.mrb[56].mxu1 %v19711_v24 }
 0x1ad   :  { %v16715_v62 = vpop.f32.mrb[104].mxu0 }
 0x1ae   :  { %v3393_v30 = vpop.f32.mrb[105].mxu0  ;;  %v3402_v40 = vadd.f32 %v19391_v8, %v16715_v62  ;;  %v5380_v62 = vmax.f32 %v3378_v25, 0.0 }
 0x1af   :  { %v16716_v32 = vpop.f32.mrb[106].mxu0  ;;  %v3394_v51 = vadd.f32 %v19391_v8, %v3393_v30  ;;  %v19775_v30 = vpack.c.bf16 %v5376_v59, %v5376_v59 }
 0x1b0   :  { %v3396_v27 = vpop.f32.mrb[107].mxu0  ;;  %v3405_v47 = vadd.f32 %v19391_v8, %v16716_v32  ;;  %v5386_v32 = vmax.f32 %v3402_v40, 0.0  ;;  %v19788_v25 = vpack.c.bf16 %v5380_v62, %v5380_v62 }
 0x1b1   :  { %v3397_v42 = vadd.f32 %v19391_v8, %v3396_v27 }
 0x1b2   :  { %16822 = vmatmul.mubr.msk.bf16.gmra.mrb[212].mxu0 %vm2078_vm0, %v18030_v41  ;;  %v5383_v41 = vmax.f32 %v3389_v26, 0.0  ;;  %v5387_v5 = vmax.f32 %v3405_v47, 0.0  ;;  %v19795_v59 = vpack.c.bf16 %v5386_v32, %v5386_v32 }
 0x1b3   :  { %16825 = vmatprep.mubr.msk.bf16.mxu0 %vm2078_vm0, %v18031_v9  ;;  %v5381_v9 = vmax.f32 %v3381_v53, 0.0  ;;  %v5385_v4 = vmax.f32 %v3397_v42, 0.0 }
 0x1b4   :  { %v19804_v47 = vpack.c.bf16 %v5387_v5, %v5387_v5 }
 0x1b5   :  { %v16719_v38 = vpop.f32.mrb[108].mxu0  ;;  %v19792_v26 = vpack.c.bf16 %v5381_v9, %v5381_v9 }
 0x1b6   :  { %v3409_v37 = vpop.f32.mrb[109].mxu0 }
 0x1b7   :  { %v16720_v55 = vpop.f32.mrb[110].mxu0  ;;  %v3410_v27 = vadd.f32 %v19391_v8, %v3409_v37 }
 0x1b8   :  { %v3412_v46 = vpop.f32.mrb[111].mxu0  ;;  %v3421_v23 = vadd.f32 %v19391_v8, %v16720_v55  ;;  %v18038_v55 = vld [vmem:[%s24332_s0 + $0x398] sm:$0xff]  }
 0x1b9   :  { %v3413_v53 = vadd.f32 %v19391_v8, %v3412_v46 }
 0x1ba   :  { %16826 = vmatmul.mubr.msk.bf16.gmra.mrb[216].mxu0 %vm2078_vm0, %v18032_v52  ;;  %v19773_v52 = vpack.c.bf16 %v5378_v3, %v5378_v3  ;;  %v5391_v42 = vmax.f32 %v3421_v23, 0.0 }
 0x1bb   :  { %16829 = vmatprep.mubr.msk.bf16.mxu0 %vm2078_vm0, %v18033_v33  ;;  %v3418_v33 = vadd.f32 %v19391_v8, %v16719_v38  ;;  %v19790_v38 = vpack.c.bf16 %v5383_v41, %v5383_v41  ;;  %v5389_v32 = vmax.f32 %v3413_v53, 0.0 }
 0x1bd   :  { %v16723_v58 = vpop.f32.mrb[112].mxu0  ;;  %v5390_v37 = vmax.f32 %v3418_v33, 0.0 }
 0x1be   :  { %v19730_v17 = vpop.f32.mrb[113].mxu0  ;;  %v3434_v40 = vadd.f32 %v19391_v8, %v16723_v58  ;;  %v19810_v58 = vpack.c.bf16 %v5385_v4, %v5385_v4 }
 0x1bf   :  { %v19735_v21 = vpop.f32.mrb[114].mxu0  ;;  %v3426_v33 = vadd.f32 %v19391_v8, %v19730_v17  ;;  %v19824_v17 = vpack.c.bf16 %v5391_v42, %v5391_v42 }
 0x1c0   :  { %v19740_v20 = vpop.f32.mrb[115].mxu0  ;;  %v3437_v23 = vadd.f32 %v19391_v8, %v19735_v21 }
 0x1c2   :  { %16830 = vmatmul.mubr.msk.bf16.gmra.mrb[220].mxu0 %vm2078_vm0, %v18034_v12  ;;  %v19779_v12 = vpack.c.bf16 %v5379_v19, %v5379_v19 }
 0x1c3   :  { %16833 = vmatprep.mubr.msk.bf16.mxu0 %vm2078_vm0, %v18035_v43  ;;  %v5384_v43 = vmax.f32 %v3394_v51, 0.0 }
 0x1c5   :  { %v19755_v14 = vpop.f32.mrb[116].mxu0  ;;  %v19802_v51 = vpack.c.bf16 %v5384_v43, %v5384_v43 }
 0x1c6   :  { %v19758_v39 = vpop.f32.mrb[117].mxu0 }
 0x1c7   :  { %v19765_v60 = vpop.f32.mrb[118].mxu0 }
 0x1c8   :  { %v19771_v6 = vpop.f32.mrb[119].mxu0 }
 0x1ca   :  { %16834 = vmatmul.mubr.msk.bf16.gmra.mrb[224].mxu0 %vm2078_vm0, %v18036_v1 }
 0x1cb   :  { %16837 = vmatprep.mubr.msk.bf16.mxu0 %vm2078_vm0, %v18037_v18  ;;  %v5388_v18 = vmax.f32 %v3410_v27, 0.0  ;;  %v19816_v27 = vpack.c.bf16 %v5390_v37, %v5390_v37  ;;  %v3429_v37 = vadd.f32 %v19391_v8, %v19740_v20 }
 0x1cd   :  { %v16731_v3 = vpop.f32.mrb[120].mxu0  ;;  %v19819_v4 = vpack.c.bf16 %v5388_v18, %v5388_v18 }
 0x1ce   :  { %v3466_v1 = vadd.f32 %v19391_v8, %v16731_v3  ;;  %v3457_v19 = vpop.f32.mrb[121].mxu0  ;;  %v5394_v3 = vmax.f32 %v3434_v40, 0.0 }
 0x1cf   :  { %v3458_v46 = vadd.f32 %v19391_v8, %v3457_v19  ;;  %v16732_v29 = vpop.f32.mrb[122].mxu0 }
 0x1d0   :  { %v5402_v62 = vmax.f32 %v3466_v1, 0.0  ;;  %v3469_v41 = vadd.f32 %v19391_v8, %v16732_v29  ;;  %v3460_v9 = vpop.f32.mrb[123].mxu0  ;;  %v19829_v29 = vpack.c.bf16 %v5389_v32, %v5389_v32  ;;  %v19832_v21 = vpack.c.bf16 %v5394_v3, %v5394_v3 }
 0x1d1   :  { %v5400_v43 = vmax.f32 %v3458_v46, 0.0  ;;  %v3461_v5 = vadd.f32 %v19391_v8, %v3460_v9 }
 0x1d2   :  { %v15403_v19 = vpack.c.bf16 %v5402_v62, %v5402_v62  ;;  %v5403_v56 = vmax.f32 %v3469_v41, 0.0  ;;  %16838 = vmatmul.mubr.msk.bf16.gmra.mrb[228].mxu0 %vm2078_vm0, %v18038_v55  ;;  %v5392_v55 = vmax.f32 %v3426_v33, 0.0 }
 0x1d3   :  { %v15401_v1 = vpack.c.bf16 %v5400_v43, %v5400_v43  ;;  %v5401_v53 = vmax.f32 %v3461_v5, 0.0  ;;  %16841 = vmatprep.mubr.msk.bf16.mxu0 %vm2078_vm0, %v18039_v57  ;;  %v3450_v57 = vadd.f32 %v19391_v8, %v19755_v14  ;;  %v18041_v14 = vld [vmem:[%s24332_s0 + $0x3b0] sm:$0xff]  }
 0x1d4   :  { %v8210_v40 = vmax.bf16 %v15403_v19, %v19773_v52  ;;  %v15404_v46 = vpack.c.bf16 %v5403_v56, %v5403_v56  ;;  %v18040_v56 = vld [vmem:[%s24332_s0 + $0x3a8] sm:$0xff]   ;;  %v5395_v52 = vmax.f32 %v3437_v23, 0.0  ;;  %v3453_v23 = vadd.f32 %v19391_v8, %v19765_v60 }
 0x1d5   :  { %v8208_v18 = vmax.bf16 %v15401_v1, %v19775_v30  ;;  %v15402_v62 = vpack.c.bf16 %v5401_v53, %v5401_v53  ;;  %v16735_v41 = vpop.f32.mrb[124].mxu0  ;;  %v3442_v30 = vadd.f32 %v19391_v8, %v19758_v39  ;;  %v3445_v60 = vadd.f32 %v19391_v8, %v19771_v6 }
 0x1d6   :  { %v8211_v42 = vmax.bf16 %v15404_v46, %v19779_v12  ;;  %v3482_v9 = vadd.f32 %v19391_v8, %v16735_v41  ;;  %v3473_v20 = vpop.f32.mrb[125].mxu0  ;;  %v5393_v12 = vmax.f32 %v3429_v37, 0.0  ;;  %v5398_v46 = vmax.f32 %v3450_v57, 0.0 }
 0x1d7   :  { %v8209_v32 = vmax.bf16 %v15402_v62, %v19783_v63  ;;  %v3474_v33 = vadd.f32 %v19391_v8, %v3473_v20  ;;  %v16736_v43 = vpop.f32.mrb[126].mxu0  ;;  %v5396_v37 = vmax.f32 %v3442_v30, 0.0 }
 0x1d8   :  { %v8473_v5 = vmax.bf16 %v8211_v42, %v8210_v40  ;;  %v5406_v3 = vmax.f32 %v3482_v9, 0.0  ;;  %v3485_v19 = vadd.f32 %v19391_v8, %v16736_v43  ;;  %v3476_v1 = vpop.f32.mrb[127].mxu0  ;;  %v5399_v43 = vmax.f32 %v3453_v23, 0.0 }
 0x1d9   :  { %v8472_v53 = vmax.bf16 %v8209_v32, %v8208_v18  ;;  %v5404_v39 = vmax.f32 %v3474_v33, 0.0  ;;  %v3477_v63 = vadd.f32 %v19391_v8, %v3476_v1  ;;  %v19861_v33 = vpack.c.bf16 %v5392_v55, %v5392_v55 }
 0x1da   :  { %v8714_v62 = vsel %vm19015_vm9, %v8473_v5, 0  ;;  %v15407_v41 = vpack.c.bf16 %v5406_v3, %v5406_v3  ;;  %v5407_v20 = vmax.f32 %v3485_v19, 0.0  ;;  %16842 = vmatmul.mubr.msk.bf16.gmra.mrb[232].mxu0 %vm2078_vm0, %v18040_v56  ;;  %v19864_v19 = vpack.c.bf16 %v5395_v52, %v5395_v52 }
 0x1db   :  { %v8614_v40 = vsel %vm19028_vm10, %v8472_v53, 0  ;;  %v15405_v42 = vpack.c.bf16 %v5404_v39, %v5404_v39  ;;  %v5405_v9 = vmax.f32 %v3477_v63, 0.0  ;;  %16845 = vmatprep.mubr.msk.bf16.mxu0 %vm2078_vm0, %v18041_v14  ;;  %v19866_v1 = vpack.c.bf16 %v5393_v12, %v5393_v12 }
 0x1dc   :  { %v8810_v18 = vadd.bf16 %v8714_v62, %v8614_v40  ;;  %v8214_v57 = vmax.bf16 %v15407_v41, %v19785_v11  ;;  %v15408_v32 = vpack.c.bf16 %v5407_v20, %v5407_v20  ;;  %v18042_v11 = vld [vmem:[%s24332_s0 + $0x3b8] sm:$0xff]   ;;  %v19873_v55 = vpack.c.bf16 %v5398_v46, %v5398_v46 }
 0x1dd   :  { %v8212_v56 = vmax.bf16 %v15405_v42, %v19788_v25  ;;  %v15406_v30 = vpack.c.bf16 %v5405_v9, %v5405_v9  ;;  %v16739_v3 = vpop.f32.mrb[128].mxu0  ;;  %v19875_v23 = vpack.c.bf16 %v5396_v37, %v5396_v37  ;;  %v5397_v12 = vmax.f32 %v3445_v60, 0.0 }
 0x1de   :  { %v8215_v14 = vmax.bf16 %v15408_v32, %v19790_v38  ;;  %v3498_v53 = vadd.f32 %v19391_v8, %v16739_v3  ;;  %v3489_v6 = vpop.f32.mrb[129].mxu0  ;;  %v18043_v38 = vld [vmem:[%s24332_s0 + $0x3c0] sm:$0xff]   ;;  %v19885_v46 = vpack.c.bf16 %v5399_v43, %v5399_v43  ;;  %v8615_v42 = vsel %vm19028_vm10, %v8473_v5, 0 }
 0x1df   :  { %v8213_v25 = vmax.bf16 %v15406_v30, %v19792_v26  ;;  %v3490_v52 = vadd.f32 %v19391_v8, %v3489_v6  ;;  %v16740_v39 = vpop.f32.mrb[130].mxu0 }
 0x1e0   :  { %v19882_v63 = vmax.bf16 %v8215_v14, %v8214_v57  ;;  %v5410_v62 = vmax.f32 %v3498_v53, 0.0  ;;  %v3501_v41 = vadd.f32 %v19391_v8, %v16740_v39  ;;  %v3492_v20 = vpop.f32.mrb[131].mxu0 }
 0x1e1   :  { %v8474_v37 = vmax.bf16 %v8213_v25, %v8212_v56  ;;  %v5408_v40 = vmax.f32 %v3490_v52, 0.0  ;;  %v3493_v26 = vadd.f32 %v19391_v8, %v3492_v20  ;;  %v19911_v20 = vpack.c.bf16 %v5397_v12, %v5397_v12  ;;  %v19926_v12 = vld [vmem:[%s24334_s2] ss:$0 sm:$0xff] }
 0x1e2   :  { %v15411_v9 = vpack.c.bf16 %v5410_v62, %v5410_v62  ;;  %v5411_v32 = vmax.f32 %v3501_v41, 0.0  ;;  %16846 = vmatmul.mubr.msk.bf16.gmra.mrb[236].mxu0 %vm2078_vm0, %v18042_v11  ;;  %v8911_v60 = vsel %vm19103_vm15, %v19882_v63, 0  ;;  %v9106_v52 = vsel %vm19110_vm1, %v19882_v63, 0 }
 0x1e3   :  { %v15409_v57 = vpack.c.bf16 %v5408_v40, %v5408_v40  ;;  %v5409_v30 = vmax.f32 %v3493_v26, 0.0  ;;  %16849 = vmatprep.mubr.msk.bf16.mxu0 %vm2078_vm0, %v18043_v38  ;;  %v8715_v43 = vsel %vm19015_vm9, %v8474_v37, 0  ;;  %v8910_v56 = vsel %vm19103_vm15, %v8474_v37, 0 }
 0x1e4   :  { %v8218_v5 = vmax.bf16 %v15411_v9, %v19795_v59  ;;  %v15412_v3 = vpack.c.bf16 %v5411_v32, %v5411_v32  ;;  %v8811_v14 = vadd.bf16 %v8715_v43, %v8615_v42  ;;  %v9006_v53 = vadd.bf16 %v8910_v56, %v8810_v18  ;;  %v18044_v59 = vld [vmem:[%s24332_s0 + $0x3c8] sm:$0xff]  }
 0x1e5   :  { %v8216_v6 = vmax.bf16 %v15409_v57, %v19802_v51  ;;  %v15410_v11 = vpack.c.bf16 %v5409_v30, %v5409_v30  ;;  %v16743_v25 = vpop.f32.mrb[132].mxu0  ;;  %v8616_v39 = vsel %vm19028_vm10, %v8474_v37, 0  ;;  %v8716_v37 = vsel %vm19015_vm9, %v19882_v63, 0 }
 0x1e6   :  { %v8219_v38 = vmax.bf16 %v15412_v3, %v19804_v47  ;;  %v3514_v62 = vadd.f32 %v19391_v8, %v16743_v25  ;;  %v3505_v41 = vpop.f32.mrb[133].mxu0  ;;  %v9007_v18 = vadd.bf16 %v8911_v60, %v8811_v14  ;;  %v9202_v51 = vadd.bf16 %v9106_v52, %v9006_v53  ;;  %v18045_v47 = vld [vmem:[%s24332_s0 + $0x3d0] sm:$0xff]  }
 0x1e7   :  { %v8217_v40 = vmax.bf16 %v15410_v11, %v19810_v58  ;;  %v3506_v26 = vadd.f32 %v19391_v8, %v3505_v41  ;;  %v16744_v42 = vpop.f32.mrb[134].mxu0  ;;  %v8812_v60 = vadd.bf16 %v8716_v37, %v8616_v39  ;;  %v8617_v56 = vsel %vm19028_vm10, %v19882_v63, 0 }
 0x1e8   :  { %v19921_v9 = vmax.bf16 %v8219_v38, %v8218_v5  ;;  %v5414_v32 = vmax.f32 %v3514_v62, 0.0  ;;  %v3517_v58 = vadd.f32 %v19926_v12, %v16744_v42  ;;  %v3508_v8 = vpop.f32.mrb[135].mxu0 }
 0x1e9   :  { %v19929_v57 = vmax.bf16 %v8217_v40, %v8216_v6  ;;  %v5412_v30 = vmax.f32 %v3506_v26, 0.0  ;;  %v3509_v43 = vadd.f32 %v19926_v12, %v3508_v8 }
 0x1ea   :  { %v15415_v5 = vpack.c.bf16 %v5414_v32, %v5414_v32  ;;  %v5415_v3 = vmax.f32 %v3517_v58, 0.0  ;;  %16850 = vmatmul.mubr.msk.bf16.gmra.mrb[240].mxu0 %vm2078_vm0, %v18044_v59  ;;  %v9303_v14 = vsel %vm19146_vm3, %v19921_v9, 0  ;;  %v8913_v53 = vsel %vm19103_vm15, %v19921_v9, 0 }
 0x1eb   :  { %v15413_v6 = vpack.c.bf16 %v5412_v30, %v5412_v30  ;;  %v5413_v11 = vmax.f32 %v3509_v43, 0.0  ;;  %16853 = vmatprep.mubr.msk.bf16.mxu0 %vm2078_vm0, %v18045_v47  ;;  %v9107_v63 = vsel %vm19110_vm1, %v19929_v57, 0  ;;  %v9302_v25 = vsel %vm19146_vm3, %v19929_v57, 0  ;;  %v18047_v30 = vld [vmem:[%s24332_s0 + $0x3e0] sm:$0xff]  }
 0x1ec   :  { %v8222_v52 = vmax.bf16 %v15415_v5, %v19816_v27  ;;  %v15416_v39 = vpack.c.bf16 %v5415_v3, %v5415_v3  ;;  %v9203_v38 = vadd.bf16 %v9107_v63, %v9007_v18  ;;  %v9398_v62 = vadd.bf16 %v9302_v25, %v9202_v51  ;;  %v18046_v18 = vld [vmem:[%s24332_s0 + $0x3d8] sm:$0xff]  }
 0x1ed   :  { %v8220_v41 = vmax.bf16 %v15413_v6, %v19819_v4  ;;  %v15414_v59 = vpack.c.bf16 %v5413_v11, %v5413_v11  ;;  %v16747_v40 = vpop.f32.mrb[136].mxu0  ;;  %v8717_v26 = vsel %vm19015_vm9, %v19929_v57, 0  ;;  %v8912_v42 = vsel %vm19103_vm15, %v19929_v57, 0 }
 0x1ee   :  { %v8223_v47 = vmax.bf16 %v15416_v39, %v19824_v17  ;;  %v3530_v37 = vadd.f32 %v19926_v12, %v16747_v40  ;;  %v3521_v27 = vpop.f32.mrb[137].mxu0  ;;  %v9399_v4 = vadd.bf16 %v9303_v14, %v9203_v38  ;;  %v8813_v51 = vadd.bf16 %v8717_v26, %v8617_v56 }
 0x1ef   :  { %v8221_v32 = vmax.bf16 %v15414_v59, %v19829_v29  ;;  %v3522_v58 = vadd.f32 %v19926_v12, %v3521_v27  ;;  %v16748_v8 = vpop.f32.mrb[138].mxu0  ;;  %v9008_v43 = vadd.bf16 %v8912_v42, %v8812_v60  ;;  %v9108_v17 = vsel %vm19110_vm1, %v19921_v9, 0 }
 0x1f0   :  { %v19970_v5 = vmax.bf16 %v8223_v47, %v8222_v52  ;;  %v5418_v3 = vmax.f32 %v3530_v37, 0.0  ;;  %v3533_v14 = vadd.f32 %v19926_v12, %v16748_v8  ;;  %v3524_v56 = vpop.f32.mrb[139].mxu0  ;;  %v19973_v6 = vcombine.low %v9398_v62, %v9399_v4  ;;  %v18048_v8 = vld [vmem:[%s24332_s0 + $0x3e8] sm:$0xff]  }
 0x1f1   :  { %v19975_v29 = vmax.bf16 %v8221_v32, %v8220_v41  ;;  %v5416_v11 = vmax.f32 %v3522_v58, 0.0  ;;  %v3525_v63 = vadd.f32 %v19926_v12, %v3524_v56  ;;  %v9009_v25 = vadd.bf16 %v8913_v53, %v8813_v51 }
 0x1f2   :  { %24457 = vst [vmem:[#allocation15_spill] sm:$0xff] %v19973_v6  ;;  %v15419_v39 = vpack.c.bf16 %v5418_v3, %v5418_v3  ;;  %v5419_v60 = vmax.f32 %v3533_v14, 0.0  ;;  %16854 = vmatmul.mubr.msk.bf16.gmra.mrb[244].mxu0 %vm2078_vm0, %v18046_v18  ;;  %17209 = vmatprep.mubr.bf16.mxu1 %v19973_v6  ;;  %v9204_v52 = vadd.bf16 %v9108_v17, %v9008_v43  ;;  %v9305_v38 = vsel %vm19146_vm3, %v19970_v5, 0 }
 0x1f3   :  { %v15417_v59 = vpack.c.bf16 %v5416_v11, %v5416_v11  ;;  %v5417_v62 = vmax.f32 %v3525_v63, 0.0  ;;  %16857 = vmatprep.mubr.msk.bf16.mxu0 %vm2078_vm0, %v18047_v30  ;;  %v9109_v41 = vsel %vm19110_vm1, %v19975_v29, 0  ;;  %v9304_v53 = vsel %vm19146_vm3, %v19975_v29, 0 }
 0x1f4   :  { %v8226_v40 = vmax.bf16 %v15419_v39, %v19832_v21  ;;  %v15420_v26 = vpack.c.bf16 %v5419_v60, %v5419_v60  ;;  %v9205_v42 = vadd.bf16 %v9109_v41, %v9009_v25  ;;  %v9400_v47 = vadd.bf16 %v9304_v53, %v9204_v52 }
 0x1f5   :  { %v8224_v37 = vmax.bf16 %v15417_v59, %v19861_v33  ;;  %v15418_v27 = vpack.c.bf16 %v5417_v62, %v5417_v62  ;;  %v16751_v18 = vpop.f32.mrb[140].mxu0  ;;  %v8618_v4 = vsel %vm19028_vm10, %v19929_v57, 0  ;;  %v8619_v51 = vsel %vm19028_vm10, %v19921_v9, 0 }
 0x1f6   :  { %v8227_v32 = vmax.bf16 %v15420_v26, %v19864_v19  ;;  %v3546_v58 = vadd.f32 %v19926_v12, %v16751_v18  ;;  %v3537_v21 = vpop.f32.mrb[141].mxu0  ;;  %v9401_v33 = vadd.bf16 %v9305_v38, %v9205_v42  ;;  %v8718_v30 = vsel %vm19015_vm9, %v19921_v9, 0  ;;  %v18049_v19 = vld [vmem:[%s24332_s0 + $0x3f0] sm:$0xff]  }
 0x1f7   :  { %v8225_v57 = vmax.bf16 %v15418_v27, %v19866_v1  ;;  %v3538_v43 = vadd.f32 %v19926_v12, %v3537_v21  ;;  %v16752_v17 = vpop.f32.mrb[142].mxu0  ;;  %v8719_v3 = vsel %vm19015_vm9, %v19975_v29, 0  ;;  %v8814_v14 = vadd.bf16 %v8718_v30, %v8618_v4 }
 0x1f8   :  { %v20014_v56 = vmax.bf16 %v8227_v32, %v8226_v40  ;;  %v5422_v11 = vmax.f32 %v3546_v58, 0.0  ;;  %v3549_v63 = vadd.f32 %v19926_v12, %v16752_v17  ;;  %v3540_v9 = vpop.f32.mrb[143].mxu0  ;;  %v20017_v25 = vcombine.low %v9400_v47, %v9401_v33 }
 0x1f9   :  { %v8480_v1 = vmax.bf16 %v8225_v57, %v8224_v37  ;;  %v5420_v39 = vmax.f32 %v3538_v43, 0.0  ;;  %v3541_v60 = vadd.f32 %v19926_v12, %v3540_v9  ;;  %v8815_v52 = vadd.bf16 %v8719_v3, %v8619_v51 }
 0x1fa   :  { %24458 = vst [vmem:[#allocation16_spill] sm:$0xff] %v20017_v25  ;;  %v15423_v38 = vpack.c.bf16 %v5422_v11, %v5422_v11  ;;  %v5423_v59 = vmax.f32 %v3549_v63, 0.0  ;;  %16858 = vmatmul.mubr.msk.bf16.gmra.mrb[248].mxu0 %vm2078_vm0, %v18048_v8  ;;  %17210 = vmatmul.mubr.bf16.gmra.mrb[60].mxu1 %v20017_v25  ;;  %v8914_v62 = vsel %vm19103_vm15, %v19975_v29, 0  ;;  %v8915_v41 = vsel %vm19103_vm15, %v19970_v5, 0 }
 0x1fb   :  { %v15421_v53 = vpack.c.bf16 %v5420_v39, %v5420_v39  ;;  %v5421_v40 = vmax.f32 %v3541_v60, 0.0  ;;  %16861 = vmatprep.mubr.msk.bf16.mxu0 %vm2078_vm0, %v18049_v19  ;;  %v9010_v26 = vadd.bf16 %v8914_v62, %v8814_v14  ;;  %v9011_v42 = vadd.bf16 %v8915_v41, %v8815_v52 }
 0x1fc   :  { %v8230_v47 = vmax.bf16 %v15423_v38, %v19873_v55  ;;  %v15424_v37 = vpack.c.bf16 %v5423_v59, %v5423_v59  ;;  %v9110_v27 = vsel %vm19110_vm1, %v19970_v5, 0  ;;  %v9111_v18 = vsel %vm19110_vm1, %v8480_v1, 0  ;;  %v18050_v55 = vld [vmem:[%s24332_s0 + $0x3f8] sm:$0xff]  }
 0x1fd   :  { %v8228_v4 = vmax.bf16 %v15421_v53, %v19875_v23  ;;  %v15422_v51 = vpack.c.bf16 %v5421_v40, %v5421_v40  ;;  %v20036_v32 = vpop.f32.mrb[144].mxu0  ;;  %v9206_v58 = vadd.bf16 %v9110_v27, %v9010_v26  ;;  %v9207_v21 = vadd.bf16 %v9111_v18, %v9011_v42  ;;  %v18053_v27 = vld [vmem:[%s24332_s0 + $0x410] sm:$0xff]  }
 0x1fe   :  { %v8231_v8 = vmax.bf16 %v15424_v37, %v19885_v46  ;;  %v20039_v33 = vpop.f32.mrb[145].mxu0  ;;  %v9306_v30 = vsel %vm19146_vm3, %v8480_v1, 0  ;;  %v9307_v23 = vsel %vm19146_vm3, %v20014_v56, 0  ;;  %v18051_v46 = vld [vmem:[%s24332_s0 + $0x400] sm:$0xff]   ;;  %v8620_v11 = vsel %vm19028_vm10, %v19975_v29, 0 }
 0x1ff   :  { %v8229_v57 = vmax.bf16 %v15422_v51, %v19911_v20  ;;  %v20050_v43 = vpop.f32.mrb[146].mxu0  ;;  %v9402_v17 = vadd.bf16 %v9306_v30, %v9206_v58  ;;  %v9403_v19 = vadd.bf16 %v9307_v23, %v9207_v21  ;;  %v8720_v20 = vsel %vm19015_vm9, %v19970_v5, 0  ;;  %v18054_v30 = vld [vmem:[%s24332_s0 + $0x418] sm:$0xff]  }
 0x200   :  { %v8483_v3 = vmax.bf16 %v8231_v8, %v8230_v47  ;;  %v3556_v14 = vpop.f32.mrb[147].mxu0  ;;  %v8621_v39 = vsel %vm19028_vm10, %v19970_v5, 0  ;;  %v8721_v29 = vsel %vm19015_vm9, %v8480_v1, 0  ;;  %v8816_v60 = vadd.bf16 %v8720_v20, %v8620_v11  ;;  %v18052_v5 = vld [vmem:[%s24332_s0 + $0x408] sm:$0xff]  }
 0x201   :  { %v8482_v63 = vmax.bf16 %v8229_v57, %v8228_v4  ;;  %v20058_v9 = vcombine.low %v9402_v17, %v9403_v19  ;;  %v8817_v52 = vadd.bf16 %v8721_v29, %v8621_v39  ;;  %v8916_v38 = vsel %vm19103_vm15, %v8480_v1, 0  ;;  %v18055_v57 = vld [vmem:[%s24332_s0 + $0x420] sm:$0xff]  }
 0x202   :  { %16862 = vmatmul.mubr.msk.bf16.gmra.mrb[252].mxu0 %vm2078_vm0, %v18050_v55  ;;  %v8917_v62 = vsel %vm19103_vm15, %v20014_v56, 0  ;;  %v9012_v41 = vadd.bf16 %v8916_v38, %v8816_v60  ;;  %v9112_v42 = vsel %vm19110_vm1, %v20014_v56, 0  ;;  %v9309_v51 = vsel %vm19146_vm3, %v8483_v3, 0  ;;  %v18056_v3 = vld [vmem:[%s24332_s0 + $0x428] sm:$0xff]   ;;  %v18058_v60 = vld [vmem:[%s24332_s0 + $0x438] sm:$0xff]   ;;  %v18059_v38 = vld [vmem:[%s24332_s0 + $0x440] sm:$0xff]  }
 0x203   :  { %24459 = vst [vmem:[#allocation17_spill] sm:$0xff] %v20058_v9  ;;  %17213 = vmatprep.mubr.bf16.mxu1 %v20058_v9  ;;  %16865 = vmatprep.mubr.msk.bf16.mxu0 %vm2078_vm0, %v18051_v46  ;;  %v9113_v53 = vsel %vm19110_vm1, %v8482_v63, 0  ;;  %v9013_v26 = vadd.bf16 %v8917_v62, %v8817_v52  ;;  %v9308_v1 = vsel %vm19146_vm3, %v8482_v63, 0  ;;  %v18057_v63 = vld [vmem:[%s24332_s0 + $0x430] sm:$0xff]  }
 0x204   :  { %v9208_v37 = vadd.bf16 %v9112_v42, %v9012_v41  ;;  %v3562_v41 = vadd.f32 %v19926_v12, %v20036_v32 }
 0x205   :  { %v16759_v59 = vpop.f32.mrb[148].mxu0  ;;  %v9209_v4 = vadd.bf16 %v9113_v53, %v9013_v26  ;;  %v3554_v53 = vadd.f32 %v19926_v12, %v20039_v33  ;;  %v3557_v26 = vadd.f32 %v19926_v12, %v3556_v14 }
 0x206   :  { %v3569_v40 = vpop.f32.mrb[149].mxu0  ;;  %v9404_v58 = vadd.bf16 %v9308_v1, %v9208_v37  ;;  %v3578_v42 = vadd.f32 %v19926_v12, %v16759_v59  ;;  %v5426_v32 = vmax.f32 %v3562_v41, 0.0 }
 0x207   :  { %v16760_v47 = vpop.f32.mrb[150].mxu0  ;;  %v9405_v21 = vadd.bf16 %v9309_v51, %v9209_v4  ;;  %v3570_v1 = vadd.f32 %v19926_v12, %v3569_v40  ;;  %v5424_v14 = vmax.f32 %v3554_v53, 0.0 }
 0x208   :  { %v3572_v18 = vpop.f32.mrb[151].mxu0  ;;  %v3581_v37 = vadd.f32 %v19926_v12, %v16760_v47  ;;  %v18061_v47 = vld [vmem:[%s24332_s0 + $0x450] sm:$0xff]  }
 0x209   :  { %v20093_v56 = vcombine.low %v9404_v58, %v9405_v21  ;;  %v3573_v4 = vadd.f32 %v19926_v12, %v3572_v18  ;;  %v5425_v21 = vmax.f32 %v3557_v26, 0.0  ;;  %v5430_v18 = vmax.f32 %v3578_v42, 0.0 }
 0x20a   :  { %16866 = vmatmul.mubr.msk.bf16.gmra.mrb[0].mxu0 %vm2078_vm0, %v18052_v5  ;;  %v3565_v5 = vadd.f32 %v19926_v12, %v20050_v43  ;;  %v18060_v43 = vld [vmem:[%s24332_s0 + $0x448] sm:$0xff]   ;;  %v20158_v41 = vpack.c.bf16 %v5424_v14, %v5424_v14 }
 0x20b   :  { %16869 = vmatprep.mubr.msk.bf16.mxu0 %vm2078_vm0, %v18053_v27  ;;  %24460 = vst [vmem:[#allocation18_spill] sm:$0xff] %v20093_v56  ;;  %17214 = vmatmul.mubr.bf16.gmra.mrb[64].mxu1 %v20093_v56  ;;  %v20166_v42 = vpack.c.bf16 %v5430_v18, %v5430_v18 }
 0x20c   :  { %v5427_v58 = vmax.f32 %v3565_v5, 0.0 }
 0x20d   :  { %v16763_v8 = vpop.f32.mrb[152].mxu0 }
 0x20e   :  { %v3585_v55 = vpop.f32.mrb[153].mxu0  ;;  %v3594_v33 = vadd.f32 %v19926_v12, %v16763_v8  ;;  %v20160_v53 = vpack.c.bf16 %v5427_v58, %v5427_v58 }
 0x20f   :  { %v16764_v23 = vpop.f32.mrb[154].mxu0  ;;  %v3586_v59 = vadd.f32 %v19926_v12, %v3585_v55 }
 0x210   :  { %v3588_v17 = vpop.f32.mrb[155].mxu0  ;;  %v3597_v8 = vadd.f32 %v19926_v12, %v16764_v23  ;;  %v20164_v23 = vpack.c.bf16 %v5425_v21, %v5425_v21 }
 0x211   :  { %v3589_v55 = vadd.f32 %v19926_v12, %v3588_v17  ;;  %v5432_v5 = vmax.f32 %v3586_v59, 0.0 }
 0x212   :  { %16870 = vmatmul.mubr.msk.bf16.gmra.mrb[4].mxu0 %vm2078_vm0, %v18054_v30 }
 0x213   :  { %16873 = vmatprep.mubr.msk.bf16.mxu0 %vm2078_vm0, %v18055_v57  ;;  %v5428_v57 = vmax.f32 %v3570_v1, 0.0  ;;  %v5435_v1 = vmax.f32 %v3597_v8, 0.0  ;;  %v5433_v58 = vmax.f32 %v3589_v55, 0.0  ;;  %v20183_v21 = vpack.c.bf16 %v5432_v5, %v5432_v5 }
 0x215   :  { %v16767_v19 = vpop.f32.mrb[156].mxu0 }
 0x216   :  { %v3601_v46 = vpop.f32.mrb[157].mxu0  ;;  %v3610_v26 = vadd.f32 %v19926_v12, %v16767_v19 }
 0x217   :  { %v16768_v11 = vpop.f32.mrb[158].mxu0 }
 0x218   :  { %v3604_v20 = vpop.f32.mrb[159].mxu0  ;;  %v5438_v18 = vmax.f32 %v3610_v26, 0.0 }
 0x21a   :  { %16874 = vmatmul.mubr.msk.bf16.gmra.mrb[8].mxu0 %vm2078_vm0, %v18056_v3  ;;  %v5431_v3 = vmax.f32 %v3581_v37, 0.0  ;;  %v3602_v37 = vadd.f32 %v19926_v12, %v3601_v46  ;;  %v18062_v46 = vld [vmem:[%s24332_s0 + $0x458] sm:$0xff]  }
 0x21b   :  { %16877 = vmatprep.mubr.msk.bf16.mxu0 %vm2078_vm0, %v18057_v63  ;;  %v20154_v63 = vpack.c.bf16 %v5426_v32, %v5426_v32  ;;  %v20169_v32 = vpack.c.bf16 %v5428_v57, %v5428_v57  ;;  %v18063_v57 = vld [vmem:[%s24332_s0 + $0x460] sm:$0xff]  }
 0x21c   :  { %v20171_v17 = vpack.c.bf16 %v5431_v3, %v5431_v3  ;;  %v20190_v3 = vpack.c.bf16 %v5435_v1, %v5435_v1  ;;  %v20199_v1 = vpack.c.bf16 %v5438_v18, %v5438_v18 }
 0x21d   :  { %v16771_v39 = vpop.f32.mrb[160].mxu0 }
 0x21e   :  { %v20112_v29 = vpop.f32.mrb[161].mxu0 }
 0x21f   :  { %v20117_v52 = vpop.f32.mrb[162].mxu0 }
 0x220   :  { %v20122_v62 = vpop.f32.mrb[163].mxu0 }
 0x222   :  { %16878 = vmatmul.mubr.msk.bf16.gmra.mrb[12].mxu0 %vm2078_vm0, %v18058_v60  ;;  %v5429_v60 = vmax.f32 %v3573_v4, 0.0  ;;  %v3613_v4 = vadd.f32 %v19926_v12, %v16768_v11  ;;  %v3626_v11 = vadd.f32 %v19926_v12, %v16771_v39  ;;  %v20194_v39 = vpack.c.bf16 %v5433_v58, %v5433_v58 }
 0x223   :  { %16881 = vmatprep.mubr.msk.bf16.mxu0 %vm2078_vm0, %v18059_v38  ;;  %v5434_v38 = vmax.f32 %v3594_v33, 0.0  ;;  %v3605_v33 = vadd.f32 %v19926_v12, %v3604_v20 }
 0x224   :  { %v20175_v14 = vpack.c.bf16 %v5429_v60, %v5429_v60  ;;  %v5436_v60 = vmax.f32 %v3602_v37, 0.0  ;;  %v5439_v22 = vmax.f32 %v3613_v4, 0.0  ;;  %v5442_v37 = vmax.f32 %v3626_v11, 0.0 }
 0x225   :  { %v20136_v27 = vpop.f32.mrb[164].mxu0  ;;  %v20177_v19 = vpack.c.bf16 %v5434_v38, %v5434_v38  ;;  %v5437_v5 = vmax.f32 %v3605_v33, 0.0  ;;  %v3629_v33 = vadd.f32 %v19926_v12, %v20117_v52 }
 0x226   :  { %v20140_v51 = vpop.f32.mrb[165].mxu0  ;;  %v20202_v4 = vpack.c.bf16 %v5436_v60, %v5436_v60 }
 0x227   :  { %v20146_v40 = vpop.f32.mrb[166].mxu0 }
 0x228   :  { %v20152_v30 = vpop.f32.mrb[167].mxu0 }
 0x22a   :  { %16882 = vmatmul.mubr.msk.bf16.gmra.mrb[16].mxu0 %vm2078_vm0, %v18060_v43 }
 0x22b   :  { %16885 = vmatprep.mubr.msk.bf16.mxu0 %vm2078_vm0, %v18061_v47 }
 0x22d   :  { %v16779_v43 = vpop.f32.mrb[168].mxu0 }
 0x22e   :  { %v3658_v59 = vadd.f32 %v19926_v12, %v16779_v43  ;;  %v3649_v47 = vpop.f32.mrb[169].mxu0 }
 0x22f   :  { %v3650_v20 = vadd.f32 %v19926_v12, %v3649_v47  ;;  %v16780_v8 = vpop.f32.mrb[170].mxu0  ;;  %v3618_v47 = vadd.f32 %v19926_v12, %v20112_v29  ;;  %v20207_v29 = vpack.c.bf16 %v5439_v22, %v5439_v22  ;;  %v3642_v22 = vadd.f32 %v19926_v12, %v20136_v27 }
 0x230   :  { %v5450_v38 = vmax.f32 %v3658_v59, 0.0  ;;  %v3661_v55 = vadd.f32 %v19926_v12, %v16780_v8  ;;  %v3652_v43 = vpop.f32.mrb[171].mxu0 }
 0x231   :  { %v5448_v44 = vmax.f32 %v3650_v20, 0.0  ;;  %v3653_v26 = vadd.f32 %v19926_v12, %v3652_v43 }
 0x232   :  { %v15451_v15 = vpack.c.bf16 %v5450_v38, %v5450_v38  ;;  %v5451_v54 = vmax.f32 %v3661_v55, 0.0  ;;  %16886 = vmatmul.mubr.msk.bf16.gmra.mrb[20].mxu0 %vm2078_vm0, %v18062_v46  ;;  %v20209_v38 = vpack.c.bf16 %v5437_v5, %v5437_v5 }
 0x233   :  { %v15449_v59 = vpack.c.bf16 %v5448_v44, %v5448_v44  ;;  %v5449_v8 = vmax.f32 %v3653_v26, 0.0  ;;  %16889 = vmatprep.mubr.msk.bf16.mxu0 %vm2078_vm0, %v18063_v57  ;;  %v5440_v44 = vmax.f32 %v3618_v47, 0.0  ;;  %v3621_v57 = vadd.f32 %v19926_v12, %v20122_v62  ;;  %v18065_v62 = vld [vmem:[%s24332_s0 + $0x470] sm:$0xff]  }
 0x234   :  { %v8234_v58 = vmax.bf16 %v15451_v15, %v20154_v63  ;;  %v15452_v20 = vpack.c.bf16 %v5451_v54, %v5451_v54  ;;  %v18064_v54 = vld [vmem:[%s24332_s0 + $0x468] sm:$0xff]   ;;  %v20219_v15 = vpack.c.bf16 %v5442_v37, %v5442_v37  ;;  %v3634_v37 = vadd.f32 %v19926_v12, %v20140_v51 }
 0x235   :  { %v8232_v46 = vmax.bf16 %v15449_v59, %v20158_v41  ;;  %v15450_v18 = vpack.c.bf16 %v5449_v8, %v5449_v8  ;;  %v16783_v11 = vpop.f32.mrb[172].mxu0  ;;  %v3645_v51 = vadd.f32 %v19926_v12, %v20146_v40 }
 0x236   :  { %v8235_v60 = vmax.bf16 %v15452_v20, %v20160_v53  ;;  %v3674_v55 = vadd.f32 %v19926_v12, %v16783_v11  ;;  %v3665_v52 = vpop.f32.mrb[173].mxu0  ;;  %v5443_v53 = vmax.f32 %v3629_v33, 0.0  ;;  %v5441_v20 = vmax.f32 %v3621_v57, 0.0 }
 0x237   :  { %v8233_v63 = vmax.bf16 %v15450_v18, %v20164_v23  ;;  %v3666_v41 = vadd.f32 %v19926_v12, %v3665_v52  ;;  %v16784_v43 = vpop.f32.mrb[174].mxu0  ;;  %v5446_v33 = vmax.f32 %v3642_v22, 0.0 }
 0x238   :  { %v8485_v5 = vmax.bf16 %v8235_v60, %v8234_v58  ;;  %v5454_v26 = vmax.f32 %v3674_v55, 0.0  ;;  %v3677_v47 = vadd.f32 %v19926_v12, %v16784_v43  ;;  %v3668_v59 = vpop.f32.mrb[175].mxu0  ;;  %v5444_v43 = vmax.f32 %v3634_v37, 0.0 }
 0x239   :  { %v8484_v8 = vmax.bf16 %v8233_v63, %v8232_v46  ;;  %v5452_v27 = vmax.f32 %v3666_v41, 0.0  ;;  %v3669_v23 = vadd.f32 %v19926_v12, %v3668_v59  ;;  %v20241_v41 = vpack.c.bf16 %v5440_v44, %v5440_v44 }
 0x23a   :  { %v8722_v18 = vsel %vm19015_vm9, %v8485_v5, 0  ;;  %v15455_v11 = vpack.c.bf16 %v5454_v26, %v5454_v26  ;;  %v5455_v52 = vmax.f32 %v3677_v47, 0.0  ;;  %16890 = vmatmul.mubr.msk.bf16.gmra.mrb[24].mxu0 %vm2078_vm0, %v18064_v54  ;;  %v20244_v47 = vpack.c.bf16 %v5443_v53, %v5443_v53 }
 0x23b   :  { %v8622_v58 = vsel %vm19028_vm10, %v8484_v8, 0  ;;  %v15453_v60 = vpack.c.bf16 %v5452_v27, %v5452_v27  ;;  %v5453_v55 = vmax.f32 %v3669_v23, 0.0  ;;  %16893 = vmatprep.mubr.msk.bf16.mxu0 %vm2078_vm0, %v18065_v62  ;;  %v20246_v59 = vpack.c.bf16 %v5441_v20, %v5441_v20 }
 0x23c   :  { %v8818_v46 = vadd.bf16 %v8722_v18, %v8622_v58  ;;  %v8238_v57 = vmax.bf16 %v15455_v11, %v20166_v42  ;;  %v15456_v63 = vpack.c.bf16 %v5455_v52, %v5455_v52  ;;  %v18066_v42 = vld [vmem:[%s24332_s0 + $0x478] sm:$0xff]   ;;  %v20253_v44 = vpack.c.bf16 %v5446_v33, %v5446_v33 }
 0x23d   :  { %v8236_v54 = vmax.bf16 %v15453_v60, %v20169_v32  ;;  %v15454_v22 = vpack.c.bf16 %v5453_v55, %v5453_v55  ;;  %v16787_v26 = vpop.f32.mrb[176].mxu0  ;;  %v20257_v32 = vadd.f32 %v19926_v12, %v20152_v30  ;;  %v5447_v23 = vmax.f32 %v3645_v51, 0.0 }
 0x23e   :  { %v8239_v62 = vmax.bf16 %v15456_v63, %v20171_v17  ;;  %v3690_v8 = vadd.f32 %v19926_v12, %v16787_v26  ;;  %v3681_v40 = vpop.f32.mrb[177].mxu0  ;;  %v18067_v17 = vld [vmem:[%s24332_s0 + $0x480] sm:$0xff]   ;;  %v20267_v33 = vpack.c.bf16 %v5444_v43, %v5444_v43  ;;  %v8623_v60 = vsel %vm19028_vm10, %v8485_v5, 0 }
 0x23f   :  { %v8237_v53 = vmax.bf16 %v15454_v22, %v20175_v14  ;;  %v3682_v37 = vadd.f32 %v19926_v12, %v3681_v40  ;;  %v16788_v27 = vpop.f32.mrb[178].mxu0 }
 0x240   :  { %v20264_v20 = vmax.bf16 %v8239_v62, %v8238_v57  ;;  %v5458_v18 = vmax.f32 %v3690_v8, 0.0  ;;  %v3693_v11 = vadd.f32 %v19926_v12, %v16788_v27  ;;  %v3684_v52 = vpop.f32.mrb[179].mxu0 }
 0x241   :  { %v8486_v30 = vmax.bf16 %v8237_v53, %v8236_v54  ;;  %v5456_v58 = vmax.f32 %v3682_v37, 0.0  ;;  %v3685_v14 = vadd.f32 %v19926_v12, %v3684_v52  ;;  %v18068_v52 = vld [vmem:[%s24332_s0 + $0x488] sm:$0xff]  }
 0x242   :  { %v8724_v55 = vsel %vm19015_vm9, %v20264_v20, 0  ;;  %v15459_v51 = vpack.c.bf16 %v5458_v18, %v5458_v18  ;;  %v5459_v57 = vmax.f32 %v3693_v11, 0.0  ;;  %16894 = vmatmul.mubr.msk.bf16.gmra.mrb[28].mxu0 %vm2078_vm0, %v18066_v42  ;;  %v8919_v37 = vsel %vm19103_vm15, %v20264_v20, 0 }
 0x243   :  { %v8624_v63 = vsel %vm19028_vm10, %v8486_v30, 0  ;;  %v8723_v43 = vsel %vm19015_vm9, %v8486_v30, 0  ;;  %v8918_v54 = vsel %vm19103_vm15, %v8486_v30, 0  ;;  %v15457_v22 = vpack.c.bf16 %v5456_v58, %v5456_v58  ;;  %16897 = vmatprep.mubr.msk.bf16.mxu0 %vm2078_vm0, %v18067_v17 }
 0x244   :  { %v8819_v5 = vadd.bf16 %v8723_v43, %v8623_v60  ;;  %v20283_v26 = vadd.bf16 %v8724_v55, %v8624_v63  ;;  %v8242_v62 = vmax.bf16 %v15459_v51, %v20177_v19  ;;  %v15460_v8 = vpack.c.bf16 %v5459_v57, %v5459_v57 }
 0x245   :  { %v8240_v40 = vmax.bf16 %v15457_v22, %v20183_v21  ;;  %v5457_v42 = vmax.f32 %v3685_v14, 0.0  ;;  %v16791_v53 = vpop.f32.mrb[180].mxu0  ;;  %v9014_v27 = vadd.bf16 %v8918_v54, %v8818_v46  ;;  %v9114_v21 = vsel %vm19110_vm1, %v20264_v20, 0 }
 0x246   :  { %v8243_v18 = vmax.bf16 %v15460_v8, %v20190_v3  ;;  %v3706_v11 = vadd.f32 %v19926_v12, %v16791_v53  ;;  %v3697_v17 = vpop.f32.mrb[181].mxu0  ;;  %v9015_v19 = vadd.bf16 %v8919_v37, %v8819_v5  ;;  %v5445_v30 = vmax.f32 %v20257_v32, 0.0  ;;  %v18069_v3 = vld [vmem:[%s24332_s0 + $0x490] sm:$0xff]  }
 0x247   :  { %v15458_v58 = vpack.c.bf16 %v5457_v42, %v5457_v42  ;;  %v3698_v14 = vadd.f32 %v19926_v12, %v3697_v17  ;;  %v16792_v46 = vpop.f32.mrb[182].mxu0  ;;  %v9210_v60 = vadd.bf16 %v9114_v21, %v9014_v27  ;;  %v20303_v55 = vpack.c.bf16 %v5447_v23, %v5447_v23 }
 0x248   :  { %v20305_v51 = vmax.bf16 %v8243_v18, %v8242_v62  ;;  %v5462_v57 = vmax.f32 %v3706_v11, 0.0  ;;  %v3709_v63 = vadd.f32 %v19926_v12, %v16792_v46  ;;  %v3700_v43 = vpop.f32.mrb[183].mxu0  ;;  %v8625_v8 = vsel %vm19028_vm10, %v20264_v20, 0 }
 0x249   :  { %v8241_v54 = vmax.bf16 %v15458_v58, %v20194_v39  ;;  %v5460_v22 = vmax.f32 %v3698_v14, 0.0  ;;  %v3701_v5 = vadd.f32 %v19926_v12, %v3700_v43 }
 0x24a   :  { %v15463_v42 = vpack.c.bf16 %v5462_v57, %v5462_v57  ;;  %v5463_v53 = vmax.f32 %v3709_v63, 0.0  ;;  %16898 = vmatmul.mubr.msk.bf16.gmra.mrb[32].mxu0 %vm2078_vm0, %v18068_v52  ;;  %v9311_v23 = vsel %vm19146_vm3, %v20305_v51, 0  ;;  %v8921_v62 = vsel %vm19103_vm15, %v20305_v51, 0  ;;  %v18070_v63 = vld [vmem:[%s24332_s0 + $0x498] sm:$0xff]  }
 0x24b   :  { %v20320_v39 = vmax.bf16 %v8241_v54, %v8240_v40  ;;  %v15461_v37 = vpack.c.bf16 %v5460_v22, %v5460_v22  ;;  %v5461_v27 = vmax.f32 %v3701_v5, 0.0  ;;  %16901 = vmatprep.mubr.msk.bf16.mxu0 %vm2078_vm0, %v18069_v3  ;;  %v9116_v20 = vsel %vm19110_vm1, %v20305_v51, 0 }
 0x24c   :  { %v8246_v18 = vmax.bf16 %v15463_v42, %v20199_v1  ;;  %v15464_v11 = vpack.c.bf16 %v5463_v53, %v5463_v53  ;;  %v8726_v40 = vsel %vm19015_vm9, %v20305_v51, 0  ;;  %v18071_v42 = vld [vmem:[%s24332_s0 + $0x4a0] sm:$0xff]  }
 0x24d   :  { %v8244_v52 = vmax.bf16 %v15461_v37, %v20202_v4  ;;  %v15462_v21 = vpack.c.bf16 %v5461_v27, %v5461_v27  ;;  %v16795_v58 = vpop.f32.mrb[184].mxu0  ;;  %v9115_v14 = vsel %vm19110_vm1, %v20320_v39, 0  ;;  %v9310_v1 = vsel %vm19146_vm3, %v20320_v39, 0 }
 0x24e   :  { %v8247_v46 = vmax.bf16 %v15464_v11, %v20207_v29  ;;  %v3722_v3 = vadd.f32 %v19926_v12, %v16795_v58  ;;  %v3713_v57 = vpop.f32.mrb[185].mxu0  ;;  %v9211_v4 = vadd.bf16 %v9115_v14, %v9015_v19  ;;  %v9406_v43 = vadd.bf16 %v9310_v1, %v9210_v60 }
 0x24f   :  { %v8245_v54 = vmax.bf16 %v15462_v21, %v20209_v38  ;;  %v3714_v22 = vadd.f32 %v19926_v12, %v3713_v57  ;;  %v16796_v5 = vpop.f32.mrb[186].mxu0  ;;  %v8725_v29 = vsel %vm19015_vm9, %v20320_v39, 0  ;;  %v8920_v53 = vsel %vm19103_vm15, %v20320_v39, 0 }
 0x250   :  { %v20356_v37 = vmax.bf16 %v8247_v46, %v8246_v18  ;;  %v5466_v19 = vmax.f32 %v3722_v3, 0.0  ;;  %v3725_v38 = vadd.f32 %v19926_v12, %v16796_v5  ;;  %v3716_v60 = vpop.f32.mrb[187].mxu0  ;;  %v9407_v27 = vadd.bf16 %v9311_v23, %v9211_v4 }
 0x251   :  { %v20359_v11 = vmax.bf16 %v8245_v54, %v8244_v52  ;;  %v5464_v21 = vmax.f32 %v3714_v22, 0.0  ;;  %v3717_v58 = vadd.f32 %v19926_v12, %v3716_v60  ;;  %v8821_v14 = vadd.bf16 %v8725_v29, %v8625_v8 }
 0x252   :  { %v15467_v1 = vpack.c.bf16 %v5466_v19, %v5466_v19  ;;  %v5467_v57 = vmax.f32 %v3725_v38, 0.0  ;;  %16902 = vmatmul.mubr.msk.bf16.gmra.mrb[36].mxu0 %vm2078_vm0, %v18070_v63  ;;  %v20363_v17 = vcombine.low %v9406_v43, %v9407_v27  ;;  %v9016_v18 = vadd.bf16 %v8920_v53, %v20283_v26 }
 0x253   :  { %v15465_v46 = vpack.c.bf16 %v5464_v21, %v5464_v21  ;;  %v5465_v3 = vmax.f32 %v3717_v58, 0.0  ;;  %16905 = vmatprep.mubr.msk.bf16.mxu0 %vm2078_vm0, %v18071_v42  ;;  %v9017_v5 = vadd.bf16 %v8921_v62, %v8821_v14  ;;  %v9117_v23 = vsel %vm19110_vm1, %v20359_v11, 0 }
 0x254   :  { %24461 = vst [vmem:[#allocation19_spill] sm:$0xff] %v20363_v17  ;;  %v8250_v52 = vmax.bf16 %v15467_v1, %v20219_v15  ;;  %v15468_v8 = vpack.c.bf16 %v5467_v57, %v5467_v57  ;;  %17217 = vmatprep.mubr.bf16.mxu1 %v20363_v17  ;;  %v9212_v4 = vadd.bf16 %v9116_v20, %v9016_v18  ;;  %v9312_v63 = vsel %vm19146_vm3, %v20359_v11, 0  ;;  %v18072_v20 = vld [vmem:[%s24332_s0 + $0x4a8] sm:$0xff]  }
 0x255   :  { %v8248_v26 = vmax.bf16 %v15465_v46, %v20241_v41  ;;  %v15466_v43 = vpack.c.bf16 %v5465_v3, %v5465_v3  ;;  %v16799_v54 = vpop.f32.mrb[188].mxu0  ;;  %v9213_v22 = vadd.bf16 %v9117_v23, %v9017_v5  ;;  %v9313_v62 = vsel %vm19146_vm3, %v20356_v37, 0 }
 0x256   :  { %v8251_v42 = vmax.bf16 %v15468_v8, %v20244_v47  ;;  %v3738_v15 = vadd.f32 %v19926_v12, %v16799_v54  ;;  %v3729_v29 = vpop.f32.mrb[189].mxu0  ;;  %v9408_v53 = vadd.bf16 %v9312_v63, %v9212_v4  ;;  %v8626_v41 = vsel %vm19028_vm10, %v20320_v39, 0  ;;  %v18073_v47 = vld [vmem:[%s24332_s0 + $0x4b0] sm:$0xff]  }
 0x257   :  { %v8249_v19 = vmax.bf16 %v15466_v43, %v20246_v59  ;;  %v3730_v38 = vadd.f32 %v19926_v12, %v3729_v29  ;;  %v16800_v60 = vpop.f32.mrb[190].mxu0  ;;  %v9409_v27 = vadd.bf16 %v9313_v62, %v9213_v22  ;;  %v8727_v21 = vsel %vm19015_vm9, %v20359_v11, 0 }
 0x258   :  { %v20395_v58 = vmax.bf16 %v8251_v42, %v8250_v52  ;;  %v5470_v14 = vmax.f32 %v3738_v15, 0.0  ;;  %v3741_v1 = vadd.f32 %v19926_v12, %v16800_v60  ;;  %v3732_v39 = vpop.f32.mrb[191].mxu0  ;;  %v8822_v59 = vadd.bf16 %v8726_v40, %v8626_v41  ;;  %v18075_v60 = vld [vmem:[%s24332_s0 + $0x4c0] sm:$0xff]  }
 0x259   :  { %v8492_v57 = vmax.bf16 %v8249_v19, %v8248_v26  ;;  %v5468_v18 = vmax.f32 %v3730_v38, 0.0  ;;  %v3733_v46 = vadd.f32 %v19926_v12, %v3732_v39  ;;  %v20403_v3 = vcombine.low %v9408_v53, %v9409_v27 }
 0x25a   :  { %v15446_v5 = vpack.c.bf16 %v5445_v30, %v5445_v30  ;;  %v15471_v23 = vpack.c.bf16 %v5470_v14, %v5470_v14  ;;  %v5471_v52 = vmax.f32 %v3741_v1, 0.0  ;;  %16906 = vmatmul.mubr.msk.bf16.gmra.mrb[40].mxu0 %vm2078_vm0, %v18072_v20  ;;  %v24463_v8 = vsel %vm19028_vm10, %v20305_v51, 0 }
 0x25b   :  { %24462 = vst [vmem:[#allocation20_spill] sm:$0xff] %v20403_v3  ;;  %v8823_v4 = vadd.bf16 %v8727_v21, %v24463_v8  ;;  %v15469_v40 = vpack.c.bf16 %v5468_v18, %v5468_v18  ;;  %v5469_v63 = vmax.f32 %v3733_v46, 0.0  ;;  %17218 = vmatmul.mubr.bf16.gmra.mrb[68].mxu1 %v20403_v3  ;;  %16909 = vmatprep.mubr.msk.bf16.mxu0 %vm2078_vm0, %v18073_v47  ;;  %v8922_v12 = vsel %vm19103_vm15, %v20359_v11, 0 }
 0x25c   :  { %v8923_v32 = vsel %vm19103_vm15, %v20356_v37, 0  ;;  %v8254_v30 = vmax.bf16 %v15471_v23, %v20253_v44  ;;  %v15472_v26 = vpack.c.bf16 %v5471_v52, %v5471_v52  ;;  %v9018_v43 = vadd.bf16 %v8922_v12, %v8822_v59  ;;  %v18074_v44 = vld [vmem:[%s24332_s0 + $0x4b8] sm:$0xff]  }
 0x25d   :  { %v9019_v51 = vadd.bf16 %v8923_v32, %v8823_v4  ;;  %v8252_v54 = vmax.bf16 %v15469_v40, %v20267_v33  ;;  %v15470_v22 = vpack.c.bf16 %v5469_v63, %v5469_v63  ;;  %v20423_v62 = vpop.f32.mrb[192].mxu0  ;;  %v9118_v42 = vsel %vm19110_vm1, %v20356_v37, 0 }
 0x25e   :  { %v9119_v15 = vsel %vm19110_vm1, %v8492_v57, 0  ;;  %v8255_v29 = vmax.bf16 %v15472_v26, %v20303_v55  ;;  %v20431_v20 = vpop.f32.mrb[193].mxu0  ;;  %v9214_v53 = vadd.bf16 %v9118_v42, %v9018_v43  ;;  %v9314_v38 = vsel %vm19146_vm3, %v8492_v57, 0 }
 0x25f   :  { %v9215_v33 = vadd.bf16 %v9119_v15, %v9019_v51  ;;  %v8253_v41 = vmax.bf16 %v15470_v22, %v15446_v5  ;;  %v20436_v19 = vpop.f32.mrb[194].mxu0  ;;  %v9315_v47 = vsel %vm19146_vm3, %v20395_v58, 0  ;;  %v8628_v39 = vsel %vm19028_vm10, %v20359_v11, 0 }
 0x260   :  { %v8495_v27 = vmax.bf16 %v8255_v29, %v8254_v30  ;;  %v20443_v55 = vpop.f32.mrb[195].mxu0  ;;  %v9410_v21 = vadd.bf16 %v9314_v38, %v9214_v53  ;;  %v8629_v18 = vsel %vm19028_vm10, %v20356_v37, 0  ;;  %v8728_v46 = vsel %vm19015_vm9, %v20356_v37, 0  ;;  %v18076_v37 = vld [vmem:[%s24332_s0 + $0x4c8] sm:$0xff]   ;;  %v18077_v30 = vld [vmem:[%s24332_s0 + $0x4d0] sm:$0xff]   ;;  %v18079_v38 = vld [vmem:[%s24332_s0 + $0x4e0] sm:$0xff]  }
 0x261   :  { %v8494_v14 = vmax.bf16 %v8253_v41, %v8252_v54  ;;  %v9411_v1 = vadd.bf16 %v9315_v47, %v9215_v33  ;;  %v8729_v5 = vsel %vm19015_vm9, %v8492_v57, 0  ;;  %v8924_v23 = vsel %vm19103_vm15, %v8492_v57, 0 }
 0x262   :  { %16910 = vmatmul.mubr.msk.bf16.gmra.mrb[44].mxu0 %vm2078_vm0, %v18074_v44  ;;  %v8824_v52 = vadd.bf16 %v8728_v46, %v8628_v39  ;;  %v8825_v8 = vadd.bf16 %v8729_v5, %v8629_v18  ;;  %v8925_v4 = vsel %vm19103_vm15, %v20395_v58, 0  ;;  %v9120_v43 = vsel %vm19110_vm1, %v20395_v58, 0  ;;  %v18078_v58 = vld [vmem:[%s24332_s0 + $0x4d8] sm:$0xff]  }
 0x263   :  { %v20452_v59 = vcombine.low %v9410_v21, %v9411_v1  ;;  %16913 = vmatprep.mubr.msk.bf16.mxu0 %vm2078_vm0, %v18075_v60  ;;  %v9121_v40 = vsel %vm19110_vm1, %v8494_v14, 0  ;;  %v9316_v51 = vsel %vm19146_vm3, %v8494_v14, 0  ;;  %v9317_v42 = vsel %vm19146_vm3, %v8495_v27, 0  ;;  %v18080_v21 = vld [vmem:[%s24332_s0 + $0x4e8] sm:$0xff]   ;;  %v18081_v1 = vld [vmem:[%s24332_s0 + $0x4f0] sm:$0xff]   ;;  %v18082_v5 = vld [vmem:[%s24332_s0 + $0x4f8] sm:$0xff]  }
 0x264   :  { %v9020_v32 = vadd.bf16 %v8924_v23, %v8824_v52  ;;  %v9021_v57 = vadd.bf16 %v8925_v4, %v8825_v8  ;;  %v18083_v52 = vld [vmem:[%s24332_s0 + $0x500] sm:$0xff]  }
 0x265   :  { %24464 = vst [vmem:[#allocation21_spill] sm:$0xff] %v20452_v59  ;;  %17221 = vmatprep.mubr.bf16.mxu1 %v20452_v59  ;;  %v16807_v11 = vpop.f32.mrb[196].mxu0  ;;  %v20528_v4 = vld [vmem:[%s24334_s2] ss:$0 sm:$0xff] }
 0x266   :  { %v3761_v63 = vpop.f32.mrb[197].mxu0  ;;  %v9216_v54 = vadd.bf16 %v9120_v43, %v9020_v32  ;;  %v9217_v22 = vadd.bf16 %v9121_v40, %v9021_v57  ;;  %v3754_v40 = vadd.f32 %v20528_v4, %v20423_v62  ;;  %v3757_v32 = vadd.f32 %v20528_v4, %v20436_v19  ;;  %v18084_v62 = vld [vmem:[%s24332_s0 + $0x508] sm:$0xff]  }
 0x267   :  { %v16808_v12 = vpop.f32.mrb[198].mxu0  ;;  %v3749_v57 = vadd.f32 %v20528_v4, %v20443_v55  ;;  %v3770_v43 = vadd.f32 %v20528_v4, %v16807_v11  ;;  %v18085_v55 = vld [vmem:[%s24332_s0 + $0x510] sm:$0xff]  }
 0x268   :  { %v3764_v26 = vpop.f32.mrb[199].mxu0  ;;  %v9412_v15 = vadd.bf16 %v9316_v51, %v9216_v54  ;;  %v9413_v29 = vadd.bf16 %v9317_v42, %v9217_v22  ;;  %v3762_v51 = vadd.f32 %v20528_v4, %v3761_v63  ;;  %v5474_v42 = vmax.f32 %v3754_v40, 0.0 }
 0x269   :  { %v3765_v22 = vadd.f32 %v20528_v4, %v3764_v26  ;;  %v5475_v63 = vmax.f32 %v3757_v32, 0.0 }
 0x26a   :  { %16914 = vmatmul.mubr.msk.bf16.gmra.mrb[48].mxu0 %vm2078_vm0, %v18076_v37  ;;  %v20486_v44 = vcombine.low %v9412_v15, %v9413_v29  ;;  %v3746_v37 = vadd.f32 %v20528_v4, %v20431_v20  ;;  %v3773_v20 = vadd.f32 %v20528_v4, %v16808_v12  ;;  %v5473_v29 = vmax.f32 %v3749_v57, 0.0 }
 0x26b   :  { %16917 = vmatprep.mubr.msk.bf16.mxu0 %vm2078_vm0, %v18077_v30  ;;  %v15476_v32 = vpack.c.bf16 %v5475_v63, %v5475_v63 }
 0x26c   :  { %24465 = vst [vmem:[#allocation22_spill] sm:$0xff] %v20486_v44  ;;  %17222 = vmatmul.mubr.bf16.gmra.mrb[72].mxu1 %v20486_v44  ;;  %v5472_v11 = vmax.f32 %v3746_v37, 0.0  ;;  %v5479_v26 = vmax.f32 %v3773_v20, 0.0 }
 0x26d   :  { %v16811_v53 = vpop.f32.mrb[200].mxu0 }
 0x26e   :  { %v3777_v33 = vpop.f32.mrb[201].mxu0 }
 0x26f   :  { %v16812_v41 = vpop.f32.mrb[202].mxu0  ;;  %v3778_v12 = vadd.f32 %v20528_v4, %v3777_v33 }
 0x270   :  { %v3780_v60 = vpop.f32.mrb[203].mxu0  ;;  %v3789_v40 = vadd.f32 %v20528_v4, %v16812_v41  ;;  %v18086_v41 = vld [vmem:[%s24332_s0 + $0x518] sm:$0xff]  }
 0x271   :  { %v3781_v37 = vadd.f32 %v20528_v4, %v3780_v60  ;;  %v5480_v20 = vmax.f32 %v3778_v12, 0.0  ;;  %v20577_v60 = vpack.c.bf16 %v5479_v26, %v5479_v26 }
 0x272   :  { %16918 = vmatmul.mubr.msk.bf16.gmra.mrb[52].mxu0 %vm2078_vm0, %v18078_v58  ;;  %v3786_v58 = vadd.f32 %v20528_v4, %v16811_v53  ;;  %v20566_v53 = vpack.c.bf16 %v5473_v29, %v5473_v29  ;;  %v18087_v29 = vld [vmem:[%s24332_s0 + $0x520] sm:$0xff]  }
 0x273   :  { %16921 = vmatprep.mubr.msk.bf16.mxu0 %vm2078_vm0, %v18079_v38  ;;  %v5478_v38 = vmax.f32 %v3770_v43, 0.0 }
 0x274   :  { %v5482_v57 = vmax.f32 %v3786_v58, 0.0  ;;  %v5483_v58 = vmax.f32 %v3789_v40, 0.0 }
 0x275   :  { %v16815_v27 = vpop.f32.mrb[204].mxu0 }
 0x276   :  { %v3793_v47 = vpop.f32.mrb[205].mxu0  ;;  %v3802_v33 = vadd.f32 %v20528_v4, %v16815_v27  ;;  %v20587_v44 = vpack.c.bf16 %v5482_v57, %v5482_v57 }
 0x277   :  { %v20500_v14 = vpop.f32.mrb[206].mxu0 }
 0x278   :  { %v20505_v39 = vpop.f32.mrb[207].mxu0  ;;  %v5486_v26 = vmax.f32 %v3802_v33, 0.0  ;;  %v20598_v33 = vpack.c.bf16 %v5483_v58, %v5483_v58 }
 0x27a   :  { %16922 = vmatmul.mubr.msk.bf16.gmra.mrb[56].mxu0 %vm2078_vm0, %v18080_v21  ;;  %v5476_v21 = vmax.f32 %v3762_v51, 0.0  ;;  %v20569_v51 = vpack.c.bf16 %v5478_v38, %v5478_v38  ;;  %v5481_v38 = vmax.f32 %v3781_v37, 0.0  ;;  %v3797_v37 = vadd.f32 %v20528_v4, %v20505_v39 }
 0x27b   :  { %16925 = vmatprep.mubr.msk.bf16.mxu0 %vm2078_vm0, %v18081_v1  ;;  %v5477_v1 = vmax.f32 %v3765_v22, 0.0 }
 0x27d   :  { %v20509_v18 = vpop.f32.mrb[208].mxu0 }
 0x27e   :  { %v20511_v46 = vpop.f32.mrb[209].mxu0 }
 0x27f   :  { %v20516_v23 = vpop.f32.mrb[210].mxu0 }
 0x280   :  { %v20521_v8 = vpop.f32.mrb[211].mxu0 }
 0x282   :  { %16926 = vmatmul.mubr.msk.bf16.gmra.mrb[60].mxu0 %vm2078_vm0, %v18082_v5  ;;  %v20560_v5 = vpack.c.bf16 %v5474_v42, %v5474_v42  ;;  %v20579_v42 = vpack.c.bf16 %v5477_v1, %v5477_v1 }
 0x283   :  { %16929 = vmatprep.mubr.msk.bf16.mxu0 %vm2078_vm0, %v18083_v52  ;;  %v20562_v52 = vpack.c.bf16 %v5472_v11, %v5472_v11  ;;  %v3794_v11 = vadd.f32 %v20528_v4, %v3793_v47  ;;  %v20590_v47 = vpack.c.bf16 %v5480_v20, %v5480_v20 }
 0x285   :  { %v20538_v30 = vpop.f32.mrb[212].mxu0  ;;  %v5484_v40 = vmax.f32 %v3794_v11, 0.0 }
 0x286   :  { %v20542_v54 = vpop.f32.mrb[213].mxu0 }
 0x287   :  { %v20549_v19 = vpop.f32.mrb[214].mxu0 }
 0x288   :  { %v20554_v15 = vpop.f32.mrb[215].mxu0 }
 0x28a   :  { %16930 = vmatmul.mubr.msk.bf16.gmra.mrb[64].mxu0 %vm2078_vm0, %v18084_v62  ;;  %v20571_v62 = vpack.c.bf16 %v5476_v21, %v5476_v21 }
 0x28b   :  { %16933 = vmatprep.mubr.msk.bf16.mxu0 %vm2078_vm0, %v18085_v55 }
 0x28d   :  { %v16827_v43 = vpop.f32.mrb[216].mxu0 }
 0x28e   :  { %v3850_v22 = vadd.f32 %v20528_v4, %v16827_v43  ;;  %v3841_v55 = vpop.f32.mrb[217].mxu0 }
 0x28f   :  { %v3842_v27 = vadd.f32 %v20528_v4, %v3841_v55  ;;  %v16828_v63 = vpop.f32.mrb[218].mxu0  ;;  %v3805_v55 = vadd.f32 %v20528_v4, %v20500_v14  ;;  %v20603_v14 = vpack.c.bf16 %v5486_v26, %v5486_v26 }
 0x290   :  { %v5498_v21 = vmax.f32 %v3850_v22, 0.0  ;;  %v3853_v12 = vadd.f32 %v20528_v4, %v16828_v63  ;;  %v3844_v43 = vpop.f32.mrb[219].mxu0 }
 0x291   :  { %v5496_v1 = vmax.f32 %v3842_v27, 0.0  ;;  %v3845_v59 = vadd.f32 %v20528_v4, %v3844_v43  ;;  %v20600_v27 = vpack.c.bf16 %v5481_v38, %v5481_v38 }
 0x292   :  { %v15499_v3 = vpack.c.bf16 %v5498_v21, %v5498_v21  ;;  %v5499_v17 = vmax.f32 %v3853_v12, 0.0  ;;  %16934 = vmatmul.mubr.msk.bf16.gmra.mrb[68].mxu0 %vm2078_vm0, %v18086_v41  ;;  %v3818_v41 = vadd.f32 %v20528_v4, %v20509_v18  ;;  %v5487_v12 = vmax.f32 %v3805_v55, 0.0 }
 0x293   :  { %v15497_v22 = vpack.c.bf16 %v5496_v1, %v5496_v1  ;;  %v5497_v57 = vmax.f32 %v3845_v59, 0.0  ;;  %16937 = vmatprep.mubr.msk.bf16.mxu0 %vm2078_vm0, %v18087_v29  ;;  %v3810_v59 = vadd.f32 %v20528_v4, %v20511_v46  ;;  %v18089_v46 = vld [vmem:[%s24332_s0 + $0x530] sm:$0xff]  }
 0x294   :  { %v8258_v20 = vmax.bf16 %v15499_v3, %v20560_v5  ;;  %v15500_v63 = vpack.c.bf16 %v5499_v17, %v5499_v17  ;;  %v18088_v17 = vld [vmem:[%s24332_s0 + $0x528] sm:$0xff]   ;;  %v20614_v3 = vpack.c.bf16 %v5484_v40, %v5484_v40  ;;  %v5485_v5 = vmax.f32 %v3797_v37, 0.0 }
 0x295   :  { %v8256_v11 = vmax.bf16 %v15497_v22, %v20562_v52  ;;  %v15498_v21 = vpack.c.bf16 %v5497_v57, %v5497_v57  ;;  %v16831_v39 = vpop.f32.mrb[220].mxu0  ;;  %v5490_v40 = vmax.f32 %v3818_v41, 0.0 }
 0x296   :  { %v8259_v29 = vmax.bf16 %v15500_v63, %v15476_v32  ;;  %v3866_v58 = vadd.f32 %v20528_v4, %v16831_v39  ;;  %v3857_v38 = vpop.f32.mrb[221].mxu0  ;;  %v3821_v32 = vadd.f32 %v20528_v4, %v20516_v23  ;;  %v5488_v63 = vmax.f32 %v3810_v59, 0.0 }
 0x297   :  { %v8257_v18 = vmax.bf16 %v15498_v21, %v20566_v53  ;;  %v3858_v52 = vadd.f32 %v20528_v4, %v3857_v38  ;;  %v16832_v43 = vpop.f32.mrb[222].mxu0  ;;  %v3813_v23 = vadd.f32 %v20528_v4, %v20521_v8 }
 0x298   :  { %v8497_v26 = vmax.bf16 %v8259_v29, %v8258_v20  ;;  %v5502_v1 = vmax.f32 %v3866_v58, 0.0  ;;  %v3869_v55 = vadd.f32 %v20528_v4, %v16832_v43  ;;  %v3860_v22 = vpop.f32.mrb[223].mxu0  ;;  %v20636_v43 = vpack.c.bf16 %v5485_v5, %v5485_v5 }
 0x299   :  { %v8496_v57 = vmax.bf16 %v8257_v18, %v8256_v11  ;;  %v5500_v37 = vmax.f32 %v3858_v52, 0.0  ;;  %v3861_v53 = vadd.f32 %v20528_v4, %v3860_v22  ;;  %v5491_v11 = vmax.f32 %v3821_v32, 0.0 }
 0x29a   :  { %v8730_v21 = vsel %vm19015_vm9, %v8497_v26, 0  ;;  %v15503_v39 = vpack.c.bf16 %v5502_v1, %v5502_v1  ;;  %v5503_v38 = vmax.f32 %v3869_v55, 0.0  ;;  %16938 = vmatmul.mubr.msk.bf16.gmra.mrb[72].mxu0 %vm2078_vm0, %v18088_v17  ;;  %v20634_v52 = vpack.c.bf16 %v5487_v12, %v5487_v12 }
 0x29b   :  { %v8630_v20 = vsel %vm19028_vm10, %v8496_v57, 0  ;;  %v15501_v29 = vpack.c.bf16 %v5500_v37, %v5500_v37  ;;  %v5501_v41 = vmax.f32 %v3861_v53, 0.0  ;;  %16941 = vmatprep.mubr.msk.bf16.mxu0 %vm2078_vm0, %v18089_v46  ;;  %v20639_v55 = vpack.c.bf16 %v5490_v40, %v5490_v40 }
 0x29c   :  { %v8826_v58 = vadd.bf16 %v8730_v21, %v8630_v20  ;;  %v8262_v59 = vmax.bf16 %v15503_v39, %v20569_v51  ;;  %v15504_v18 = vpack.c.bf16 %v5503_v38, %v5503_v38  ;;  %v3834_v22 = vadd.f32 %v20528_v4, %v20538_v30  ;;  %v18090_v51 = vld [vmem:[%s24332_s0 + $0x538] sm:$0xff]   ;;  %v18091_v30 = vld [vmem:[%s24332_s0 + $0x540] sm:$0xff]  }
 0x29d   :  { %v8260_v17 = vmax.bf16 %v15501_v29, %v20571_v62  ;;  %v15502_v1 = vpack.c.bf16 %v5501_v41, %v5501_v41  ;;  %v16835_v8 = vpop.f32.mrb[224].mxu0  ;;  %v20648_v12 = vpack.c.bf16 %v5488_v63, %v5488_v63  ;;  %v5489_v5 = vmax.f32 %v3813_v23, 0.0 }
 0x29e   :  { %v8263_v46 = vmax.bf16 %v15504_v18, %v20577_v60  ;;  %v3882_v32 = vadd.f32 %v20528_v4, %v16835_v8  ;;  %v3873_v57 = vpop.f32.mrb[225].mxu0  ;;  %v20655_v60 = vpack.c.bf16 %v5491_v11, %v5491_v11  ;;  %v20659_v53 = vadd.f32 %v20528_v4, %v20542_v54 }
 0x29f   :  { %v8261_v62 = vmax.bf16 %v15502_v1, %v20579_v42  ;;  %v3874_v40 = vadd.f32 %v20528_v4, %v3873_v57  ;;  %v16836_v37 = vpop.f32.mrb[226].mxu0  ;;  %v5494_v29 = vmax.f32 %v3834_v22, 0.0  ;;  %v8631_v41 = vsel %vm19028_vm10, %v8497_v26, 0 }
 0x2a0   :  { %v20661_v21 = vmax.bf16 %v8263_v46, %v8262_v59  ;;  %v5506_v63 = vmax.f32 %v3882_v32, 0.0  ;;  %v3876_v39 = vpop.f32.mrb[227].mxu0  ;;  %v3885_v42 = vadd.f32 %v20528_v4, %v16836_v37 }
 0x2a1   :  { %v8498_v38 = vmax.bf16 %v8261_v62, %v8260_v17  ;;  %v5504_v23 = vmax.f32 %v3874_v40, 0.0  ;;  %v3877_v20 = vadd.f32 %v20528_v4, %v3876_v39 }
 0x2a2   :  { %v8927_v11 = vsel %vm19103_vm15, %v20661_v21, 0  ;;  %v8732_v54 = vsel %vm19015_vm9, %v20661_v21, 0  ;;  %16942 = vmatmul.mubr.msk.bf16.gmra.mrb[76].mxu0 %vm2078_vm0, %v18090_v51  ;;  %v15507_v26 = vpack.c.bf16 %v5506_v63, %v5506_v63  ;;  %v9122_v32 = vsel %vm19110_vm1, %v20661_v21, 0 }
 0x2a3   :  { %v8632_v59 = vsel %vm19028_vm10, %v8498_v38, 0  ;;  %v8731_v18 = vsel %vm19015_vm9, %v8498_v38, 0  ;;  %v8926_v17 = vsel %vm19103_vm15, %v8498_v38, 0  ;;  %16945 = vmatprep.mubr.msk.bf16.mxu0 %vm2078_vm0, %v18091_v30  ;;  %v15505_v46 = vpack.c.bf16 %v5504_v23, %v5504_v23 }
 0x2a4   :  { %v8827_v1 = vadd.bf16 %v8731_v18, %v8631_v41  ;;  %v20681_v8 = vadd.bf16 %v8732_v54, %v8632_v59  ;;  %v9022_v22 = vadd.bf16 %v8926_v17, %v8826_v58  ;;  %v8266_v57 = vmax.bf16 %v15507_v26, %v20587_v44  ;;  %v18092_v58 = vld [vmem:[%s24332_s0 + $0x548] sm:$0xff]  }
 0x2a5   :  { %v5507_v51 = vmax.f32 %v3885_v42, 0.0  ;;  %v5505_v62 = vmax.f32 %v3877_v20, 0.0  ;;  %v16839_v40 = vpop.f32.mrb[228].mxu0  ;;  %v8264_v39 = vmax.bf16 %v15505_v46, %v20590_v47  ;;  %v20692_v23 = vpack.c.bf16 %v5489_v5, %v5489_v5  ;;  %v18093_v20 = vld [vmem:[%s24332_s0 + $0x550] sm:$0xff]  }
 0x2a6   :  { %v9023_v37 = vadd.bf16 %v8927_v11, %v8827_v1  ;;  %v3898_v63 = vadd.f32 %v20528_v4, %v16839_v40  ;;  %v3889_v30 = vpop.f32.mrb[229].mxu0  ;;  %v9218_v38 = vadd.bf16 %v9122_v32, %v9022_v22  ;;  %v5492_v47 = vmax.f32 %v20659_v53, 0.0 }
 0x2a7   :  { %v15508_v41 = vpack.c.bf16 %v5507_v51, %v5507_v51  ;;  %v15506_v54 = vpack.c.bf16 %v5505_v62, %v5505_v62  ;;  %v3890_v44 = vadd.f32 %v20528_v4, %v3889_v30  ;;  %v16840_v42 = vpop.f32.mrb[230].mxu0  ;;  %v20701_v11 = vadd.f32 %v20528_v4, %v20549_v19 }
 0x2a8   :  { %v5510_v59 = vmax.f32 %v3898_v63, 0.0  ;;  %v3901_v18 = vadd.f32 %v20528_v4, %v16840_v42  ;;  %v3892_v5 = vpop.f32.mrb[231].mxu0  ;;  %v20707_v46 = vpack.c.bf16 %v5494_v29, %v5494_v29  ;;  %v20711_v32 = vadd.f32 %v20528_v4, %v20554_v15 }
 0x2a9   :  { %v8267_v17 = vmax.bf16 %v15508_v41, %v20598_v33  ;;  %v8265_v26 = vmax.bf16 %v15506_v54, %v20600_v27  ;;  %v5508_v1 = vmax.f32 %v3890_v44, 0.0  ;;  %v3893_v22 = vadd.f32 %v20528_v4, %v3892_v5 }
 0x2aa   :  { %v15511_v51 = vpack.c.bf16 %v5510_v59, %v5510_v59  ;;  %v5511_v19 = vmax.f32 %v3901_v18, 0.0  ;;  %16946 = vmatmul.mubr.msk.bf16.gmra.mrb[80].mxu0 %vm2078_vm0, %v18092_v58  ;;  %v5495_v27 = vmax.f32 %v20701_v11, 0.0  ;;  %v8633_v29 = vsel %vm19028_vm10, %v20661_v21, 0 }
 0x2ab   :  { %v20714_v62 = vmax.bf16 %v8267_v17, %v8266_v57  ;;  %v20716_v40 = vmax.bf16 %v8265_v26, %v8264_v39  ;;  %v15509_v33 = vpack.c.bf16 %v5508_v1, %v5508_v1  ;;  %v5509_v63 = vmax.f32 %v3893_v22, 0.0  ;;  %16949 = vmatprep.mubr.msk.bf16.mxu0 %vm2078_vm0, %v18093_v20 }
 0x2ac   :  { %v8270_v15 = vmax.bf16 %v15511_v51, %v20603_v14  ;;  %v15512_v30 = vpack.c.bf16 %v5511_v19, %v5511_v19  ;;  %v18094_v14 = vld [vmem:[%s24332_s0 + $0x558] sm:$0xff]  }
 0x2ad   :  { %v8268_v41 = vmax.bf16 %v15509_v33, %v20614_v3  ;;  %v15510_v58 = vpack.c.bf16 %v5509_v63, %v5509_v63  ;;  %v16843_v57 = vpop.f32.mrb[232].mxu0  ;;  %v9123_v39 = vsel %vm19110_vm1, %v20716_v40, 0  ;;  %v9318_v54 = vsel %vm19146_vm3, %v20716_v40, 0 }
 0x2ae   :  { %v8271_v44 = vmax.bf16 %v15512_v30, %v20634_v52  ;;  %v3914_v42 = vadd.f32 %v20528_v4, %v16843_v57  ;;  %v3905_v21 = vpop.f32.mrb[233].mxu0  ;;  %v9219_v3 = vadd.bf16 %v9123_v39, %v9023_v37  ;;  %v9319_v20 = vsel %vm19146_vm3, %v20714_v62, 0  ;;  %v18095_v52 = vld [vmem:[%s24332_s0 + $0x560] sm:$0xff]  }
 0x2af   :  { %v8269_v59 = vmax.bf16 %v15510_v58, %v20636_v43  ;;  %v3906_v18 = vadd.f32 %v20528_v4, %v3905_v21  ;;  %v16844_v5 = vpop.f32.mrb[234].mxu0  ;;  %v9414_v17 = vadd.bf16 %v9318_v54, %v9218_v38  ;;  %v8733_v26 = vsel %vm19015_vm9, %v20716_v40, 0 }
 0x2b0   :  { %v20747_v1 = vmax.bf16 %v8271_v44, %v8270_v15  ;;  %v5514_v37 = vmax.f32 %v3914_v42, 0.0  ;;  %v3917_v22 = vadd.f32 %v20528_v4, %v16844_v5  ;;  %v3908_v51 = vpop.f32.mrb[235].mxu0  ;;  %v9415_v19 = vadd.bf16 %v9319_v20, %v9219_v3 }
 0x2b1   :  { %v20750_v43 = vmax.bf16 %v8269_v59, %v8268_v41  ;;  %v5512_v33 = vmax.f32 %v3906_v18, 0.0  ;;  %v3909_v38 = vadd.f32 %v20528_v4, %v3908_v51  ;;  %v8829_v63 = vadd.bf16 %v8733_v26, %v8633_v29 }
 0x2b2   :  { %v5493_v30 = vmax.f32 %v20711_v32, 0.0  ;;  %v15515_v58 = vpack.c.bf16 %v5514_v37, %v5514_v37  ;;  %v5515_v57 = vmax.f32 %v3917_v22, 0.0  ;;  %16950 = vmatmul.mubr.msk.bf16.gmra.mrb[84].mxu0 %vm2078_vm0, %v18094_v14  ;;  %v20755_v39 = vcombine.low %v9414_v17, %v9415_v19  ;;  %v18097_v19 = vld [vmem:[%s24332_s0 + $0x570] sm:$0xff]  }
 0x2b3   :  { %v15513_v15 = vpack.c.bf16 %v5512_v33, %v5512_v33  ;;  %v5513_v54 = vmax.f32 %v3909_v38, 0.0  ;;  %v8636_v44 = vsel %vm19028_vm10, %v20750_v43, 0  ;;  %v8736_v41 = vsel %vm19015_vm9, %v20747_v1, 0  ;;  %16953 = vmatprep.mubr.msk.bf16.mxu0 %vm2078_vm0, %v18095_v52  ;;  %v18096_v52 = vld [vmem:[%s24332_s0 + $0x568] sm:$0xff]  }
 0x2b4   :  { %24466 = vst [vmem:[#allocation23_spill] sm:$0xff] %v20755_v39  ;;  %v8274_v32 = vmax.bf16 %v15515_v58, %v20639_v55  ;;  %v15516_v29 = vpack.c.bf16 %v5515_v57, %v5515_v57  ;;  %17225 = vmatprep.mubr.bf16.mxu1 %v20755_v39  ;;  %v8832_v42 = vadd.bf16 %v8736_v41, %v8636_v44  ;;  %v8928_v21 = vsel %vm19103_vm15, %v20716_v40, 0 }
 0x2b5   :  { %v8272_v14 = vmax.bf16 %v15513_v15, %v20648_v12  ;;  %v15514_v3 = vpack.c.bf16 %v5513_v54, %v5513_v54  ;;  %v16847_v20 = vpop.f32.mrb[236].mxu0  ;;  %v8929_v59 = vsel %vm19103_vm15, %v20714_v62, 0  ;;  %v9024_v18 = vadd.bf16 %v8928_v21, %v20681_v8 }
 0x2b6   :  { %v8275_v55 = vmax.bf16 %v15516_v29, %v20655_v60  ;;  %v3930_v5 = vadd.f32 %v20528_v4, %v16847_v20  ;;  %v3921_v17 = vpop.f32.mrb[237].mxu0  ;;  %v9025_v26 = vadd.bf16 %v8929_v59, %v8829_v63  ;;  %v9124_v12 = vsel %vm19110_vm1, %v20714_v62, 0 }
 0x2b7   :  { %v8273_v37 = vmax.bf16 %v15514_v3, %v20692_v23  ;;  %v3922_v22 = vadd.f32 %v20528_v4, %v3921_v17  ;;  %v16848_v51 = vpop.f32.mrb[238].mxu0  ;;  %v9125_v60 = vsel %vm19110_vm1, %v20750_v43, 0  ;;  %v9220_v8 = vadd.bf16 %v9124_v12, %v9024_v18 }
 0x2b8   :  { %v20790_v33 = vmax.bf16 %v8275_v55, %v8274_v32  ;;  %v5518_v38 = vmax.f32 %v3930_v5, 0.0  ;;  %v3933_v63 = vadd.f32 %v20528_v4, %v16848_v51  ;;  %v3924_v58 = vpop.f32.mrb[239].mxu0  ;;  %v9221_v57 = vadd.bf16 %v9125_v60, %v9025_v26 }
 0x2b9   :  { %v15493_v23 = vpack.c.bf16 %v5492_v47, %v5492_v47  ;;  %v20796_v15 = vmax.bf16 %v8273_v37, %v8272_v14  ;;  %v5516_v54 = vmax.f32 %v3922_v22, 0.0  ;;  %v3925_v44 = vadd.f32 %v20528_v4, %v3924_v58  ;;  %v18098_v22 = vld [vmem:[%s24332_s0 + $0x578] sm:$0xff]  }
 0x2ba   :  { %v15496_v41 = vpack.c.bf16 %v5495_v27, %v5495_v27  ;;  %v15494_v32 = vpack.c.bf16 %v5493_v30, %v5493_v30  ;;  %v15519_v29 = vpack.c.bf16 %v5518_v38, %v5518_v38  ;;  %v8637_v21 = vsel %vm19028_vm10, %v20747_v1, 0  ;;  %16954 = vmatmul.mubr.msk.bf16.gmra.mrb[88].mxu0 %vm2078_vm0, %v18096_v52 }
 0x2bb   :  { %v15517_v53 = vpack.c.bf16 %v5516_v54, %v5516_v54  ;;  %v5519_v3 = vmax.f32 %v3933_v63, 0.0  ;;  %v5517_v47 = vmax.f32 %v3925_v44, 0.0  ;;  %v9320_v14 = vsel %vm19146_vm3, %v20750_v43, 0  ;;  %16957 = vmatprep.mubr.msk.bf16.mxu0 %vm2078_vm0, %v18097_v19 }
 0x2bc   :  { %v8278_v11 = vmax.bf16 %v15519_v29, %v20707_v46  ;;  %v8737_v27 = vsel %vm19015_vm9, %v20796_v15, 0  ;;  %v8932_v30 = vsel %vm19103_vm15, %v20796_v15, 0  ;;  %v9321_v20 = vsel %vm19146_vm3, %v20747_v1, 0 }
 0x2bd   :  { %v8276_v59 = vmax.bf16 %v15517_v53, %v15493_v23  ;;  %v15520_v18 = vpack.c.bf16 %v5519_v3, %v5519_v3  ;;  %v15518_v55 = vpack.c.bf16 %v5517_v47, %v5517_v47  ;;  %v8833_v5 = vadd.bf16 %v8737_v27, %v8637_v21  ;;  %v20820_v17 = vpop.f32.mrb[240].mxu0 }
 0x2be   :  { %v8933_v46 = vsel %vm19103_vm15, %v20790_v33, 0  ;;  %v9028_v52 = vadd.bf16 %v8932_v30, %v8832_v42  ;;  %v9416_v26 = vadd.bf16 %v9320_v14, %v9220_v8  ;;  %v9417_v12 = vadd.bf16 %v9321_v20, %v9221_v57  ;;  %v20825_v37 = vpop.f32.mrb[241].mxu0  ;;  %v18099_v42 = vld [vmem:[%s24332_s0 + $0x580] sm:$0xff]  }
 0x2bf   :  { %v9128_v51 = vsel %vm19110_vm1, %v20790_v33, 0  ;;  %v8279_v60 = vmax.bf16 %v15520_v18, %v15496_v41  ;;  %v8277_v19 = vmax.bf16 %v15518_v55, %v15494_v32  ;;  %v9029_v38 = vadd.bf16 %v8933_v46, %v8833_v5  ;;  %v20833_v63 = vpop.f32.mrb[242].mxu0  ;;  %v18100_v18 = vld [vmem:[%s24332_s0 + $0x588] sm:$0xff]  }
 0x2c0   :  { %v9224_v8 = vadd.bf16 %v9128_v51, %v9028_v52  ;;  %v20838_v58 = vcombine.low %v9416_v26, %v9417_v12  ;;  %v20840_v57 = vpop.f32.mrb[243].mxu0  ;;  %v8634_v32 = vsel %vm19028_vm10, %v20716_v40, 0  ;;  %v8635_v53 = vsel %vm19028_vm10, %v20714_v62, 0 }
 0x2c1   :  { %v8507_v23 = vmax.bf16 %v8279_v60, %v8278_v11  ;;  %v8506_v54 = vmax.bf16 %v8277_v19, %v8276_v59  ;;  %v8734_v47 = vsel %vm19015_vm9, %v20714_v62, 0  ;;  %v8735_v14 = vsel %vm19015_vm9, %v20750_v43, 0 }
 0x2c2   :  { %24467 = vst [vmem:[#allocation24_spill] sm:$0xff] %v20838_v58  ;;  %17226 = vmatmul.mubr.bf16.gmra.mrb[76].mxu1 %v20838_v58  ;;  %16958 = vmatmul.mubr.msk.bf16.gmra.mrb[92].mxu0 %vm2078_vm0, %v18098_v22  ;;  %v8930_v40 = vsel %vm19103_vm15, %v20750_v43, 0  ;;  %v8830_v30 = vadd.bf16 %v8734_v47, %v8634_v32  ;;  %v8831_v20 = vadd.bf16 %v8735_v14, %v8635_v53  ;;  %v9127_v62 = vsel %vm19110_vm1, %v20796_v15, 0  ;;  %v18101_v43 = vld [vmem:[%s24332_s0 + $0x590] sm:$0xff]  }
 0x2c3   :  { %v9129_v44 = vsel %vm19110_vm1, %v8506_v54, 0  ;;  %v9324_v41 = vsel %vm19146_vm3, %v8506_v54, 0  ;;  %16961 = vmatprep.mubr.msk.bf16.mxu0 %vm2078_vm0, %v18099_v42  ;;  %v9325_v3 = vsel %vm19146_vm3, %v8507_v23, 0  ;;  %v8931_v55 = vsel %vm19103_vm15, %v20747_v1, 0 }
 0x2c4   :  { %v9225_v29 = vadd.bf16 %v9129_v44, %v9029_v38  ;;  %v9420_v21 = vadd.bf16 %v9324_v41, %v9224_v8  ;;  %v9026_v46 = vadd.bf16 %v8930_v40, %v8830_v30  ;;  %v9027_v52 = vadd.bf16 %v8931_v55, %v8831_v20  ;;  %v18103_v41 = vld [vmem:[%s24332_s0 + $0x5a0] sm:$0xff]  }
 0x2c5   :  { %v16855_v11 = vpop.f32.mrb[244].mxu0  ;;  %v9126_v22 = vsel %vm19110_vm1, %v20747_v1, 0  ;;  %v9322_v51 = vsel %vm19146_vm3, %v20796_v15, 0  ;;  %v9323_v38 = vsel %vm19146_vm3, %v20790_v33, 0  ;;  %v18102_v15 = vld [vmem:[%s24332_s0 + $0x598] sm:$0xff]   ;;  %v18107_v20 = vld [vmem:[%s24332_s0 + $0x5c0] sm:$0xff]   ;;  %v3938_v55 = vadd.f32 %v20528_v4, %v20825_v37 }
 0x2c6   :  { %v9421_v27 = vadd.bf16 %v9325_v3, %v9225_v29  ;;  %v3953_v59 = vpop.f32.mrb[245].mxu0  ;;  %v9222_v60 = vadd.bf16 %v9126_v22, %v9026_v46  ;;  %v9223_v19 = vadd.bf16 %v9127_v62, %v9027_v52  ;;  %v18105_v3 = vld [vmem:[%s24332_s0 + $0x5b0] sm:$0xff]   ;;  %v3946_v62 = vadd.f32 %v20528_v4, %v20820_v17  ;;  %v18108_v17 = vld [vmem:[%s24332_s0 + $0x5c8] sm:$0xff]  }
 0x2c7   :  { %v16856_v5 = vpop.f32.mrb[246].mxu0  ;;  %v3941_v46 = vadd.f32 %v20528_v4, %v20840_v57  ;;  %v3962_v52 = vadd.f32 %v20528_v4, %v16855_v11  ;;  %v18109_v57 = vld [vmem:[%s24332_s0 + $0x5d0] sm:$0xff]   ;;  %v5520_v11 = vmax.f32 %v3938_v55, 0.0 }
 0x2c8   :  { %v3956_v26 = vpop.f32.mrb[247].mxu0  ;;  %v20878_v12 = vcombine.low %v9420_v21, %v9421_v27  ;;  %v9418_v42 = vadd.bf16 %v9322_v51, %v9222_v60  ;;  %v9419_v8 = vadd.bf16 %v9323_v38, %v9223_v19  ;;  %v18104_v21 = vld [vmem:[%s24332_s0 + $0x5a8] sm:$0xff]   ;;  %v18106_v27 = vld [vmem:[%s24332_s0 + $0x5b8] sm:$0xff]   ;;  %v3954_v51 = vadd.f32 %v20528_v4, %v3953_v59 }
 0x2c9   :  { %v5522_v19 = vmax.f32 %v3946_v62, 0.0  ;;  %v3965_v37 = vadd.f32 %v20528_v4, %v16856_v5 }
 0x2ca   :  { %24468 = vst [vmem:[#allocation25_spill] sm:$0xff] %v20878_v12  ;;  %16962 = vmatmul.mubr.msk.bf16.gmra.mrb[96].mxu0 %vm2078_vm0, %v18100_v18  ;;  %v20891_v54 = vcombine.low %v9418_v42, %v9419_v8 }
 0x2cb   :  { %16965 = vmatprep.mubr.msk.bf16.mxu0 %vm2078_vm0, %v18101_v43  ;;  %v3949_v43 = vadd.f32 %v20528_v4, %v20833_v63  ;;  %v3957_v63 = vadd.f32 %v20528_v4, %v3956_v26  ;;  %v20958_v5 = vpack.c.bf16 %v5522_v19, %v5522_v19  ;;  %v5527_v26 = vmax.f32 %v3965_v37, 0.0 }
 0x2cc   :  { %24469 = vst [vmem:[#allocation26_spill] sm:$0xff] %v20891_v54  ;;  %17229 = vmatprep.mubr.bf16.mxu1 %v20891_v54 }
 0x2cd   :  { %v16859_v23 = vpop.f32.mrb[248].mxu0  ;;  %17230 = vmatmul.mubr.bf16.gmra.mrb[80].mxu1 %v20878_v12  ;;  %v5523_v42 = vmax.f32 %v3949_v43, 0.0 }
 0x2ce   :  { %v3969_v1 = vpop.f32.mrb[249].mxu0  ;;  %v3978_v59 = vadd.f32 %v20528_v4, %v16859_v23 }
 0x2cf   :  { %v16860_v44 = vpop.f32.mrb[250].mxu0  ;;  %v15524_v62 = vpack.c.bf16 %v5523_v42, %v5523_v42 }
 0x2d0   :  { %v3972_v33 = vpop.f32.mrb[251].mxu0  ;;  %v5530_v55 = vmax.f32 %v3978_v59, 0.0  ;;  %v3981_v23 = vadd.f32 %v20528_v4, %v16860_v44  ;;  %v18110_v44 = vld [vmem:[%s24332_s0 + $0x5d8] sm:$0xff]  }
 0x2d2   :  { %16966 = vmatmul.mubr.msk.bf16.gmra.mrb[100].mxu0 %vm2078_vm0, %v18102_v15  ;;  %v5521_v15 = vmax.f32 %v3941_v46, 0.0 }
 0x2d3   :  { %16969 = vmatprep.mubr.msk.bf16.mxu0 %vm2078_vm0, %v18103_v41  ;;  %v5526_v41 = vmax.f32 %v3962_v52, 0.0 }
 0x2d4   :  { %v20964_v43 = vpack.c.bf16 %v5521_v15, %v5521_v15  ;;  %v20986_v15 = vpack.c.bf16 %v5530_v55, %v5530_v55 }
 0x2d5   :  { %v16863_v32 = vpop.f32.mrb[252].mxu0  ;;  %v20966_v46 = vpack.c.bf16 %v5526_v41, %v5526_v41  ;;  %v5531_v41 = vmax.f32 %v3981_v23, 0.0 }
 0x2d6   :  { %v3985_v29 = vpop.f32.mrb[253].mxu0  ;;  %v3994_v52 = vadd.f32 %v20528_v4, %v16863_v32 }
 0x2d7   :  { %v16864_v53 = vpop.f32.mrb[254].mxu0  ;;  %v3986_v37 = vadd.f32 %v20528_v4, %v3985_v29  ;;  %v18111_v29 = vld [vmem:[%s24332_s0 + $0x5e0] sm:$0xff]  }
 0x2d8   :  { %v20909_v47 = vpop.f32.mrb[255].mxu0  ;;  %v5534_v12 = vmax.f32 %v3994_v52, 0.0 }
 0x2d9   :  { %v3989_v55 = vadd.f32 %v20528_v4, %v20909_v47 }
 0x2da   :  { %16970 = vmatmul.mubr.msk.bf16.gmra.mrb[104].mxu0 %vm2078_vm0, %v18104_v21  ;;  %v5524_v21 = vmax.f32 %v3954_v51, 0.0 }
 0x2db   :  { %16973 = vmatprep.mubr.msk.bf16.mxu0 %vm2078_vm0, %v18105_v3  ;;  %v3970_v3 = vadd.f32 %v20528_v4, %v3969_v1  ;;  %v3973_v1 = vadd.f32 %v20528_v4, %v3972_v33  ;;  %v3997_v33 = vadd.f32 %v20528_v4, %v16864_v53 }
 0x2dd   :  { %v20913_v14 = vpop.f32.mrb[0].mxu0  ;;  %v5528_v19 = vmax.f32 %v3970_v3, 0.0  ;;  %v5535_v56 = vmax.f32 %v3997_v33, 0.0 }
 0x2de   :  { %v20915_v40 = vpop.f32.mrb[1].mxu0  ;;  %v4010_v52 = vadd.f32 %v20528_v4, %v20913_v14 }
 0x2df   :  { %v20920_v30 = vpop.f32.mrb[2].mxu0  ;;  %v20990_v53 = vpack.c.bf16 %v5528_v19, %v5528_v19 }
 0x2e0   :  { %v20925_v18 = vpop.f32.mrb[3].mxu0 }
 0x2e2   :  { %16974 = vmatmul.mubr.msk.bf16.gmra.mrb[108].mxu0 %vm2078_vm0, %v18106_v27  ;;  %v5525_v27 = vmax.f32 %v3957_v63, 0.0 }
 0x2e3   :  { %16977 = vmatprep.mubr.msk.bf16.mxu0 %vm2078_vm0, %v18107_v20  ;;  %v20961_v20 = vpack.c.bf16 %v5520_v11, %v5520_v11  ;;  %v20977_v11 = vpack.c.bf16 %v5527_v26, %v5527_v26  ;;  %v5529_v26 = vmax.f32 %v3973_v1, 0.0  ;;  %v20996_v1 = vpack.c.bf16 %v5531_v41, %v5531_v41 }
 0x2e4   :  { %v20979_v42 = vpack.c.bf16 %v5525_v27, %v5525_v27 }
 0x2e5   :  { %v20938_v22 = vpop.f32.mrb[4].mxu0 }
 0x2e6   :  { %v20941_v60 = vpop.f32.mrb[5].mxu0 }
 0x2e7   :  { %v20948_v38 = vpop.f32.mrb[6].mxu0 }
 0x2e8   :  { %v20954_v8 = vpop.f32.mrb[7].mxu0 }
 0x2ea   :  { %16978 = vmatmul.mubr.msk.bf16.gmra.mrb[112].mxu0 %vm2078_vm0, %v18108_v17  ;;  %v20970_v17 = vpack.c.bf16 %v5524_v21, %v5524_v21 }
 0x2eb   :  { %16981 = vmatprep.mubr.msk.bf16.mxu0 %vm2078_vm0, %v18109_v57 }
 0x2ed   :  { %v16875_v51 = vpop.f32.mrb[8].mxu0 }
 0x2ee   :  { %v4042_v63 = vadd.f32 %v20528_v4, %v16875_v51  ;;  %v4033_v57 = vpop.f32.mrb[9].mxu0 }
 0x2ef   :  { %v4034_v32 = vadd.f32 %v20528_v4, %v4033_v57  ;;  %v16876_v59 = vpop.f32.mrb[10].mxu0  ;;  %v5532_v57 = vmax.f32 %v3986_v37, 0.0 }
 0x2f0   :  { %v5546_v21 = vmax.f32 %v4042_v63, 0.0  ;;  %v4045_v3 = vadd.f32 %v20528_v4, %v16876_v59  ;;  %v4036_v51 = vpop.f32.mrb[11].mxu0  ;;  %v21003_v59 = vpack.c.bf16 %v5534_v12, %v5534_v12  ;;  %v5533_v12 = vmax.f32 %v3989_v55, 0.0 }
 0x2f1   :  { %v5544_v27 = vmax.f32 %v4034_v32, 0.0  ;;  %v4037_v54 = vadd.f32 %v20528_v4, %v4036_v51  ;;  %v21001_v32 = vpack.c.bf16 %v5529_v26, %v5529_v26 }
 0x2f2   :  { %v15547_v58 = vpack.c.bf16 %v5546_v21, %v5546_v21  ;;  %v5547_v39 = vmax.f32 %v4045_v3, 0.0  ;;  %16982 = vmatmul.mubr.msk.bf16.gmra.mrb[116].mxu0 %vm2078_vm0, %v18110_v44  ;;  %v21006_v21 = vpack.c.bf16 %v5532_v57, %v5532_v57 }
 0x2f3   :  { %v15545_v23 = vpack.c.bf16 %v5544_v27, %v5544_v27  ;;  %v5545_v63 = vmax.f32 %v4037_v54, 0.0  ;;  %16985 = vmatprep.mubr.msk.bf16.mxu0 %vm2078_vm0, %v18111_v29  ;;  %v4002_v54 = vadd.f32 %v20528_v4, %v20915_v40  ;;  %v18113_v40 = vld [vmem:[%s24332_s0 + $0x5f0] sm:$0xff]  }
 0x2f4   :  { %v8282_v19 = vmax.bf16 %v15547_v58, %v20958_v5  ;;  %v15548_v37 = vpack.c.bf16 %v5547_v39, %v5547_v39  ;;  %v18112_v39 = vld [vmem:[%s24332_s0 + $0x5e8] sm:$0xff]   ;;  %v21014_v58 = vpack.c.bf16 %v5535_v56, %v5535_v56  ;;  %v21024_v56 = vadd.f32 %v20528_v4, %v20920_v30 }
 0x2f5   :  { %v8280_v44 = vmax.bf16 %v15545_v23, %v20961_v20  ;;  %v15546_v33 = vpack.c.bf16 %v5545_v63, %v5545_v63  ;;  %v16879_v47 = vpop.f32.mrb[12].mxu0  ;;  %v5536_v63 = vmax.f32 %v4002_v54, 0.0  ;;  %v21039_v54 = vadd.f32 %v20528_v4, %v20938_v22 }
 0x2f6   :  { %v8283_v29 = vmax.bf16 %v15548_v37, %v15524_v62  ;;  %v4058_v41 = vadd.f32 %v20528_v4, %v16879_v47  ;;  %v4049_v14 = vpop.f32.mrb[13].mxu0  ;;  %v5538_v62 = vmax.f32 %v4010_v52, 0.0  ;;  %v21032_v52 = vadd.f32 %v20528_v4, %v20925_v18 }
 0x2f7   :  { %v8281_v5 = vmax.bf16 %v15546_v33, %v20964_v43  ;;  %v4050_v20 = vadd.f32 %v20528_v4, %v4049_v14  ;;  %v16880_v3 = vpop.f32.mrb[14].mxu0 }
 0x2f8   :  { %v8509_v51 = vmax.bf16 %v8283_v29, %v8282_v19  ;;  %v5550_v26 = vmax.f32 %v4058_v41, 0.0  ;;  %v4061_v27 = vadd.f32 %v20528_v4, %v16880_v3  ;;  %v4052_v57 = vpop.f32.mrb[15].mxu0 }
 0x2f9   :  { %v8508_v55 = vmax.bf16 %v8281_v5, %v8280_v44  ;;  %v5548_v23 = vmax.f32 %v4050_v20, 0.0  ;;  %v4053_v43 = vadd.f32 %v20528_v4, %v4052_v57  ;;  %v21044_v5 = vpack.c.bf16 %v5538_v62, %v5538_v62 }
 0x2fa   :  { %v8738_v37 = vsel %vm19015_vm9, %v8509_v51, 0  ;;  %v15551_v33 = vpack.c.bf16 %v5550_v26, %v5550_v26  ;;  %v5551_v47 = vmax.f32 %v4061_v27, 0.0  ;;  %16986 = vmatmul.mubr.msk.bf16.gmra.mrb[120].mxu0 %vm2078_vm0, %v18112_v39  ;;  %v21042_v39 = vpack.c.bf16 %v5533_v12, %v5533_v12 }
 0x2fb   :  { %v8638_v30 = vsel %vm19028_vm10, %v8508_v55, 0  ;;  %v15549_v19 = vpack.c.bf16 %v5548_v23, %v5548_v23  ;;  %v5549_v44 = vmax.f32 %v4053_v43, 0.0  ;;  %16989 = vmatprep.mubr.msk.bf16.mxu0 %vm2078_vm0, %v18113_v40  ;;  %v21047_v26 = vpack.c.bf16 %v5536_v63, %v5536_v63 }
 0x2fc   :  { %v8834_v29 = vadd.bf16 %v8738_v37, %v8638_v30  ;;  %v8286_v41 = vmax.bf16 %v15551_v33, %v20966_v46  ;;  %v15552_v14 = vpack.c.bf16 %v5551_v47, %v5551_v47  ;;  %v5539_v40 = vmax.f32 %v21024_v56, 0.0  ;;  %v18114_v46 = vld [vmem:[%s24332_s0 + $0x5f8] sm:$0xff]  }
 0x2fd   :  { %v8284_v18 = vmax.bf16 %v15549_v19, %v20970_v17  ;;  %v15550_v20 = vpack.c.bf16 %v5549_v44, %v5549_v44  ;;  %v16883_v3 = vpop.f32.mrb[16].mxu0  ;;  %v5537_v12 = vmax.f32 %v21032_v52, 0.0  ;;  %v21058_v17 = vadd.f32 %v20528_v4, %v20941_v60 }
 0x2fe   :  { %v8287_v27 = vmax.bf16 %v15552_v14, %v20977_v11  ;;  %v4074_v22 = vadd.f32 %v20528_v4, %v16883_v3  ;;  %v4065_v57 = vpop.f32.mrb[17].mxu0  ;;  %v18115_v11 = vld [vmem:[%s24332_s0 + $0x600] sm:$0xff]   ;;  %v5542_v23 = vmax.f32 %v21039_v54, 0.0  ;;  %v21068_v43 = vadd.f32 %v20528_v4, %v20948_v38 }
 0x2ff   :  { %v8285_v62 = vmax.bf16 %v15550_v20, %v20979_v42  ;;  %v4066_v55 = vadd.f32 %v20528_v4, %v4065_v57  ;;  %v16884_v56 = vpop.f32.mrb[18].mxu0  ;;  %v4021_v30 = vadd.f32 %v20528_v4, %v20954_v8  ;;  %v8639_v19 = vsel %vm19028_vm10, %v8509_v51, 0 }
 0x300   :  { %v21070_v63 = vmax.bf16 %v8287_v27, %v8286_v41  ;;  %v5554_v37 = vmax.f32 %v4074_v22, 0.0  ;;  %v4068_v60 = vpop.f32.mrb[19].mxu0  ;;  %v4077_v42 = vadd.f32 %v20528_v4, %v16884_v56 }
 0x301   :  { %v8510_v33 = vmax.bf16 %v8285_v62, %v8284_v18  ;;  %v5552_v47 = vmax.f32 %v4066_v55, 0.0  ;;  %v4069_v52 = vadd.f32 %v20528_v4, %v4068_v60  ;;  %v5540_v60 = vmax.f32 %v21058_v17, 0.0 }
 0x302   :  { %v8935_v38 = vsel %vm19103_vm15, %v21070_v63, 0  ;;  %v8740_v44 = vsel %vm19015_vm9, %v21070_v63, 0  ;;  %16990 = vmatmul.mubr.msk.bf16.gmra.mrb[124].mxu0 %vm2078_vm0, %v18114_v46  ;;  %v15555_v8 = vpack.c.bf16 %v5554_v37, %v5554_v37  ;;  %v9130_v3 = vsel %vm19110_vm1, %v21070_v63, 0 }
 0x303   :  { %v8640_v54 = vsel %vm19028_vm10, %v8510_v33, 0  ;;  %v8739_v41 = vsel %vm19015_vm9, %v8510_v33, 0  ;;  %v8934_v4 = vsel %vm19103_vm15, %v8510_v33, 0  ;;  %16993 = vmatprep.mubr.msk.bf16.mxu0 %vm2078_vm0, %v18115_v11  ;;  %v15553_v20 = vpack.c.bf16 %v5552_v47, %v5552_v47 }
 0x304   :  { %v8835_v51 = vadd.bf16 %v8739_v41, %v8639_v19  ;;  %v21092_v14 = vadd.bf16 %v8740_v44, %v8640_v54  ;;  %v9030_v18 = vadd.bf16 %v8934_v4, %v8834_v29  ;;  %v8290_v27 = vmax.bf16 %v15555_v8, %v20986_v15  ;;  %v21106_v29 = vld [vmem:[%s24334_s2] ss:$0 sm:$0xff]  ;;  %v18116_v15 = vld [vmem:[%s24332_s0 + $0x608] sm:$0xff]  }
 0x305   :  { %v5555_v22 = vmax.f32 %v4077_v42, 0.0  ;;  %v5553_v57 = vmax.f32 %v4069_v52, 0.0  ;;  %v16887_v46 = vpop.f32.mrb[20].mxu0  ;;  %v8288_v56 = vmax.bf16 %v15553_v20, %v20990_v53  ;;  %v18117_v53 = vld [vmem:[%s24332_s0 + $0x610] sm:$0xff]   ;;  %v5543_v19 = vmax.f32 %v21068_v43, 0.0 }
 0x306   :  { %v21098_v62 = vadd.bf16 %v8935_v38, %v8835_v51  ;;  %v21100_v55 = vadd.bf16 %v9130_v3, %v9030_v18  ;;  %v4090_v11 = vadd.f32 %v21106_v29, %v16887_v46  ;;  %v4081_v37 = vpop.f32.mrb[21].mxu0  ;;  %v5541_v38 = vmax.f32 %v4021_v30, 0.0 }
 0x307   :  { %v15556_v33 = vpack.c.bf16 %v5555_v22, %v5555_v22  ;;  %v15554_v47 = vpack.c.bf16 %v5553_v57, %v5553_v57  ;;  %v4082_v42 = vadd.f32 %v21106_v29, %v4081_v37  ;;  %v16888_v52 = vpop.f32.mrb[22].mxu0  ;;  %v21122_v18 = vpack.c.bf16 %v5539_v40, %v5539_v40 }
 0x308   :  { %v5558_v44 = vmax.f32 %v4090_v11, 0.0  ;;  %v4093_v54 = vadd.f32 %v21106_v29, %v16888_v52  ;;  %v4084_v41 = vpop.f32.mrb[23].mxu0  ;;  %v21124_v20 = vpack.c.bf16 %v5537_v12, %v5537_v12  ;;  %v21137_v11 = vpack.c.bf16 %v5543_v19, %v5543_v19 }
 0x309   :  { %v8291_v4 = vmax.bf16 %v15556_v33, %v20996_v1  ;;  %v8289_v17 = vmax.bf16 %v15554_v47, %v21001_v32  ;;  %v5556_v8 = vmax.f32 %v4082_v42, 0.0  ;;  %v4085_v51 = vadd.f32 %v21106_v29, %v4084_v41  ;;  %v18118_v42 = vld [vmem:[%s24332_s0 + $0x618] sm:$0xff]  }
 0x30a   :  { %v15559_v3 = vpack.c.bf16 %v5558_v44, %v5558_v44  ;;  %v5559_v22 = vmax.f32 %v4093_v54, 0.0  ;;  %16994 = vmatmul.mubr.msk.bf16.gmra.mrb[128].mxu0 %vm2078_vm0, %v18116_v15  ;;  %v21132_v1 = vpack.c.bf16 %v5542_v23, %v5542_v23  ;;  %v21134_v32 = vpack.c.bf16 %v5540_v60, %v5540_v60  ;;  %v18119_v44 = vld [vmem:[%s24332_s0 + $0x620] sm:$0xff]  }
 0x30b   :  { %v21127_v43 = vmax.bf16 %v8291_v4, %v8290_v27  ;;  %v21129_v30 = vmax.bf16 %v8289_v17, %v8288_v56  ;;  %v15557_v57 = vpack.c.bf16 %v5556_v8, %v5556_v8  ;;  %v5557_v46 = vmax.f32 %v4085_v51, 0.0  ;;  %16997 = vmatprep.mubr.msk.bf16.mxu0 %vm2078_vm0, %v18117_v53 }
 0x30c   :  { %v8294_v40 = vmax.bf16 %v15559_v3, %v21003_v59  ;;  %v15560_v12 = vpack.c.bf16 %v5559_v22, %v5559_v22  ;;  %v21139_v37 = vpack.c.bf16 %v5541_v38, %v5541_v38  ;;  %v8641_v23 = vsel %vm19028_vm10, %v21070_v63, 0 }
 0x30d   :  { %v8742_v27 = vsel %vm19015_vm9, %v21127_v43, 0  ;;  %v8642_v56 = vsel %vm19028_vm10, %v21129_v30, 0  ;;  %v16891_v15 = vpop.f32.mrb[24].mxu0  ;;  %v8741_v59 = vsel %vm19015_vm9, %v21129_v30, 0  ;;  %v8292_v33 = vmax.bf16 %v15557_v57, %v21006_v21 }
 0x30e   :  { %v21153_v60 = vadd.bf16 %v8742_v27, %v8642_v56  ;;  %v4097_v47 = vpop.f32.mrb[25].mxu0  ;;  %v21159_v52 = vadd.bf16 %v8741_v59, %v8641_v23  ;;  %v8295_v53 = vmax.bf16 %v15560_v12, %v21014_v58  ;;  %v15558_v19 = vpack.c.bf16 %v5557_v46, %v5557_v46 }
 0x30f   :  { %v4106_v63 = vadd.f32 %v21106_v29, %v16891_v15  ;;  %v16892_v38 = vpop.f32.mrb[26].mxu0  ;;  %v4098_v54 = vadd.f32 %v21106_v29, %v4097_v47  ;;  %v9131_v4 = vsel %vm19110_vm1, %v21129_v30, 0  ;;  %v9326_v58 = vsel %vm19146_vm3, %v21129_v30, 0 }
 0x310   :  { %v4109_v21 = vadd.f32 %v21106_v29, %v16892_v38  ;;  %v4100_v41 = vpop.f32.mrb[27].mxu0  ;;  %v21174_v17 = vmax.bf16 %v8295_v53, %v8294_v40  ;;  %v8293_v8 = vmax.bf16 %v15558_v19, %v21042_v39  ;;  %v8643_v22 = vsel %vm19028_vm10, %v21127_v43, 0 }
 0x311   :  { %v5562_v51 = vmax.f32 %v4106_v63, 0.0  ;;  %v4101_v3 = vadd.f32 %v21106_v29, %v4100_v41  ;;  %v5560_v57 = vmax.f32 %v4098_v54, 0.0  ;;  %v9227_v12 = vadd.bf16 %v9131_v4, %v21098_v62 }
 0x312   :  { %v5563_v46 = vmax.f32 %v4109_v21, 0.0  ;;  %16998 = vmatmul.mubr.msk.bf16.gmra.mrb[132].mxu0 %vm2078_vm0, %v18118_v42  ;;  %v21183_v27 = vmax.bf16 %v8293_v8, %v8292_v33  ;;  %v9327_v39 = vsel %vm19146_vm3, %v21127_v43, 0  ;;  %v9422_v59 = vadd.bf16 %v9326_v58, %v21100_v55  ;;  %v18120_v21 = vld [vmem:[%s24332_s0 + $0x628] sm:$0xff]  }
 0x313   :  { %v15563_v56 = vpack.c.bf16 %v5562_v51, %v5562_v51  ;;  %v5561_v40 = vmax.f32 %v4101_v3, 0.0  ;;  %17001 = vmatprep.mubr.msk.bf16.mxu0 %vm2078_vm0, %v18119_v44  ;;  %v15561_v15 = vpack.c.bf16 %v5560_v57, %v5560_v57  ;;  %v9423_v47 = vadd.bf16 %v9327_v39, %v9227_v12 }
 0x314   :  { %v15564_v23 = vpack.c.bf16 %v5563_v46, %v5563_v46  ;;  %v8937_v42 = vsel %vm19103_vm15, %v21127_v43, 0  ;;  %v8743_v62 = vsel %vm19015_vm9, %v21183_v27, 0  ;;  %v8936_v8 = vsel %vm19103_vm15, %v21129_v30, 0 }
 0x315   :  { %v8298_v33 = vmax.bf16 %v15563_v56, %v21044_v5  ;;  %v15562_v53 = vpack.c.bf16 %v5561_v40, %v5561_v40  ;;  %v16895_v19 = vpop.f32.mrb[28].mxu0  ;;  %v8296_v63 = vmax.bf16 %v15561_v15, %v21047_v26  ;;  %v8839_v44 = vadd.bf16 %v8743_v62, %v8643_v22 }
 0x316   :  { %v8299_v38 = vmax.bf16 %v15564_v23, %v21122_v18  ;;  %v21199_v54 = vcombine.low %v9422_v59, %v9423_v47  ;;  %v4113_v55 = vpop.f32.mrb[29].mxu0  ;;  %v8939_v5 = vsel %vm19103_vm15, %v21174_v17, 0  ;;  %v4122_v4 = vadd.f32 %v21106_v29, %v16895_v19  ;;  %v18121_v18 = vld [vmem:[%s24332_s0 + $0x630] sm:$0xff]  }
 0x317   :  { %v8297_v41 = vmax.bf16 %v15562_v53, %v21124_v20  ;;  %v4114_v26 = vadd.f32 %v21106_v29, %v4113_v55  ;;  %v16896_v58 = vpop.f32.mrb[30].mxu0  ;;  %v9035_v20 = vadd.bf16 %v8939_v5, %v8839_v44  ;;  %v8644_v30 = vsel %vm19028_vm10, %v21183_v27, 0 }
 0x318   :  { %24470 = vst [vmem:[#allocation27_spill] sm:$0xff] %v21199_v54  ;;  %v21216_v51 = vmax.bf16 %v8299_v38, %v8298_v33  ;;  %17233 = vmatprep.mubr.bf16.mxu1 %v21199_v54  ;;  %v4125_v3 = vadd.f32 %v21106_v29, %v16896_v58  ;;  %v4116_v22 = vpop.f32.mrb[31].mxu0  ;;  %v5566_v46 = vmax.f32 %v4122_v4, 0.0  ;;  %v8645_v15 = vsel %vm19028_vm10, %v21174_v17, 0 }
 0x319   :  { %v21220_v57 = vmax.bf16 %v8297_v41, %v8296_v63  ;;  %v5564_v12 = vmax.f32 %v4114_v26, 0.0  ;;  %v4117_v56 = vadd.f32 %v21106_v29, %v4116_v22  ;;  %v8744_v63 = vsel %vm19015_vm9, %v21174_v17, 0 }
 0x31a   :  { %v8941_v40 = vsel %vm19103_vm15, %v21216_v51, 0  ;;  %v5567_v39 = vmax.f32 %v4125_v3, 0.0  ;;  %17002 = vmatmul.mubr.msk.bf16.gmra.mrb[136].mxu0 %vm2078_vm0, %v18120_v21  ;;  %v9136_v23 = vsel %vm19110_vm1, %v21216_v51, 0  ;;  %v15567_v47 = vpack.c.bf16 %v5566_v46, %v5566_v46  ;;  %v18123_v46 = vld [vmem:[%s24332_s0 + $0x640] sm:$0xff]  }
 0x31b   :  { %v9135_v59 = vsel %vm19110_vm1, %v21220_v57, 0  ;;  %v15565_v62 = vpack.c.bf16 %v5564_v12, %v5564_v12  ;;  %17005 = vmatprep.mubr.msk.bf16.mxu0 %vm2078_vm0, %v18121_v18  ;;  %v5565_v19 = vmax.f32 %v4117_v56, 0.0  ;;  %v8745_v55 = vsel %vm19015_vm9, %v21220_v57, 0 }
 0x31c   :  { %v9231_v33 = vadd.bf16 %v9135_v59, %v9035_v20  ;;  %v15568_v53 = vpack.c.bf16 %v5567_v39, %v5567_v39  ;;  %v8302_v38 = vmax.bf16 %v15567_v47, %v21132_v1  ;;  %v8840_v21 = vadd.bf16 %v8744_v63, %v8644_v30  ;;  %v18122_v1 = vld [vmem:[%s24332_s0 + $0x638] sm:$0xff]  }
 0x31d   :  { %v8300_v44 = vmax.bf16 %v15565_v62, %v21134_v32  ;;  %v21248_v41 = vpop.f32.mrb[32].mxu0  ;;  %v15566_v4 = vpack.c.bf16 %v5565_v19, %v5565_v19  ;;  %v8841_v26 = vadd.bf16 %v8745_v55, %v8645_v15  ;;  %v8940_v58 = vsel %vm19103_vm15, %v21220_v57, 0 }
 0x31e   :  { %v8303_v5 = vmax.bf16 %v15568_v53, %v21137_v11  ;;  %v21254_v18 = vpop.f32.mrb[33].mxu0  ;;  %v9036_v32 = vadd.bf16 %v8940_v58, %v8840_v21  ;;  %v9032_v20 = vadd.bf16 %v8936_v8, %v21092_v14  ;;  %v9033_v3 = vadd.bf16 %v8937_v42, %v21159_v52 }
 0x31f   :  { %v9132_v11 = vsel %vm19110_vm1, %v21127_v43, 0  ;;  %v21264_v22 = vpop.f32.mrb[34].mxu0  ;;  %v8301_v56 = vmax.bf16 %v15566_v4, %v21139_v37  ;;  %v9037_v39 = vadd.bf16 %v8941_v40, %v8841_v26  ;;  %v9133_v14 = vsel %vm19110_vm1, %v21183_v27, 0 }
 0x320   :  { %v8519_v12 = vmax.bf16 %v8303_v5, %v8302_v38  ;;  %v21273_v8 = vpop.f32.mrb[35].mxu0  ;;  %v9232_v52 = vadd.bf16 %v9136_v23, %v9036_v32  ;;  %v9228_v42 = vadd.bf16 %v9132_v11, %v9032_v20  ;;  %v9229_v30 = vadd.bf16 %v9133_v14, %v9033_v3  ;;  %v18124_v5 = vld [vmem:[%s24332_s0 + $0x648] sm:$0xff]  }
 0x321   :  { %v9328_v43 = vsel %vm19146_vm3, %v21183_v27, 0  ;;  %v8518_v15 = vmax.bf16 %v8301_v56, %v8300_v44  ;;  %v9329_v59 = vsel %vm19146_vm3, %v21174_v17, 0  ;;  %v8938_v37 = vsel %vm19103_vm15, %v21183_v27, 0  ;;  %v18127_v56 = vld [vmem:[%s24332_s0 + $0x660] sm:$0xff]  }
 0x322   :  { %17006 = vmatmul.mubr.msk.bf16.gmra.mrb[140].mxu0 %vm2078_vm0, %v18122_v1  ;;  %v9424_v40 = vadd.bf16 %v9328_v43, %v9228_v42  ;;  %v9425_v47 = vadd.bf16 %v9329_v59, %v9229_v30  ;;  %v9331_v44 = vsel %vm19146_vm3, %v21216_v51, 0  ;;  %v9333_v27 = vsel %vm19146_vm3, %v8519_v12, 0  ;;  %v18128_v42 = vld [vmem:[%s24332_s0 + $0x668] sm:$0xff]   ;;  %v18129_v43 = vld [vmem:[%s24332_s0 + $0x670] sm:$0xff]  }
 0x323   :  { %17009 = vmatprep.mubr.msk.bf16.mxu0 %vm2078_vm0, %v18123_v46  ;;  %v9137_v23 = vsel %vm19110_vm1, %v8518_v15, 0  ;;  %v9332_v62 = vsel %vm19146_vm3, %v8518_v15, 0  ;;  %v9034_v55 = vadd.bf16 %v8938_v37, %v21153_v60  ;;  %v9330_v4 = vsel %vm19146_vm3, %v21220_v57, 0  ;;  %v18125_v60 = vld [vmem:[%s24332_s0 + $0x650] sm:$0xff]  }
 0x324   :  { %v9233_v53 = vadd.bf16 %v9137_v23, %v9037_v39  ;;  %v9428_v19 = vadd.bf16 %v9332_v62, %v9232_v52  ;;  %v21290_v63 = vcombine.low %v9424_v40, %v9425_v47  ;;  %v9134_v51 = vsel %vm19110_vm1, %v21174_v17, 0  ;;  %v18130_v40 = vld [vmem:[%s24332_s0 + $0x678] sm:$0xff]   ;;  %v18131_v23 = vld [vmem:[%s24332_s0 + $0x680] sm:$0xff]  }
 0x325   :  { %v16903_v38 = vpop.f32.mrb[36].mxu0  ;;  %v9427_v58 = vadd.bf16 %v9331_v44, %v9231_v33  ;;  %v9230_v32 = vadd.bf16 %v9134_v51, %v9034_v55  ;;  %v18126_v33 = vld [vmem:[%s24332_s0 + $0x658] sm:$0xff]   ;;  %v4141_v44 = vadd.f32 %v21106_v29, %v21264_v22 }
 0x326   :  { %24471 = vst [vmem:[#allocation28_spill] sm:$0xff] %v21290_v63  ;;  %v4145_v21 = vpop.f32.mrb[37].mxu0  ;;  %v9429_v26 = vadd.bf16 %v9333_v27, %v9233_v53  ;;  %17234 = vmatmul.mubr.bf16.gmra.mrb[84].mxu1 %v21290_v63  ;;  %v4138_v53 = vadd.f32 %v21106_v29, %v21248_v41  ;;  %v4133_v27 = vadd.f32 %v21106_v29, %v21273_v8  ;;  %v18132_v41 = vld [vmem:[%s24332_s0 + $0x688] sm:$0xff]   ;;  %v18133_v8 = vld [vmem:[%s24332_s0 + $0x690] sm:$0xff]  }
 0x327   :  { %v16904_v1 = vpop.f32.mrb[38].mxu0  ;;  %v9426_v11 = vadd.bf16 %v9330_v4, %v9230_v32  ;;  %v4154_v55 = vadd.f32 %v21106_v29, %v16903_v38  ;;  %v4146_v4 = vadd.f32 %v21106_v29, %v4145_v21 }
 0x328   :  { %v4148_v20 = vpop.f32.mrb[39].mxu0  ;;  %v21311_v3 = vcombine.low %v9428_v19, %v9429_v26  ;;  %v4130_v19 = vadd.f32 %v21106_v29, %v21254_v18  ;;  %v5570_v51 = vmax.f32 %v4138_v53, 0.0  ;;  %v4157_v18 = vadd.f32 %v21106_v29, %v16904_v1 }
 0x329   :  { %v21315_v57 = vcombine.low %v9426_v11, %v9427_v58  ;;  %v4149_v22 = vadd.f32 %v21106_v29, %v4148_v20  ;;  %v5569_v11 = vmax.f32 %v4133_v27, 0.0 }
 0x32a   :  { %24472 = vst [vmem:[#allocation29_spill] sm:$0xff] %v21311_v3  ;;  %17010 = vmatmul.mubr.msk.bf16.gmra.mrb[144].mxu0 %vm2078_vm0, %v18124_v5  ;;  %v5568_v38 = vmax.f32 %v4130_v19, 0.0  ;;  %v21382_v1 = vpack.c.bf16 %v5570_v51, %v5570_v51  ;;  %v5575_v20 = vmax.f32 %v4157_v18, 0.0 }
 0x32b   :  { %17013 = vmatprep.mubr.msk.bf16.mxu0 %vm2078_vm0, %v18125_v60  ;;  %24473 = vst [vmem:[#allocation30_spill] sm:$0xff] %v21315_v57  ;;  %17237 = vmatprep.mubr.bf16.mxu1 %v21315_v57  ;;  %v5571_v60 = vmax.f32 %v4141_v44, 0.0  ;;  %v21388_v19 = vpack.c.bf16 %v5569_v11, %v5569_v11 }
 0x32d   :  { %v16907_v46 = vpop.f32.mrb[40].mxu0 }
 0x32e   :  { %v4161_v17 = vpop.f32.mrb[41].mxu0  ;;  %17238 = vmatmul.mubr.bf16.gmra.mrb[88].mxu1 %v21311_v3  ;;  %v4170_v21 = vadd.f32 %v21106_v29, %v16907_v46 }
 0x32f   :  { %v16908_v12 = vpop.f32.mrb[42].mxu0 }
 0x330   :  { %v4164_v39 = vpop.f32.mrb[43].mxu0  ;;  %v5578_v53 = vmax.f32 %v4170_v21, 0.0  ;;  %v4173_v46 = vadd.f32 %v21106_v29, %v16908_v12  ;;  %v18134_v12 = vld [vmem:[%s24332_s0 + $0x698] sm:$0xff]  }
 0x332   :  { %17014 = vmatmul.mubr.msk.bf16.gmra.mrb[148].mxu0 %vm2078_vm0, %v18126_v33  ;;  %v5574_v33 = vmax.f32 %v4154_v55, 0.0  ;;  %v21410_v21 = vpack.c.bf16 %v5578_v53, %v5578_v53  ;;  %v5579_v11 = vmax.f32 %v4173_v46, 0.0 }
 0x333   :  { %17017 = vmatprep.mubr.msk.bf16.mxu0 %vm2078_vm0, %v18127_v56  ;;  %v5572_v56 = vmax.f32 %v4146_v4, 0.0 }
 0x334   :  { %v21390_v44 = vpack.c.bf16 %v5574_v33, %v5574_v33 }
 0x335   :  { %v16911_v14 = vpop.f32.mrb[44].mxu0  ;;  %v21394_v4 = vpack.c.bf16 %v5572_v56, %v5572_v56 }
 0x336   :  { %v4177_v52 = vpop.f32.mrb[45].mxu0  ;;  %v4186_v27 = vadd.f32 %v21106_v29, %v16911_v14 }
 0x337   :  { %v16912_v30 = vpop.f32.mrb[46].mxu0  ;;  %v4178_v51 = vadd.f32 %v21106_v29, %v4177_v52  ;;  %v18135_v52 = vld [vmem:[%s24332_s0 + $0x6a0] sm:$0xff]  }
 0x338   :  { %v21333_v15 = vpop.f32.mrb[47].mxu0 }
 0x339   :  { %v4181_v53 = vadd.f32 %v21106_v29, %v21333_v15 }
 0x33a   :  { %17018 = vmatmul.mubr.msk.bf16.gmra.mrb[152].mxu0 %vm2078_vm0, %v18128_v42  ;;  %v4162_v42 = vadd.f32 %v21106_v29, %v4161_v17  ;;  %v4165_v17 = vadd.f32 %v21106_v29, %v4164_v39  ;;  %v4189_v39 = vadd.f32 %v21106_v29, %v16912_v30 }
 0x33b   :  { %17021 = vmatprep.mubr.msk.bf16.mxu0 %vm2078_vm0, %v18129_v43  ;;  %v5573_v43 = vmax.f32 %v4149_v22, 0.0 }
 0x33c   :  { %v5583_v54 = vmax.f32 %v4189_v39, 0.0 }
 0x33d   :  { %v21337_v59 = vpop.f32.mrb[48].mxu0 }
 0x33e   :  { %v21339_v37 = vpop.f32.mrb[49].mxu0 }
 0x33f   :  { %v21344_v47 = vpop.f32.mrb[50].mxu0 }
 0x340   :  { %v21349_v62 = vpop.f32.mrb[51].mxu0 }
 0x342   :  { %17022 = vmatmul.mubr.msk.bf16.gmra.mrb[156].mxu0 %vm2078_vm0, %v18130_v40  ;;  %v21385_v40 = vpack.c.bf16 %v5568_v38, %v5568_v38  ;;  %v21403_v38 = vpack.c.bf16 %v5573_v43, %v5573_v43 }
 0x343   :  { %17025 = vmatprep.mubr.msk.bf16.mxu0 %vm2078_vm0, %v18131_v23  ;;  %v15572_v23 = vpack.c.bf16 %v5571_v60, %v5571_v60 }
 0x345   :  { %v21362_v5 = vpop.f32.mrb[52].mxu0 }
 0x346   :  { %v21365_v26 = vpop.f32.mrb[53].mxu0 }
 0x347   :  { %v21372_v58 = vpop.f32.mrb[54].mxu0 }
 0x348   :  { %v21378_v32 = vpop.f32.mrb[55].mxu0 }
 0x34a   :  { %17026 = vmatmul.mubr.msk.bf16.gmra.mrb[160].mxu0 %vm2078_vm0, %v18132_v41  ;;  %v5576_v41 = vmax.f32 %v4162_v42, 0.0 }
 0x34b   :  { %17029 = vmatprep.mubr.msk.bf16.mxu0 %vm2078_vm0, %v18133_v8  ;;  %v21401_v8 = vpack.c.bf16 %v5575_v20, %v5575_v20  ;;  %v5577_v20 = vmax.f32 %v4165_v17, 0.0  ;;  %v21420_v17 = vpack.c.bf16 %v5579_v11, %v5579_v11 }
 0x34c   :  { %v21414_v30 = vpack.c.bf16 %v5576_v41, %v5576_v41 }
 0x34d   :  { %v16923_v55 = vpop.f32.mrb[56].mxu0 }
 0x34e   :  { %v4234_v18 = vadd.f32 %v21106_v29, %v16923_v55  ;;  %v4225_v22 = vpop.f32.mrb[57].mxu0  ;;  %v5582_v55 = vmax.f32 %v4186_v27, 0.0  ;;  %v4202_v27 = vadd.f32 %v21106_v29, %v21337_v59 }
 0x34f   :  { %v4226_v14 = vadd.f32 %v21106_v29, %v4225_v22  ;;  %v16924_v60 = vpop.f32.mrb[58].mxu0  ;;  %v5580_v22 = vmax.f32 %v4178_v51, 0.0 }
 0x350   :  { %v5594_v33 = vmax.f32 %v4234_v18, 0.0  ;;  %v4237_v56 = vadd.f32 %v21106_v29, %v16924_v60  ;;  %v4228_v42 = vpop.f32.mrb[59].mxu0  ;;  %v21427_v60 = vpack.c.bf16 %v5582_v55, %v5582_v55 }
 0x351   :  { %v5592_v43 = vmax.f32 %v4226_v14, 0.0  ;;  %v4229_v3 = vadd.f32 %v21106_v29, %v4228_v42  ;;  %v21425_v14 = vpack.c.bf16 %v5577_v20, %v5577_v20 }
 0x352   :  { %v15595_v57 = vpack.c.bf16 %v5594_v33, %v5594_v33  ;;  %v5595_v63 = vmax.f32 %v4237_v56, 0.0  ;;  %17030 = vmatmul.mubr.msk.bf16.gmra.mrb[164].mxu0 %vm2078_vm0, %v18134_v12  ;;  %v21430_v33 = vpack.c.bf16 %v5580_v22, %v5580_v22 }
 0x353   :  { %v15593_v46 = vpack.c.bf16 %v5592_v43, %v5592_v43  ;;  %v5593_v18 = vmax.f32 %v4229_v3, 0.0  ;;  %17033 = vmatprep.mubr.msk.bf16.mxu0 %vm2078_vm0, %v18135_v52  ;;  %v4194_v3 = vadd.f32 %v21106_v29, %v21339_v37  ;;  %v18137_v37 = vld [vmem:[%s24332_s0 + $0x6b0] sm:$0xff]  }
 0x354   :  { %v8306_v41 = vmax.bf16 %v15595_v57, %v21382_v1  ;;  %v15596_v51 = vpack.c.bf16 %v5595_v63, %v5595_v63  ;;  %v18136_v63 = vld [vmem:[%s24332_s0 + $0x6a8] sm:$0xff]   ;;  %v21438_v57 = vpack.c.bf16 %v5583_v54, %v5583_v54  ;;  %v5581_v1 = vmax.f32 %v4181_v53, 0.0 }
 0x355   :  { %v8304_v12 = vmax.bf16 %v15593_v46, %v21385_v40  ;;  %v15594_v39 = vpack.c.bf16 %v5593_v18, %v5593_v18  ;;  %v16927_v15 = vpop.f32.mrb[60].mxu0  ;;  %v21448_v54 = vadd.f32 %v21106_v29, %v21344_v47  ;;  %v5584_v18 = vmax.f32 %v4194_v3, 0.0 }
 0x356   :  { %v8307_v52 = vmax.bf16 %v15596_v51, %v15572_v23  ;;  %v4250_v11 = vadd.f32 %v21106_v29, %v16927_v15  ;;  %v4241_v59 = vpop.f32.mrb[61].mxu0  ;;  %v5586_v23 = vmax.f32 %v4202_v27, 0.0  ;;  %v21456_v27 = vadd.f32 %v21106_v29, %v21349_v62  ;;  %v18166_v62 = vld [vmem:[%s24333_s3] sm:$0xff]  }
 0x357   :  { %v8305_v40 = vmax.bf16 %v15594_v39, %v21388_v19  ;;  %v4242_v56 = vadd.f32 %v21106_v29, %v4241_v59  ;;  %v16928_v42 = vpop.f32.mrb[62].mxu0  ;;  %v21463_v3 = vadd.f32 %v21106_v29, %v21362_v5  ;;  %v5587_v5 = vmax.f32 %v21448_v54, 0.0  ;;  %17265 = vmatprep.subr.bf16.mxu1 %v18166_v62 }
 0x358   :  { %v8521_v20 = vmax.bf16 %v8307_v52, %v8306_v41  ;;  %v5598_v55 = vmax.f32 %v4250_v11, 0.0  ;;  %v4253_v43 = vadd.f32 %v21106_v29, %v16928_v42  ;;  %v4244_v22 = vpop.f32.mrb[63].mxu0  ;;  %17266 = vmatpush3.bf16.msra.mxu1 %v18166_v62 }
 0x359   :  { %v8520_v53 = vmax.bf16 %v8305_v40, %v8304_v12  ;;  %v5596_v46 = vmax.f32 %v4242_v56, 0.0  ;;  %v4245_v19 = vadd.f32 %v21106_v29, %v4244_v22  ;;  %v21471_v40 = vpack.c.bf16 %v5586_v23, %v5586_v23 }
 0x35a   :  { %v8746_v51 = vsel %vm19015_vm9, %v8521_v20, 0  ;;  %v15599_v39 = vpack.c.bf16 %v5598_v55, %v5598_v55  ;;  %v5599_v15 = vmax.f32 %v4253_v43, 0.0  ;;  %17034 = vmatmul.mubr.msk.bf16.gmra.mrb[168].mxu0 %vm2078_vm0, %v18136_v63  ;;  %v21469_v63 = vpack.c.bf16 %v5581_v1, %v5581_v1  ;;  %v18138_v1 = vld [vmem:[%s24332_s0 + $0x6b8] sm:$0xff]  }
 0x35b   :  { %v8646_v47 = vsel %vm19028_vm10, %v8520_v53, 0  ;;  %v15597_v41 = vpack.c.bf16 %v5596_v46, %v5596_v46  ;;  %v5597_v12 = vmax.f32 %v4245_v19, 0.0  ;;  %17037 = vmatprep.mubr.msk.bf16.mxu0 %vm2078_vm0, %v18137_v37  ;;  %v21474_v55 = vpack.c.bf16 %v5584_v18, %v5584_v18 }
 0x35c   :  { %v8842_v52 = vadd.bf16 %v8746_v51, %v8646_v47  ;;  %v8310_v11 = vmax.bf16 %v15599_v39, %v21390_v44  ;;  %v15600_v59 = vpack.c.bf16 %v5599_v15, %v5599_v15  ;;  %v5585_v23 = vmax.f32 %v21456_v27, 0.0 }
 0x35d   :  { %v8308_v56 = vmax.bf16 %v15597_v41, %v21394_v4  ;;  %v15598_v42 = vpack.c.bf16 %v5597_v12, %v5597_v12  ;;  %v16931_v37 = vpop.f32.mrb[64].mxu0  ;;  %v21485_v4 = vadd.f32 %v21106_v29, %v21365_v26  ;;  %v5590_v19 = vmax.f32 %v21463_v3, 0.0 }
 0x35e   :  { %v8311_v43 = vmax.bf16 %v15600_v59, %v21401_v8  ;;  %v4266_v44 = vadd.f32 %v21106_v29, %v16931_v37  ;;  %v4257_v22 = vpop.f32.mrb[65].mxu0  ;;  %v18139_v8 = vld [vmem:[%s24332_s0 + $0x6c0] sm:$0xff]   ;;  %v21495_v18 = vadd.f32 %v21106_v29, %v21372_v58  ;;  %v4213_v41 = vadd.f32 %v21106_v29, %v21378_v32 }
 0x35f   :  { %v8309_v53 = vmax.bf16 %v15598_v42, %v21403_v38  ;;  %v4258_v54 = vadd.f32 %v21106_v29, %v4257_v22  ;;  %v16932_v46 = vpop.f32.mrb[66].mxu0  ;;  %v8647_v12 = vsel %vm19028_vm10, %v8521_v20, 0 }
 0x360   :  { %v21497_v51 = vmax.bf16 %v8311_v43, %v8310_v11  ;;  %v5602_v26 = vmax.f32 %v4266_v44, 0.0  ;;  %v4260_v39 = vpop.f32.mrb[67].mxu0  ;;  %v4269_v27 = vadd.f32 %v21106_v29, %v16932_v46 }
 0x361   :  { %v8522_v15 = vmax.bf16 %v8309_v53, %v8308_v56  ;;  %v5600_v38 = vmax.f32 %v4258_v54, 0.0  ;;  %v4261_v47 = vadd.f32 %v21106_v29, %v4260_v39 }
 0x362   :  { %v8943_v58 = vsel %vm19103_vm15, %v21497_v51, 0  ;;  %v8748_v3 = vsel %vm19015_vm9, %v21497_v51, 0  ;;  %17038 = vmatmul.mubr.msk.bf16.gmra.mrb[172].mxu0 %vm2078_vm0, %v18138_v1  ;;  %v15603_v20 = vpack.c.bf16 %v5602_v26, %v5602_v26  ;;  %v9138_v43 = vsel %vm19110_vm1, %v21497_v51, 0 }
 0x363   :  { %v8648_v11 = vsel %vm19028_vm10, %v8522_v15, 0  ;;  %v8747_v59 = vsel %vm19015_vm9, %v8522_v15, 0  ;;  %v8942_v32 = vsel %vm19103_vm15, %v8522_v15, 0  ;;  %17041 = vmatprep.mubr.msk.bf16.mxu0 %vm2078_vm0, %v18139_v8  ;;  %v15601_v37 = vpack.c.bf16 %v5600_v38, %v5600_v38 }
 0x364   :  { %v8843_v62 = vadd.bf16 %v8747_v59, %v8647_v12  ;;  %v21519_v56 = vadd.bf16 %v8748_v3, %v8648_v11  ;;  %v9038_v42 = vadd.bf16 %v8942_v32, %v8842_v52  ;;  %v8314_v44 = vmax.bf16 %v15603_v20, %v21410_v21  ;;  %v18140_v52 = vld [vmem:[%s24332_s0 + $0x6c8] sm:$0xff]   ;;  %v18141_v12 = vld [vmem:[%s24332_s0 + $0x6d0] sm:$0xff]  }
 0x365   :  { %v5603_v22 = vmax.f32 %v4269_v27, 0.0  ;;  %v5601_v1 = vmax.f32 %v4261_v47, 0.0  ;;  %v16935_v53 = vpop.f32.mrb[68].mxu0  ;;  %v8312_v8 = vmax.bf16 %v15601_v37, %v21414_v30  ;;  %v5588_v15 = vmax.f32 %v21485_v4, 0.0 }
 0x366   :  { %v21525_v54 = vadd.bf16 %v8943_v58, %v8843_v62  ;;  %v21527_v46 = vadd.bf16 %v9138_v43, %v9038_v42  ;;  %v4282_v26 = vadd.f32 %v21106_v29, %v16935_v53  ;;  %v4273_v39 = vpop.f32.mrb[69].mxu0  ;;  %v5591_v30 = vmax.f32 %v21495_v18, 0.0  ;;  %v18171_v18 = vld [vmem:[%s24333_s3 + $0x8] sm:$0xff]  }
 0x367   :  { %v15604_v38 = vpack.c.bf16 %v5603_v22, %v5603_v22  ;;  %v15602_v21 = vpack.c.bf16 %v5601_v1, %v5601_v1  ;;  %v4274_v27 = vadd.f32 %v21106_v29, %v4273_v39  ;;  %v16936_v47 = vpop.f32.mrb[70].mxu0  ;;  %v5589_v58 = vmax.f32 %v4213_v41, 0.0  ;;  %17267 = vmatprep.subr.bf16.mxu1 %v18171_v18 }
 0x368   :  { %v5606_v3 = vmax.f32 %v4282_v26, 0.0  ;;  %v4285_v11 = vadd.f32 %v21106_v29, %v16936_v47  ;;  %v4276_v59 = vpop.f32.mrb[71].mxu0  ;;  %v21544_v42 = vpack.c.bf16 %v5587_v5, %v5587_v5  ;;  %v21546_v37 = vpack.c.bf16 %v5585_v23, %v5585_v23  ;;  %17268 = vmatpush3.bf16.msra.mxu1 %v18171_v18  ;;  %v18142_v47 = vld [vmem:[%s24332_s0 + $0x6d8] sm:$0xff]  }
 0x369   :  { %v8315_v32 = vmax.bf16 %v15604_v38, %v21420_v17  ;;  %v8313_v4 = vmax.bf16 %v15602_v21, %v21425_v14  ;;  %v5604_v20 = vmax.f32 %v4274_v27, 0.0  ;;  %v4277_v62 = vadd.f32 %v21106_v29, %v4276_v59 }
 0x36a   :  { %v15607_v43 = vpack.c.bf16 %v5606_v3, %v5606_v3  ;;  %v5607_v22 = vmax.f32 %v4285_v11, 0.0  ;;  %17042 = vmatmul.mubr.msk.bf16.gmra.mrb[176].mxu0 %vm2078_vm0, %v18140_v52  ;;  %v21557_v5 = vpack.c.bf16 %v5590_v19, %v5590_v19  ;;  %v21559_v23 = vpack.c.bf16 %v5588_v15, %v5588_v15  ;;  %v18143_v11 = vld [vmem:[%s24332_s0 + $0x6e0] sm:$0xff]  }
 0x36b   :  { %v21552_v41 = vmax.bf16 %v8315_v32, %v8314_v44  ;;  %v21554_v17 = vmax.bf16 %v8313_v4, %v8312_v8  ;;  %v15605_v14 = vpack.c.bf16 %v5604_v20, %v5604_v20  ;;  %v5605_v1 = vmax.f32 %v4277_v62, 0.0  ;;  %17045 = vmatprep.mubr.msk.bf16.mxu0 %vm2078_vm0, %v18141_v12 }
 0x36c   :  { %v8318_v53 = vmax.bf16 %v15607_v43, %v21427_v60  ;;  %v15608_v26 = vpack.c.bf16 %v5607_v22, %v5607_v22  ;;  %v21562_v39 = vpack.c.bf16 %v5591_v30, %v5591_v30  ;;  %v21564_v52 = vpack.c.bf16 %v5589_v58, %v5589_v58 }
 0x36d   :  { %v8750_v44 = vsel %vm19015_vm9, %v21552_v41, 0  ;;  %v8650_v8 = vsel %vm19028_vm10, %v21554_v17, 0  ;;  %v16939_v19 = vpop.f32.mrb[72].mxu0  ;;  %v8649_v60 = vsel %vm19028_vm10, %v21497_v51, 0  ;;  %v8749_v15 = vsel %vm19015_vm9, %v21554_v17, 0 }
 0x36e   :  { %v21578_v38 = vadd.bf16 %v8750_v44, %v8650_v8  ;;  %v8316_v21 = vmax.bf16 %v15605_v14, %v21430_v33  ;;  %v4289_v27 = vpop.f32.mrb[73].mxu0  ;;  %v21584_v12 = vadd.bf16 %v8749_v15, %v8649_v60  ;;  %v8319_v30 = vmax.bf16 %v15608_v26, %v21438_v57 }
 0x36f   :  { %v15606_v58 = vpack.c.bf16 %v5605_v1, %v5605_v1  ;;  %v4298_v51 = vadd.f32 %v21106_v29, %v16939_v19  ;;  %v16940_v3 = vpop.f32.mrb[74].mxu0  ;;  %v4290_v59 = vadd.f32 %v21106_v29, %v4289_v27  ;;  %v9139_v4 = vsel %vm19110_vm1, %v21554_v17, 0 }
 0x370   :  { %v4301_v33 = vadd.f32 %v21106_v29, %v16940_v3  ;;  %v4292_v32 = vpop.f32.mrb[75].mxu0  ;;  %v9334_v57 = vsel %vm19146_vm3, %v21554_v17, 0  ;;  %v21599_v20 = vmax.bf16 %v8319_v30, %v8318_v53  ;;  %v8651_v18 = vsel %vm19028_vm10, %v21552_v41, 0 }
 0x371   :  { %v8317_v62 = vmax.bf16 %v15606_v58, %v21469_v63  ;;  %v5610_v43 = vmax.f32 %v4298_v51, 0.0  ;;  %v4293_v22 = vadd.f32 %v21106_v29, %v4292_v32  ;;  %v5608_v14 = vmax.f32 %v4290_v59, 0.0  ;;  %v18176_v51 = vld [vmem:[%s24333_s3 + $0x10] sm:$0xff]   ;;  %v18144_v32 = vld [vmem:[%s24332_s0 + $0x6e8] sm:$0xff]  }
 0x372   :  { %v5611_v1 = vmax.f32 %v4301_v33, 0.0  ;;  %17046 = vmatmul.mubr.msk.bf16.gmra.mrb[180].mxu0 %vm2078_vm0, %v18142_v47  ;;  %v9235_v26 = vadd.bf16 %v9139_v4, %v21525_v54  ;;  %v9335_v63 = vsel %vm19146_vm3, %v21552_v41, 0  ;;  %v9430_v15 = vadd.bf16 %v9334_v57, %v21527_v46  ;;  %17269 = vmatprep.subr.bf16.mxu1 %v18176_v51 }
 0x373   :  { %v21608_v44 = vmax.bf16 %v8317_v62, %v8316_v21  ;;  %v15611_v8 = vpack.c.bf16 %v5610_v43, %v5610_v43  ;;  %v5609_v53 = vmax.f32 %v4293_v22, 0.0  ;;  %17049 = vmatprep.mubr.msk.bf16.mxu0 %vm2078_vm0, %v18143_v11  ;;  %v15609_v19 = vpack.c.bf16 %v5608_v14, %v5608_v14  ;;  %17270 = vmatpush3.bf16.msra.mxu1 %v18176_v51 }
 0x374   :  { %v15612_v60 = vpack.c.bf16 %v5611_v1, %v5611_v1  ;;  %v9431_v27 = vadd.bf16 %v9335_v63, %v9235_v26  ;;  %v8945_v47 = vsel %vm19103_vm15, %v21552_v41, 0  ;;  %v8947_v4 = vsel %vm19103_vm15, %v21599_v20, 0 }
 0x375   :  { %v8751_v54 = vsel %vm19015_vm9, %v21608_v44, 0  ;;  %v8322_v21 = vmax.bf16 %v15611_v8, %v21471_v40  ;;  %v15610_v30 = vpack.c.bf16 %v5609_v53, %v5609_v53  ;;  %v16943_v58 = vpop.f32.mrb[76].mxu0  ;;  %v8320_v3 = vmax.bf16 %v15609_v19, %v21474_v55 }
 0x376   :  { %v8323_v46 = vmax.bf16 %v15612_v60, %v21544_v42  ;;  %v8847_v11 = vadd.bf16 %v8751_v54, %v8651_v18  ;;  %v21627_v59 = vcombine.low %v9430_v15, %v9431_v27  ;;  %v4305_v33 = vpop.f32.mrb[77].mxu0  ;;  %v4314_v57 = vadd.f32 %v21106_v29, %v16943_v58  ;;  %v18145_v42 = vld [vmem:[%s24332_s0 + $0x6f0] sm:$0xff]  }
 0x377   :  { %v8321_v40 = vmax.bf16 %v15610_v30, %v21546_v37  ;;  %v4306_v55 = vadd.f32 %v21106_v29, %v4305_v33  ;;  %v16944_v62 = vpop.f32.mrb[78].mxu0  ;;  %v8944_v43 = vsel %vm19103_vm15, %v21554_v17, 0  ;;  %v8652_v19 = vsel %vm19028_vm10, %v21608_v44, 0 }
 0x378   :  { %24474 = vst [vmem:[#allocation31_spill] sm:$0xff] %v21627_v59  ;;  %v21644_v22 = vmax.bf16 %v8323_v46, %v8322_v21  ;;  %v9043_v37 = vadd.bf16 %v8947_v4, %v8847_v11  ;;  %17241 = vmatprep.mubr.bf16.mxu1 %v21627_v59  ;;  %v4317_v18 = vadd.f32 %v21106_v29, %v16944_v62  ;;  %v4308_v14 = vpop.f32.mrb[79].mxu0  ;;  %v5614_v26 = vmax.f32 %v4314_v57, 0.0 }
 0x379   :  { %v21648_v1 = vmax.bf16 %v8321_v40, %v8320_v3  ;;  %v5612_v8 = vmax.f32 %v4306_v55, 0.0  ;;  %v4309_v53 = vadd.f32 %v21106_v29, %v4308_v14  ;;  %v8653_v60 = vsel %vm19028_vm10, %v21599_v20, 0  ;;  %v18147_v14 = vld [vmem:[%s24332_s0 + $0x700] sm:$0xff]  }
 0x37a   :  { %v8949_v63 = vsel %vm19103_vm15, %v21644_v22, 0  ;;  %v5615_v17 = vmax.f32 %v4317_v18, 0.0  ;;  %17050 = vmatmul.mubr.msk.bf16.gmra.mrb[184].mxu0 %vm2078_vm0, %v18144_v32  ;;  %v9144_v15 = vsel %vm19110_vm1, %v21644_v22, 0  ;;  %v15615_v27 = vpack.c.bf16 %v5614_v26, %v5614_v26 }
 0x37b   :  { %v9143_v29 = vsel %vm19110_vm1, %v21648_v1, 0  ;;  %v15613_v54 = vpack.c.bf16 %v5612_v8, %v5612_v8  ;;  %17053 = vmatprep.mubr.msk.bf16.mxu0 %vm2078_vm0, %v18145_v42  ;;  %v5613_v58 = vmax.f32 %v4309_v53, 0.0  ;;  %v8752_v51 = vsel %vm19015_vm9, %v21599_v20, 0 }
 0x37c   :  { %v9239_v21 = vadd.bf16 %v9143_v29, %v9043_v37  ;;  %v15616_v30 = vpack.c.bf16 %v5615_v17, %v5615_v17  ;;  %v8326_v3 = vmax.bf16 %v15615_v27, %v21557_v5  ;;  %v8753_v11 = vsel %vm19015_vm9, %v21648_v1, 0  ;;  %v18146_v5 = vld [vmem:[%s24332_s0 + $0x6f8] sm:$0xff]  }
 0x37d   :  { %v8324_v46 = vmax.bf16 %v15613_v54, %v21559_v23  ;;  %v8848_v33 = vadd.bf16 %v8752_v51, %v8652_v19  ;;  %v21676_v32 = vpop.f32.mrb[80].mxu0  ;;  %v15614_v4 = vpack.c.bf16 %v5613_v58, %v5613_v58  ;;  %v8849_v57 = vadd.bf16 %v8753_v11, %v8653_v60 }
 0x37e   :  { %v8327_v40 = vmax.bf16 %v15616_v30, %v21562_v39  ;;  %v8948_v55 = vsel %vm19103_vm15, %v21648_v1, 0  ;;  %v21682_v62 = vpop.f32.mrb[81].mxu0  ;;  %v9040_v42 = vadd.bf16 %v8944_v43, %v21519_v56  ;;  %v9041_v37 = vadd.bf16 %v8945_v47, %v21584_v12 }
 0x37f   :  { %v9044_v23 = vadd.bf16 %v8948_v55, %v8848_v33  ;;  %v9140_v39 = vsel %vm19110_vm1, %v21552_v41, 0  ;;  %v21692_v18 = vpop.f32.mrb[82].mxu0  ;;  %v8325_v8 = vmax.bf16 %v15614_v4, %v21564_v52  ;;  %v9045_v53 = vadd.bf16 %v8949_v63, %v8849_v57 }
 0x380   :  { %v8531_v26 = vmax.bf16 %v8327_v40, %v8326_v3  ;;  %v9141_v56 = vsel %vm19110_vm1, %v21608_v44, 0  ;;  %v4324_v43 = vpop.f32.mrb[83].mxu0  ;;  %v9236_v47 = vadd.bf16 %v9140_v39, %v9040_v42  ;;  %v9336_v41 = vsel %vm19146_vm3, %v21608_v44, 0  ;;  %v18181_v3 = vld [vmem:[%s24333_s3 + $0x18] sm:$0xff]   ;;  %v18148_v40 = vld [vmem:[%s24332_s0 + $0x708] sm:$0xff]  }
 0x381   :  { %v9240_v12 = vadd.bf16 %v9144_v15, %v9044_v23  ;;  %v9237_v17 = vadd.bf16 %v9141_v56, %v9041_v37  ;;  %v8530_v19 = vmax.bf16 %v8325_v8, %v8324_v46  ;;  %v9337_v60 = vsel %vm19146_vm3, %v21599_v20, 0  ;;  %17271 = vmatprep.subr.bf16.mxu1 %v18181_v3  ;;  %v18151_v8 = vld [vmem:[%s24332_s0 + $0x720] sm:$0xff]  }
 0x382   :  { %17054 = vmatmul.mubr.msk.bf16.gmra.mrb[188].mxu0 %vm2078_vm0, %v18146_v5  ;;  %v8946_v52 = vsel %vm19103_vm15, %v21608_v44, 0  ;;  %v9432_v63 = vadd.bf16 %v9336_v41, %v9236_v47  ;;  %v9339_v44 = vsel %vm19146_vm3, %v21644_v22, 0  ;;  %v9341_v46 = vsel %vm19146_vm3, %v8531_v26, 0  ;;  %17272 = vmatpush3.bf16.msra.mxu1 %v18181_v3  ;;  %v18152_v47 = vld [vmem:[%s24332_s0 + $0x728] sm:$0xff]   ;;  %v18153_v41 = vld [vmem:[%s24332_s0 + $0x730] sm:$0xff]  }
 0x383   :  { %v9433_v29 = vadd.bf16 %v9337_v60, %v9237_v17  ;;  %17057 = vmatprep.mubr.msk.bf16.mxu0 %vm2078_vm0, %v18147_v14  ;;  %v9145_v15 = vsel %vm19110_vm1, %v8530_v19, 0  ;;  %v9340_v27 = vsel %vm19146_vm3, %v8530_v19, 0  ;;  %v9042_v11 = vadd.bf16 %v8946_v52, %v21578_v38  ;;  %v18149_v38 = vld [vmem:[%s24332_s0 + $0x710] sm:$0xff]   ;;  %v18150_v14 = vld [vmem:[%s24332_s0 + $0x718] sm:$0xff]   ;;  %v21766_v60 = vld [vmem:[%s24334_s2] ss:$0 sm:$0xff] }
 0x384   :  { %v9241_v54 = vadd.bf16 %v9145_v15, %v9045_v53  ;;  %v9436_v30 = vadd.bf16 %v9340_v27, %v9240_v12  ;;  %v9338_v4 = vsel %vm19146_vm3, %v21648_v1, 0  ;;  %v9142_v22 = vsel %vm19110_vm1, %v21599_v20, 0  ;;  %v18186_v27 = vld [vmem:[%s24333_s3 + $0x20] sm:$0xff]  }
 0x385   :  { %v21716_v58 = vcombine.low %v9432_v63, %v9433_v29  ;;  %v16951_v51 = vpop.f32.mrb[84].mxu0  ;;  %v9435_v55 = vadd.bf16 %v9339_v44, %v9239_v21  ;;  %v9238_v23 = vadd.bf16 %v9142_v22, %v9042_v11  ;;  %v4330_v52 = vadd.f32 %v21766_v60, %v21676_v32  ;;  %17273 = vmatprep.subr.bf16.mxu1 %v18186_v27 }
 0x386   :  { %v4337_v33 = vpop.f32.mrb[85].mxu0  ;;  %v9437_v57 = vadd.bf16 %v9341_v46, %v9241_v54  ;;  %v4322_v63 = vadd.f32 %v21766_v60, %v21682_v62  ;;  %v4333_v29 = vadd.f32 %v21766_v60, %v21692_v18  ;;  %v4325_v15 = vadd.f32 %v21766_v60, %v4324_v43  ;;  %v18154_v62 = vld [vmem:[%s24332_s0 + $0x738] sm:$0xff]   ;;  %v18155_v43 = vld [vmem:[%s24332_s0 + $0x740] sm:$0xff]   ;;  %17274 = vmatpush3.bf16.msra.mxu1 %v18186_v27 }
 0x387   :  { %24475 = vst [vmem:[#allocation32_spill] sm:$0xff] %v21716_v58  ;;  %17242 = vmatmul.mubr.bf16.gmra.mrb[92].mxu1 %v21716_v58  ;;  %v16952_v5 = vpop.f32.mrb[86].mxu0  ;;  %v9434_v1 = vadd.bf16 %v9338_v4, %v9238_v23  ;;  %v4338_v3 = vadd.f32 %v21766_v60, %v4337_v33  ;;  %v5618_v44 = vmax.f32 %v4330_v52, 0.0 }
 0x388   :  { %v4340_v42 = vpop.f32.mrb[87].mxu0  ;;  %v21740_v37 = vcombine.low %v9436_v30, %v9437_v57  ;;  %v4346_v30 = vadd.f32 %v21766_v60, %v16951_v51  ;;  %v5616_v46 = vmax.f32 %v4322_v63, 0.0  ;;  %v5619_v11 = vmax.f32 %v4333_v29, 0.0 }
 0x389   :  { %v21744_v39 = vcombine.low %v9434_v1, %v9435_v55  ;;  %v4349_v51 = vadd.f32 %v21766_v60, %v16952_v5  ;;  %v4341_v33 = vadd.f32 %v21766_v60, %v4340_v42  ;;  %v5620_v22 = vmax.f32 %v4338_v3, 0.0 }
 0x38a   :  { %24476 = vst [vmem:[#allocation33_spill] sm:$0xff] %v21740_v37  ;;  %17058 = vmatmul.mubr.msk.bf16.gmra.mrb[192].mxu0 %vm2078_vm0, %v18148_v40  ;;  %v5617_v40 = vmax.f32 %v4325_v15, 0.0  ;;  %v5622_v57 = vmax.f32 %v4346_v30, 0.0  ;;  %v21790_v55 = vpack.c.bf16 %v5618_v44, %v5618_v44  ;;  %v18157_v44 = vld [vmem:[%s24332_s0 + $0x750] sm:$0xff]  }
 0x38b   :  { %17061 = vmatprep.mubr.msk.bf16.mxu0 %vm2078_vm0, %v18149_v38  ;;  %24477 = vst [vmem:[#allocation34_spill] sm:$0xff] %v21744_v39  ;;  %17245 = vmatprep.mubr.bf16.mxu1 %v21744_v39  ;;  %v21792_v38 = vpack.c.bf16 %v5616_v46, %v5616_v46 }
 0x38d   :  { %v16955_v20 = vpop.f32.mrb[88].mxu0 }
 0x38e   :  { %v4353_v21 = vpop.f32.mrb[89].mxu0  ;;  %v4362_v23 = vadd.f32 %v21766_v60, %v16955_v20  ;;  %v21805_v20 = vpack.c.bf16 %v5622_v57, %v5622_v57 }
 0x38f   :  { %17246 = vmatmul.mubr.bf16.gmra.mrb[96].mxu1 %v21740_v37  ;;  %v16956_v26 = vpop.f32.mrb[90].mxu0  ;;  %v4354_v1 = vadd.f32 %v21766_v60, %v4353_v21  ;;  %v21807_v21 = vpack.c.bf16 %v5620_v22, %v5620_v22 }
 0x390   :  { %v4356_v53 = vpop.f32.mrb[91].mxu0  ;;  %v4365_v5 = vadd.f32 %v21766_v60, %v16956_v26  ;;  %v18156_v26 = vld [vmem:[%s24332_s0 + $0x748] sm:$0xff]  }
 0x391   :  { %v4357_v42 = vadd.f32 %v21766_v60, %v4356_v53  ;;  %v5626_v53 = vmax.f32 %v4362_v23, 0.0  ;;  %v5624_v3 = vmax.f32 %v4354_v1, 0.0 }
 0x392   :  { %17062 = vmatmul.mubr.msk.bf16.gmra.mrb[196].mxu0 %vm2078_vm0, %v18150_v14  ;;  %v21797_v14 = vpack.c.bf16 %v5619_v11, %v5619_v11  ;;  %v5627_v46 = vmax.f32 %v4365_v5, 0.0 }
 0x393   :  { %17065 = vmatprep.mubr.msk.bf16.mxu0 %vm2078_vm0, %v18151_v8  ;;  %v21799_v8 = vpack.c.bf16 %v5617_v40, %v5617_v40  ;;  %v21828_v1 = vpack.c.bf16 %v5626_v53, %v5626_v53 }
 0x395   :  { %v16959_v56 = vpop.f32.mrb[92].mxu0 }
 0x396   :  { %v4369_v12 = vpop.f32.mrb[93].mxu0  ;;  %v4378_v52 = vadd.f32 %v21766_v60, %v16959_v56 }
 0x397   :  { %v16960_v17 = vpop.f32.mrb[94].mxu0  ;;  %v4370_v63 = vadd.f32 %v21766_v60, %v4369_v12 }
 0x398   :  { %v4372_v19 = vpop.f32.mrb[95].mxu0  ;;  %v4381_v15 = vadd.f32 %v21766_v60, %v16960_v17  ;;  %v5625_v17 = vmax.f32 %v4357_v42, 0.0  ;;  %v18190_v42 = vld [vmem:[%s24333_s3 + $0x28] sm:$0xff]  }
 0x399   :  { %v4373_v27 = vadd.f32 %v21766_v60, %v4372_v19  ;;  %17275 = vmatprep.subr.bf16.mxu1 %v18190_v42 }
 0x39a   :  { %17066 = vmatmul.mubr.msk.bf16.gmra.mrb[200].mxu0 %vm2078_vm0, %v18152_v47  ;;  %v5623_v47 = vmax.f32 %v4349_v51, 0.0  ;;  %v5630_v51 = vmax.f32 %v4378_v52, 0.0  ;;  %v21840_v52 = vpack.c.bf16 %v5625_v17, %v5625_v17  ;;  %17276 = vmatpush3.bf16.msra.mxu1 %v18190_v42 }
 0x39b   :  { %17069 = vmatprep.mubr.msk.bf16.mxu0 %vm2078_vm0, %v18153_v41  ;;  %v5621_v41 = vmax.f32 %v4341_v33, 0.0  ;;  %v5628_v33 = vmax.f32 %v4370_v63, 0.0  ;;  %v5629_v22 = vmax.f32 %v4373_v27, 0.0 }
 0x39c   :  { %v21821_v40 = vpack.c.bf16 %v5623_v47, %v5623_v47  ;;  %v21836_v47 = vpop.f32.mrb[0].mxu1  ;;  %v21844_v27 = vpack.c.bf16 %v5630_v51, %v5630_v51 }
 0x39d   :  { %v16963_v54 = vpop.f32.mrb[96].mxu0  ;;  %v21824_v57 = vpack.c.bf16 %v5621_v41, %v5621_v41  ;;  %24478 = vst [vmem:[#allocation35_spill] sm:$0xff] %v21836_v47  ;;  %v21838_v41 = vpack.c.bf16 %v5627_v46, %v5627_v46 }
 0x39e   :  { %v4385_v32 = vpop.f32.mrb[97].mxu0  ;;  %v4394_v56 = vadd.f32 %v21766_v60, %v16963_v54 }
 0x39f   :  { %v16964_v18 = vpop.f32.mrb[98].mxu0  ;;  %v4386_v12 = vadd.f32 %v21766_v60, %v4385_v32  ;;  %v5631_v32 = vmax.f32 %v4381_v15, 0.0  ;;  %v21842_v15 = vpop.f32.mrb[1].mxu1 }
 0x3a0   :  { %v4388_v4 = vpop.f32.mrb[99].mxu0  ;;  %v4397_v19 = vadd.f32 %v21766_v60, %v16964_v18  ;;  %v21830_v18 = vpack.c.bf16 %v5624_v3, %v5624_v3  ;;  %24479 = vst [vmem:[#allocation36_spill] sm:$0xff] %v21842_v15 }
 0x3a1   :  { %v5632_v5 = vmax.f32 %v4386_v12, 0.0  ;;  %v21851_v12 = vpack.c.bf16 %v5631_v32, %v5631_v32 }
 0x3a2   :  { %17070 = vmatmul.mubr.msk.bf16.gmra.mrb[204].mxu0 %vm2078_vm0, %v18154_v62  ;;  %v5635_v63 = vmax.f32 %v4397_v19, 0.0 }
 0x3a3   :  { %17073 = vmatprep.mubr.msk.bf16.mxu0 %vm2078_vm0, %v18155_v43  ;;  %v4389_v43 = vadd.f32 %v21766_v60, %v4388_v4  ;;  %v5634_v4 = vmax.f32 %v4394_v56, 0.0  ;;  %v21849_v56 = vpop.f32.mrb[2].mxu1 }
 0x3a4   :  { %24480 = vst [vmem:[#allocation37_spill] sm:$0xff] %v21849_v56  ;;  %v21859_v51 = vpop.f32.mrb[3].mxu1  ;;  %v21870_v56 = vpack.c.bf16 %v5635_v63, %v5635_v63 }
 0x3a5   :  { %v16967_v29 = vpop.f32.mrb[100].mxu0  ;;  %24481 = vst [vmem:[#allocation38_spill] sm:$0xff] %v21859_v51 }
 0x3a6   :  { %v4401_v30 = vpop.f32.mrb[101].mxu0  ;;  %v4410_v54 = vadd.f32 %v21766_v60, %v16967_v29  ;;  %v5633_v29 = vmax.f32 %v4389_v43, 0.0  ;;  %v18158_v43 = vld [vmem:[%s24332_s0 + $0x758] sm:$0xff]  }
 0x3a7   :  { %v16968_v62 = vpop.f32.mrb[102].mxu0  ;;  %v4402_v23 = vadd.f32 %v21766_v60, %v4401_v30  ;;  %v21846_v30 = vpack.c.bf16 %v5628_v33, %v5628_v33  ;;  %v21863_v33 = vpack.c.bf16 %v5632_v5, %v5632_v5 }
 0x3a8   :  { %v4404_v11 = vpop.f32.mrb[103].mxu0  ;;  %v4413_v53 = vadd.f32 %v21766_v60, %v16968_v62  ;;  %v21861_v62 = vpack.c.bf16 %v5634_v4, %v5634_v4  ;;  %v21872_v15 = vpack.c.bf16 %v5633_v29, %v5633_v29 }
 0x3a9   :  { %v5636_v46 = vmax.f32 %v4402_v23, 0.0  ;;  %v18159_v23 = vld [vmem:[%s24332_s0 + $0x760] sm:$0xff]  }
 0x3aa   :  { %17074 = vmatmul.mubr.msk.bf16.gmra.mrb[208].mxu0 %vm2078_vm0, %v18156_v26  ;;  %v5638_v26 = vmax.f32 %v4410_v54, 0.0  ;;  %v4405_v54 = vadd.f32 %v21766_v60, %v4404_v11  ;;  %v5639_v11 = vmax.f32 %v4413_v53, 0.0 }
 0x3ab   :  { %17077 = vmatprep.mubr.msk.bf16.mxu0 %vm2078_vm0, %v18157_v44  ;;  %v21853_v44 = vpack.c.bf16 %v5629_v22, %v5629_v22  ;;  %v21878_v58 = vpack.c.bf16 %v5636_v46, %v5636_v46 }
 0x3ac   :  { %v21875_v47 = vpack.c.bf16 %v5638_v26, %v5638_v26 }
 0x3ad   :  { %v16971_v3 = vpop.f32.mrb[104].mxu0 }
 0x3ae   :  { %v4426_v17 = vadd.f32 %v21766_v60, %v16971_v3  ;;  %v4417_v19 = vpop.f32.mrb[105].mxu0  ;;  %v17139_v3 = vpop.f32.mrb[4].mxu1 }
 0x3af   :  { %v4418_v32 = vadd.f32 %v21766_v60, %v4417_v19  ;;  %v16972_v22 = vpop.f32.mrb[106].mxu0  ;;  %v5089_v5 = vpop.f32.mrb[5].mxu1  ;;  %v5098_v63 = vadd.f32 %v21766_v60, %v17139_v3 }
 0x3b0   :  { %v5642_v42 = vmax.f32 %v4426_v17, 0.0  ;;  %v4429_v4 = vadd.f32 %v21766_v60, %v16972_v22  ;;  %v4420_v51 = vpop.f32.mrb[107].mxu0  ;;  %v17140_v39 = vpop.f32.mrb[6].mxu1  ;;  %v5637_v17 = vmax.f32 %v4405_v54, 0.0  ;;  %v5090_v26 = vadd.f32 %v21766_v60, %v5089_v5 }
 0x3b1   :  { %v5640_v37 = vmax.f32 %v4418_v32, 0.0  ;;  %v4421_v19 = vadd.f32 %v21766_v60, %v4420_v51  ;;  %v5092_v29 = vpop.f32.mrb[7].mxu1  ;;  %v5810_v46 = vmax.f32 %v5098_v63, 0.0 }
 0x3b2   :  { %v15643_v59 = vpack.c.bf16 %v5642_v42, %v5642_v42  ;;  %v5643_v9 = vmax.f32 %v4429_v4, 0.0  ;;  %17078 = vmatmul.mubr.msk.bf16.gmra.mrb[212].mxu0 %vm2078_vm0, %v18158_v43  ;;  %v17143_v53 = vpop.f32.mrb[8].mxu1  ;;  %v5101_v42 = vadd.f32 %v21766_v60, %v17140_v39  ;;  %v5808_v24 = vmax.f32 %v5090_v26, 0.0 }
 0x3b3   :  { %v15641_v22 = vpack.c.bf16 %v5640_v37, %v5640_v37  ;;  %v5641_v25 = vmax.f32 %v4421_v19, 0.0  ;;  %17081 = vmatprep.mubr.msk.bf16.mxu0 %vm2078_vm0, %v18159_v23  ;;  %v5105_v4 = vpop.f32.mrb[9].mxu1  ;;  %v5093_v37 = vadd.f32 %v21766_v60, %v5092_v29  ;;  %v21888_v19 = vpack.c.bf16 %v5639_v11, %v5639_v11 }
 0x3b4   :  { %v8330_v51 = vmax.bf16 %v15643_v59, %v21790_v55  ;;  %v15644_v32 = vpack.c.bf16 %v5643_v9, %v5643_v9  ;;  %v17144_v54 = vpop.f32.mrb[10].mxu1  ;;  %v18160_v9 = vld [vmem:[%s24332_s0 + $0x768] sm:$0xff]   ;;  %v5811_v39 = vmax.f32 %v5101_v42, 0.0  ;;  %v21902_v11 = vpack.c.bf16 %v5810_v46, %v5810_v46 }
 0x3b5   :  { %v8328_v43 = vmax.bf16 %v15641_v22, %v21792_v38  ;;  %v15642_v6 = vpack.c.bf16 %v5641_v25, %v5641_v25  ;;  %v16975_v3 = vpop.f32.mrb[108].mxu0  ;;  %v5108_v55 = vpop.f32.mrb[11].mxu1  ;;  %v21895_v38 = vpack.c.bf16 %v5637_v17, %v5637_v17  ;;  %v5809_v7 = vmax.f32 %v5093_v37, 0.0 }
 0x3b6   :  { %v8331_v23 = vmax.bf16 %v15644_v32, %v21797_v14  ;;  %v4442_v5 = vadd.f32 %v21766_v60, %v16975_v3  ;;  %v4433_v59 = vpop.f32.mrb[109].mxu0  ;;  %v18161_v14 = vld [vmem:[%s24332_s0 + $0x770] sm:$0xff]   ;;  %24482 = vst [vmem:[#allocation39_spill] sm:$0xff] %v21902_v11  ;;  %v21904_v22 = vpop.f32.mrb[12].mxu1  ;;  %v21909_v3 = vpack.c.bf16 %v5808_v24, %v5808_v24 }
 0x3b7   :  { %v8329_v25 = vmax.bf16 %v15642_v6, %v21799_v8  ;;  %v4434_v63 = vadd.f32 %v21766_v60, %v4433_v59  ;;  %v16976_v29 = vpop.f32.mrb[110].mxu0  ;;  %v18191_v24 = vld [vmem:[%s24333_s3 + $0x30] sm:$0xff]  }
 0x3b8   :  { %v21906_v26 = vmax.bf16 %v8331_v23, %v8330_v51  ;;  %v5646_v32 = vmax.f32 %v4442_v5, 0.0  ;;  %v4445_v42 = vadd.f32 %v21766_v60, %v16976_v29  ;;  %v4436_v17 = vpop.f32.mrb[111].mxu0  ;;  %24483 = vst [vmem:[#allocation40_spill] sm:$0xff] %v21909_v3  ;;  %v21916_v51 = vpack.c.bf16 %v5811_v39, %v5811_v39  ;;  %v21918_v23 = vpop.f32.mrb[13].mxu1  ;;  %17277 = vmatprep.subr.bf16.mxu1 %v18191_v24 }
 0x3b9   :  { %v8532_v6 = vmax.bf16 %v8329_v25, %v8328_v43  ;;  %v5644_v8 = vmax.f32 %v4434_v63, 0.0  ;;  %v4437_v59 = vadd.f32 %v21766_v60, %v4436_v17  ;;  %v5114_v25 = vadd.f32 %v21766_v60, %v17143_v53  ;;  %v21927_v63 = vpop.f32.mrb[14].mxu1  ;;  %17278 = vmatpush3.bf16.msra.mxu1 %v18191_v24 }
 0x3ba   :  { %v8754_v46 = vsel %vm19015_vm9, %v21906_v26, 0  ;;  %v15647_v16 = vpack.c.bf16 %v5646_v32, %v5646_v32  ;;  %v5647_v0 = vmax.f32 %v4445_v42, 0.0  ;;  %17082 = vmatmul.mubr.msk.bf16.gmra.mrb[216].mxu0 %vm2078_vm0, %v18160_v9  ;;  %24484 = vst [vmem:[#allocation41_spill] sm:$0xff] %v21916_v51  ;;  %v5106_v32 = vadd.f32 %v21766_v60, %v5105_v4  ;;  %v21931_v42 = vpop.f32.mrb[15].mxu1  ;;  %17279 = vmatprep.subr.bf16.mxu1 %v18192_v13 }
 0x3bb   :  { %v8654_v43 = vsel %vm19028_vm10, %v8532_v6, 0  ;;  %v15645_v37 = vpack.c.bf16 %v5644_v8, %v5644_v8  ;;  %v5645_v5 = vmax.f32 %v4437_v59, 0.0  ;;  %17085 = vmatprep.mubr.msk.bf16.mxu0 %vm2078_vm0, %v18161_v14  ;;  %v5814_v59 = vmax.f32 %v5114_v25, 0.0  ;;  %v21935_v2 = vpop.f32.mrb[16].mxu1 }
 0x3bc   :  { %v8850_v9 = vadd.bf16 %v8754_v46, %v8654_v43  ;;  %v8334_v39 = vmax.bf16 %v15647_v16, %v21805_v20  ;;  %v15648_v29 = vpack.c.bf16 %v5647_v0, %v5647_v0  ;;  %v5117_v14 = vadd.f32 %v21766_v60, %v17144_v54  ;;  %v18162_v20 = vld [vmem:[%s24332_s0 + $0x778] sm:$0xff]   ;;  %v21944_v46 = vpop.f32.mrb[17].mxu1 }
 0x3bd   :  { %v8332_v17 = vmax.bf16 %v15645_v37, %v21807_v21  ;;  %v15646_v6 = vpack.c.bf16 %v5645_v5, %v5645_v5  ;;  %v16979_v8 = vpop.f32.mrb[112].mxu0  ;;  %v21942_v4 = vpack.c.bf16 %v5809_v7, %v5809_v7  ;;  %v5812_v21 = vmax.f32 %v5106_v32, 0.0  ;;  %v18163_v37 = vld [vmem:[%s24332_s0 + $0x780] sm:$0xff]   ;;  %v21954_v25 = vpop.f32.mrb[18].mxu1  ;;  %17280 = vmatpush3.bf16.msra.mxu1 %v18192_v13 }
 0x3be   :  { %v8335_v53 = vmax.bf16 %v15648_v29, %v21821_v40  ;;  %v4458_v16 = vadd.f32 %v21766_v60, %v16979_v8  ;;  %v4449_v0 = vpop.f32.mrb[113].mxu0  ;;  %v8655_v54 = vsel %vm19028_vm10, %v21906_v26, 0  ;;  %v5815_v5 = vmax.f32 %v5117_v14, 0.0 }
 0x3bf   :  { %24485 = vst [vmem:[#allocation42_spill] sm:$0xff] %v21942_v4  ;;  %v8333_v24 = vmax.bf16 %v15646_v6, %v21824_v57  ;;  %v4450_v40 = vadd.f32 %v21766_v60, %v4449_v0  ;;  %v16980_v43 = vpop.f32.mrb[114].mxu0  ;;  %v21958_v8 = vpack.c.bf16 %v5814_v59, %v5814_v59  ;;  %v21961_v26 = vadd.f32 %v21766_v60, %v5108_v55  ;;  %v21963_v57 = vpop.f32.mrb[19].mxu1 }
 0x3c0   :  { %v21956_v7 = vmax.bf16 %v8335_v53, %v8334_v39  ;;  %v5650_v29 = vmax.f32 %v4458_v16, 0.0  ;;  %v4452_v32 = vpop.f32.mrb[115].mxu0  ;;  %v4461_v61 = vadd.f32 %v21766_v60, %v16980_v43  ;;  %v21967_v14 = vpop.f32.mrb[20].mxu1  ;;  %v21976_v55 = vpack.c.bf16 %v5812_v21, %v5812_v21 }
 0x3c1   :  { %24486 = vst [vmem:[#allocation43_spill] sm:$0xff] %v21958_v8  ;;  %v8534_v6 = vmax.bf16 %v8333_v24, %v8332_v17  ;;  %v5648_v0 = vmax.f32 %v4450_v40, 0.0  ;;  %v4453_v35 = vadd.f32 %v21766_v60, %v4452_v32  ;;  %v21978_v17 = vpack.c.bf16 %v5815_v5, %v5815_v5  ;;  %v21987_v43 = vpop.f32.mrb[21].mxu1 }
 0x3c2   :  { %v8951_v39 = vsel %vm19103_vm15, %v21956_v7, 0  ;;  %v8756_v59 = vsel %vm19015_vm9, %v21956_v7, 0  ;;  %17086 = vmatmul.mubr.msk.bf16.gmra.mrb[220].mxu0 %vm2078_vm0, %v18162_v20  ;;  %24487 = vst [vmem:[#allocation44_spill] sm:$0xff] %v21976_v55  ;;  %v15651_v40 = vpack.c.bf16 %v5650_v29, %v5650_v29  ;;  %v21991_v31 = vpop.f32.mrb[22].mxu1 }
 0x3c3   :  { %24488 = vst [vmem:[#allocation45_spill] sm:$0xff] %v21978_v17  ;;  %v8656_v53 = vsel %vm19028_vm10, %v8534_v6, 0  ;;  %v8755_v16 = vsel %vm19015_vm9, %v8534_v6, 0  ;;  %v8950_v24 = vsel %vm19103_vm15, %v8534_v6, 0  ;;  %17089 = vmatprep.mubr.msk.bf16.mxu0 %vm2078_vm0, %v18163_v37  ;;  %v15649_v5 = vpack.c.bf16 %v5648_v0, %v5648_v0 }
 0x3c4   :  { %v8851_v32 = vadd.bf16 %v8755_v16, %v8655_v54  ;;  %v21989_v20 = vadd.bf16 %v8756_v59, %v8656_v53  ;;  %v9046_v21 = vadd.bf16 %v8950_v24, %v8850_v9  ;;  %v9146_v6 = vsel %vm19110_vm1, %v21956_v7, 0  ;;  %v22000_v54 = vpop.f32.mrb[23].mxu1  ;;  %v18164_v24 = vld [vmem:[%s24332_s0 + $0x788] sm:$0xff]  }
 0x3c5   :  { %v8338_v29 = vmax.bf16 %v15651_v40, %v21828_v1  ;;  %v5651_v37 = vmax.f32 %v4461_v61, 0.0  ;;  %v5649_v28 = vmax.f32 %v4453_v35, 0.0  ;;  %v16983_v10 = vpop.f32.mrb[116].mxu0  ;;  %v8336_v0 = vmax.bf16 %v15649_v5, %v21830_v18  ;;  %v22011_v48 = vpop.f32.mrb[24].mxu1  ;;  %v18165_v40 = vld [vmem:[%s24332_s0 + $0x790] sm:$0xff]  }
 0x3c6   :  { %v22002_v59 = vadd.bf16 %v8951_v39, %v8851_v32  ;;  %v22004_v9 = vadd.bf16 %v9146_v6, %v9046_v21  ;;  %v4474_v53 = vadd.f32 %v21766_v60, %v16983_v10  ;;  %v4465_v16 = vpop.f32.mrb[117].mxu0  ;;  %v5813_v18 = vmax.f32 %v21961_v26, 0.0  ;;  %v22018_v10 = vpop.f32.mrb[25].mxu1 }
 0x3c7   :  { %v15652_v35 = vpack.c.bf16 %v5651_v37, %v5651_v37  ;;  %v15650_v61 = vpack.c.bf16 %v5649_v28, %v5649_v28  ;;  %v4466_v1 = vadd.f32 %v21766_v60, %v4465_v16  ;;  %v16984_v39 = vpop.f32.mrb[118].mxu0  ;;  %v5130_v6 = vadd.f32 %v21766_v60, %v21904_v22  ;;  %v22025_v37 = vpop.f32.mrb[26].mxu1 }
 0x3c8   :  { %v5654_v32 = vmax.f32 %v4474_v53, 0.0  ;;  %v4477_v21 = vadd.f32 %v21766_v60, %v16984_v39  ;;  %v4468_v5 = vpop.f32.mrb[119].mxu0  ;;  %v5122_v28 = vadd.f32 %v21766_v60, %v21918_v23  ;;  %v22030_v13 = vpop.f32.mrb[27].mxu1 }
 0x3c9   :  { %v8339_v16 = vmax.bf16 %v15652_v35, %v21838_v41  ;;  %v8337_v17 = vmax.bf16 %v15650_v61, %v21840_v52  ;;  %v5652_v26 = vmax.f32 %v4466_v1, 0.0  ;;  %v4469_v55 = vadd.f32 %v21766_v60, %v4468_v5  ;;  %v22033_v4 = vpop.f32.mrb[28].mxu1 }
 0x3ca   :  { %v15655_v53 = vpack.c.bf16 %v5654_v32, %v5654_v32  ;;  %v5655_v39 = vmax.f32 %v4477_v21, 0.0  ;;  %17090 = vmatmul.mubr.msk.bf16.gmra.mrb[224].mxu0 %vm2078_vm0, %v18164_v24  ;;  %v5818_v8 = vmax.f32 %v5130_v6, 0.0  ;;  %v5816_v22 = vmax.f32 %v5122_v28, 0.0  ;;  %v22040_v52 = vpop.f32.mrb[29].mxu1 }
 0x3cb   :  { %v22035_v23 = vmax.bf16 %v8339_v16, %v8338_v29  ;;  %v22037_v51 = vmax.bf16 %v8337_v17, %v8336_v0  ;;  %v15653_v41 = vpack.c.bf16 %v5652_v26, %v5652_v26  ;;  %v5653_v35 = vmax.f32 %v4469_v55, 0.0  ;;  %17093 = vmatprep.mubr.msk.bf16.mxu0 %vm2078_vm0, %v18165_v40  ;;  %v22048_v21 = vpop.f32.mrb[30].mxu1  ;;  %v18193_v26 = vld [vmem:[%s24333_s3 + $0x80] sm:$0xff]  }
 0x3cc   :  { %v8657_v61 = vsel %vm19028_vm10, %v21956_v7, 0  ;;  %v8342_v24 = vmax.bf16 %v15655_v53, %v21844_v27  ;;  %v15656_v1 = vpack.c.bf16 %v5655_v39, %v5655_v39  ;;  %v22046_v32 = vpack.c.bf16 %v5813_v18, %v5813_v18  ;;  %v22060_v7 = vpop.f32.mrb[31].mxu1  ;;  %17345 = vmatprep.subr.bf16.mxu1 %v18193_v26 }
 0x3cd   :  { %v8758_v17 = vsel %vm19015_vm9, %v22035_v23, 0  ;;  %v8658_v55 = vsel %vm19028_vm10, %v22037_v51, 0  ;;  %v16987_v29 = vpop.f32.mrb[120].mxu0  ;;  %v22056_v0 = vpack.c.bf16 %v5818_v8, %v5818_v8  ;;  %v22058_v40 = vpack.c.bf16 %v5816_v22, %v5816_v22  ;;  %v18167_v8 = vld [vmem:[%s24332_s0 + $0x798] sm:$0xff]   ;;  %v22074_v16 = vpop.f32.mrb[32].mxu1 }
 0x3ce   :  { %24489 = vst [vmem:[#allocation46_spill] sm:$0xff] %v22046_v32  ;;  %v8659_v27 = vsel %vm19028_vm10, %v22035_v23, 0  ;;  %v8757_v18 = vsel %vm19015_vm9, %v22037_v51, 0  ;;  %v22068_v5 = vadd.bf16 %v8758_v17, %v8658_v55  ;;  %v8340_v6 = vmax.bf16 %v15653_v41, %v21846_v30  ;;  %v4481_v28 = vpop.f32.mrb[121].mxu0  ;;  %v18168_v30 = vld [vmem:[%s24332_s0 + $0x7a0] sm:$0xff]   ;;  %v22086_v41 = vpop.f32.mrb[33].mxu1 }
 0x3cf   :  { %24490 = vst [vmem:[#allocation47_spill] sm:$0xff] %v22056_v0  ;;  %24491 = vst [vmem:[#allocation48_spill] sm:$0xff] %v22058_v40  ;;  %v22079_v53 = vadd.bf16 %v8757_v18, %v8657_v61  ;;  %v8343_v39 = vmax.bf16 %v15656_v1, %v21851_v12  ;;  %v15654_v22 = vpack.c.bf16 %v5653_v35, %v5653_v35  ;;  %v16988_v55 = vpop.f32.mrb[122].mxu0  ;;  %v9147_v61 = vsel %vm19110_vm1, %v22037_v51, 0  ;;  %v22096_v35 = vpop.f32.mrb[34].mxu1 }
 0x3d0   :  { %v4490_v17 = vadd.f32 %v21766_v60, %v16987_v29  ;;  %24492 = vst [vmem:[#allocation49_spill] sm:$0xff] %v22086_v41  ;;  %v4482_v40 = vadd.f32 %v21766_v60, %v4481_v28  ;;  %v4493_v0 = vadd.f32 %v21766_v60, %v16988_v55  ;;  %v4484_v32 = vpop.f32.mrb[123].mxu0  ;;  %v9342_v12 = vsel %vm19146_vm3, %v22037_v51, 0  ;;  %24493 = vst [vmem:[#allocation50_spill] sm:$0xff] %v22096_v35  ;;  %v22102_v55 = vpop.f32.mrb[35].mxu1 }
 0x3d1   :  { %v22098_v1 = vmax.bf16 %v8343_v39, %v8342_v24  ;;  %v8341_v29 = vmax.bf16 %v15654_v22, %v21853_v44  ;;  %v4485_v28 = vadd.f32 %v21766_v60, %v4484_v32  ;;  %v9243_v35 = vadd.bf16 %v9147_v61, %v22002_v59  ;;  %v22109_v26 = vpop.f32.mrb[36].mxu1 }
 0x3d2   :  { %v5658_v18 = vmax.f32 %v4490_v17, 0.0  ;;  %v5656_v3 = vmax.f32 %v4482_v40, 0.0  ;;  %v5659_v11 = vmax.f32 %v4493_v0, 0.0  ;;  %17094 = vmatmul.mubr.msk.bf16.gmra.mrb[228].mxu0 %vm2078_vm0, %v18167_v8  ;;  %v9343_v32 = vsel %vm19146_vm3, %v22035_v23, 0  ;;  %v22117_v22 = vpop.f32.mrb[37].mxu1 }
 0x3d3   :  { %v22111_v24 = vmax.bf16 %v8341_v29, %v8340_v6  ;;  %v5657_v39 = vmax.f32 %v4485_v28, 0.0  ;;  %17097 = vmatprep.mubr.msk.bf16.mxu0 %vm2078_vm0, %v18168_v30  ;;  %v9438_v8 = vadd.bf16 %v9342_v12, %v22004_v9  ;;  %v9439_v17 = vadd.bf16 %v9343_v32, %v9243_v35  ;;  %v22120_v59 = vpop.f32.mrb[38].mxu1  ;;  %v18169_v32 = vld [vmem:[%s24332_s0 + $0x7a8] sm:$0xff]  }
 0x3d4   :  { %v15659_v44 = vpack.c.bf16 %v5658_v18, %v5658_v18  ;;  %v15657_v40 = vpack.c.bf16 %v5656_v3, %v5656_v3  ;;  %v15660_v0 = vpack.c.bf16 %v5659_v11, %v5659_v11  ;;  %v22129_v28 = vpop.f32.mrb[39].mxu1 }
 0x3d5   :  { %v8759_v61 = vsel %vm19015_vm9, %v22111_v24, 0  ;;  %v15658_v30 = vpack.c.bf16 %v5657_v39, %v5657_v39  ;;  %v16991_v18 = vpop.f32.mrb[124].mxu0  ;;  %24494 = vst [vmem:[#allocation51_spill] sm:$0xff] %v22129_v28  ;;  %v22133_v12 = vcombine.low %v9438_v8, %v9439_v17  ;;  %v22138_v41 = vpop.f32.mrb[40].mxu1  ;;  %v18170_v39 = vld [vmem:[%s24332_s0 + $0x7b0] sm:$0xff]  }
 0x3d6   :  { %v8346_v29 = vmax.bf16 %v15659_v44, %v21861_v62  ;;  %v8344_v11 = vmax.bf16 %v15657_v40, %v21863_v33  ;;  %v8347_v3 = vmax.bf16 %v15660_v0, %v21870_v56  ;;  %v8855_v9 = vadd.bf16 %v8759_v61, %v8659_v27  ;;  %v4497_v35 = vpop.f32.mrb[125].mxu0  ;;  %24496 = vst [vmem:[#allocation53_spill] sm:$0xff] %v22138_v41  ;;  %v22149_v40 = vpop.f32.mrb[41].mxu1 }
 0x3d7   :  { %24495 = vst [vmem:[#allocation52_spill] sm:$0xff] %v22133_v12  ;;  %v8345_v62 = vmax.bf16 %v15658_v30, %v21872_v15  ;;  %v8955_v44 = vsel %vm19103_vm15, %v22098_v1, 0  ;;  %v4506_v33 = vadd.f32 %v21766_v60, %v16991_v18  ;;  %v4498_v56 = vadd.f32 %v21766_v60, %v4497_v35  ;;  %v16992_v27 = vpop.f32.mrb[126].mxu0  ;;  %24497 = vst [vmem:[#allocation54_spill] sm:$0xff] %v22149_v40  ;;  %v22158_v30 = vpop.f32.mrb[42].mxu1 }
 0x3d8   :  { %v22154_v15 = vmax.bf16 %v8347_v3, %v8346_v29  ;;  %v9051_v8 = vadd.bf16 %v8955_v44, %v8855_v9  ;;  %17249 = vmatprep.mubr.bf16.mxu1 %v22133_v12  ;;  %v4509_v17 = vadd.f32 %v21766_v60, %v16992_v27  ;;  %v4500_v61 = vpop.f32.mrb[127].mxu0  ;;  %24498 = vst [vmem:[#allocation55_spill] sm:$0xff] %v22158_v30  ;;  %v22163_v41 = vpop.f32.mrb[43].mxu1  ;;  %v8660_v9 = vsel %vm19028_vm10, %v22111_v24, 0 }
 0x3d9   :  { %v22160_v18 = vmax.bf16 %v8345_v62, %v8344_v11  ;;  %v5662_v35 = vmax.f32 %v4506_v33, 0.0  ;;  %v5660_v6 = vmax.f32 %v4498_v56, 0.0  ;;  %v4501_v40 = vadd.f32 %v21766_v60, %v4500_v61  ;;  %24499 = vst [vmem:[#allocation56_spill] sm:$0xff] %v22163_v41  ;;  %v22175_v62 = vpop.f32.mrb[44].mxu1 }
 0x3da   :  { %v8957_v29 = vsel %vm19103_vm15, %v22154_v15, 0  ;;  %v5663_v3 = vmax.f32 %v4509_v17, 0.0  ;;  %v8661_v11 = vsel %vm19028_vm10, %v22098_v1, 0  ;;  %17098 = vmatmul.mubr.msk.bf16.gmra.mrb[232].mxu0 %vm2078_vm0, %v18169_v32  ;;  %24500 = vst [vmem:[#allocation57_spill] sm:$0xff] %v22175_v62  ;;  %v9152_v44 = vsel %vm19110_vm1, %v22154_v15, 0  ;;  %v22184_v17 = vpop.f32.mrb[45].mxu1 }
 0x3db   :  { %v9151_v33 = vsel %vm19110_vm1, %v22160_v18, 0  ;;  %v15663_v56 = vpack.c.bf16 %v5662_v35, %v5662_v35  ;;  %v15661_v27 = vpack.c.bf16 %v5660_v6, %v5660_v6  ;;  %17101 = vmatprep.mubr.msk.bf16.mxu0 %vm2078_vm0, %v18170_v39  ;;  %24501 = vst [vmem:[#allocation58_spill] sm:$0xff] %v22184_v17  ;;  %v5661_v32 = vmax.f32 %v4501_v40, 0.0  ;;  %v22191_v62 = vpop.f32.mrb[46].mxu1 }
 0x3dc   :  { %v22186_v61 = vadd.bf16 %v9151_v33, %v9051_v8  ;;  %v15664_v0 = vpack.c.bf16 %v5663_v3, %v5663_v3  ;;  %v8760_v12 = vsel %vm19015_vm9, %v22098_v1, 0  ;;  %24502 = vst [vmem:[#allocation59_spill] sm:$0xff] %v22191_v62  ;;  %v8761_v6 = vsel %vm19015_vm9, %v22160_v18, 0  ;;  %v22198_v8 = vpop.f32.mrb[47].mxu1 }
 0x3dd   :  { %v8350_v41 = vmax.bf16 %v15663_v56, %v21875_v47  ;;  %v8348_v30 = vmax.bf16 %v15661_v27, %v21878_v58  ;;  %v8856_v39 = vadd.bf16 %v8760_v12, %v8660_v9  ;;  %v16995_v35 = vpop.f32.mrb[128].mxu0  ;;  %24503 = vst [vmem:[#allocation60_spill] sm:$0xff] %v22198_v8  ;;  %v15662_v3 = vpack.c.bf16 %v5661_v32, %v5661_v32  ;;  %v18172_v58 = vld [vmem:[%s24332_s0 + $0x7b8] sm:$0xff]   ;;  %v22207_v47 = vpop.f32.mrb[48].mxu1 }
 0x3de   :  { %v8351_v40 = vmax.bf16 %v15664_v0, %v21888_v19  ;;  %v8857_v33 = vadd.bf16 %v8761_v6, %v8661_v11  ;;  %v8956_v62 = vsel %vm19103_vm15, %v22160_v18, 0  ;;  %v4513_v17 = vpop.f32.mrb[129].mxu0  ;;  %24504 = vst [vmem:[#allocation61_spill] sm:$0xff] %v22207_v47  ;;  %v24505_v12 = vsel %vm19103_vm15, %v22037_v51, 0  ;;  %v22225_v32 = vpop.f32.mrb[49].mxu1 }
 0x3df   :  { %v9052_v56 = vadd.bf16 %v8956_v62, %v8856_v39  ;;  %v9048_v19 = vadd.bf16 %v24505_v12, %v21989_v20  ;;  %v24506_v0 = vsel %vm19103_vm15, %v22035_v23, 0  ;;  %v9148_v11 = vsel %vm19110_vm1, %v22035_v23, 0  ;;  %v16996_v27 = vpop.f32.mrb[130].mxu0  ;;  %v18173_v62 = vld [vmem:[%s24332_s0 + $0x7c0] sm:$0xff]   ;;  %v22231_v12 = vpop.f32.mrb[50].mxu1 }
 0x3e0   :  { %v9049_v9 = vadd.bf16 %v24506_v0, %v22079_v53  ;;  %v8543_v6 = vmax.bf16 %v8351_v40, %v8350_v41  ;;  %v8349_v51 = vmax.bf16 %v15662_v3, %v21895_v38  ;;  %v9053_v20 = vadd.bf16 %v8957_v29, %v8857_v33  ;;  %v4516_v53 = vpop.f32.mrb[131].mxu0  ;;  %24507 = vst [vmem:[#allocation62_spill] sm:$0xff] %v22231_v12  ;;  %v22236_v28 = vpop.f32.mrb[51].mxu1 }
 0x3e1   :  { %v9149_v39 = vsel %vm19110_vm1, %v22111_v24, 0  ;;  %v9248_v0 = vadd.bf16 %v9152_v44, %v9052_v56  ;;  %v9244_v23 = vadd.bf16 %v9148_v11, %v9048_v19  ;;  %v9344_v8 = vsel %vm19146_vm3, %v22111_v24, 0  ;;  %24508 = vst [vmem:[#allocation63_spill] sm:$0xff] %v22236_v28 }
 0x3e2   :  { %v9245_v47 = vadd.bf16 %v9149_v39, %v9049_v9  ;;  %v9347_v38 = vsel %vm19146_vm3, %v22154_v15, 0  ;;  %v8542_v41 = vmax.bf16 %v8349_v51, %v8348_v30  ;;  %v9345_v29 = vsel %vm19146_vm3, %v22098_v1, 0  ;;  %17102 = vmatmul.mubr.msk.bf16.gmra.mrb[236].mxu0 %vm2078_vm0, %v18172_v58 }
 0x3e3   :  { %v4522_v40 = vadd.f32 %v21766_v60, %v16995_v35  ;;  %v9440_v44 = vadd.bf16 %v9344_v8, %v9244_v23  ;;  %v4514_v33 = vadd.f32 %v21766_v60, %v4513_v17  ;;  %v4525_v56 = vadd.f32 %v21766_v60, %v16996_v27  ;;  %17105 = vmatprep.mubr.msk.bf16.mxu0 %vm2078_vm0, %v18173_v62 }
 0x3e4   :  { %v9441_v3 = vadd.bf16 %v9345_v29, %v9245_v47  ;;  %v9153_v15 = vsel %vm19110_vm1, %v8542_v41, 0  ;;  %v9348_v30 = vsel %vm19146_vm3, %v8542_v41, 0  ;;  %v4517_v9 = vadd.f32 %v21766_v60, %v4516_v53  ;;  %v18174_v53 = vld [vmem:[%s24332_s0 + $0x7c8] sm:$0xff]  }
 0x3e5   :  { %v5666_v19 = vmax.f32 %v4522_v40, 0.0  ;;  %v9249_v35 = vadd.bf16 %v9153_v15, %v9053_v20  ;;  %v9444_v11 = vadd.bf16 %v9348_v30, %v9248_v0  ;;  %v5664_v8 = vmax.f32 %v4514_v33, 0.0  ;;  %v16999_v47 = vpop.f32.mrb[132].mxu0 }
 0x3e6   :  { %v22254_v58 = vcombine.low %v9440_v44, %v9441_v3  ;;  %v9346_v17 = vsel %vm19146_vm3, %v22160_v18, 0  ;;  %v9349_v27 = vsel %vm19146_vm3, %v8543_v6, 0  ;;  %v24510_v51 = vsel %vm19103_vm15, %v22111_v24, 0  ;;  %v4529_v39 = vpop.f32.mrb[133].mxu0 }
 0x3e7   :  { %v22261_v62 = vpack.c.bf16 %v5666_v19, %v5666_v19  ;;  %v9050_v20 = vadd.bf16 %v24510_v51, %v22068_v5  ;;  %v9445_v0 = vadd.bf16 %v9349_v27, %v9249_v35  ;;  %v5667_v18 = vmax.f32 %v4525_v56, 0.0  ;;  %v17000_v41 = vpop.f32.mrb[134].mxu0  ;;  %v18175_v5 = vld [vmem:[%s24332_s0 + $0x7d0] sm:$0xff]  }
 0x3e8   :  { %24509 = vst [vmem:[#allocation64_spill] sm:$0xff] %v22254_v58  ;;  %17250 = vmatmul.mubr.bf16.gmra.mrb[100].mxu1 %v22254_v58  ;;  %v9150_v6 = vsel %vm19110_vm1, %v22098_v1, 0  ;;  %v9443_v23 = vadd.bf16 %v9347_v38, %v22186_v61  ;;  %v22279_v24 = vpack.c.bf16 %v5664_v8, %v5664_v8  ;;  %v5665_v29 = vmax.f32 %v4517_v9, 0.0  ;;  %v4532_v3 = vpop.f32.mrb[135].mxu0 }
 0x3e9   :  { %v9246_v40 = vadd.bf16 %v9150_v6, %v9050_v20  ;;  %v4538_v44 = vadd.f32 %v21766_v60, %v16999_v47  ;;  %v22282_v33 = vcombine.low %v9444_v11, %v9445_v0  ;;  %v4530_v56 = vadd.f32 %v21766_v60, %v4529_v39  ;;  %v18177_v6 = vld [vmem:[%s24332_s0 + $0x7d8] sm:$0xff]  }
 0x3ea   :  { %v4541_v1 = vadd.f32 %v21766_v60, %v17000_v41  ;;  %v4533_v61 = vadd.f32 %v21766_v60, %v4532_v3  ;;  %17106 = vmatmul.mubr.msk.bf16.gmra.mrb[240].mxu0 %vm2078_vm0, %v18174_v53  ;;  %v5133_v30 = vadd.f32 %v21766_v60, %v21927_v63  ;;  %v5125_v19 = vadd.f32 %v21766_v60, %v21931_v42 }
 0x3eb   :  { %24511 = vst [vmem:[#allocation65_spill] sm:$0xff] %v22282_v33  ;;  %v9442_v38 = vadd.bf16 %v9346_v17, %v9246_v40  ;;  %v5670_v15 = vmax.f32 %v4538_v44, 0.0  ;;  %v5668_v9 = vmax.f32 %v4530_v56, 0.0  ;;  %17109 = vmatprep.mubr.msk.bf16.mxu0 %vm2078_vm0, %v18175_v5  ;;  %v5146_v8 = vadd.f32 %v21766_v60, %v21935_v2  ;;  %v18178_v40 = vld [vmem:[%s24332_s0 + $0x7e0] sm:$0xff]  }
 0x3ec   :  { %v5671_v35 = vmax.f32 %v4541_v1, 0.0  ;;  %v5669_v11 = vmax.f32 %v4533_v61, 0.0  ;;  %v22295_v47 = vpack.c.bf16 %v5667_v18, %v5667_v18  ;;  %v22297_v17 = vpack.c.bf16 %v5665_v29, %v5665_v29 }
 0x3ed   :  { %v22299_v27 = vcombine.low %v9442_v38, %v9443_v23  ;;  %v5819_v51 = vmax.f32 %v5133_v30, 0.0  ;;  %v22301_v20 = vpack.c.bf16 %v5670_v15, %v5670_v15  ;;  %v22303_v63 = vpack.c.bf16 %v5668_v9, %v5668_v9  ;;  %v17003_v39 = vpop.f32.mrb[136].mxu0 }
 0x3ee   :  { %v22305_v42 = vpack.c.bf16 %v5671_v35, %v5671_v35  ;;  %v5817_v53 = vmax.f32 %v5125_v19, 0.0  ;;  %v22308_v0 = vpack.c.bf16 %v5669_v11, %v5669_v11  ;;  %v4554_v2 = vadd.f32 %v21766_v60, %v17003_v39  ;;  %v4545_v18 = vpop.f32.mrb[137].mxu0 }
 0x3ef   :  { %24512 = vst [vmem:[#allocation66_spill] sm:$0xff] %v22299_v27  ;;  %17253 = vmatprep.mubr.bf16.mxu1 %v22299_v27  ;;  %v5822_v23 = vmax.f32 %v5146_v8, 0.0  ;;  %v5138_v41 = vadd.f32 %v21766_v60, %v21944_v46  ;;  %v4546_v5 = vadd.f32 %v21766_v60, %v4545_v18  ;;  %v17004_v29 = vpop.f32.mrb[138].mxu0  ;;  %v22321_v44 = vpack.c.bf16 %v5819_v51, %v5819_v51  ;;  %v24625_v50 = vld [vmem:[#allocation64_spill] sm:$0xff] }
 0x3f0   :  { %17254 = vmatmul.mubr.bf16.gmra.mrb[104].mxu1 %v22282_v33  ;;  %v5149_v3 = vadd.f32 %v21766_v60, %v21954_v25  ;;  %v5141_v56 = vadd.f32 %v21766_v60, %v21963_v57  ;;  %v5674_v1 = vmax.f32 %v4554_v2, 0.0  ;;  %v4557_v46 = vadd.f32 %v21766_v60, %v17004_v29  ;;  %v4548_v61 = vpop.f32.mrb[139].mxu0 }
 0x3f1   :  { %v5820_v38 = vmax.f32 %v5138_v41, 0.0  ;;  %v5162_v15 = vadd.f32 %v21766_v60, %v21967_v14  ;;  %v5672_v30 = vmax.f32 %v4546_v5, 0.0  ;;  %v4549_v19 = vadd.f32 %v21766_v60, %v4548_v61 }
 0x3f2   :  { %v5823_v9 = vmax.f32 %v5149_v3, 0.0  ;;  %v5821_v35 = vmax.f32 %v5141_v56, 0.0  ;;  %v22331_v11 = vpack.c.bf16 %v5674_v1, %v5674_v1  ;;  %v5675_v8 = vmax.f32 %v4557_v46, 0.0  ;;  %17110 = vmatmul.mubr.msk.bf16.gmra.mrb[244].mxu0 %vm2078_vm0, %v18177_v6 }
 0x3f3   :  { %v22334_v25 = vpack.c.bf16 %v5817_v53, %v5817_v53  ;;  %v22336_v57 = vpack.c.bf16 %v5822_v23, %v5822_v23  ;;  %v22338_v51 = vpack.c.bf16 %v5672_v30, %v5672_v30  ;;  %v5673_v39 = vmax.f32 %v4549_v19, 0.0  ;;  %17113 = vmatprep.mubr.msk.bf16.mxu0 %vm2078_vm0, %v18178_v40 }
 0x3f4   :  { %v22341_v14 = vpack.c.bf16 %v5820_v38, %v5820_v38  ;;  %v5826_v2 = vmax.f32 %v5162_v15, 0.0  ;;  %v22343_v18 = vpack.c.bf16 %v5823_v9, %v5823_v9  ;;  %v22345_v41 = vpack.c.bf16 %v5821_v35, %v5821_v35  ;;  %v18180_v38 = vld [vmem:[%s24332_s0 + $0x7f0] sm:$0xff]  }
 0x3f5   :  { %v5154_v5 = vadd.f32 %v21766_v60, %v21987_v43  ;;  %v5165_v53 = vadd.f32 %v21766_v60, %v21991_v31  ;;  %v22351_v6 = vpack.c.bf16 %v5675_v8, %v5675_v8  ;;  %v17007_v23 = vpop.f32.mrb[140].mxu0  ;;  %v5157_v29 = vadd.f32 %v21766_v60, %v22000_v54  ;;  %v18179_v43 = vld [vmem:[%s24332_s0 + $0x7e8] sm:$0xff]   ;;  %v22368_v54 = vld [vmem:[%s24334_s2] ss:$0 sm:$0xff] }
 0x3f6   :  { %v5178_v40 = vadd.f32 %v21766_v60, %v22011_v48  ;;  %v5170_v3 = vadd.f32 %v21766_v60, %v22018_v10  ;;  %v4570_v56 = vadd.f32 %v21766_v60, %v17007_v23  ;;  %v4561_v1 = vpop.f32.mrb[141].mxu0  ;;  %v5181_v61 = vadd.f32 %v21766_v60, %v22025_v37 }
 0x3f7   :  { %v5824_v31 = vmax.f32 %v5154_v5, 0.0  ;;  %v5827_v46 = vmax.f32 %v5165_v53, 0.0  ;;  %v4562_v48 = vadd.f32 %v22368_v54, %v4561_v1  ;;  %v17008_v10 = vpop.f32.mrb[142].mxu0  ;;  %v5825_v15 = vmax.f32 %v5157_v29, 0.0 }
 0x3f8   :  { %v5830_v30 = vmax.f32 %v5178_v40, 0.0  ;;  %v5828_v19 = vmax.f32 %v5170_v3, 0.0  ;;  %v22374_v9 = vpack.c.bf16 %v5673_v39, %v5673_v39  ;;  %v5678_v35 = vmax.f32 %v4570_v56, 0.0  ;;  %v4564_v37 = vpop.f32.mrb[143].mxu0 }
 0x3f9   :  { %v4573_v60 = vadd.f32 %v22368_v54, %v17008_v10  ;;  %v22377_v8 = vpack.c.bf16 %v5826_v2, %v5826_v2  ;;  %v5676_v5 = vmax.f32 %v4562_v48, 0.0  ;;  %v4565_v53 = vadd.f32 %v22368_v54, %v4564_v37 }
 0x3fa   :  { %v22380_v23 = vpack.c.bf16 %v5824_v31, %v5824_v31  ;;  %v22382_v1 = vpack.c.bf16 %v5827_v46, %v5827_v46  ;;  %17114 = vmatmul.mubr.msk.bf16.gmra.mrb[248].mxu0 %vm2078_vm0, %v18179_v43  ;;  %v22385_v29 = vpack.c.bf16 %v5825_v15, %v5825_v15  ;;  %v22387_v39 = vpack.c.bf16 %v5830_v30, %v5830_v30 }
 0x3fb   :  { %v5679_v33 = vmax.f32 %v4573_v60, 0.0  ;;  %v5831_v40 = vmax.f32 %v5181_v61, 0.0  ;;  %v22389_v3 = vpack.c.bf16 %v5678_v35, %v5678_v35  ;;  %v5677_v56 = vmax.f32 %v4565_v53, 0.0  ;;  %17117 = vmatprep.mubr.msk.bf16.mxu0 %vm2078_vm0, %v18180_v38 }
 0x3fc   :  { %24513 = vst [vmem:[#allocation67_spill] sm:$0xff] %v22380_v23  ;;  %24514 = vst [vmem:[#allocation68_spill] sm:$0xff] %v22382_v1  ;;  %v22392_v2 = vpack.c.bf16 %v5828_v19, %v5828_v19  ;;  %v5194_v31 = vadd.f32 %v22368_v54, %v22033_v4  ;;  %v22396_v46 = vpack.c.bf16 %v5676_v5, %v5676_v5  ;;  %v18183_v5 = vld [vmem:[%s24332_s0 + $0x800] sm:$0xff]  }
 0x3fd   :  { %24515 = vst [vmem:[#allocation69_spill] sm:$0xff] %v22385_v29  ;;  %24516 = vst [vmem:[#allocation70_spill] sm:$0xff] %v22387_v39  ;;  %v22400_v43 = vadd.f32 %v22368_v54, %v22030_v13  ;;  %v5186_v48 = vadd.f32 %v22368_v54, %v22040_v52  ;;  %v5197_v61 = vadd.f32 %v22368_v54, %v22048_v21  ;;  %v17011_v38 = vpop.f32.mrb[144].mxu0  ;;  %v18182_v52 = vld [vmem:[%s24332_s0 + $0x7f8] sm:$0xff]  }
 0x3fe   :  { %24517 = vst [vmem:[#allocation71_spill] sm:$0xff] %v22392_v2  ;;  %v22406_v10 = vpack.c.bf16 %v5679_v33, %v5679_v33  ;;  %v22408_v15 = vpack.c.bf16 %v5831_v40, %v5831_v40  ;;  %v5834_v30 = vmax.f32 %v5194_v31, 0.0  ;;  %v5189_v4 = vadd.f32 %v22368_v54, %v22060_v7  ;;  %v4577_v35 = vpop.f32.mrb[145].mxu0 }
 0x3ff   :  { %24518 = vst [vmem:[#allocation72_spill] sm:$0xff] %v22400_v43  ;;  %v22412_v19 = vpack.c.bf16 %v5677_v56, %v5677_v56  ;;  %v4586_v13 = vadd.f32 %v22368_v54, %v17011_v38  ;;  %v5832_v60 = vmax.f32 %v5186_v48, 0.0  ;;  %v5835_v21 = vmax.f32 %v5197_v61, 0.0  ;;  %v17012_v37 = vpop.f32.mrb[146].mxu0 }
 0x400   :  { %24519 = vst [vmem:[#allocation73_spill] sm:$0xff] %v22408_v15  ;;  %v4578_v33 = vadd.f32 %v22368_v54, %v4577_v35  ;;  %v15835_v53 = vpack.c.bf16 %v5834_v30, %v5834_v30  ;;  %v5833_v7 = vmax.f32 %v5189_v4, 0.0  ;;  %v5210_v40 = vadd.f32 %v22368_v54, %v22074_v16  ;;  %v4580_v38 = vpop.f32.mrb[147].mxu0  ;;  %v24520_v35 = vld [vmem:[#allocation39_spill] sm:$0xff]  ;;  %v24521_v4 = vld [vmem:[#allocation40_spill] sm:$0xff]  ;;  %v24522_v16 = vld [vmem:[#allocation41_spill] sm:$0xff] }
 0x401   :  { %v5682_v56 = vmax.f32 %v4586_v13, 0.0  ;;  %v4589_v31 = vadd.f32 %v22368_v54, %v17012_v37  ;;  %v15833_v27 = vpack.c.bf16 %v5832_v60, %v5832_v60  ;;  %v15836_v58 = vpack.c.bf16 %v5835_v21, %v5835_v21  ;;  %v24523_v60 = vld [vmem:[#allocation42_spill] sm:$0xff] }
 0x402   :  { %v5680_v48 = vmax.f32 %v4578_v33, 0.0  ;;  %v4581_v61 = vadd.f32 %v22368_v54, %v4580_v38  ;;  %v8426_v15 = vmax.bf16 %v15835_v53, %v24520_v35  ;;  %v15834_v2 = vpack.c.bf16 %v5833_v7, %v5833_v7  ;;  %17118 = vmatmul.mubr.msk.bf16.gmra.mrb[252].mxu0 %vm2078_vm0, %v18182_v52  ;;  %v24524_v7 = vld [vmem:[#allocation49_spill] sm:$0xff] }
 0x403   :  { %v5683_v39 = vmax.f32 %v4589_v31, 0.0  ;;  %v8424_v29 = vmax.bf16 %v15833_v27, %v24521_v4  ;;  %v8427_v13 = vmax.bf16 %v15836_v58, %v24522_v16  ;;  %v22431_v1 = vpack.c.bf16 %v5682_v56, %v5682_v56  ;;  %17121 = vmatprep.mubr.msk.bf16.mxu0 %vm2078_vm0, %v18183_v5  ;;  %v24525_v31 = vld [vmem:[#allocation50_spill] sm:$0xff] }
 0x404   :  { %v5681_v37 = vmax.f32 %v4581_v61, 0.0  ;;  %v8425_v21 = vmax.bf16 %v15834_v2, %v24523_v60  ;;  %v5838_v33 = vmax.f32 %v5210_v40, 0.0  ;;  %v22435_v38 = vpack.c.bf16 %v5680_v48, %v5680_v48  ;;  %v18184_v48 = vld [vmem:[%s24332_s0 + $0x808] sm:$0xff]  }
 0x405   :  { %v22437_v53 = vmax.bf16 %v8427_v13, %v8426_v15  ;;  %v5202_v52 = vadd.f32 %v22368_v54, %v24524_v7  ;;  %v5213_v27 = vadd.f32 %v22368_v54, %v24525_v31  ;;  %v22443_v35 = vpack.c.bf16 %v5683_v39, %v5683_v39  ;;  %v17015_v58 = vpop.f32.mrb[148].mxu0 }
 0x406   :  { %v8580_v56 = vmax.bf16 %v8425_v21, %v8424_v29  ;;  %v15839_v61 = vpack.c.bf16 %v5838_v33, %v5838_v33  ;;  %v5205_v5 = vadd.f32 %v22368_v54, %v22102_v55  ;;  %v22447_v2 = vpack.c.bf16 %v5681_v37, %v5681_v37  ;;  %v4593_v15 = vpop.f32.mrb[149].mxu0  ;;  %v18185_v55 = vld [vmem:[%s24332_s0 + $0x810] sm:$0xff]  }
 0x407   :  { %v4602_v40 = vadd.f32 %v22368_v54, %v17015_v58  ;;  %v8786_v39 = vsel %vm19015_vm9, %v22437_v53, 0  ;;  %v5836_v4 = vmax.f32 %v5202_v52, 0.0  ;;  %v4594_v29 = vadd.f32 %v22368_v54, %v4593_v15  ;;  %v17016_v16 = vpop.f32.mrb[150].mxu0  ;;  %v24526_v37 = vld [vmem:[#allocation43_spill] sm:$0xff] }
 0x408   :  { %v8686_v13 = vsel %vm19028_vm10, %v8580_v56, 0  ;;  %v8430_v60 = vmax.bf16 %v15839_v61, %v24526_v37  ;;  %v5839_v21 = vmax.f32 %v5213_v27, 0.0  ;;  %v4605_v7 = vadd.f32 %v22368_v54, %v17016_v16  ;;  %v4596_v31 = vpop.f32.mrb[151].mxu0  ;;  %v24528_v27 = vld [vmem:[#allocation44_spill] sm:$0xff] }
 0x409   :  { %v5686_v33 = vmax.f32 %v4602_v40, 0.0  ;;  %v22464_v58 = vadd.bf16 %v8786_v39, %v8686_v13  ;;  %v15837_v52 = vpack.c.bf16 %v5836_v4, %v5836_v4  ;;  %v5684_v30 = vmax.f32 %v4594_v29, 0.0  ;;  %v24529_v29 = vld [vmem:[#allocation45_spill] sm:$0xff] }
 0x40a   :  { %v4597_v15 = vadd.f32 %v22368_v54, %v4596_v31  ;;  %v15840_v43 = vpack.c.bf16 %v5839_v21, %v5839_v21  ;;  %v5837_v28 = vmax.f32 %v5205_v5, 0.0  ;;  %v5687_v23 = vmax.f32 %v4605_v7, 0.0  ;;  %17122 = vmatmul.mubr.msk.bf16.gmra.mrb[0].mxu0 %vm2078_vm0, %v18184_v48  ;;  %v24532_v31 = vld [vmem:[#allocation51_spill] sm:$0xff] }
 0x40b   :  { %24527 = vst [vmem:[#allocation39_spill] sm:$0xff] %v22464_v58  ;;  %v8687_v56 = vsel %vm19028_vm10, %v22437_v53, 0  ;;  %v8428_v61 = vmax.bf16 %v15837_v52, %v24528_v27  ;;  %v5226_v40 = vadd.f32 %v22368_v54, %v22109_v26  ;;  %v22474_v39 = vpack.c.bf16 %v5686_v33, %v5686_v33  ;;  %17125 = vmatprep.mubr.msk.bf16.mxu0 %vm2078_vm0, %v18185_v55 }
 0x40c   :  { %v22476_v4 = vpack.c.bf16 %v5684_v30, %v5684_v30  ;;  %v8431_v5 = vmax.bf16 %v15840_v43, %v24529_v29  ;;  %v15838_v16 = vpack.c.bf16 %v5837_v28, %v5837_v28  ;;  %v5685_v13 = vmax.f32 %v4597_v15, 0.0  ;;  %v24531_v30 = vld [vmem:[#allocation46_spill] sm:$0xff] }
 0x40d   :  { %v5842_v48 = vmax.f32 %v5226_v40, 0.0  ;;  %v5218_v37 = vadd.f32 %v22368_v54, %v22117_v22  ;;  %v5229_v53 = vadd.f32 %v22368_v54, %v22120_v59  ;;  %v22484_v21 = vpack.c.bf16 %v5687_v23, %v5687_v23  ;;  %v17019_v26 = vpop.f32.mrb[152].mxu0  ;;  %v18187_v22 = vld [vmem:[%s24332_s0 + $0x818] sm:$0xff]  }
 0x40e   :  { %v22486_v33 = vmax.bf16 %v8431_v5, %v8430_v60  ;;  %v8429_v7 = vmax.bf16 %v15838_v16, %v24531_v30  ;;  %v5221_v55 = vadd.f32 %v22368_v54, %v24532_v31  ;;  %v4618_v28 = vadd.f32 %v22368_v54, %v17019_v26  ;;  %v4609_v43 = vpop.f32.mrb[153].mxu0  ;;  %v18188_v60 = vld [vmem:[%s24332_s0 + $0x820] sm:$0xff]  }
 0x40f   :  { %v15843_v52 = vpack.c.bf16 %v5842_v48, %v5842_v48  ;;  %v5840_v15 = vmax.f32 %v5218_v37, 0.0  ;;  %v5843_v59 = vmax.f32 %v5229_v53, 0.0  ;;  %v4610_v23 = vadd.f32 %v22368_v54, %v4609_v43  ;;  %v17020_v27 = vpop.f32.mrb[154].mxu0  ;;  %v24534_v37 = vld [vmem:[#allocation47_spill] sm:$0xff] }
 0x410   :  { %24530 = vst [vmem:[#allocation40_spill] sm:$0xff] %v22486_v33  ;;  %v22499_v40 = vmax.bf16 %v8429_v7, %v8428_v61  ;;  %v8788_v29 = vsel %vm19015_vm9, %v22486_v33, 0  ;;  %v5841_v5 = vmax.f32 %v5221_v55, 0.0  ;;  %v5690_v16 = vmax.f32 %v4618_v28, 0.0  ;;  %v4612_v48 = vpop.f32.mrb[155].mxu0 }
 0x411   :  { %v4621_v26 = vadd.f32 %v22368_v54, %v17020_v27  ;;  %v8434_v53 = vmax.bf16 %v15843_v52, %v24534_v37  ;;  %v15841_v30 = vpack.c.bf16 %v5840_v15, %v5840_v15  ;;  %v5688_v31 = vmax.f32 %v4610_v23, 0.0 }
 0x412   :  { %24533 = vst [vmem:[#allocation41_spill] sm:$0xff] %v22499_v40  ;;  %v4613_v43 = vadd.f32 %v22368_v54, %v4612_v48  ;;  %v8688_v61 = vsel %vm19028_vm10, %v22499_v40, 0  ;;  %v8787_v7 = vsel %vm19015_vm9, %v22499_v40, 0  ;;  %v15691_v58 = vpack.c.bf16 %v5690_v16, %v5690_v16  ;;  %17126 = vmatmul.mubr.msk.bf16.gmra.mrb[4].mxu0 %vm2078_vm0, %v18187_v22  ;;  %v24535_v48 = vld [vmem:[#allocation48_spill] sm:$0xff] }
 0x413   :  { %v5691_v55 = vmax.f32 %v4621_v26, 0.0  ;;  %v22514_v28 = vadd.bf16 %v8787_v7, %v8687_v56  ;;  %v22516_v27 = vadd.bf16 %v8788_v29, %v8688_v61  ;;  %v22518_v52 = vpack.c.bf16 %v5685_v13, %v5685_v13  ;;  %17129 = vmatprep.mubr.msk.bf16.mxu0 %vm2078_vm0, %v18188_v60  ;;  %v24536_v7 = vld [vmem:[#allocation53_spill] sm:$0xff]  ;;  %v24537_v13 = vld [vmem:[#allocation54_spill] sm:$0xff] }
 0x414   :  { %v15689_v15 = vpack.c.bf16 %v5688_v31, %v5688_v31  ;;  %v5689_v23 = vmax.f32 %v4613_v43, 0.0  ;;  %v8432_v37 = vmax.bf16 %v15841_v30, %v24535_v48  ;;  %v8354_v33 = vmax.bf16 %v15691_v58, %v22261_v62  ;;  %v18189_v62 = vld [vmem:[%s24332_s0 + $0x828] sm:$0xff]  }
 0x415   :  { %v15692_v12 = vpack.c.bf16 %v5691_v55, %v5691_v55  ;;  %v15844_v40 = vpack.c.bf16 %v5843_v59, %v5843_v59  ;;  %v15842_v16 = vpack.c.bf16 %v5841_v5, %v5841_v5  ;;  %v17023_v56 = vpop.f32.mrb[156].mxu0  ;;  %v5242_v29 = vadd.f32 %v22368_v54, %v24536_v7 }
 0x416   :  { %v8352_v26 = vmax.bf16 %v15689_v15, %v22279_v24  ;;  %v15690_v22 = vpack.c.bf16 %v5689_v23, %v5689_v23  ;;  %v5234_v31 = vadd.f32 %v22368_v54, %v24537_v13  ;;  %v4634_v60 = vadd.f32 %v22368_v54, %v17023_v56  ;;  %v4625_v30 = vpop.f32.mrb[157].mxu0 }
 0x417   :  { %v8355_v43 = vmax.bf16 %v15692_v12, %v22295_v47  ;;  %v8435_v58 = vmax.bf16 %v15844_v40, %v22321_v44  ;;  %v8433_v24 = vmax.bf16 %v15842_v16, %v22334_v25  ;;  %v4626_v5 = vadd.f32 %v22368_v54, %v4625_v30  ;;  %v17024_v61 = vpop.f32.mrb[158].mxu0 }
 0x418   :  { %v8353_v59 = vmax.bf16 %v15690_v22, %v22297_v17  ;;  %v5846_v55 = vmax.f32 %v5242_v29, 0.0  ;;  %v5844_v15 = vmax.f32 %v5234_v31, 0.0  ;;  %v5694_v12 = vmax.f32 %v4634_v60, 0.0  ;;  %v4628_v48 = vpop.f32.mrb[159].mxu0 }
 0x419   :  { %v8545_v23 = vmax.bf16 %v8355_v43, %v8354_v33  ;;  %v4637_v47 = vadd.f32 %v22368_v54, %v17024_v61  ;;  %v22538_v56 = vmax.bf16 %v8435_v58, %v8434_v53  ;;  %v5692_v13 = vmax.f32 %v4626_v5, 0.0  ;;  %v24538_v5 = vld [vmem:[#allocation55_spill] sm:$0xff] }
 0x41a   :  { %v8544_v7 = vmax.bf16 %v8353_v59, %v8352_v26  ;;  %v4629_v44 = vadd.f32 %v22368_v54, %v4628_v48  ;;  %v22541_v40 = vmax.bf16 %v8433_v24, %v8432_v37  ;;  %v15695_v16 = vpack.c.bf16 %v5694_v12, %v5694_v12  ;;  %17130 = vmatmul.mubr.msk.bf16.gmra.mrb[8].mxu0 %vm2078_vm0, %v18189_v62  ;;  %v24539_v12 = vld [vmem:[#allocation56_spill] sm:$0xff] }
 0x41b   :  { %v8663_v17 = vsel %vm19028_vm10, %v8545_v23, 0  ;;  %v8762_v25 = vsel %vm19015_vm9, %v8545_v23, 0  ;;  %v5695_v33 = vmax.f32 %v4637_v47, 0.0  ;;  %v15693_v22 = vpack.c.bf16 %v5692_v13, %v5692_v13 }
 0x41c   :  { %v8662_v53 = vsel %vm19028_vm10, %v8544_v7, 0  ;;  %v5693_v26 = vmax.f32 %v4629_v44, 0.0  ;;  %v15847_v29 = vpack.c.bf16 %v5846_v55, %v5846_v55  ;;  %v8358_v37 = vmax.bf16 %v15695_v16, %v22301_v20  ;;  %v24540_v7 = vld [vmem:[#allocation57_spill] sm:$0xff] }
 0x41d   :  { %v8858_v31 = vadd.bf16 %v8762_v25, %v8662_v53  ;;  %v15696_v43 = vpack.c.bf16 %v5695_v33, %v5695_v33  ;;  %v22551_v60 = vpack.c.bf16 %v5844_v15, %v5844_v15  ;;  %v8356_v30 = vmax.bf16 %v15693_v22, %v22303_v63  ;;  %v17027_v24 = vpop.f32.mrb[160].mxu0 }
 0x41e   :  { %v15694_v58 = vpack.c.bf16 %v5693_v26, %v5693_v26  ;;  %v8438_v59 = vmax.bf16 %v15847_v29, %v22336_v57  ;;  %v5245_v62 = vadd.f32 %v22368_v54, %v24538_v5  ;;  %v4650_v23 = vadd.f32 %v22368_v54, %v17027_v24  ;;  %v4641_v55 = vpop.f32.mrb[161].mxu0 }
 0x41f   :  { %v8359_v61 = vmax.bf16 %v15696_v43, %v22305_v42  ;;  %v8436_v20 = vmax.bf16 %v22551_v60, %v22341_v14  ;;  %v5237_v15 = vadd.f32 %v22368_v54, %v24539_v12  ;;  %v4642_v47 = vadd.f32 %v22368_v54, %v4641_v55  ;;  %v17028_v48 = vpop.f32.mrb[162].mxu0 }
 0x420   :  { %v8357_v63 = vmax.bf16 %v15694_v58, %v22308_v0  ;;  %v5847_v57 = vmax.f32 %v5245_v62, 0.0  ;;  %v5258_v13 = vadd.f32 %v22368_v54, %v24540_v7  ;;  %v5698_v42 = vmax.f32 %v4650_v23, 0.0  ;;  %v4644_v16 = vpop.f32.mrb[163].mxu0 }
 0x421   :  { %v22567_v44 = vmax.bf16 %v8359_v61, %v8358_v37  ;;  %v4653_v25 = vadd.f32 %v22368_v54, %v17028_v48  ;;  %v5845_v33 = vmax.f32 %v5237_v15, 0.0  ;;  %v5696_v53 = vmax.f32 %v4642_v47, 0.0 }
 0x422   :  { %v8546_v14 = vmax.bf16 %v8357_v63, %v8356_v30  ;;  %v4645_v22 = vadd.f32 %v22368_v54, %v4644_v16  ;;  %v15848_v26 = vpack.c.bf16 %v5847_v57, %v5847_v57  ;;  %v15699_v43 = vpack.c.bf16 %v5698_v42, %v5698_v42 }
 0x423   :  { %v8665_v0 = vsel %vm19028_vm10, %v22567_v44, 0  ;;  %v8959_v29 = vsel %vm19103_vm15, %v22567_v44, 0  ;;  %v8764_v37 = vsel %vm19015_vm9, %v22567_v44, 0  ;;  %v15697_v24 = vpack.c.bf16 %v5696_v53, %v5696_v53 }
 0x424   :  { %v8664_v60 = vsel %vm19028_vm10, %v8546_v14, 0  ;;  %v8763_v30 = vsel %vm19015_vm9, %v8546_v14, 0  ;;  %v8958_v58 = vsel %vm19103_vm15, %v8546_v14, 0  ;;  %v8362_v23 = vmax.bf16 %v15699_v43, %v22331_v11 }
 0x425   :  { %v8859_v5 = vadd.bf16 %v8763_v30, %v8663_v17  ;;  %v22586_v62 = vadd.bf16 %v8764_v37, %v8664_v60  ;;  %v9054_v61 = vadd.bf16 %v8958_v58, %v8858_v31  ;;  %v8360_v55 = vmax.bf16 %v15697_v24, %v22338_v51  ;;  %v17031_v63 = vpop.f32.mrb[164].mxu0 }
 0x426   :  { %v5699_v12 = vmax.f32 %v4653_v25, 0.0  ;;  %v5697_v15 = vmax.f32 %v4645_v22, 0.0  ;;  %v9154_v47 = vsel %vm19110_vm1, %v22567_v44, 0  ;;  %v4666_v57 = vadd.f32 %v22368_v54, %v17031_v63  ;;  %v4657_v7 = vpop.f32.mrb[165].mxu0 }
 0x427   :  { %v9055_v48 = vadd.bf16 %v8959_v29, %v8859_v5  ;;  %v9250_v42 = vadd.bf16 %v9154_v47, %v9054_v61  ;;  %v8439_v17 = vmax.bf16 %v15848_v26, %v22343_v18  ;;  %v4658_v11 = vadd.f32 %v22368_v54, %v4657_v7  ;;  %v17032_v14 = vpop.f32.mrb[166].mxu0 }
 0x428   :  { %v15700_v16 = vpack.c.bf16 %v5699_v12, %v5699_v12  ;;  %v15698_v31 = vpack.c.bf16 %v5697_v15, %v5697_v15  ;;  %v15846_v51 = vpack.c.bf16 %v5845_v33, %v5845_v33  ;;  %v5702_v25 = vmax.f32 %v4666_v57, 0.0  ;;  %v4660_v22 = vpop.f32.mrb[167].mxu0 }
 0x429   :  { %v4669_v53 = vadd.f32 %v22368_v54, %v17032_v14  ;;  %v22597_v37 = vmax.bf16 %v8439_v17, %v8438_v59  ;;  %v5850_v43 = vmax.f32 %v5258_v13, 0.0  ;;  %v5700_v30 = vmax.f32 %v4658_v11, 0.0 }
 0x42a   :  { %v8363_v29 = vmax.bf16 %v15700_v16, %v22351_v6  ;;  %v8361_v60 = vmax.bf16 %v15698_v31, %v22374_v9  ;;  %v4661_v18 = vadd.f32 %v22368_v54, %v4660_v22  ;;  %v15703_v26 = vpack.c.bf16 %v5702_v25, %v5702_v25 }
 0x42b   :  { %v5703_v58 = vmax.f32 %v4669_v53, 0.0  ;;  %v8437_v24 = vmax.bf16 %v15846_v51, %v22345_v41  ;;  %v22603_v5 = vpack.c.bf16 %v5850_v43, %v5850_v43  ;;  %v15701_v59 = vpack.c.bf16 %v5700_v30, %v5700_v30 }
 0x42c   :  { %v22605_v33 = vmax.bf16 %v8363_v29, %v8362_v23  ;;  %v22607_v61 = vmax.bf16 %v8361_v60, %v8360_v55  ;;  %v5701_v12 = vmax.f32 %v4661_v18, 0.0  ;;  %v8366_v13 = vmax.bf16 %v15703_v26, %v22389_v3 }
 0x42d   :  { %v15704_v6 = vpack.c.bf16 %v5703_v58, %v5703_v58  ;;  %v22610_v15 = vmax.bf16 %v8437_v24, %v8436_v20  ;;  %v8442_v9 = vmax.bf16 %v22603_v5, %v22377_v8  ;;  %v8364_v63 = vmax.bf16 %v15701_v59, %v22396_v46  ;;  %v17035_v41 = vpop.f32.mrb[168].mxu0 }
 0x42e   :  { %v15702_v47 = vpack.c.bf16 %v5701_v12, %v5701_v12  ;;  %v9155_v23 = vsel %vm19110_vm1, %v22607_v61, 0  ;;  %v9350_v55 = vsel %vm19146_vm3, %v22607_v61, 0  ;;  %v4682_v20 = vadd.f32 %v22368_v54, %v17035_v41  ;;  %v4673_v57 = vpop.f32.mrb[169].mxu0 }
 0x42f   :  { %v8367_v3 = vmax.bf16 %v15704_v6, %v22406_v10  ;;  %v9251_v7 = vadd.bf16 %v9155_v23, %v9055_v48  ;;  %v9351_v46 = vsel %vm19146_vm3, %v22605_v33, 0  ;;  %v4674_v16 = vadd.f32 %v22368_v54, %v4673_v57  ;;  %v17036_v31 = vpop.f32.mrb[170].mxu0 }
 0x430   :  { %v8365_v17 = vmax.bf16 %v15702_v47, %v22412_v19  ;;  %v9446_v11 = vadd.bf16 %v9350_v55, %v9250_v42  ;;  %v8765_v14 = vsel %vm19015_vm9, %v22607_v61, 0  ;;  %v5706_v10 = vmax.f32 %v4682_v20, 0.0  ;;  %v4676_v48 = vpop.f32.mrb[171].mxu0 }
 0x431   :  { %v22631_v51 = vmax.bf16 %v8367_v3, %v8366_v13  ;;  %v4685_v25 = vadd.f32 %v22368_v54, %v17036_v31  ;;  %v9447_v53 = vadd.bf16 %v9351_v46, %v9251_v7  ;;  %v5704_v43 = vmax.f32 %v4674_v16, 0.0 }
 0x432   :  { %v22634_v22 = vmax.bf16 %v8365_v17, %v8364_v63  ;;  %v4677_v19 = vadd.f32 %v22368_v54, %v4676_v48  ;;  %v8861_v42 = vadd.bf16 %v8765_v14, %v8665_v0  ;;  %v15707_v29 = vpack.c.bf16 %v5706_v10, %v5706_v10 }
 0x433   :  { %v5707_v60 = vmax.f32 %v4685_v25, 0.0  ;;  %v22641_v30 = vcombine.low %v9446_v11, %v9447_v53  ;;  %v8669_v18 = vsel %vm19028_vm10, %v22631_v51, 0  ;;  %v15705_v26 = vpack.c.bf16 %v5704_v43, %v5704_v43 }
 0x434   :  { %v5705_v58 = vmax.f32 %v4677_v19, 0.0  ;;  %v8668_v24 = vsel %vm19028_vm10, %v22634_v22, 0  ;;  %v8768_v59 = vsel %vm19015_vm9, %v22631_v51, 0  ;;  %v8370_v44 = vmax.bf16 %v15707_v29, %v22431_v1 }
 0x435   :  { %24541 = vst [vmem:[#allocation42_spill] sm:$0xff] %v22641_v30  ;;  %v15708_v0 = vpack.c.bf16 %v5707_v60, %v5707_v60  ;;  %17257 = vmatprep.mubr.bf16.mxu1 %v22641_v30  ;;  %v8864_v12 = vadd.bf16 %v8768_v59, %v8668_v24  ;;  %v8960_v13 = vsel %vm19103_vm15, %v22607_v61, 0  ;;  %v8368_v6 = vmax.bf16 %v15705_v26, %v22435_v38  ;;  %v17039_v47 = vpop.f32.mrb[172].mxu0 }
 0x436   :  { %v15706_v63 = vpack.c.bf16 %v5705_v58, %v5705_v58  ;;  %v8961_v41 = vsel %vm19103_vm15, %v22605_v33, 0  ;;  %v9056_v23 = vadd.bf16 %v8960_v13, %v22586_v62  ;;  %v4698_v55 = vadd.f32 %v22368_v54, %v17039_v47  ;;  %v4689_v3 = vpop.f32.mrb[173].mxu0 }
 0x437   :  { %v8371_v1 = vmax.bf16 %v15708_v0, %v22443_v35  ;;  %v9057_v20 = vadd.bf16 %v8961_v41, %v8861_v42  ;;  %v9156_v57 = vsel %vm19110_vm1, %v22605_v33, 0  ;;  %v4690_v7 = vadd.f32 %v22368_v54, %v4689_v3  ;;  %v17040_v46 = vpop.f32.mrb[174].mxu0 }
 0x438   :  { %v8369_v38 = vmax.bf16 %v15706_v63, %v22447_v2  ;;  %v9157_v17 = vsel %vm19110_vm1, %v22634_v22, 0  ;;  %v9252_v62 = vadd.bf16 %v9156_v57, %v9056_v23  ;;  %v5710_v35 = vmax.f32 %v4698_v55, 0.0  ;;  %v4692_v11 = vpop.f32.mrb[175].mxu0 }
 0x439   :  { %v22672_v16 = vmax.bf16 %v8371_v1, %v8370_v44  ;;  %v4701_v31 = vadd.f32 %v22368_v54, %v17040_v46  ;;  %v9253_v14 = vadd.bf16 %v9157_v17, %v9057_v20  ;;  %v5708_v25 = vmax.f32 %v4690_v7, 0.0 }
 0x43a   :  { %v22675_v10 = vmax.bf16 %v8369_v38, %v8368_v6  ;;  %v4693_v2 = vadd.f32 %v22368_v54, %v4692_v11  ;;  %v9352_v48 = vsel %vm19146_vm3, %v22634_v22, 0  ;;  %v15711_v42 = vpack.c.bf16 %v5710_v35, %v5710_v35 }
 0x43b   :  { %v8965_v53 = vsel %vm19103_vm15, %v22672_v16, 0  ;;  %v9160_v43 = vsel %vm19110_vm1, %v22672_v16, 0  ;;  %v9355_v19 = vsel %vm19146_vm3, %v22672_v16, 0  ;;  %v15709_v29 = vpack.c.bf16 %v5708_v25, %v5708_v25 }
 0x43c   :  { %v5711_v60 = vmax.f32 %v4701_v31, 0.0  ;;  %v5709_v26 = vmax.f32 %v4693_v2, 0.0  ;;  %v8769_v58 = vsel %vm19015_vm9, %v22675_v10, 0  ;;  %v8374_v24 = vmax.bf16 %v15711_v42, %v22474_v39 }
 0x43d   :  { %v8865_v59 = vadd.bf16 %v8769_v58, %v8669_v18  ;;  %v8964_v44 = vsel %vm19103_vm15, %v22675_v10, 0  ;;  %v9353_v0 = vsel %vm19146_vm3, %v22631_v51, 0  ;;  %v8372_v13 = vmax.bf16 %v15709_v29, %v22476_v4  ;;  %v22701_v41 = vpop.f32.mrb[176].mxu0 }
 0x43e   :  { %v15712_v6 = vpack.c.bf16 %v5711_v60, %v5711_v60  ;;  %v15710_v63 = vpack.c.bf16 %v5709_v26, %v5709_v26  ;;  %v9060_v47 = vadd.bf16 %v8964_v44, %v8864_v12  ;;  %v9448_v1 = vadd.bf16 %v9352_v48, %v9252_v62  ;;  %v22706_v18 = vpop.f32.mrb[177].mxu0  ;;  %v24544_v60 = vld [vmem:[#allocation59_spill] sm:$0xff]  ;;  %v24545_v26 = vld [vmem:[#allocation60_spill] sm:$0xff] }
 0x43f   :  { %v9061_v23 = vadd.bf16 %v8965_v53, %v8865_v59  ;;  %v9449_v55 = vadd.bf16 %v9353_v0, %v9253_v14  ;;  %v8666_v39 = vsel %vm19028_vm10, %v22607_v61, 0  ;;  %v8667_v4 = vsel %vm19028_vm10, %v22605_v33, 0  ;;  %v22713_v12 = vpop.f32.mrb[178].mxu0 }
 0x440   :  { %v8375_v3 = vmax.bf16 %v15712_v6, %v22484_v21  ;;  %v8373_v20 = vmax.bf16 %v15710_v63, %v22518_v52  ;;  %v9256_v57 = vadd.bf16 %v9160_v43, %v9060_v47  ;;  %v8766_v7 = vsel %vm19015_vm9, %v22605_v33, 0  ;;  %v22726_v52 = vpop.f32.mrb[179].mxu0  ;;  %v24543_v43 = vld [vmem:[#allocation58_spill] sm:$0xff] }
 0x441   :  { %v22715_v38 = vcombine.low %v9448_v1, %v9449_v55  ;;  %v8767_v61 = vsel %vm19015_vm9, %v22634_v22, 0  ;;  %v8962_v21 = vsel %vm19103_vm15, %v22634_v22, 0  ;;  %v8862_v62 = vadd.bf16 %v8766_v7, %v8666_v39 }
 0x442   :  { %v8555_v46 = vmax.bf16 %v8375_v3, %v8374_v24  ;;  %v8554_v17 = vmax.bf16 %v8373_v20, %v8372_v13  ;;  %v8863_v16 = vadd.bf16 %v8767_v61, %v8667_v4  ;;  %v8963_v33 = vsel %vm19103_vm15, %v22631_v51, 0  ;;  %v24546_v24 = vld [vmem:[#allocation61_spill] sm:$0xff] }
 0x443   :  { %24542 = vst [vmem:[#allocation49_spill] sm:$0xff] %v22715_v38  ;;  %17258 = vmatmul.mubr.bf16.gmra.mrb[108].mxu1 %v22715_v38  ;;  %v9158_v35 = vsel %vm19110_vm1, %v22631_v51, 0  ;;  %v9159_v22 = vsel %vm19110_vm1, %v22675_v10, 0  ;;  %v9354_v31 = vsel %vm19146_vm3, %v22675_v10, 0  ;;  %v9058_v2 = vadd.bf16 %v8962_v21, %v8862_v62  ;;  %v24548_v62 = vld [vmem:[#allocation62_spill] sm:$0xff] }
 0x444   :  { %v9357_v11 = vsel %vm19146_vm3, %v8555_v46, 0  ;;  %v9161_v14 = vsel %vm19110_vm1, %v8554_v17, 0  ;;  %v9356_v25 = vsel %vm19146_vm3, %v8554_v17, 0  ;;  %v9059_v53 = vadd.bf16 %v8963_v33, %v8863_v16  ;;  %v24550_v33 = vld [vmem:[#allocation67_spill] sm:$0xff] }
 0x445   :  { %v9257_v48 = vadd.bf16 %v9161_v14, %v9061_v23  ;;  %v9452_v51 = vadd.bf16 %v9356_v25, %v9256_v57  ;;  %v5250_v42 = vadd.f32 %v22368_v54, %v24543_v43  ;;  %v9254_v29 = vadd.bf16 %v9158_v35, %v9058_v2  ;;  %v17047_v44 = vpop.f32.mrb[180].mxu0  ;;  %v24553_v25 = vld [vmem:[#allocation69_spill] sm:$0xff]  ;;  %v24555_v43 = vld [vmem:[#allocation72_spill] sm:$0xff] }
 0x446   :  { %v5261_v10 = vadd.f32 %v22368_v54, %v24544_v60  ;;  %v5253_v58 = vadd.f32 %v22368_v54, %v24545_v26  ;;  %v5274_v59 = vadd.f32 %v22368_v54, %v24546_v24  ;;  %v9255_v0 = vadd.bf16 %v9159_v22, %v9059_v53  ;;  %v22757_v47 = vpop.f32.mrb[181].mxu0  ;;  %v24557_v60 = vld [vmem:[#allocation71_spill] sm:$0xff] }
 0x447   :  { %v9453_v13 = vadd.bf16 %v9357_v11, %v9257_v48  ;;  %v5848_v6 = vmax.f32 %v5250_v42, 0.0  ;;  %v5266_v63 = vadd.f32 %v22368_v54, %v22225_v32  ;;  %v9450_v23 = vadd.bf16 %v9354_v31, %v9254_v29  ;;  %v22759_v3 = vpop.f32.mrb[182].mxu0  ;;  %v24551_v31 = vld [vmem:[#allocation63_spill] sm:$0xff]  ;;  %v24552_v11 = vld [vmem:[#allocation68_spill] sm:$0xff]  ;;  %v24554_v48 = vld [vmem:[#allocation70_spill] sm:$0xff] }
 0x448   :  { %v5851_v1 = vmax.f32 %v5261_v10, 0.0  ;;  %v5849_v55 = vmax.f32 %v5253_v58, 0.0  ;;  %v5854_v39 = vmax.f32 %v5274_v59, 0.0  ;;  %v9451_v20 = vadd.bf16 %v9355_v19, %v9255_v0  ;;  %v22763_v61 = vpop.f32.mrb[183].mxu0 }
 0x449   :  { %v22761_v57 = vcombine.low %v9452_v51, %v9453_v13  ;;  %v15849_v4 = vpack.c.bf16 %v5848_v6, %v5848_v6  ;;  %v5852_v7 = vmax.f32 %v5266_v63, 0.0  ;;  %v5277_v32 = vadd.f32 %v22368_v54, %v24548_v62  ;;  %v24558_v13 = vld [vmem:[#allocation3_spill] sm:$0xff]  ;;  %v24559_v6 = vld [vmem:[#allocation4_spill] sm:$0xff]  ;;  %v18194_v62 = vld [vmem:[%s24333_s3 + $0x88] sm:$0xff]  }
 0x44a   :  { %v15852_v21 = vpack.c.bf16 %v5851_v1, %v5851_v1  ;;  %v15850_v46 = vpack.c.bf16 %v5849_v55, %v5849_v55  ;;  %v15855_v17 = vpack.c.bf16 %v5854_v39, %v5854_v39  ;;  %v22767_v16 = vcombine.low %v9450_v23, %v9451_v20  ;;  %v24561_v55 = vld [vmem:[#allocation73_spill] sm:$0xff] }
 0x44b   :  { %24547 = vst [vmem:[#allocation50_spill] sm:$0xff] %v22761_v57  ;;  %v8440_v35 = vmax.bf16 %v15849_v4, %v24550_v33  ;;  %v15853_v22 = vpack.c.bf16 %v5852_v7, %v5852_v7  ;;  %v5269_v19 = vadd.f32 %v22368_v54, %v24551_v31  ;;  %v5855_v53 = vmax.f32 %v5277_v32, 0.0  ;;  %v24562_v33 = vld [vmem:[#allocation5_spill] sm:$0xff] }
 0x44c   :  { %24549 = vst [vmem:[#allocation43_spill] sm:$0xff] %v22767_v16  ;;  %v8443_v14 = vmax.bf16 %v15852_v21, %v24552_v11  ;;  %v8441_v2 = vmax.bf16 %v15850_v46, %v24553_v25  ;;  %v8446_v51 = vmax.bf16 %v15855_v17, %v24554_v48  ;;  %v24556_v42 = vmax.f32 %v24555_v43, 0.0  ;;  %17261 = vmatprep.mubr.bf16.mxu1 %v22767_v16  ;;  %v24566_v11 = vld [vmem:[#allocation7_spill] sm:$0xff]  ;;  %v24617_v16 = vld [vmem:[#allocation66_spill] sm:$0xff] }
 0x44d   :  { %v8444_v10 = vmax.bf16 %v15853_v22, %v24557_v60  ;;  %v5853_v26 = vmax.f32 %v5269_v19, 0.0  ;;  %17262 = vmatmul.mubr.bf16.gmra.mrb[112].mxu1 %v22761_v57  ;;  %v15856_v59 = vpack.c.bf16 %v5855_v53, %v5855_v53  ;;  %v17051_v0 = vpop.f32.mrb[184].mxu0  ;;  %v24560_v63 = vcombine.low %v24558_v13, %v24559_v6  ;;  %v24565_v19 = vld [vmem:[#allocation41_spill] sm:$0xff]  ;;  %v24569_v60 = vld [vmem:[#allocation40_spill] sm:$0xff]  ;;  %v24570_v6 = vld [vmem:[#allocation39_spill] sm:$0xff] }
 0x44e   :  { %v15830_v29 = vpack.c.bf16 %v24556_v42, %v24556_v42  ;;  %v22784_v58 = vmax.bf16 %v8443_v14, %v8442_v9  ;;  %v22786_v24 = vmax.bf16 %v8441_v2, %v8440_v35  ;;  %v22791_v1 = vpop.f32.mrb[185].mxu0  ;;  %v4714_v5 = vadd.f32 %v22368_v54, %v22701_v41  ;;  %v24563_v35 = vld [vmem:[#allocation6_spill] sm:$0xff]  ;;  %v24567_v14 = vld [vmem:[#allocation8_spill] sm:$0xff] }
 0x44f   :  { %17281 = vmatprep.mubr.bf16.mxu1 %v24560_v63  ;;  %v15854_v23 = vpack.c.bf16 %v5853_v26, %v5853_v26  ;;  %v8447_v39 = vmax.bf16 %v15856_v59, %v24561_v55  ;;  %v22794_v20 = vpop.f32.mrb[186].mxu0  ;;  %v4706_v9 = vadd.f32 %v22368_v54, %v22706_v18  ;;  %v4717_v46 = vadd.f32 %v22368_v54, %v22713_v12 }
 0x450   :  { %v22796_v7 = vpop.f32.mrb[187].mxu0  ;;  %v4709_v17 = vadd.f32 %v22368_v54, %v22726_v52  ;;  %v4730_v32 = vadd.f32 %v22368_v54, %v17047_v44  ;;  %v24564_v41 = vcombine.low %v24562_v33, %v24563_v35  ;;  %v5714_v22 = vmax.f32 %v4714_v5, 0.0  ;;  %v18371_v52 = vld [vmem:[%s24333_s3 + $0x80] sm:$0xff]   ;;  %v18196_v5 = vld [vmem:[%s24333_s3 + $0x98] sm:$0xff]   ;;  %v24572_v35 = vld [vmem:[#allocation10_spill] sm:$0xff] }
 0x451   :  { %v8445_v4 = vmax.bf16 %v15854_v23, %v15830_v29  ;;  %v22798_v8 = vmax.bf16 %v8447_v39, %v8446_v51  ;;  %v5712_v18 = vmax.f32 %v4706_v9, 0.0  ;;  %v8982_v12 = vsel %vm19103_vm15, %v24565_v19, 0  ;;  %v18195_v51 = vld [vmem:[%s24333_s3 + $0x90] sm:$0xff]   ;;  %v24571_v33 = vld [vmem:[#allocation9_spill] sm:$0xff] }
 0x452   :  { %v24568_v44 = vcombine.low %v24566_v11, %v24567_v14  ;;  %v5715_v25 = vmax.f32 %v4717_v46, 0.0  ;;  %v5713_v2 = vmax.f32 %v4709_v17, 0.0  ;;  %v8989_v43 = vsel %vm19103_vm15, %v22784_v58, 0  ;;  %v24630_v49 = vld [vmem:[#allocation50_spill] sm:$0xff] }
 0x453   :  { %v22804_v21 = vmax.bf16 %v8445_v4, %v8444_v10  ;;  %v5718_v42 = vmax.f32 %v4730_v32, 0.0  ;;  %v8983_v10 = vsel %vm19103_vm15, %v24569_v60, 0  ;;  %v22843_v26 = vpack.c.bf16 %v5714_v22, %v5714_v22 }
 0x454   :  { %v22845_v59 = vpack.c.bf16 %v5712_v18, %v5712_v18  ;;  %v4722_v13 = vadd.f32 %v22368_v54, %v22757_v47  ;;  %v9078_v63 = vadd.bf16 %v8982_v12, %v24570_v6  ;;  %v22850_v23 = vpack.c.bf16 %v5715_v25, %v5715_v25 }
 0x455   :  { %17282 = vmatmul.mubr.bf16.vlgmr.msra.gmra.mrb[52].mxu1 %v24564_v41  ;;  %v22817_v31 = vpop.f32.mrb[188].mxu0  ;;  %v22852_v55 = vpack.c.bf16 %v5713_v2, %v5713_v2  ;;  %v9079_v39 = vadd.bf16 %v8983_v10, %v22514_v28  ;;  %v9178_v4 = vsel %vm19110_vm1, %v24569_v60, 0  ;;  %v4733_v47 = vadd.f32 %v22368_v54, %v22759_v3 }
 0x456   :  { %17346 = vmatpush3.bf16.msra.mxu1 %v18371_v52  ;;  %17285 = vmatprep.mubr.bf16.mxu1 %v24568_v44  ;;  %v22828_v48 = vpop.f32.mrb[189].mxu0  ;;  %v22865_v9 = vadd.f32 %v22368_v54, %v22763_v61  ;;  %v9179_v28 = vsel %vm19110_vm1, %v22541_v40, 0  ;;  %v9274_v46 = vadd.bf16 %v9178_v4, %v9078_v63  ;;  %v22870_v17 = vpack.c.bf16 %v5718_v42, %v5718_v42  ;;  %v24575_v52 = vld [vmem:[#allocation11_spill] sm:$0xff] }
 0x457   :  { %17347 = vmatprep.subr.bf16.mxu1 %v18194_v62  ;;  %v22833_v53 = vpop.f32.mrb[190].mxu0  ;;  %v9374_v32 = vsel %vm19146_vm3, %v22541_v40, 0  ;;  %v9375_v3 = vsel %vm19146_vm3, %v22538_v56, 0  ;;  %v24573_v61 = vcombine.low %v24571_v33, %v24572_v35  ;;  %v5716_v41 = vmax.f32 %v4722_v13, 0.0 }
 0x458   :  { %v22838_v29 = vpop.f32.mrb[191].mxu0  ;;  %v22883_v18 = vadd.bf16 %v9374_v32, %v9274_v46  ;;  %v8689_v19 = vsel %vm19028_vm10, %v24569_v60, 0  ;;  %v8789_v12 = vsel %vm19015_vm9, %v22541_v40, 0  ;;  %v4746_v11 = vadd.f32 %v22368_v54, %v17051_v0  ;;  %v18197_v60 = vld [vmem:[%s24333_s3 + $0xa0] sm:$0xff]  }
 0x459   :  { %v8885_v25 = vadd.bf16 %v8789_v12, %v8689_v19  ;;  %v8984_v2 = vsel %vm19103_vm15, %v22541_v40, 0  ;;  %v4738_v42 = vadd.f32 %v22368_v54, %v22791_v1  ;;  %v8985_v0 = vsel %vm19103_vm15, %v22538_v56, 0 }
 0x45a   :  { %17348 = vmatpush3.bf16.msra.mxu1 %v18194_v62  ;;  %v9275_v62 = vadd.bf16 %v9179_v28, %v9079_v39  ;;  %24574 = vst [vmem:[#allocation44_spill] sm:$0xff] %v22883_v18  ;;  %v9080_v10 = vadd.bf16 %v8984_v2, %v22516_v27  ;;  %v9180_v13 = vsel %vm19110_vm1, %v22538_v56, 0  ;;  %v9185_v1 = vsel %vm19110_vm1, %v22804_v21, 0  ;;  %v24615_v18 = vld [vmem:[#allocation38_spill] sm:$0xff] }
 0x45b   :  { %17349 = vmatprep.subr.bf16.mxu1 %v18195_v51  ;;  %v5719_v6 = vmax.f32 %v4733_v47, 0.0  ;;  %v9081_v4 = vadd.bf16 %v8985_v0, %v8885_v25  ;;  %v5717_v28 = vmax.f32 %v22865_v9, 0.0  ;;  %v4749_v27 = vadd.f32 %v22368_v54, %v22794_v20  ;;  %v18198_v20 = vld [vmem:[%s24333_s3 + $0xa8] sm:$0xff]   ;;  %v22968_v0 = vld [vmem:[%s24334_s2] ss:$0 sm:$0xff] }
 0x45c   :  { %v22895_v44 = vadd.bf16 %v9375_v3, %v9275_v62  ;;  %v9181_v46 = vsel %vm19110_vm1, %v22610_v15, 0  ;;  %v9276_v62 = vadd.bf16 %v9180_v13, %v9080_v10  ;;  %v22927_v32 = vpack.c.bf16 %v5716_v41, %v5716_v41 }
 0x45d   :  { %17286 = vmatmul.mubr.bf16.gmra.mrb[56].mxu1 %v24573_v61  ;;  %v22881_v22 = vpop.f32.mrb[192].mxu0  ;;  %v5722_v47 = vmax.f32 %v4746_v11, 0.0  ;;  %v9277_v3 = vadd.bf16 %v9181_v46, %v9081_v4  ;;  %v9376_v33 = vsel %vm19146_vm3, %v22610_v15, 0  ;;  %v5720_v35 = vmax.f32 %v4738_v42, 0.0  ;;  %v24580_v42 = vld [vmem:[#allocation13_spill] sm:$0xff] }
 0x45e   :  { %17289 = vmatprep.mubr.bf16.mxu1 %v24575_v52  ;;  %17350 = vmatpush3.bf16.msra.mxu1 %v18195_v51  ;;  %v22893_v14 = vpop.f32.mrb[193].mxu0  ;;  %24576 = vst [vmem:[#allocation45_spill] sm:$0xff] %v22895_v44  ;;  %v4741_v9 = vadd.f32 %v22368_v54, %v22796_v7  ;;  %v22940_v61 = vadd.bf16 %v9376_v33, %v9276_v62  ;;  %v8690_v12 = vsel %vm19028_vm10, %v22541_v40, 0  ;;  %v8691_v54 = vsel %vm19028_vm10, %v22538_v56, 0  ;;  %v24579_v7 = vld [vmem:[#allocation12_spill] sm:$0xff] }
 0x45f   :  { %17351 = vmatprep.subr.bf16.mxu1 %v18196_v5  ;;  %v22905_v51 = vpop.f32.mrb[194].mxu0  ;;  %v22942_v41 = vpack.c.bf16 %v5719_v6, %v5719_v6  ;;  %v5723_v52 = vmax.f32 %v4749_v27, 0.0  ;;  %v8790_v25 = vsel %vm19015_vm9, %v22538_v56, 0  ;;  %v8791_v2 = vsel %vm19015_vm9, %v22610_v15, 0 }
 0x460   :  { %v22917_v63 = vpop.f32.mrb[195].mxu0  ;;  %24577 = vst [vmem:[#allocation46_spill] sm:$0xff] %v22940_v61  ;;  %v8986_v40 = vsel %vm19103_vm15, %v22610_v15, 0  ;;  %v4762_v10 = vadd.f32 %v22968_v0, %v22817_v31  ;;  %v8886_v6 = vadd.bf16 %v8790_v25, %v8690_v12  ;;  %v8987_v4 = vsel %vm19103_vm15, %v22597_v37, 0  ;;  %v18199_v31 = vld [vmem:[%s24333_s3 + $0xb0] sm:$0xff]  }
 0x461   :  { %v22979_v27 = vpack.c.bf16 %v5717_v28, %v5717_v28  ;;  %v5721_v46 = vmax.f32 %v4741_v9, 0.0  ;;  %v22989_v33 = vpack.c.bf16 %v5722_v47, %v5722_v47  ;;  %v9183_v12 = vsel %vm19110_vm1, %v22786_v24, 0 }
 0x462   :  { %17352 = vmatpush3.bf16.msra.mxu1 %v18196_v5  ;;  %v9377_v5 = vsel %vm19146_vm3, %v22597_v37, 0  ;;  %v9082_v9 = vadd.bf16 %v8986_v40, %v8886_v6  ;;  %v9378_v47 = vsel %vm19146_vm3, %v22786_v24, 0  ;;  %v9379_v40 = vsel %vm19146_vm3, %v22784_v58, 0 }
 0x463   :  { %17353 = vmatprep.subr.bf16.mxu1 %v18197_v60  ;;  %v22944_v19 = vadd.bf16 %v9377_v5, %v9277_v3  ;;  %v9182_v3 = vsel %vm19110_vm1, %v22597_v37, 0  ;;  %v22993_v5 = vadd.f32 %v22968_v0, %v22828_v48  ;;  %v8693_v6 = vsel %vm19028_vm10, %v22597_v37, 0 }
 0x464   :  { %v9278_v48 = vadd.bf16 %v9182_v3, %v9082_v9  ;;  %v23037_v3 = vadd.f32 %v22968_v0, %v22838_v29  ;;  %v9184_v29 = vsel %vm19110_vm1, %v22784_v58, 0  ;;  %vm18375_vm0 = vmmov 0  }
 0x465   :  { %24578 = vst [vmem:[#allocation51_spill] sm:$0xff] %v22944_v19  ;;  %17290 = vmatmul.mubr.bf16.gmra.mrb[60].mxu1 %v24579_v7  ;;  %v22953_v11 = vpop.f32.mrb[196].mxu0  ;;  %v23000_v7 = vpack.c.bf16 %v5720_v35, %v5720_v35  ;;  %v23013_v35 = vpack.c.bf16 %v5721_v46, %v5721_v46  ;;  %v24582_v46 = vld [vmem:[#allocation14_spill] sm:$0xff]  ;;  %v24614_v19 = vld [vmem:[#allocation37_spill] sm:$0xff] }
 0x466   :  { %17293 = vmatprep.mubr.bf16.mxu1 %v24580_v42  ;;  %17354 = vmatpush3.bf16.msra.mxu1 %v18197_v60  ;;  %v22972_v56 = vpop.f32.mrb[197].mxu0  ;;  %v8887_v60 = vadd.bf16 %v8791_v2, %v8691_v54  ;;  %v23002_v54 = vpack.c.bf16 %v5723_v52, %v5723_v52  ;;  %v5726_v2 = vmax.f32 %v4762_v10, 0.0  ;;  %v8692_v42 = vsel %vm19028_vm10, %v22610_v15, 0 }
 0x467   :  { %v22981_v62 = vpop.f32.mrb[198].mxu0  ;;  %17355 = vmatprep.subr.bf16.mxu1 %v18198_v20  ;;  %v23017_v52 = vadd.f32 %v22968_v0, %v22833_v53  ;;  %v8792_v15 = vsel %vm19015_vm9, %v22597_v37, 0  ;;  %v8793_v53 = vsel %vm19015_vm9, %v22786_v24, 0  ;;  %v5085_v61 = vadd.f32 %v22968_v0, %v24614_v19 }
 0x468   :  { %v22995_v28 = vpop.f32.mrb[199].mxu0  ;;  %v9083_v25 = vadd.bf16 %v8987_v4, %v8887_v60  ;;  %v5724_v4 = vmax.f32 %v22993_v5, 0.0  ;;  %v23026_v60 = vadd.bf16 %v9378_v47, %v9278_v48  ;;  %v8888_v5 = vadd.bf16 %v8792_v15, %v8692_v42  ;;  %v24584_v47 = vld [vmem:[#allocation15_spill] sm:$0xff] }
 0x469   :  { %v23042_v48 = vpack.c.bf16 %v5726_v2, %v5726_v2  ;;  %v23055_v2 = vld [vmem:[%s24333_s3 + $0xc0] sm:$0xff]  }
 0x46a   :  { %17356 = vmatpush3.bf16.msra.mxu1 %v18198_v20  ;;  %v18200_v20 = vld [vmem:[%s24333_s3 + $0xb8] sm:$0xff]   ;;  %v9279_v10 = vadd.bf16 %v9183_v12, %v9083_v25  ;;  %24581 = vst [vmem:[#allocation47_spill] sm:$0xff] %v23026_v60  ;;  %v8889_v25 = vadd.bf16 %v8793_v53, %v8693_v6  ;;  %v9380_v53 = vsel %vm19146_vm3, %v22804_v21, 0  ;;  %v4770_v21 = vadd.f32 %v22968_v0, %v22893_v14 }
 0x46b   :  { %17357 = vmatprep.subr.bf16.mxu1 %v18199_v31 }
 0x46c   :  { %v23039_v12 = vadd.bf16 %v9379_v40, %v9279_v10 }
 0x46d   :  { %17294 = vmatmul.mubr.bf16.gmra.mrb[64].mxu1 %v24582_v46  ;;  %v17067_v9 = vpop.f32.mrb[200].mxu0  ;;  %v8988_v46 = vsel %vm19103_vm15, %v22786_v24, 0  ;;  %v9085_v24 = vadd.bf16 %v8989_v43, %v8889_v25  ;;  %v5727_v43 = vmax.f32 %v23017_v52, 0.0  ;;  %v4778_v25 = vadd.f32 %v22968_v0, %v22881_v22  ;;  %v24587_v22 = vld [vmem:[#allocation16_spill] sm:$0xff] }
 0x46e   :  { %24583 = vst [vmem:[#allocation48_spill] sm:$0xff] %v23039_v12  ;;  %17297 = vmatprep.mubr.bf16.mxu1 %v24584_v47  ;;  %v4810_v37 = vadd.f32 %v22968_v0, %v17067_v9  ;;  %v4801_v13 = vpop.f32.mrb[201].mxu0  ;;  %17358 = vmatpush3.bf16.msra.mxu1 %v18199_v31  ;;  %v9084_v10 = vadd.bf16 %v8988_v46, %v8888_v5  ;;  %v9381_v9 = vsel %vm19146_vm3, %v22798_v8, 0 }
 0x46f   :  { %v4802_v40 = vadd.f32 %v22968_v0, %v4801_v13  ;;  %v17068_v42 = vpop.f32.mrb[202].mxu0  ;;  %17359 = vmatprep.subr.bf16.mxu1 %v18200_v20  ;;  %v9281_v58 = vadd.bf16 %v9185_v1, %v9085_v24 }
 0x470   :  { %v5738_v6 = vmax.f32 %v4810_v37, 0.0  ;;  %v4813_v15 = vadd.f32 %v22968_v0, %v17068_v42  ;;  %v4804_v13 = vpop.f32.mrb[203].mxu0  ;;  %v9280_v46 = vadd.bf16 %v9184_v29, %v9084_v10 }
 0x471   :  { %v5736_v39 = vmax.f32 %v4802_v40, 0.0  ;;  %v4805_v5 = vadd.f32 %v22968_v0, %v4804_v13  ;;  %v23081_v29 = vadd.bf16 %v9381_v9, %v9281_v58  ;;  %v23083_v40 = vpack.c.bf16 %v5724_v4, %v5724_v4  ;;  %v24588_v4 = vld [vmem:[#allocation17_spill] sm:$0xff] }
 0x472   :  { %v15739_v37 = vpack.c.bf16 %v5738_v6, %v5738_v6  ;;  %v5739_v42 = vmax.f32 %v4813_v15, 0.0  ;;  %17360 = vmatpush3.bf16.msra.mxu1 %v18200_v20  ;;  %v23079_v8 = vadd.bf16 %v9380_v53, %v9280_v46  ;;  %v5725_v15 = vmax.f32 %v23037_v3, 0.0 }
 0x473   :  { %v15737_v31 = vpack.c.bf16 %v5736_v39, %v5736_v39  ;;  %v5737_v12 = vmax.f32 %v4805_v5, 0.0  ;;  %17425 = vmatprep.subr.bf16.mxu1 %v23055_v2  ;;  %24586 = vst [vmem:[#allocation54_spill] sm:$0xff] %v23081_v29  ;;  %v4781_v39 = vadd.f32 %v22968_v0, %v22905_v51  ;;  %v23100_v51 = vpack.c.bf16 %v5727_v43, %v5727_v43  ;;  %v24613_v29 = vld [vmem:[#allocation36_spill] sm:$0xff] }
 0x474   :  { %24585 = vst [vmem:[#allocation53_spill] sm:$0xff] %v23079_v8  ;;  %v8378_v1 = vmax.bf16 %v15739_v37, %v22843_v26  ;;  %v15740_v52 = vpack.c.bf16 %v5739_v42, %v5739_v42  ;;  %v4773_v26 = vadd.f32 %v22968_v0, %v22917_v63  ;;  %v5728_v5 = vmax.f32 %v4770_v21, 0.0 }
 0x475   :  { %17298 = vmatmul.mubr.bf16.gmra.mrb[68].mxu1 %v24587_v22  ;;  %v8376_v20 = vmax.bf16 %v15737_v31, %v22845_v59  ;;  %v15738_v10 = vpack.c.bf16 %v5737_v12, %v5737_v12  ;;  %v17071_v24 = vpop.f32.mrb[204].mxu0  ;;  %v5730_v59 = vmax.f32 %v4778_v25, 0.0  ;;  %v5731_v63 = vmax.f32 %v4781_v39, 0.0 }
 0x476   :  { %17301 = vmatprep.mubr.bf16.mxu1 %v24588_v4  ;;  %v8379_v14 = vmax.bf16 %v15740_v52, %v22850_v23  ;;  %v4826_v13 = vadd.f32 %v22968_v0, %v17071_v24  ;;  %v4817_v53 = vpop.f32.mrb[205].mxu0  ;;  %v5729_v24 = vmax.f32 %v4773_v26, 0.0  ;;  %v23114_v39 = vpack.c.bf16 %v5725_v15, %v5725_v15 }
 0x477   :  { %v8377_v12 = vmax.bf16 %v15738_v10, %v22852_v55  ;;  %v4818_v31 = vadd.f32 %v22968_v0, %v4817_v53  ;;  %v17072_v9 = vpop.f32.mrb[206].mxu0  ;;  %v23110_v10 = vadd.f32 %v22968_v0, %v22953_v11  ;;  %v24589_v53 = vld [vmem:[#allocation18_spill] sm:$0xff]  ;;  %v4786_v15 = vadd.f32 %v22968_v0, %v22972_v56 }
 0x478   :  { %v8557_v46 = vmax.bf16 %v8379_v14, %v8378_v1  ;;  %v5742_v58 = vmax.f32 %v4826_v13, 0.0  ;;  %v4829_v3 = vadd.f32 %v22968_v0, %v17072_v9  ;;  %v4820_v37 = vpop.f32.mrb[207].mxu0  ;;  %v5074_v8 = vadd.f32 %v22968_v0, %v24613_v29 }
 0x479   :  { %v8556_v42 = vmax.bf16 %v8377_v12, %v8376_v20  ;;  %v5740_v23 = vmax.f32 %v4818_v31, 0.0  ;;  %v4821_v52 = vadd.f32 %v22968_v0, %v4820_v37  ;;  %v23118_v12 = vpack.c.bf16 %v5730_v59, %v5730_v59 }
 0x47a   :  { %v8770_v43 = vsel %vm19015_vm9, %v8557_v46, 0  ;;  %v15743_v25 = vpack.c.bf16 %v5742_v58, %v5742_v58  ;;  %v5743_v55 = vmax.f32 %v4829_v3, 0.0  ;;  %v23120_v31 = vpack.c.bf16 %v5728_v5, %v5728_v5  ;;  %v24590_v3 = vld [vmem:[#allocation19_spill] sm:$0xff] }
 0x47b   :  { %v8670_v21 = vsel %vm19028_vm10, %v8556_v42, 0  ;;  %v15741_v1 = vpack.c.bf16 %v5740_v23, %v5740_v23  ;;  %v5741_v14 = vmax.f32 %v4821_v52, 0.0  ;;  %v23124_v37 = vpack.c.bf16 %v5731_v63, %v5731_v63 }
 0x47c   :  { %v8866_v20 = vadd.bf16 %v8770_v43, %v8670_v21  ;;  %v8382_v13 = vmax.bf16 %v15743_v25, %v22870_v17  ;;  %v15744_v26 = vpack.c.bf16 %v5743_v55, %v5743_v55  ;;  %v23130_v59 = vpack.c.bf16 %v5729_v24, %v5729_v24 }
 0x47d   :  { %17302 = vmatmul.mubr.bf16.gmra.mrb[72].mxu1 %v24589_v53  ;;  %v8380_v11 = vmax.bf16 %v15741_v1, %v22927_v32  ;;  %v15742_v9 = vpack.c.bf16 %v5741_v14, %v5741_v14  ;;  %v17075_v58 = vpop.f32.mrb[208].mxu0  ;;  %v5734_v5 = vmax.f32 %v23110_v10, 0.0  ;;  %v4797_v63 = vadd.f32 %v22968_v0, %v22981_v62 }
 0x47e   :  { %17305 = vmatprep.mubr.bf16.mxu1 %v24590_v3  ;;  %v8383_v17 = vmax.bf16 %v15744_v26, %v22942_v41  ;;  %v4842_v42 = vadd.f32 %v22968_v0, %v17075_v58  ;;  %v4833_v23 = vpop.f32.mrb[209].mxu0  ;;  %v8671_v24 = vsel %vm19028_vm10, %v8557_v46, 0 }
 0x47f   :  { %v8381_v32 = vmax.bf16 %v15742_v9, %v22979_v27  ;;  %v4834_v52 = vadd.f32 %v22968_v0, %v4833_v23  ;;  %v17076_v43 = vpop.f32.mrb[210].mxu0  ;;  %v5732_v27 = vmax.f32 %v4786_v15, 0.0  ;;  %v24591_v23 = vld [vmem:[#allocation20_spill] sm:$0xff] }
 0x480   :  { %v23137_v25 = vmax.bf16 %v8383_v17, %v8382_v13  ;;  %v5746_v56 = vmax.f32 %v4842_v42, 0.0  ;;  %v4845_v41 = vadd.f32 %v22968_v0, %v17076_v43  ;;  %v4836_v55 = vpop.f32.mrb[211].mxu0 }
 0x481   :  { %v8558_v21 = vmax.bf16 %v8381_v32, %v8380_v11  ;;  %v5744_v1 = vmax.f32 %v4834_v52, 0.0  ;;  %v4837_v10 = vadd.f32 %v22968_v0, %v4836_v55  ;;  %v23158_v32 = vadd.f32 %v22968_v0, %v22995_v28  ;;  %v24592_v55 = vld [vmem:[#allocation21_spill] sm:$0xff] }
 0x482   :  { %v8772_v14 = vsel %vm19015_vm9, %v23137_v25, 0  ;;  %v15747_v26 = vpack.c.bf16 %v5746_v56, %v5746_v56  ;;  %v5747_v62 = vmax.f32 %v4845_v41, 0.0  ;;  %v8967_v41 = vsel %vm19103_vm15, %v23137_v25, 0 }
 0x483   :  { %v8672_v13 = vsel %vm19028_vm10, %v8558_v21, 0  ;;  %v8771_v9 = vsel %vm19015_vm9, %v8558_v21, 0  ;;  %v8966_v46 = vsel %vm19103_vm15, %v8558_v21, 0  ;;  %v15745_v11 = vpack.c.bf16 %v5744_v1, %v5744_v1 }
 0x484   :  { %v8867_v58 = vadd.bf16 %v8771_v9, %v8671_v24  ;;  %v23152_v17 = vadd.bf16 %v8772_v14, %v8672_v13  ;;  %v8386_v15 = vmax.bf16 %v15747_v26, %v22989_v33  ;;  %v15748_v42 = vpack.c.bf16 %v5747_v62, %v5747_v62 }
 0x485   :  { %17306 = vmatmul.mubr.bf16.gmra.mrb[76].mxu1 %v24591_v23  ;;  %v8384_v52 = vmax.bf16 %v15745_v11, %v23000_v7  ;;  %v5745_v43 = vmax.f32 %v4837_v10, 0.0  ;;  %v17079_v56 = vpop.f32.mrb[212].mxu0  ;;  %v9062_v1 = vadd.bf16 %v8966_v46, %v8866_v20  ;;  %v5735_v26 = vmax.f32 %v4797_v63, 0.0 }
 0x486   :  { %17309 = vmatprep.mubr.bf16.mxu1 %v24592_v55  ;;  %v8387_v24 = vmax.bf16 %v15748_v42, %v23002_v54  ;;  %v4858_v33 = vadd.f32 %v22968_v0, %v17079_v56  ;;  %v4849_v21 = vpop.f32.mrb[213].mxu0  ;;  %v9063_v14 = vadd.bf16 %v8967_v41, %v8867_v58  ;;  %v9162_v10 = vsel %vm19110_vm1, %v23137_v25, 0 }
 0x487   :  { %v15746_v28 = vpack.c.bf16 %v5745_v43, %v5745_v43  ;;  %v4850_v62 = vadd.f32 %v22968_v0, %v4849_v21  ;;  %v17080_v7 = vpop.f32.mrb[214].mxu0  ;;  %v9258_v42 = vadd.bf16 %v9162_v10, %v9062_v1  ;;  %v23174_v56 = vpack.c.bf16 %v5734_v5, %v5734_v5 }
 0x488   :  { %v23171_v13 = vmax.bf16 %v8387_v24, %v8386_v15  ;;  %v5750_v9 = vmax.f32 %v4858_v33, 0.0  ;;  %v4861_v11 = vadd.f32 %v22968_v0, %v17080_v7  ;;  %v4852_v54 = vpop.f32.mrb[215].mxu0  ;;  %v23178_v58 = vpack.c.bf16 %v5732_v27, %v5732_v27 }
 0x489   :  { %v8385_v20 = vmax.bf16 %v15746_v28, %v23013_v35  ;;  %v5748_v63 = vmax.f32 %v4850_v62, 0.0  ;;  %v4853_v46 = vadd.f32 %v22968_v0, %v4852_v54  ;;  %v23181_v15 = vpack.c.bf16 %v5735_v26, %v5735_v26  ;;  %v24593_v28 = vld [vmem:[#allocation22_spill] sm:$0xff] }
 0x48a   :  { %v15751_v41 = vpack.c.bf16 %v5750_v9, %v5750_v9  ;;  %v5751_v21 = vmax.f32 %v4861_v11, 0.0  ;;  %v9359_v35 = vsel %vm19146_vm3, %v23171_v13, 0  ;;  %v8673_v27 = vsel %vm19028_vm10, %v23137_v25, 0  ;;  %v24594_v9 = vld [vmem:[#allocation23_spill] sm:$0xff] }
 0x48b   :  { %v23183_v24 = vmax.bf16 %v8385_v20, %v8384_v52  ;;  %v15749_v33 = vpack.c.bf16 %v5748_v63, %v5748_v63  ;;  %v5749_v7 = vmax.f32 %v4853_v46, 0.0 }
 0x48c   :  { %v8390_v5 = vmax.bf16 %v15751_v41, %v23042_v48  ;;  %v15752_v1 = vpack.c.bf16 %v5751_v21, %v5751_v21 }
 0x48d   :  { %17310 = vmatmul.mubr.bf16.gmra.mrb[80].mxu1 %v24593_v28  ;;  %v8388_v26 = vmax.bf16 %v15749_v33, %v23083_v40  ;;  %v15750_v62 = vpack.c.bf16 %v5749_v7, %v5749_v7  ;;  %v17083_v52 = vpop.f32.mrb[216].mxu0  ;;  %v9163_v10 = vsel %vm19110_vm1, %v23183_v24, 0  ;;  %v9358_v48 = vsel %vm19146_vm3, %v23183_v24, 0 }
 0x48e   :  { %17313 = vmatprep.mubr.bf16.mxu1 %v24594_v9  ;;  %v8391_v11 = vmax.bf16 %v15752_v1, %v23100_v51  ;;  %v4874_v25 = vadd.f32 %v22968_v0, %v17083_v52  ;;  %v4865_v54 = vpop.f32.mrb[217].mxu0  ;;  %v9259_v20 = vadd.bf16 %v9163_v10, %v9063_v14  ;;  %v9454_v63 = vadd.bf16 %v9358_v48, %v9258_v42 }
 0x48f   :  { %v8389_v40 = vmax.bf16 %v15750_v62, %v23114_v39  ;;  %v4866_v46 = vadd.f32 %v22968_v0, %v4865_v54  ;;  %v17084_v41 = vpop.f32.mrb[218].mxu0  ;;  %v8773_v21 = vsel %vm19015_vm9, %v23183_v24, 0  ;;  %v8968_v33 = vsel %vm19103_vm15, %v23183_v24, 0 }
 0x490   :  { %v23211_v7 = vmax.bf16 %v8391_v11, %v8390_v5  ;;  %v5754_v51 = vmax.f32 %v4874_v25, 0.0  ;;  %v4877_v1 = vadd.f32 %v22968_v0, %v17084_v41  ;;  %v4868_v14 = vpop.f32.mrb[219].mxu0  ;;  %v9455_v42 = vadd.bf16 %v9359_v35, %v9259_v20 }
 0x491   :  { %v23214_v52 = vmax.bf16 %v8389_v40, %v8388_v26  ;;  %v5752_v39 = vmax.f32 %v4866_v46, 0.0  ;;  %v4869_v62 = vadd.f32 %v22968_v0, %v4868_v14  ;;  %v8869_v10 = vadd.bf16 %v8773_v21, %v8673_v27 }
 0x492   :  { %v15755_v48 = vpack.c.bf16 %v5754_v51, %v5754_v51  ;;  %v5755_v54 = vmax.f32 %v4877_v1, 0.0  ;;  %v23217_v6 = vcombine.low %v9454_v63, %v9455_v42  ;;  %v8969_v5 = vsel %vm19103_vm15, %v23171_v13, 0  ;;  %v24596_v63 = vld [vmem:[#allocation24_spill] sm:$0xff] }
 0x493   :  { %v15753_v11 = vpack.c.bf16 %v5752_v39, %v5752_v39  ;;  %v5753_v25 = vmax.f32 %v4869_v62, 0.0  ;;  %v9064_v41 = vadd.bf16 %v8968_v33, %v23152_v17  ;;  %v9065_v43 = vadd.bf16 %v8969_v5, %v8869_v10  ;;  %v24597_v33 = vld [vmem:[#allocation26_spill] sm:$0xff] }
 0x494   :  { %24595 = vst [vmem:[#allocation55_spill] sm:$0xff] %v23217_v6  ;;  %v8394_v35 = vmax.bf16 %v15755_v48, %v23118_v12  ;;  %v15756_v26 = vpack.c.bf16 %v5755_v54, %v5755_v54  ;;  %v9164_v27 = vsel %vm19110_vm1, %v23171_v13, 0  ;;  %v9165_v20 = vsel %vm19110_vm1, %v23214_v52, 0 }
 0x495   :  { %17314 = vmatmul.mubr.bf16.gmra.mrb[84].mxu1 %v24596_v63  ;;  %v8392_v40 = vmax.bf16 %v15753_v11, %v23120_v31  ;;  %v15754_v46 = vpack.c.bf16 %v5753_v25, %v5753_v25  ;;  %v17087_v21 = vpop.f32.mrb[220].mxu0  ;;  %v9260_v51 = vadd.bf16 %v9164_v27, %v9064_v41  ;;  %v9261_v17 = vadd.bf16 %v9165_v20, %v9065_v43 }
 0x496   :  { %17317 = vmatprep.mubr.bf16.mxu1 %v24597_v33  ;;  %v8395_v12 = vmax.bf16 %v15756_v26, %v23124_v37  ;;  %v4890_v1 = vadd.f32 %v22968_v0, %v17087_v21  ;;  %v4881_v14 = vpop.f32.mrb[221].mxu0  ;;  %v9360_v42 = vsel %vm19146_vm3, %v23214_v52, 0  ;;  %v9361_v39 = vsel %vm19146_vm3, %v23211_v7, 0 }
 0x497   :  { %v8393_v31 = vmax.bf16 %v15754_v46, %v23130_v59  ;;  %v4882_v62 = vadd.f32 %v22968_v0, %v4881_v14  ;;  %v17088_v43 = vpop.f32.mrb[222].mxu0  ;;  %v9456_v10 = vadd.bf16 %v9360_v42, %v9260_v51  ;;  %v9457_v48 = vadd.bf16 %v9361_v39, %v9261_v17  ;;  %v24600_v39 = vld [vmem:[#allocation25_spill] sm:$0xff] }
 0x498   :  { %v23243_v54 = vmax.bf16 %v8395_v12, %v8394_v35  ;;  %v5758_v37 = vmax.f32 %v4890_v1, 0.0  ;;  %v4893_v5 = vadd.f32 %v22968_v0, %v17088_v43  ;;  %v4884_v11 = vpop.f32.mrb[223].mxu0  ;;  %v8674_v25 = vsel %vm19028_vm10, %v23183_v24, 0 }
 0x499   :  { %v8564_v41 = vmax.bf16 %v8393_v31, %v8392_v40  ;;  %v5756_v26 = vmax.f32 %v4882_v62, 0.0  ;;  %v4885_v27 = vadd.f32 %v22968_v0, %v4884_v11  ;;  %v23250_v59 = vcombine.low %v9456_v10, %v9457_v48  ;;  %v24601_v48 = vld [vmem:[#allocation27_spill] sm:$0xff] }
 0x49a   :  { %v24599_v20 = vmax.f32 %v23158_v32, 0.0  ;;  %v15759_v35 = vpack.c.bf16 %v5758_v37, %v5758_v37  ;;  %v5759_v21 = vmax.f32 %v4893_v5, 0.0  ;;  %v8675_v51 = vsel %vm19028_vm10, %v23171_v13, 0 }
 0x49b   :  { %24598 = vst [vmem:[#allocation56_spill] sm:$0xff] %v23250_v59  ;;  %v15757_v17 = vpack.c.bf16 %v5756_v26, %v5756_v26  ;;  %v5757_v12 = vmax.f32 %v4885_v27, 0.0  ;;  %v8774_v24 = vsel %vm19015_vm9, %v23171_v13, 0  ;;  %v8775_v40 = vsel %vm19015_vm9, %v23214_v52, 0 }
 0x49c   :  { %v15734_v46 = vpack.c.bf16 %v24599_v20, %v24599_v20  ;;  %v8398_v32 = vmax.bf16 %v15759_v35, %v23174_v56  ;;  %v15760_v1 = vpack.c.bf16 %v5759_v21, %v5759_v21  ;;  %v8870_v14 = vadd.bf16 %v8774_v24, %v8674_v25 }
 0x49d   :  { %v8871_v42 = vadd.bf16 %v8775_v40, %v8675_v51  ;;  %17318 = vmatmul.mubr.bf16.gmra.mrb[88].mxu1 %v24600_v39  ;;  %v8396_v31 = vmax.bf16 %v15757_v17, %v23178_v58  ;;  %v15758_v62 = vpack.c.bf16 %v5757_v12, %v5757_v12  ;;  %v23267_v43 = vpop.f32.mrb[224].mxu0  ;;  %v8970_v13 = vsel %vm19103_vm15, %v23214_v52, 0 }
 0x49e   :  { %v8971_v10 = vsel %vm19103_vm15, %v23211_v7, 0  ;;  %17321 = vmatprep.mubr.bf16.mxu1 %v24601_v48  ;;  %v8399_v56 = vmax.bf16 %v15760_v1, %v23181_v15  ;;  %v23277_v37 = vpop.f32.mrb[225].mxu0  ;;  %v9066_v5 = vadd.bf16 %v8970_v13, %v8870_v14  ;;  %v9166_v26 = vsel %vm19110_vm1, %v23211_v7, 0  ;;  %v24602_v1 = vld [vmem:[#allocation28_spill] sm:$0xff]  ;;  %v24603_v13 = vld [vmem:[#allocation30_spill] sm:$0xff] }
 0x49f   :  { %v9067_v11 = vadd.bf16 %v8971_v10, %v8871_v42  ;;  %v8397_v58 = vmax.bf16 %v15758_v62, %v15734_v46  ;;  %v23279_v25 = vpop.f32.mrb[226].mxu0  ;;  %v9167_v27 = vsel %vm19110_vm1, %v8564_v41, 0  ;;  %v9362_v17 = vsel %vm19146_vm3, %v8564_v41, 0 }
 0x4a0   :  { %v8567_v20 = vmax.bf16 %v8399_v56, %v8398_v32  ;;  %v23286_v35 = vpop.f32.mrb[227].mxu0  ;;  %v9262_v21 = vadd.bf16 %v9166_v26, %v9066_v5  ;;  %v9363_v46 = vsel %vm19146_vm3, %v23243_v54, 0  ;;  %v8676_v40 = vsel %vm19028_vm10, %v23214_v52, 0 }
 0x4a1   :  { %v8566_v51 = vmax.bf16 %v8397_v58, %v8396_v31  ;;  %v9263_v15 = vadd.bf16 %v9167_v27, %v9067_v11  ;;  %v8677_v32 = vsel %vm19028_vm10, %v23211_v7, 0  ;;  %v8973_v14 = vsel %vm19103_vm15, %v23243_v54, 0 }
 0x4a2   :  { %v9458_v12 = vadd.bf16 %v9362_v17, %v9262_v21  ;;  %v8776_v31 = vsel %vm19015_vm9, %v23211_v7, 0  ;;  %v8777_v62 = vsel %vm19015_vm9, %v8564_v41, 0  ;;  %v8972_v52 = vsel %vm19103_vm15, %v8564_v41, 0 }
 0x4a3   :  { %v9459_v24 = vadd.bf16 %v9363_v46, %v9263_v15  ;;  %v8872_v5 = vadd.bf16 %v8776_v31, %v8676_v40  ;;  %v8873_v11 = vadd.bf16 %v8777_v62, %v8677_v32  ;;  %v9169_v58 = vsel %vm19110_vm1, %v8566_v51, 0  ;;  %v24605_v32 = vld [vmem:[#allocation29_spill] sm:$0xff]  ;;  %v24606_v62 = vld [vmem:[#allocation31_spill] sm:$0xff] }
 0x4a4   :  { %v9168_v7 = vsel %vm19110_vm1, %v23243_v54, 0  ;;  %v9364_v15 = vsel %vm19146_vm3, %v8566_v51, 0  ;;  %v9365_v17 = vsel %vm19146_vm3, %v8567_v20, 0  ;;  %v4906_v59 = vadd.f32 %v22968_v0, %v23267_v43 }
 0x4a5   :  { %17322 = vmatmul.mubr.bf16.gmra.mrb[92].mxu1 %v24602_v1  ;;  %v23303_v42 = vpop.f32.mrb[228].mxu0  ;;  %v23315_v56 = vcombine.low %v9458_v12, %v9459_v24  ;;  %v9068_v41 = vadd.bf16 %v8972_v52, %v8872_v5  ;;  %v9069_v21 = vadd.bf16 %v8973_v14, %v8873_v11  ;;  %v24608_v5 = vld [vmem:[#allocation32_spill] sm:$0xff]  ;;  %v24609_v11 = vld [vmem:[#allocation34_spill] sm:$0xff]  ;;  %v5807_v6 = vmax.f32 %v5085_v61, 0.0 }
 0x4a6   :  { %17325 = vmatprep.mubr.bf16.mxu1 %v24603_v13  ;;  %v23313_v10 = vpop.f32.mrb[229].mxu0  ;;  %v4898_v29 = vadd.f32 %v22968_v0, %v23277_v37  ;;  %v4909_v37 = vadd.f32 %v22968_v0, %v23279_v25 }
 0x4a7   :  { %24604 = vst [vmem:[#allocation57_spill] sm:$0xff] %v23315_v56  ;;  %v23319_v26 = vpop.f32.mrb[230].mxu0  ;;  %v9264_v46 = vadd.bf16 %v9168_v7, %v9068_v41  ;;  %v9265_v12 = vadd.bf16 %v9169_v58, %v9069_v21  ;;  %v24610_v21 = vld [vmem:[#allocation33_spill] sm:$0xff]  ;;  %v5804_v56 = vmax.f32 %v5074_v8, 0.0 }
 0x4a8   :  { %v23324_v27 = vpop.f32.mrb[231].mxu0 }
 0x4a9   :  { %v9460_v24 = vadd.bf16 %v9364_v15, %v9264_v46  ;;  %v9461_v40 = vadd.bf16 %v9365_v17, %v9265_v12  ;;  %v24611_v17 = vld [vmem:[#allocation52_spill] sm:$0xff]  ;;  %v24612_v12 = vld [vmem:[#allocation35_spill] sm:$0xff] }
 0x4ab   :  { %v23336_v52 = vcombine.low %v9460_v24, %v9461_v40  ;;  %v5082_v24 = vadd.f32 %v22968_v0, %v24612_v12  ;;  %v24616_v12 = vld [vmem:[#allocation64_spill] sm:$0xff] }
 0x4ad   :  { %17326 = vmatmul.mubr.bf16.gmra.mrb[96].mxu1 %v24605_v32  ;;  %v23331_v31 = vpop.f32.mrb[232].mxu0  ;;  %24607 = vst [vmem:[#allocation58_spill] sm:$0xff] %v23336_v52  ;;  %v5806_v44 = vmax.f32 %v5082_v24, 0.0  ;;  %v5077_v52 = vadd.f32 %v22968_v0, %v24615_v18 }
 0x4ae   :  { %17329 = vmatprep.mubr.bf16.mxu1 %v24606_v62  ;;  %v23334_v54 = vpop.f32.mrb[233].mxu0 }
 0x4af   :  { %v23338_v14 = vpop.f32.mrb[234].mxu0  ;;  %v15807_v24 = vpack.c.bf16 %v5806_v44, %v5806_v44  ;;  %v5805_v30 = vmax.f32 %v5077_v52, 0.0  ;;  %v4901_v44 = vadd.f32 %v22968_v0, %v23286_v35 }
 0x4b0   :  { %v23340_v51 = vpop.f32.mrb[235].mxu0 }
 0x4b1   :  { %v15806_v62 = vpack.c.bf16 %v5805_v30, %v5805_v30 }
 0x4b5   :  { %17330 = vmatmul.mubr.bf16.gmra.mrb[100].mxu1 %v24608_v5  ;;  %v23343_v20 = vpop.f32.mrb[236].mxu0 }
 0x4b6   :  { %17333 = vmatprep.mubr.bf16.mxu1 %v24609_v11  ;;  %v23346_v58 = vpop.f32.mrb[237].mxu0  ;;  %v15808_v11 = vpack.c.bf16 %v5807_v6, %v5807_v6  ;;  %v4914_v6 = vadd.f32 %v22968_v0, %v23313_v10 }
 0x4b7   :  { %v23348_v7 = vpop.f32.mrb[238].mxu0 }
 0x4b8   :  { %v23350_v41 = vpop.f32.mrb[239].mxu0 }
 0x4bd   :  { %17334 = vmatmul.mubr.bf16.gmra.mrb[104].mxu1 %v24610_v21  ;;  %v23353_v15 = vpop.f32.mrb[240].mxu0  ;;  %v5762_v21 = vmax.f32 %v4906_v59, 0.0 }
 0x4be   :  { %17337 = vmatprep.mubr.bf16.mxu1 %v24611_v17  ;;  %v23356_v46 = vpop.f32.mrb[241].mxu0  ;;  %v15805_v17 = vpack.c.bf16 %v5804_v56, %v5804_v56 }
 0x4bf   :  { %v23360_v40 = vpop.f32.mrb[242].mxu0 }
 0x4c0   :  { %v23364_v60 = vpop.f32.mrb[243].mxu0 }
 0x4c5   :  { %17338 = vmatmul.mubr.bf16.gmra.mrb[108].mxu1 %v24616_v12  ;;  %v17111_v57 = vpop.f32.mrb[244].mxu0 }
 0x4c6   :  { %17341 = vmatprep.mubr.bf16.mxu1 %v24617_v16  ;;  %v4986_v38 = vadd.f32 %v22968_v0, %v17111_v57  ;;  %v4977_v19 = vpop.f32.mrb[245].mxu0  ;;  %v5760_v57 = vmax.f32 %v4898_v29, 0.0  ;;  %v4925_v29 = vadd.f32 %v22968_v0, %v23319_v26 }
 0x4c7   :  { %v4978_v18 = vadd.f32 %v22968_v0, %v4977_v19  ;;  %v17112_v8 = vpop.f32.mrb[246].mxu0 }
 0x4c8   :  { %v5782_v43 = vmax.f32 %v4986_v38, 0.0  ;;  %v4989_v61 = vadd.f32 %v22968_v0, %v17112_v8  ;;  %v4980_v12 = vpop.f32.mrb[247].mxu0  ;;  %v4922_v38 = vadd.f32 %v22968_v0, %v23303_v42  ;;  %v23386_v8 = vpack.c.bf16 %v5762_v21, %v5762_v21 }
 0x4c9   :  { %v5780_v5 = vmax.f32 %v4978_v18, 0.0  ;;  %v4981_v16 = vadd.f32 %v22968_v0, %v4980_v12  ;;  %v5763_v12 = vmax.f32 %v4909_v37, 0.0  ;;  %v15761_v32 = vpack.c.bf16 %v5760_v57, %v5760_v57 }
 0x4ca   :  { %v15783_v52 = vpack.c.bf16 %v5782_v43, %v5782_v43  ;;  %v5783_v19 = vmax.f32 %v4989_v61, 0.0  ;;  %v24618_v61 = vld [vmem:[#allocation65_spill] sm:$0xff]  ;;  %v5761_v42 = vmax.f32 %v4901_v44, 0.0  ;;  %v5766_v10 = vmax.f32 %v4922_v38, 0.0 }
 0x4cb   :  { %v15781_v59 = vpack.c.bf16 %v5780_v5, %v5780_v5  ;;  %v5781_v56 = vmax.f32 %v4981_v16, 0.0  ;;  %v5767_v44 = vmax.f32 %v4925_v29, 0.0 }
 0x4cc   :  { %v8422_v25 = vmax.bf16 %v15807_v24, %v15783_v52  ;;  %v15784_v18 = vpack.c.bf16 %v5783_v19, %v5783_v19  ;;  %v4917_v24 = vadd.f32 %v22968_v0, %v23324_v27  ;;  %v5764_v52 = vmax.f32 %v4914_v6, 0.0 }
 0x4cd   :  { %v8420_v35 = vmax.bf16 %v15805_v17, %v15781_v59  ;;  %v15782_v43 = vpack.c.bf16 %v5781_v56, %v5781_v56  ;;  %17342 = vmatmul.mubr.bf16.gmra.mrb[112].mxu1 %v24618_v61  ;;  %v17115_v30 = vpop.f32.mrb[248].mxu0  ;;  %v4938_v6 = vadd.f32 %v22968_v0, %v23331_v31  ;;  %v23409_v29 = vpack.c.bf16 %v5766_v10, %v5766_v10 }
 0x4ce   :  { %v8423_v5 = vmax.bf16 %v15808_v11, %v15784_v18  ;;  %17361 = vmatprep.mubr.bf16.mxu1 %v24584_v47  ;;  %v5002_v16 = vadd.f32 %v22968_v0, %v17115_v30  ;;  %v4993_v21 = vpop.f32.mrb[249].mxu0  ;;  %v15764_v18 = vpack.c.bf16 %v5763_v12, %v5763_v12  ;;  %v15762_v30 = vpack.c.bf16 %v5761_v42, %v5761_v42 }
 0x4cf   :  { %v8421_v37 = vmax.bf16 %v15806_v62, %v15782_v43  ;;  %v4994_v26 = vadd.f32 %v22968_v0, %v4993_v21  ;;  %v17116_v17 = vpop.f32.mrb[250].mxu0  ;;  %v5765_v43 = vmax.f32 %v4917_v24, 0.0  ;;  %v23414_v21 = vpack.c.bf16 %v5764_v52, %v5764_v52 }
 0x4d0   :  { %v23398_v19 = vmax.bf16 %v8423_v5, %v8422_v25  ;;  %v5786_v59 = vmax.f32 %v5002_v16, 0.0  ;;  %v5005_v57 = vadd.f32 %v22968_v0, %v17116_v17  ;;  %v4996_v11 = vpop.f32.mrb[251].mxu0  ;;  %v18202_v16 = vld [vmem:[%s24333_s3 + $0xc8] sm:$0xff]   ;;  %v23416_v24 = vpack.c.bf16 %v5767_v44, %v5767_v44 }
 0x4d1   :  { %v23401_v47 = vmax.bf16 %v8421_v37, %v8420_v35  ;;  %v5784_v56 = vmax.f32 %v4994_v26, 0.0  ;;  %v4997_v38 = vadd.f32 %v22968_v0, %v4996_v11  ;;  %v4930_v35 = vadd.f32 %v22968_v0, %v23334_v54  ;;  %v18203_v11 = vld [vmem:[%s24333_s3 + $0xd0] sm:$0xff]  }
 0x4d2   :  { %v15787_v27 = vpack.c.bf16 %v5786_v59, %v5786_v59  ;;  %v5787_v62 = vmax.f32 %v5005_v57, 0.0  ;;  %v4941_v17 = vadd.f32 %v22968_v0, %v23338_v14  ;;  %v15766_v52 = vpack.c.bf16 %v5765_v43, %v5765_v43 }
 0x4d3   :  { %v15785_v25 = vpack.c.bf16 %v5784_v56, %v5784_v56  ;;  %v5785_v5 = vmax.f32 %v4997_v38, 0.0  ;;  %v5770_v59 = vmax.f32 %v4938_v6, 0.0  ;;  %v5768_v14 = vmax.f32 %v4930_v35, 0.0 }
 0x4d4   :  { %v8402_v12 = vmax.bf16 %v15787_v27, %v23386_v8  ;;  %v15788_v42 = vpack.c.bf16 %v5787_v62, %v5787_v62  ;;  %v23433_v38 = vadd.f32 %v22968_v0, %v23340_v51  ;;  %v5771_v62 = vmax.f32 %v4941_v17, 0.0 }
 0x4d5   :  { %17362 = vmatmul.mubr.bf16.vlgmr.msra.gmra.mrb[52].mxu1 %v24587_v22  ;;  %v8400_v31 = vmax.bf16 %v15785_v25, %v15761_v32  ;;  %v15786_v37 = vpack.c.bf16 %v5785_v5, %v5785_v5  ;;  %v17119_v26 = vpop.f32.mrb[252].mxu0  ;;  %v4954_v5 = vadd.f32 %v22968_v0, %v23343_v20  ;;  %v23451_v17 = vpack.c.bf16 %v5770_v59, %v5770_v59 }
 0x4d6   :  { %17426 = vmatpush3.bf16.msra.mxu1 %v23055_v2  ;;  %17365 = vmatprep.mubr.bf16.mxu1 %v24588_v4  ;;  %v8403_v54 = vmax.bf16 %v15788_v42, %v15764_v18  ;;  %v5018_v8 = vadd.f32 %v22968_v0, %v17119_v26  ;;  %v5009_v10 = vpop.f32.mrb[253].mxu0  ;;  %v18204_v42 = vld [vmem:[%s24333_s3 + $0xd8] sm:$0xff]   ;;  %v23453_v20 = vpack.c.bf16 %v5768_v14, %v5768_v14 }
 0x4d7   :  { %v8401_v57 = vmax.bf16 %v15786_v37, %v15762_v30  ;;  %17427 = vmatprep.subr.bf16.mxu1 %v18202_v16  ;;  %v5010_v22 = vadd.f32 %v22968_v0, %v5009_v10  ;;  %v17120_v32 = vpop.f32.mrb[254].mxu0  ;;  %v5774_v59 = vmax.f32 %v4954_v5, 0.0  ;;  %v4957_v14 = vadd.f32 %v22968_v0, %v23348_v7 }
 0x4d8   :  { %v23428_v44 = vmax.bf16 %v8403_v54, %v8402_v12  ;;  %v5790_v2 = vmax.f32 %v5018_v8, 0.0  ;;  %v5021_v4 = vadd.f32 %v22968_v0, %v17120_v32  ;;  %v5012_v56 = vpop.f32.mrb[255].mxu0 }
 0x4d9   :  { %v8568_v18 = vmax.bf16 %v8401_v57, %v8400_v31  ;;  %v5788_v30 = vmax.f32 %v5010_v22, 0.0  ;;  %v5013_v27 = vadd.f32 %v22968_v0, %v5012_v56  ;;  %v4946_v31 = vadd.f32 %v22968_v0, %v23346_v58 }
 0x4da   :  { %v8778_v43 = vsel %vm19015_vm9, %v23428_v44, 0  ;;  %v15791_v6 = vpack.c.bf16 %v5790_v2, %v5790_v2  ;;  %17428 = vmatpush3.bf16.msra.mxu1 %v18202_v16  ;;  %v5791_v25 = vmax.f32 %v5021_v4, 0.0  ;;  %v15772_v57 = vpack.c.bf16 %v5771_v62, %v5771_v62  ;;  %v18205_v4 = vld [vmem:[%s24333_s3 + $0xe0] sm:$0xff]  }
 0x4db   :  { %v8678_v35 = vsel %vm19028_vm10, %v8568_v18, 0  ;;  %v15789_v51 = vpack.c.bf16 %v5788_v30, %v5788_v30  ;;  %v5789_v12 = vmax.f32 %v5013_v27, 0.0  ;;  %17429 = vmatprep.subr.bf16.mxu1 %v18203_v11  ;;  %v5769_v22 = vmax.f32 %v23433_v38, 0.0 }
 0x4dc   :  { %v23448_v37 = vadd.bf16 %v8778_v43, %v8678_v35  ;;  %v8406_v16 = vmax.bf16 %v15791_v6, %v23409_v29  ;;  %v15792_v26 = vpack.c.bf16 %v5791_v25, %v5791_v25  ;;  %v5772_v56 = vmax.f32 %v4946_v31, 0.0 }
 0x4dd   :  { %17366 = vmatmul.mubr.bf16.gmra.mrb[56].mxu1 %v24589_v53  ;;  %v8404_v54 = vmax.bf16 %v15789_v51, %v23414_v21  ;;  %v15790_v8 = vpack.c.bf16 %v5789_v12, %v5789_v12  ;;  %v17123_v10 = vpop.f32.mrb[0].mxu0  ;;  %v8679_v7 = vsel %vm19028_vm10, %v23428_v44, 0  ;;  %v4949_v62 = vadd.f32 %v22968_v0, %v23350_v41 }
 0x4de   :  { %17369 = vmatprep.mubr.bf16.mxu1 %v24590_v3  ;;  %v8407_v58 = vmax.bf16 %v15792_v26, %v23416_v24  ;;  %v5034_v29 = vadd.f32 %v22968_v0, %v17123_v10  ;;  %v5025_v32 = vpop.f32.mrb[1].mxu0  ;;  %17430 = vmatpush3.bf16.msra.mxu1 %v18203_v11  ;;  %v5775_v5 = vmax.f32 %v4957_v14, 0.0  ;;  %v15775_v10 = vpack.c.bf16 %v5774_v59, %v5774_v59 }
 0x4df   :  { %v8405_v53 = vmax.bf16 %v15790_v8, %v15766_v52  ;;  %v5026_v21 = vadd.f32 %v22968_v0, %v5025_v32  ;;  %v17124_v2 = vpop.f32.mrb[2].mxu0  ;;  %17431 = vmatprep.subr.bf16.mxu1 %v18204_v42  ;;  %v18373_v32 = vld [vmem:[%s24334_s2] ss:$0 sm:$0xff] }
 0x4e0   :  { %v23467_v38 = vmax.bf16 %v8407_v58, %v8406_v16  ;;  %v5794_v24 = vmax.f32 %v5034_v29, 0.0  ;;  %v5037_v18 = vadd.f32 %v22968_v0, %v17124_v2  ;;  %v5028_v11 = vpop.f32.mrb[3].mxu0  ;;  %v15770_v16 = vpack.c.bf16 %v5769_v22, %v5769_v22 }
 0x4e1   :  { %v23473_v52 = vmax.bf16 %v8405_v53, %v8404_v54  ;;  %v5792_v30 = vmax.f32 %v5026_v21, 0.0  ;;  %v5029_v27 = vadd.f32 %v22968_v0, %v5028_v11  ;;  %v18206_v0 = vld [vmem:[%s24333_s3 + $0xe8] sm:$0xff]   ;;  %v5773_v58 = vmax.f32 %v4949_v62, 0.0 }
 0x4e2   :  { %v8780_v43 = vsel %vm19015_vm9, %v23467_v38, 0  ;;  %v15795_v6 = vpack.c.bf16 %v5794_v24, %v5794_v24  ;;  %v5795_v25 = vmax.f32 %v5037_v18, 0.0  ;;  %17432 = vmatpush3.bf16.msra.mxu1 %v18204_v42  ;;  %v15776_v22 = vpack.c.bf16 %v5775_v5, %v5775_v5 }
 0x4e3   :  { %v8680_v44 = vsel %vm19028_vm10, %v23473_v52, 0  ;;  %v8779_v35 = vsel %vm19015_vm9, %v23473_v52, 0  ;;  %v15793_v51 = vpack.c.bf16 %v5792_v30, %v5792_v30  ;;  %17433 = vmatprep.subr.bf16.mxu1 %v18205_v4  ;;  %v5793_v54 = vmax.f32 %v5029_v27, 0.0 }
 0x4e4   :  { %v23490_v41 = vadd.bf16 %v8779_v35, %v8679_v7  ;;  %v23492_v12 = vadd.bf16 %v8780_v43, %v8680_v44  ;;  %v8410_v42 = vmax.bf16 %v15795_v6, %v23451_v17  ;;  %v15796_v31 = vpack.c.bf16 %v5795_v25, %v5795_v25 }
 0x4e5   :  { %17370 = vmatmul.mubr.bf16.gmra.mrb[60].mxu1 %v24591_v23  ;;  %v8408_v26 = vmax.bf16 %v15793_v51, %v23453_v20  ;;  %v17127_v8 = vpop.f32.mrb[4].mxu0  ;;  %v15773_v17 = vpack.c.bf16 %v5772_v56, %v5772_v56  ;;  %v15794_v21 = vpack.c.bf16 %v5793_v54, %v5793_v54  ;;  %v18207_v20 = vld [vmem:[%s24333_s3 + $0xf0] sm:$0xff]   ;;  %v4970_v59 = vadd.f32 %v18373_v32, %v23353_v15 }
 0x4e6   :  { %17373 = vmatprep.mubr.bf16.mxu1 %v24592_v55  ;;  %v8411_v29 = vmax.bf16 %v15796_v31, %v15772_v57  ;;  %v5050_v14 = vadd.f32 %v18373_v32, %v17127_v8  ;;  %v5041_v53 = vpop.f32.mrb[5].mxu0  ;;  %17434 = vmatpush3.bf16.msra.mxu1 %v18205_v4  ;;  %v4962_v30 = vadd.f32 %v18373_v32, %v23356_v46  ;;  %v18208_v46 = vld [vmem:[%s24333_s3 + $0xf8] sm:$0xff]  }
 0x4e7   :  { %v5042_v2 = vadd.f32 %v18373_v32, %v5041_v53  ;;  %v17128_v24 = vpop.f32.mrb[6].mxu0  ;;  %17435 = vmatprep.subr.bf16.mxu1 %v18206_v0  ;;  %v8409_v4 = vmax.bf16 %v15794_v21, %v15770_v16  ;;  %v15774_v62 = vpack.c.bf16 %v5773_v58, %v5773_v58  ;;  %v4973_v43 = vadd.f32 %v18373_v32, %v23360_v40 }
 0x4e8   :  { %v23505_v57 = vmax.bf16 %v8411_v29, %v8410_v42  ;;  %v5798_v18 = vmax.f32 %v5050_v14, 0.0  ;;  %v5053_v11 = vadd.f32 %v18373_v32, %v17128_v24  ;;  %v5044_v7 = vpop.f32.mrb[7].mxu0  ;;  %v4965_v5 = vadd.f32 %v18373_v32, %v23364_v60 }
 0x4e9   :  { %v5796_v56 = vmax.f32 %v5042_v2, 0.0  ;;  %v5045_v27 = vadd.f32 %v18373_v32, %v5044_v7  ;;  %v23510_v44 = vmax.bf16 %v8409_v4, %v8408_v26  ;;  %v5778_v51 = vmax.f32 %v4970_v59, 0.0 }
 0x4ea   :  { %v15799_v6 = vpack.c.bf16 %v5798_v18, %v5798_v18  ;;  %v5799_v25 = vmax.f32 %v5053_v11, 0.0  ;;  %17436 = vmatpush3.bf16.msra.mxu1 %v18206_v0  ;;  %v5776_v16 = vmax.f32 %v4962_v30, 0.0  ;;  %v5779_v8 = vmax.f32 %v4973_v43, 0.0 }
 0x4eb   :  { %v15797_v15 = vpack.c.bf16 %v5796_v56, %v5796_v56  ;;  %v5797_v35 = vmax.f32 %v5045_v27, 0.0  ;;  %17437 = vmatprep.subr.bf16.mxu1 %v18207_v20  ;;  %v5777_v29 = vmax.f32 %v4965_v5, 0.0 }
 0x4ec   :  { %v8414_v42 = vmax.bf16 %v15799_v6, %v15775_v10  ;;  %v15800_v31 = vpack.c.bf16 %v5799_v25, %v5799_v25  ;;  %v23520_v10 = vld [vmem:[%s24333_s3 + $0x100] sm:$0xff]   ;;  %v15777_v18 = vpack.c.bf16 %v5776_v16, %v5776_v16  ;;  %v15780_v30 = vpack.c.bf16 %v5779_v8, %v5779_v8 }
 0x4ed   :  { %v8412_v54 = vmax.bf16 %v15797_v15, %v15773_v17  ;;  %17374 = vmatmul.mubr.bf16.gmra.mrb[64].mxu1 %v24593_v28  ;;  %v15798_v40 = vpack.c.bf16 %v5797_v35, %v5797_v35  ;;  %v17131_v0 = vpop.f32.mrb[8].mxu0  ;;  %v15779_v17 = vpack.c.bf16 %v5778_v51, %v5778_v51 }
 0x4ee   :  { %v8415_v60 = vmax.bf16 %v15800_v31, %v15776_v22  ;;  %17377 = vmatprep.mubr.bf16.mxu1 %v24594_v9  ;;  %v5066_v26 = vadd.f32 %v18373_v32, %v17131_v0  ;;  %v5057_v58 = vpop.f32.mrb[9].mxu0  ;;  %17438 = vmatpush3.bf16.msra.mxu1 %v18207_v20 }
 0x4ef   :  { %v8413_v14 = vmax.bf16 %v15798_v40, %v15774_v62  ;;  %v5058_v53 = vadd.f32 %v18373_v32, %v5057_v58  ;;  %v17132_v21 = vpop.f32.mrb[10].mxu0  ;;  %17439 = vmatprep.subr.bf16.mxu1 %v18208_v46  ;;  %v15778_v62 = vpack.c.bf16 %v5777_v29, %v5777_v29 }
 0x4f0   :  { %v23522_v2 = vmax.bf16 %v8415_v60, %v8414_v42  ;;  %v5802_v24 = vmax.f32 %v5066_v26, 0.0  ;;  %v5069_v22 = vadd.f32 %v18373_v32, %v17132_v21  ;;  %v5060_v59 = vpop.f32.mrb[11].mxu0  ;;  %v9372_v21 = vsel %vm19146_vm3, %v23401_v47, 0 }
 0x4f1   :  { %v23524_v11 = vmax.bf16 %v8413_v14, %v8412_v54  ;;  %v5800_v20 = vmax.f32 %v5058_v53, 0.0  ;;  %v5061_v7 = vadd.f32 %v18373_v32, %v5060_v59  ;;  %v9177_v53 = vsel %vm19110_vm1, %v23401_v47, 0 }
 0x4f2   :  { %v15803_v4 = vpack.c.bf16 %v5802_v24, %v5802_v24  ;;  %v5803_v56 = vmax.f32 %v5069_v22, 0.0  ;;  %17440 = vmatpush3.bf16.msra.mxu1 %v18208_v46  ;;  %v8784_v27 = vsel %vm19015_vm9, %v23522_v2, 0  ;;  %v8685_v54 = vsel %vm19028_vm10, %v23522_v2, 0 }
 0x4f3   :  { %v15801_v43 = vpack.c.bf16 %v5800_v20, %v5800_v20  ;;  %v5801_v6 = vmax.f32 %v5061_v7, 0.0  ;;  %17505 = vmatprep.subr.bf16.mxu1 %v23520_v10  ;;  %v8684_v25 = vsel %vm19028_vm10, %v23524_v11, 0  ;;  %v9373_v22 = vsel %vm19146_vm3, %v23398_v19, 0 }
 0x4f4   :  { %v8418_v5 = vmax.bf16 %v15803_v4, %v15779_v17  ;;  %v15804_v15 = vpack.c.bf16 %v5803_v56, %v5803_v56  ;;  %v8880_v32 = vadd.bf16 %v8784_v27, %v8684_v25  ;;  %v8974_v20 = vsel %vm19103_vm15, %v23473_v52, 0 }
 0x4f5   :  { %v8416_v35 = vmax.bf16 %v15801_v43, %v15777_v18  ;;  %v15802_v51 = vpack.c.bf16 %v5801_v6, %v5801_v6  ;;  %17378 = vmatmul.mubr.bf16.gmra.mrb[68].mxu1 %v24596_v63  ;;  %v8975_v47 = vsel %vm19103_vm15, %v23467_v38, 0  ;;  %v9070_v7 = vadd.bf16 %v8974_v20, %v23448_v37 }
 0x4f6   :  { %v8419_v46 = vmax.bf16 %v15804_v15, %v15780_v30  ;;  %17381 = vmatprep.mubr.bf16.mxu1 %v24597_v33  ;;  %v9071_v30 = vadd.bf16 %v8975_v47, %v23490_v41  ;;  %v9170_v19 = vsel %vm19110_vm1, %v23467_v38, 0  ;;  %v9171_v4 = vsel %vm19110_vm1, %v23510_v44, 0  ;;  %v24620_v41 = vld [vmem:[#allocation31_spill] sm:$0xff] }
 0x4f7   :  { %v8417_v42 = vmax.bf16 %v15802_v51, %v15778_v62  ;;  %v9266_v56 = vadd.bf16 %v9170_v19, %v9070_v7  ;;  %v24619_v62 = vld [vmem:[#allocation29_spill] sm:$0xff]  ;;  %v9366_v52 = vsel %vm19146_vm3, %v23510_v44, 0  ;;  %v9367_v37 = vsel %vm19146_vm3, %v23505_v57, 0 }
 0x4f8   :  { %v23535_v31 = vmax.bf16 %v8419_v46, %v8418_v5  ;;  %v9267_v27 = vadd.bf16 %v9171_v4, %v9071_v30  ;;  %v8681_v25 = vsel %vm19028_vm10, %v23467_v38, 0  ;;  %v8781_v5 = vsel %vm19015_vm9, %v23510_v44, 0  ;;  %v24623_v19 = vld [vmem:[#allocation33_spill] sm:$0xff]  ;;  %v24624_v4 = vld [vmem:[#allocation52_spill] sm:$0xff] }
 0x4f9   :  { %v23537_v16 = vmax.bf16 %v8417_v42, %v8416_v35  ;;  %v9462_v43 = vadd.bf16 %v9366_v52, %v9266_v56  ;;  %v8976_v35 = vsel %vm19103_vm15, %v23510_v44, 0  ;;  %v8977_v51 = vsel %vm19103_vm15, %v23505_v57, 0  ;;  %v24626_v52 = vld [vmem:[#allocation66_spill] sm:$0xff] }
 0x4fa   :  { %v8981_v40 = vsel %vm19103_vm15, %v23535_v31, 0  ;;  %v9176_v60 = vsel %vm19110_vm1, %v23535_v31, 0  ;;  %v9463_v6 = vadd.bf16 %v9367_v37, %v9267_v27  ;;  %v9072_v46 = vadd.bf16 %v8976_v35, %v23492_v12  ;;  %v24627_v37 = vld [vmem:[#allocation42_spill] sm:$0xff]  ;;  %v18211_v35 = vld [vmem:[%s24333_s3 + $0x110] sm:$0xff]  }
 0x4fb   :  { %v8785_v0 = vsel %vm19015_vm9, %v23537_v16, 0  ;;  %v8980_v8 = vsel %vm19103_vm15, %v23537_v16, 0  ;;  %v9172_v38 = vsel %vm19110_vm1, %v23505_v57, 0  ;;  %v9369_v12 = vsel %vm19146_vm3, %v23522_v2, 0 }
 0x4fc   :  { %v8881_v26 = vadd.bf16 %v8785_v0, %v8685_v54  ;;  %v9076_v58 = vadd.bf16 %v8980_v8, %v8880_v32  ;;  %v23597_v15 = vcombine.low %v9462_v43, %v9463_v6  ;;  %v8877_v32 = vadd.bf16 %v8781_v5, %v8681_v25  ;;  %v24621_v8 = vld [vmem:[#allocation32_spill] sm:$0xff]  ;;  %v24628_v43 = vld [vmem:[#allocation49_spill] sm:$0xff]  ;;  %v24634_v5 = vld [vmem:[#allocation58_spill] sm:$0xff] }
 0x4fd   :  { %17382 = vmatmul.mubr.bf16.gmra.mrb[72].mxu1 %v24600_v39  ;;  %v9173_v54 = vsel %vm19110_vm1, %v23524_v11, 0  ;;  %v8979_v45 = vsel %vm19103_vm15, %v23522_v2, 0  ;;  %v9175_v34 = vsel %vm19110_vm1, %v23537_v16, 0  ;;  %v9371_v36 = vsel %vm19146_vm3, %v23535_v31, 0  ;;  %v24631_v31 = vld [vmem:[#allocation55_spill] sm:$0xff]  ;;  %v24632_v6 = vld [vmem:[#allocation56_spill] sm:$0xff] }
 0x4fe   :  { %17385 = vmatprep.mubr.bf16.mxu1 %v24601_v48  ;;  %v9077_v29 = vadd.bf16 %v8981_v40, %v8881_v26  ;;  %v9272_v14 = vadd.bf16 %v9176_v60, %v9076_v58  ;;  %v9073_v42 = vadd.bf16 %v8977_v51, %v8877_v32  ;;  %v9268_v40 = vadd.bf16 %v9172_v38, %v9072_v46  ;;  %v24622_v26 = vld [vmem:[#allocation34_spill] sm:$0xff]  ;;  %v24633_v25 = vld [vmem:[#allocation57_spill] sm:$0xff] }
 0x4ff   :  { %v9368_v60 = vsel %vm19146_vm3, %v23524_v11, 0  ;;  %v18210_v32 = vld [vmem:[%s24333_s3 + $0x108] sm:$0xff]   ;;  %v18217_v51 = vld [vmem:[%s24335_s5 + $0x40] sm:$0xff]  }
 0x500   :  { %v9273_v17 = vadd.bf16 %v9177_v53, %v9077_v29  ;;  %v9468_v24 = vadd.bf16 %v9372_v21, %v9272_v14  ;;  %v9269_v0 = vadd.bf16 %v9173_v54, %v9073_v42  ;;  %v9464_v58 = vadd.bf16 %v9368_v60, %v9268_v40  ;;  %v18218_v46 = vld [vmem:[%s24335_s5] sm:$0xff]   ;;  %v18219_v42 = vld [vmem:[%s24335_s5 + $0x48] sm:$0xff]   ;;  %v18221_v54 = vld [vmem:[%s24335_s5 + $0x50] sm:$0xff]  }
 0x501   :  { %v8682_v14 = vsel %vm19028_vm10, %v23510_v44, 0  ;;  %v8683_v53 = vsel %vm19028_vm10, %v23505_v57, 0  ;;  %v8782_v21 = vsel %vm19015_vm9, %v23505_v57, 0  ;;  %v8978_v44 = vsel %vm19103_vm15, %v23524_v11, 0  ;;  %v18220_v38 = vld [vmem:[%s24335_s5 + $0x8] sm:$0xff]   ;;  %v18223_v40 = vld [vmem:[%s24335_s5 + $0x58] sm:$0xff]  }
 0x502   :  { %v9469_v59 = vadd.bf16 %v9373_v22, %v9273_v17  ;;  %v9465_v29 = vadd.bf16 %v9369_v12, %v9269_v0  ;;  %v8783_v17 = vsel %vm19015_vm9, %v23524_v11, 0  ;;  %v8878_v22 = vadd.bf16 %v8782_v21, %v8682_v14  ;;  %v18226_v0 = vld [vmem:[%s24335_s5 + $0x20] sm:$0xff]   ;;  %v18227_v60 = vld [vmem:[%s24335_s5 + $0x68] sm:$0xff]   ;;  %v18230_v12 = vld [vmem:[%s24335_s5 + $0x30] sm:$0xff]  }
 0x503   :  { %v9174_v57 = vsel %vm19110_vm1, %v23522_v2, 0  ;;  %v9370_v11 = vsel %vm19146_vm3, %v23537_v16, 0  ;;  %v24629_v16 = vld [vmem:[#allocation43_spill] sm:$0xff]  ;;  %v24644_v21 = vld [vmem:[#allocation53_spill] sm:$0xff] }
 0x504   :  { %v23565_v18 = vcombine.low %v9468_v24, %v9469_v59  ;;  %v23632_v24 = vcombine.low %v9464_v58, %v9465_v29  ;;  %v8879_v59 = vadd.bf16 %v8783_v17, %v8683_v53  ;;  %v9074_v20 = vadd.bf16 %v8978_v44, %v8878_v22  ;;  %v24641_v58 = vld [vmem:[#allocation47_spill] sm:$0xff]  ;;  %v24642_v29 = vld [vmem:[#allocation48_spill] sm:$0xff]  ;;  %v18233_v53 = vld [vmem:[%s24335_s5 + $0xc0] sm:$0xff]  }
 0x505   :  { %17386 = vmatmul.mubr.bf16.gmra.mrb[76].mxu1 %v24602_v1  ;;  %v24643_v14 = vcombine.low %v24641_v58, %v24642_v29  ;;  %v24645_v17 = vld [vmem:[#allocation54_spill] sm:$0xff]  ;;  %v18234_v58 = vld [vmem:[%s24335_s5 + $0x80] sm:$0xff]  }
 0x506   :  { %17389 = vmatprep.mubr.bf16.mxu1 %v24603_v13  ;;  %v9075_v47 = vadd.bf16 %v8979_v45, %v8879_v59  ;;  %v9270_v7 = vadd.bf16 %v9174_v57, %v9074_v20 }
 0x508   :  { %v9271_v30 = vadd.bf16 %v9175_v34, %v9075_v47  ;;  %v9466_v56 = vadd.bf16 %v9370_v11, %v9270_v7  ;;  %v23815_v47 = vld [vmem:[%s24336_s4] ss:$0 sm:$0xff] }
 0x50a   :  { %v9467_v2 = vadd.bf16 %v9371_v36, %v9271_v30 }
 0x50c   :  { %v23654_v27 = vcombine.low %v9466_v56, %v9467_v2 }
 0x50d   :  { %17390 = vmatmul.mubr.bf16.gmra.mrb[80].mxu1 %v24619_v62 }
 0x50e   :  { %17393 = vmatprep.mubr.bf16.mxu1 %v24620_v41 }
 0x515   :  { %17394 = vmatmul.mubr.bf16.gmra.mrb[84].mxu1 %v24621_v8 }
 0x516   :  { %17397 = vmatprep.mubr.bf16.mxu1 %v24622_v26 }
 0x51d   :  { %17398 = vmatmul.mubr.bf16.gmra.mrb[88].mxu1 %v24623_v19 }
 0x51e   :  { %17401 = vmatprep.mubr.bf16.mxu1 %v24624_v4 }
 0x525   :  { %17402 = vmatmul.mubr.bf16.gmra.mrb[92].mxu1 %v24625_v50 }
 0x526   :  { %17405 = vmatprep.mubr.bf16.mxu1 %v24626_v52 }
 0x52d   :  { %17406 = vmatmul.mubr.bf16.gmra.mrb[96].mxu1 %v24618_v61 }
 0x52e   :  { %17409 = vmatprep.mubr.bf16.mxu1 %v24627_v37 }
 0x535   :  { %17410 = vmatmul.mubr.bf16.gmra.mrb[100].mxu1 %v24628_v43 }
 0x536   :  { %17413 = vmatprep.mubr.bf16.mxu1 %v24629_v16 }
 0x53d   :  { %17414 = vmatmul.mubr.bf16.gmra.mrb[104].mxu1 %v24630_v49 }
 0x53e   :  { %17417 = vmatprep.mubr.bf16.mxu1 %v24631_v31 }
 0x545   :  { %17418 = vmatmul.mubr.bf16.gmra.mrb[108].mxu1 %v24632_v6 }
 0x546   :  { %17421 = vmatprep.mubr.bf16.mxu1 %v24633_v25 }
 0x54d   :  { %17422 = vmatmul.mubr.bf16.gmra.mrb[112].mxu1 %v24634_v5 }
 0x54e   :  { %17441 = vmatprep.mubr.bf16.mxu1 %v24590_v3  ;;  %v18212_v3 = vld [vmem:[%s24333_s3 + $0x118] sm:$0xff]  }
 0x555   :  { %17442 = vmatmul.mubr.bf16.vlgmr.msra.gmra.mrb[52].mxu1 %v24591_v23  ;;  %v18213_v23 = vld [vmem:[%s24333_s3 + $0x120] sm:$0xff]  }
 0x556   :  { %17506 = vmatpush3.bf16.msra.mxu1 %v23520_v10  ;;  %17445 = vmatprep.mubr.bf16.mxu1 %v24592_v55  ;;  %v18214_v55 = vld [vmem:[%s24333_s3 + $0x128] sm:$0xff]   ;;  %v18216_v10 = vld [vmem:[%s24333_s3 + $0x138] sm:$0xff]  }
 0x557   :  { %17507 = vmatprep.subr.bf16.mxu1 %v18210_v32 }
 0x55a   :  { %17508 = vmatpush3.bf16.msra.mxu1 %v18210_v32 }
 0x55b   :  { %17509 = vmatprep.subr.bf16.mxu1 %v18211_v35 }
 0x55d   :  { %17446 = vmatmul.mubr.bf16.gmra.mrb[56].mxu1 %v24593_v28  ;;  %v18215_v28 = vld [vmem:[%s24333_s3 + $0x130] sm:$0xff]  }
 0x55e   :  { %17449 = vmatprep.mubr.bf16.mxu1 %v24594_v9  ;;  %17510 = vmatpush3.bf16.msra.mxu1 %v18211_v35 }
 0x55f   :  { %17511 = vmatprep.subr.bf16.mxu1 %v18212_v3 }
 0x562   :  { %17512 = vmatpush3.bf16.msra.mxu1 %v18212_v3 }
 0x563   :  { %17513 = vmatprep.subr.bf16.mxu1 %v18213_v23 }
 0x565   :  { %17450 = vmatmul.mubr.bf16.gmra.mrb[60].mxu1 %v24596_v63 }
 0x566   :  { %17453 = vmatprep.mubr.bf16.mxu1 %v24597_v33  ;;  %17514 = vmatpush3.bf16.msra.mxu1 %v18213_v23 }
 0x567   :  { %17515 = vmatprep.subr.bf16.mxu1 %v18214_v55 }
 0x56a   :  { %17516 = vmatpush3.bf16.msra.mxu1 %v18214_v55 }
 0x56b   :  { %17517 = vmatprep.subr.bf16.mxu1 %v18215_v28 }
 0x56d   :  { %17454 = vmatmul.mubr.bf16.gmra.mrb[64].mxu1 %v24600_v39 }
 0x56e   :  { %17457 = vmatprep.mubr.bf16.mxu1 %v24601_v48  ;;  %17518 = vmatpush3.bf16.msra.mxu1 %v18215_v28 }
 0x56f   :  { %17519 = vmatprep.subr.bf16.mxu1 %v18216_v10 }
 0x572   :  { %17520 = vmatpush3.bf16.msra.mxu1 %v18216_v10 }
 0x573   :  { %16411 = vmatprep.subr.bf16.mxu1 %v18217_v51 }
 0x575   :  { %17458 = vmatmul.mubr.bf16.gmra.mrb[68].mxu1 %v24602_v1 }
 0x576   :  { %17461 = vmatprep.mubr.bf16.mxu1 %v24603_v13 }
 0x57d   :  { %17462 = vmatmul.mubr.bf16.gmra.mrb[72].mxu1 %v24619_v62 }
 0x57e   :  { %17465 = vmatprep.mubr.bf16.mxu1 %v24620_v41 }
 0x585   :  { %17466 = vmatmul.mubr.bf16.gmra.mrb[76].mxu1 %v24621_v8 }
 0x586   :  { %17469 = vmatprep.mubr.bf16.mxu1 %v24622_v26 }
 0x58d   :  { %17470 = vmatmul.mubr.bf16.gmra.mrb[80].mxu1 %v24623_v19 }
 0x58e   :  { %17473 = vmatprep.mubr.bf16.mxu1 %v24624_v4 }
 0x595   :  { %17474 = vmatmul.mubr.bf16.gmra.mrb[84].mxu1 %v24625_v50 }
 0x596   :  { %17477 = vmatprep.mubr.bf16.mxu1 %v24626_v52 }
 0x59d   :  { %17478 = vmatmul.mubr.bf16.gmra.mrb[88].mxu1 %v24618_v61 }
 0x59e   :  { %17481 = vmatprep.mubr.bf16.mxu1 %v24627_v37 }
 0x5a5   :  { %17482 = vmatmul.mubr.bf16.gmra.mrb[92].mxu1 %v24628_v43 }
 0x5a6   :  { %17485 = vmatprep.mubr.bf16.mxu1 %v24629_v16 }
 0x5ad   :  { %17486 = vmatmul.mubr.bf16.gmra.mrb[96].mxu1 %v24630_v49 }
 0x5ae   :  { %17489 = vmatprep.mubr.bf16.mxu1 %v24631_v31 }
 0x5b5   :  { %17490 = vmatmul.mubr.bf16.gmra.mrb[100].mxu1 %v24632_v6 }
 0x5b6   :  { %17493 = vmatprep.mubr.bf16.mxu1 %v24633_v25 }
 0x5bd   :  { %17494 = vmatmul.mubr.bf16.gmra.mrb[104].mxu1 %v24634_v5 }
 0x5be   :  { %17497 = vmatprep.mubr.bf16.mxu1 %v23597_v15 }
 0x5c5   :  { %17498 = vmatmul.mubr.bf16.gmra.mrb[108].mxu1 %v23632_v24 }
 0x5c6   :  { %17501 = vmatprep.mubr.bf16.mxu1 %v23654_v27 }
 0x5cd   :  { %17502 = vmatmul.mubr.bf16.gmra.mrb[112].mxu1 %v23565_v18 }
 0x5ce   :  { %17521 = vmatprep.mubr.bf16.mxu1 %v24594_v9  ;;  %v18222_v9 = vld [vmem:[%s24335_s5 + $0x10] sm:$0xff]  }
 0x5d5   :  { %17522 = vmatmul.mubr.bf16.vlgmr.msra.gmra.mrb[52].mxu1 %v24596_v63  ;;  %v18224_v63 = vld [vmem:[%s24335_s5 + $0x18] sm:$0xff]  }
 0x5d6   :  { %17525 = vmatprep.mubr.bf16.mxu1 %v24597_v33  ;;  %16412 = vmatpush3.bf16.msra.mxu1 %v18218_v46  ;;  %v18225_v33 = vld [vmem:[%s24335_s5 + $0x60] sm:$0xff]  }
 0x5d7   :  { %16413 = vmatprep.subr.bf16.mxu1 %v18219_v42 }
 0x5da   :  { %16414 = vmatpush3.bf16.msra.mxu1 %v18220_v38 }
 0x5db   :  { %16415 = vmatprep.subr.bf16.mxu1 %v18221_v54 }
 0x5dd   :  { %17526 = vmatmul.mubr.bf16.gmra.mrb[56].mxu1 %v24600_v39  ;;  %v18228_v39 = vld [vmem:[%s24335_s5 + $0x28] sm:$0xff]  }
 0x5de   :  { %17529 = vmatprep.mubr.bf16.mxu1 %v24601_v48  ;;  %16416 = vmatpush3.bf16.msra.mxu1 %v18222_v9  ;;  %v18229_v48 = vld [vmem:[%s24335_s5 + $0x70] sm:$0xff]  }
 0x5df   :  { %16417 = vmatprep.subr.bf16.mxu1 %v18223_v40 }
 0x5e2   :  { %16418 = vmatpush3.bf16.msra.mxu1 %v18224_v63 }
 0x5e3   :  { %16419 = vmatprep.subr.bf16.mxu1 %v18225_v33 }
 0x5e5   :  { %17530 = vmatmul.mubr.bf16.gmra.mrb[60].mxu1 %v24602_v1  ;;  %v18231_v1 = vld [vmem:[%s24335_s5 + $0x78] sm:$0xff]  }
 0x5e6   :  { %17533 = vmatprep.mubr.bf16.mxu1 %v24603_v13  ;;  %16420 = vmatpush3.bf16.msra.mxu1 %v18226_v0  ;;  %v18232_v13 = vld [vmem:[%s24335_s5 + $0x38] sm:$0xff]  }
 0x5e7   :  { %16421 = vmatprep.subr.bf16.mxu1 %v18227_v60 }
 0x5ea   :  { %16422 = vmatpush3.bf16.msra.mxu1 %v18228_v39 }
 0x5eb   :  { %16423 = vmatprep.subr.bf16.mxu1 %v18229_v48 }
 0x5ed   :  { %17534 = vmatmul.mubr.bf16.gmra.mrb[64].mxu1 %v24619_v62  ;;  %v24636_v62 = vld [vmem:[#allocation45_spill] sm:$0xff] }
 0x5ee   :  { %17537 = vmatprep.mubr.bf16.mxu1 %v24620_v41  ;;  %16424 = vmatpush3.bf16.msra.mxu1 %v18230_v12 }
 0x5ef   :  { %16425 = vmatprep.subr.bf16.mxu1 %v18231_v1 }
 0x5f2   :  { %16426 = vmatpush3.bf16.msra.mxu1 %v18232_v13 }
 0x5f3   :  { %16433 = vmatprep.subr.bf16.mxu1 %v18233_v53 }
 0x5f5   :  { %17538 = vmatmul.mubr.bf16.gmra.mrb[68].mxu1 %v24621_v8  ;;  %v24639_v8 = vld [vmem:[#allocation51_spill] sm:$0xff] }
 0x5f6   :  { %17541 = vmatprep.mubr.bf16.mxu1 %v24622_v26 }
 0x5fd   :  { %17542 = vmatmul.mubr.bf16.gmra.mrb[72].mxu1 %v24623_v19 }
 0x5fe   :  { %17545 = vmatprep.mubr.bf16.mxu1 %v24624_v4 }
 0x605   :  { %17546 = vmatmul.mubr.bf16.gmra.mrb[76].mxu1 %v24625_v50 }
 0x606   :  { %17549 = vmatprep.mubr.bf16.mxu1 %v24626_v52 }
 0x60d   :  { %17550 = vmatmul.mubr.bf16.gmra.mrb[80].mxu1 %v24618_v61  ;;  %v24635_v61 = vld [vmem:[#allocation44_spill] sm:$0xff] }
 0x60e   :  { %17553 = vmatprep.mubr.bf16.mxu1 %v24627_v37  ;;  %v24637_v41 = vcombine.low %v24635_v61, %v24636_v62 }
 0x615   :  { %17554 = vmatmul.mubr.bf16.gmra.mrb[84].mxu1 %v24628_v43 }
 0x616   :  { %17557 = vmatprep.mubr.bf16.mxu1 %v24629_v16 }
 0x61d   :  { %17558 = vmatmul.mubr.bf16.gmra.mrb[88].mxu1 %v24630_v49 }
 0x61e   :  { %17561 = vmatprep.mubr.bf16.mxu1 %v24631_v31 }
 0x625   :  { %17562 = vmatmul.mubr.bf16.gmra.mrb[92].mxu1 %v24632_v6 }
 0x626   :  { %17565 = vmatprep.mubr.bf16.mxu1 %v24633_v25 }
 0x62d   :  { %17566 = vmatmul.mubr.bf16.gmra.mrb[96].mxu1 %v24634_v5 }
 0x62e   :  { %17569 = vmatprep.mubr.bf16.mxu1 %v23597_v15  ;;  %v24638_v15 = vld [vmem:[#allocation46_spill] sm:$0xff] }
 0x62f   :  { %v24640_v26 = vcombine.low %v24638_v15, %v24639_v8 }
 0x635   :  { %17570 = vmatmul.mubr.bf16.gmra.mrb[100].mxu1 %v23632_v24  ;;  %v24646_v24 = vcombine.low %v24644_v21, %v24645_v17  ;;  %v18235_v17 = vld [vmem:[%s24335_s5 + $0xc8] sm:$0xff]  }
 0x636   :  { %17573 = vmatprep.mubr.bf16.mxu1 %v23654_v27 }
 0x63d   :  { %17574 = vmatmul.mubr.bf16.gmra.mrb[104].mxu1 %v23565_v18 }
 0x63e   :  { %17577 = vmatprep.mubr.bf16.mxu1 %v24637_v41 }
 0x645   :  { %17578 = vmatmul.mubr.bf16.gmra.mrb[108].mxu1 %v24640_v26 }
 0x646   :  { %17581 = vmatprep.mubr.bf16.mxu1 %v24643_v14 }
 0x64d   :  { %17582 = vmatmul.mubr.bf16.gmra.mrb[112].mxu1 %v24646_v24 }
 0x6a8   :  { %v17523_v18 = vpop.f32.mrb[52].mxu1 }
 0x6a9   :  { %v11408_v22 = vpop.f32.mrb[53].mxu1  ;;  %v11736_v7 = vadd.f32 %v17523_v18, %v23815_v47 }
 0x6aa   :  { %v17524_v59 = vpop.f32.mrb[54].mxu1  ;;  %v11734_v30 = vadd.f32 %v23815_v47, %v11408_v22 }
 0x6ab   :  { %v11411_v44 = vpop.f32.mrb[55].mxu1  ;;  %v11737_v19 = vadd.f32 %v17524_v59, %v23815_v47  ;;  %v11800_v4 = vmax.f32 %v11736_v7, 0.0  ;;  %v18236_v7 = vld [vmem:[%s24335_s5 + $0x88] sm:$0xff]  }
 0x6ac   :  { %v11735_v11 = vadd.f32 %v23815_v47, %v11411_v44  ;;  %v11798_v27 = vmax.f32 %v11734_v30, 0.0 }
 0x6ad   :  { %v11801_v37 = vmax.f32 %v11737_v19, 0.0  ;;  %v15859_v5 = vpack.c.bf16 %v11800_v4, %v11800_v4  ;;  %v18237_v4 = vld [vmem:[%s24335_s5 + $0xd0] sm:$0xff]  }
 0x6ae   :  { %v11799_v31 = vmax.f32 %v11735_v11, 0.0  ;;  %v15857_v23 = vpack.c.bf16 %v11798_v27, %v11798_v27 }
 0x6af   :  { %v15860_v51 = vpack.c.bf16 %v11801_v37, %v11801_v37 }
 0x6b0   :  { %v17527_v45 = vpop.f32.mrb[56].mxu1  ;;  %v15858_v54 = vpack.c.bf16 %v11799_v31, %v11799_v31  ;;  %v18240_v31 = vld [vmem:[%s24335_s5 + $0x98] sm:$0xff]  }
 0x6b1   :  { %v11424_v20 = vpop.f32.mrb[57].mxu1  ;;  %v11740_v32 = vadd.f32 %v17527_v45, %v23815_v47 }
 0x6b2   :  { %v17528_v57 = vpop.f32.mrb[58].mxu1  ;;  %v11738_v55 = vadd.f32 %v23815_v47, %v11424_v20 }
 0x6b3   :  { %v11427_v34 = vpop.f32.mrb[59].mxu1  ;;  %v11741_v46 = vadd.f32 %v17528_v57, %v23815_v47  ;;  %v11804_v0 = vmax.f32 %v11740_v32, 0.0 }
 0x6b4   :  { %v11739_v9 = vadd.f32 %v23815_v47, %v11427_v34  ;;  %v11802_v12 = vmax.f32 %v11738_v55, 0.0 }
 0x6b5   :  { %v11805_v62 = vmax.f32 %v11741_v46, 0.0  ;;  %v15863_v24 = vpack.c.bf16 %v11804_v0, %v11804_v0 }
 0x6b6   :  { %v11803_v29 = vmax.f32 %v11739_v9, 0.0  ;;  %v15861_v59 = vpack.c.bf16 %v11802_v12, %v11802_v12 }
 0x6b7   :  { %v15864_v20 = vpack.c.bf16 %v11805_v62, %v11805_v62 }
 0x6b8   :  { %v17531_v36 = vpop.f32.mrb[60].mxu1  ;;  %v15862_v30 = vpack.c.bf16 %v11803_v29, %v11803_v29 }
 0x6b9   :  { %v11744_v56 = vadd.f32 %v17531_v36, %v23815_v47  ;;  %v11440_v2 = vpop.f32.mrb[61].mxu1 }
 0x6ba   :  { %v11742_v50 = vadd.f32 %v23815_v47, %v11440_v2  ;;  %v17532_v52 = vpop.f32.mrb[62].mxu1 }
 0x6bb   :  { %v11808_v43 = vmax.f32 %v11744_v56, 0.0  ;;  %v11745_v16 = vadd.f32 %v17532_v52, %v23815_v47  ;;  %v11443_v49 = vpop.f32.mrb[63].mxu1 }
 0x6bc   :  { %v11806_v6 = vmax.f32 %v11742_v50, 0.0  ;;  %v11743_v25 = vadd.f32 %v23815_v47, %v11443_v49  ;;  %v18239_v49 = vld [vmem:[%s24335_s5 + $0xd8] sm:$0xff]  }
 0x6bd   :  { %v15867_v35 = vpack.c.bf16 %v11808_v43, %v11808_v43  ;;  %v11809_v3 = vmax.f32 %v11745_v16, 0.0  ;;  %v18238_v43 = vld [vmem:[%s24335_s5 + $0x90] sm:$0xff]  }
 0x6be   :  { %v15865_v28 = vpack.c.bf16 %v11806_v6, %v11806_v6  ;;  %v11807_v10 = vmax.f32 %v11743_v25, 0.0  ;;  %v18241_v25 = vld [vmem:[%s24335_s5 + $0xe0] sm:$0xff]  }
 0x6bf   :  { %v12120_v42 = vmax.bf16 %v15867_v35, %v15859_v5  ;;  %v15868_v38 = vpack.c.bf16 %v11809_v3, %v11809_v3  ;;  %v18242_v3 = vld [vmem:[%s24335_s5 + $0xa0] sm:$0xff]  }
 0x6c0   :  { %v12118_v40 = vmax.bf16 %v15865_v28, %v15857_v23  ;;  %v15866_v63 = vpack.c.bf16 %v11807_v10, %v11807_v10  ;;  %v17535_v33 = vpop.f32.mrb[64].mxu1  ;;  %v18243_v23 = vld [vmem:[%s24335_s5 + $0xe8] sm:$0xff]  }
 0x6c1   :  { %v12121_v60 = vmax.bf16 %v15868_v38, %v15860_v51  ;;  %v11748_v39 = vadd.f32 %v17535_v33, %v23815_v47  ;;  %v11456_v48 = vpop.f32.mrb[65].mxu1  ;;  %v18244_v51 = vld [vmem:[%s24335_s5 + $0xa8] sm:$0xff]   ;;  %v18245_v38 = vld [vmem:[%s24335_s5 + $0xf0] sm:$0xff]  }
 0x6c2   :  { %v12119_v1 = vmax.bf16 %v15866_v63, %v15858_v54  ;;  %v11746_v13 = vadd.f32 %v23815_v47, %v11456_v48  ;;  %v17536_v61 = vpop.f32.mrb[66].mxu1 }
 0x6c3   :  { %v11812_v41 = vmax.f32 %v11748_v39, 0.0  ;;  %v11749_v15 = vadd.f32 %v17536_v61, %v23815_v47  ;;  %v11459_v8 = vpop.f32.mrb[67].mxu1  ;;  %v12151_v26 = vmax.bf16 %v12121_v60, %v12120_v42 }
 0x6c4   :  { %v12150_v14 = vmax.bf16 %v12119_v1, %v12118_v40  ;;  %v11810_v53 = vmax.f32 %v11746_v13, 0.0  ;;  %v11747_v21 = vadd.f32 %v23815_v47, %v11459_v8  ;;  %v18246_v1 = vld [vmem:[%s24335_s5 + $0xb0] sm:$0xff]  }
 0x6c5   :  { %v15871_v18 = vpack.c.bf16 %v11812_v41, %v11812_v41  ;;  %v11813_v22 = vmax.f32 %v11749_v15, 0.0  ;;  %13229 = vmatprep.mubr.bf16.mxu1 %v12151_v26  ;;  %v18247_v41 = vld [vmem:[%s24335_s5 + $0xf8] sm:$0xff]  }
 0x6c6   :  { %v15869_v44 = vpack.c.bf16 %v11810_v53, %v11810_v53  ;;  %v11811_v45 = vmax.f32 %v11747_v21, 0.0  ;;  %13230 = vmatmul.mubr.bf16.vlgmr.msra.gmra.mrb[116].mxu1 %v12150_v14 }
 0x6c7   :  { %v12124_v57 = vmax.bf16 %v15871_v18, %v15863_v24  ;;  %v15872_v34 = vpack.c.bf16 %v11813_v22, %v11813_v22  ;;  %16434 = vmatpush3.bf16.msra.mxu1 %v18234_v58 }
 0x6c8   :  { %v12122_v19 = vmax.bf16 %v15869_v44, %v15861_v59  ;;  %v15870_v11 = vpack.c.bf16 %v11811_v45, %v11811_v45  ;;  %v17539_v36 = vpop.f32.mrb[68].mxu1  ;;  %16435 = vmatprep.subr.bf16.mxu1 %v18235_v17  ;;  %v18248_v59 = vld [vmem:[%s24335_s5 + $0xb8] sm:$0xff]  }
 0x6c9   :  { %v12125_v56 = vmax.bf16 %v15872_v34, %v15864_v20  ;;  %v11472_v2 = vpop.f32.mrb[69].mxu1  ;;  %v11752_v55 = vadd.f32 %v17539_v36, %v23815_v47 }
 0x6ca   :  { %v12123_v27 = vmax.bf16 %v15870_v11, %v15862_v30  ;;  %v17540_v50 = vpop.f32.mrb[70].mxu1  ;;  %v11750_v28 = vadd.f32 %v23815_v47, %v11472_v2 }
 0x6cb   :  { %16436 = vmatpush3.bf16.msra.mxu1 %v18236_v7  ;;  %v11475_v52 = vpop.f32.mrb[71].mxu1  ;;  %v12153_v37 = vmax.bf16 %v12125_v56, %v12124_v57  ;;  %v11753_v10 = vadd.f32 %v17540_v50, %v23815_v47  ;;  %v11816_v54 = vmax.f32 %v11752_v55, 0.0  ;;  %v18249_v7 = vld [vmem:[%s24335_s5 + $0x140] sm:$0xff]  }
 0x6cc   :  { %v23848_v16 = vmax.bf16 %v12123_v27, %v12122_v19  ;;  %16437 = vmatprep.subr.bf16.mxu1 %v18237_v4  ;;  %v11751_v46 = vadd.f32 %v23815_v47, %v11475_v52  ;;  %v11814_v63 = vmax.f32 %v11750_v28, 0.0 }
 0x6cd   :  { %13269 = vmatprep.mubr.bf16.mxu1 %v12153_v37  ;;  %v11817_v60 = vmax.f32 %v11753_v10, 0.0  ;;  %v15875_v15 = vpack.c.bf16 %v11816_v54, %v11816_v54  ;;  %v18252_v54 = vld [vmem:[%s24335_s5 + $0x108] sm:$0xff]  }
 0x6ce   :  { %v11815_v13 = vmax.f32 %v11751_v46, 0.0  ;;  %v15873_v29 = vpack.c.bf16 %v11814_v63, %v11814_v63 }
 0x6cf   :  { %16438 = vmatpush3.bf16.msra.mxu1 %v18238_v43  ;;  %v15876_v17 = vpack.c.bf16 %v11817_v60, %v11817_v60 }
 0x6d0   :  { %v17543_v6 = vpop.f32.mrb[72].mxu1  ;;  %16439 = vmatprep.subr.bf16.mxu1 %v18239_v49  ;;  %v15874_v44 = vpack.c.bf16 %v11815_v13, %v11815_v13  ;;  %v18250_v49 = vld [vmem:[%s24335_s5 + $0x100] sm:$0xff]  }
 0x6d1   :  { %v11488_v5 = vpop.f32.mrb[73].mxu1  ;;  %v11756_v8 = vadd.f32 %v17543_v6, %v23815_v47 }
 0x6d2   :  { %v17544_v32 = vpop.f32.mrb[74].mxu1  ;;  %v11754_v14 = vadd.f32 %v23815_v47, %v11488_v5 }
 0x6d3   :  { %16440 = vmatpush3.bf16.msra.mxu1 %v18240_v31  ;;  %v11491_v35 = vpop.f32.mrb[75].mxu1  ;;  %v11757_v24 = vadd.f32 %v17544_v32, %v23815_v47  ;;  %v11820_v30 = vmax.f32 %v11756_v8, 0.0  ;;  %v18257_v8 = vld [vmem:[%s24335_s5 + $0x160] sm:$0xff]  }
 0x6d4   :  { %16441 = vmatprep.subr.bf16.mxu1 %v18241_v25  ;;  %v11755_v45 = vadd.f32 %v23815_v47, %v11491_v35  ;;  %v11818_v4 = vmax.f32 %v11754_v14, 0.0  ;;  %v18251_v35 = vld [vmem:[%s24335_s5 + $0x148] sm:$0xff]   ;;  %v18258_v14 = vld [vmem:[%s24335_s5 + $0x120] sm:$0xff]  }
 0x6d5   :  { %v11821_v50 = vmax.f32 %v11757_v24, 0.0 }
 0x6d6   :  { %v11819_v6 = vmax.f32 %v11755_v45, 0.0  ;;  %v15877_v28 = vpack.c.bf16 %v11818_v4, %v11818_v4 }
 0x6d7   :  { %16442 = vmatpush3.bf16.msra.mxu1 %v18242_v3  ;;  %v15879_v3 = vpack.c.bf16 %v11820_v30, %v11820_v30  ;;  %v15880_v46 = vpack.c.bf16 %v11821_v50, %v11821_v50 }
 0x6d8   :  { %v17547_v42 = vpop.f32.mrb[76].mxu1  ;;  %16443 = vmatprep.subr.bf16.mxu1 %v18243_v23 }
 0x6d9   :  { %v11760_v9 = vadd.f32 %v17547_v42, %v23815_v47  ;;  %v11504_v40 = vpop.f32.mrb[77].mxu1 }
 0x6da   :  { %v11758_v33 = vadd.f32 %v23815_v47, %v11504_v40  ;;  %v17548_v0 = vpop.f32.mrb[78].mxu1 }
 0x6db   :  { %v11824_v39 = vmax.f32 %v11760_v9, 0.0  ;;  %v11761_v48 = vadd.f32 %v17548_v0, %v23815_v47  ;;  %16444 = vmatpush3.bf16.msra.mxu1 %v18244_v51  ;;  %v11507_v12 = vpop.f32.mrb[79].mxu1  ;;  %v15878_v9 = vpack.c.bf16 %v11819_v6, %v11819_v6  ;;  %v18253_v0 = vld [vmem:[%s24335_s5 + $0x150] sm:$0xff]  }
 0x6dc   :  { %v11822_v61 = vmax.f32 %v11758_v33, 0.0  ;;  %v11759_v62 = vadd.f32 %v23815_v47, %v11507_v12  ;;  %16445 = vmatprep.subr.bf16.mxu1 %v18245_v38 }
 0x6dd   :  { %v15883_v26 = vpack.c.bf16 %v11824_v39, %v11824_v39  ;;  %v11825_v58 = vmax.f32 %v11761_v48, 0.0 }
 0x6de   :  { %v15881_v53 = vpack.c.bf16 %v11822_v61, %v11822_v61  ;;  %v11823_v21 = vmax.f32 %v11759_v62, 0.0  ;;  %v18255_v62 = vld [vmem:[%s24335_s5 + $0x158] sm:$0xff]  }
 0x6df   :  { %v12128_v18 = vmax.bf16 %v15883_v26, %v15875_v15  ;;  %v15884_v22 = vpack.c.bf16 %v11825_v58, %v11825_v58  ;;  %16446 = vmatpush3.bf16.msra.mxu1 %v18246_v1  ;;  %v18254_v1 = vld [vmem:[%s24335_s5 + $0x110] sm:$0xff]  }
 0x6e0   :  { %v12126_v20 = vmax.bf16 %v15881_v53, %v15873_v29  ;;  %v15882_v57 = vpack.c.bf16 %v11823_v21, %v11823_v21  ;;  %v17551_v34 = vpop.f32.mrb[80].mxu1  ;;  %16447 = vmatprep.subr.bf16.mxu1 %v18247_v41  ;;  %v18256_v41 = vld [vmem:[%s24335_s5 + $0x118] sm:$0xff]   ;;  %v18259_v53 = vld [vmem:[%s24335_s5 + $0x168] sm:$0xff]  }
 0x6e1   :  { %v12129_v19 = vmax.bf16 %v15884_v22, %v15876_v17  ;;  %v11764_v11 = vadd.f32 %v17551_v34, %v23815_v47  ;;  %v11520_v36 = vpop.f32.mrb[81].mxu1 }
 0x6e2   :  { %v12127_v56 = vmax.bf16 %v15882_v57, %v15874_v44  ;;  %v11762_v2 = vadd.f32 %v23815_v47, %v11520_v36  ;;  %v17552_v27 = vpop.f32.mrb[82].mxu1  ;;  %v18261_v44 = vld [vmem:[%s24335_s5 + $0x170] sm:$0xff]  }
 0x6e3   :  { %v11828_v52 = vmax.f32 %v11764_v11, 0.0  ;;  %v11765_v37 = vadd.f32 %v17552_v27, %v23815_v47  ;;  %16448 = vmatpush3.bf16.msra.mxu1 %v18248_v59  ;;  %v11523_v43 = vpop.f32.mrb[83].mxu1  ;;  %v12155_v31 = vmax.bf16 %v12129_v19, %v12128_v18  ;;  %v18260_v18 = vld [vmem:[%s24335_s5 + $0x128] sm:$0xff]  }
 0x6e4   :  { %v23901_v25 = vmax.bf16 %v12127_v56, %v12126_v20  ;;  %v11826_v5 = vmax.f32 %v11762_v2, 0.0  ;;  %v11763_v32 = vadd.f32 %v23815_v47, %v11523_v43  ;;  %16455 = vmatprep.subr.bf16.mxu1 %v18249_v7  ;;  %v18262_v56 = vld [vmem:[%s24335_s5 + $0x130] sm:$0xff]  }
 0x6e5   :  { %v15887_v23 = vpack.c.bf16 %v11828_v52, %v11828_v52  ;;  %v11829_v55 = vmax.f32 %v11765_v37, 0.0  ;;  %v18263_v52 = vld [vmem:[%s24335_s5 + $0x178] sm:$0xff]  }
 0x6e6   :  { %v15885_v10 = vpack.c.bf16 %v11826_v5, %v11826_v5  ;;  %v11827_v51 = vmax.f32 %v11763_v32, 0.0  ;;  %13270 = vmatmul.mubr.bf16.vlgmr.msra.gmra.mrb[120].mxu1 %v23848_v16 }
 0x6e7   :  { %v12132_v42 = vmax.bf16 %v15887_v23, %v15879_v3  ;;  %v15888_v38 = vpack.c.bf16 %v11829_v55, %v11829_v55  ;;  %16456 = vmatpush3.bf16.msra.mxu1 %v18250_v49  ;;  %13309 = vmatprep.mubr.bf16.mxu1 %v12155_v31 }
 0x6e8   :  { %v12130_v40 = vmax.bf16 %v15885_v10, %v15877_v28  ;;  %v15886_v63 = vpack.c.bf16 %v11827_v51, %v11827_v51  ;;  %v17555_v33 = vpop.f32.mrb[84].mxu1  ;;  %16457 = vmatprep.subr.bf16.mxu1 %v18251_v35  ;;  %v18264_v10 = vld [vmem:[%s24335_s5 + $0x138] sm:$0xff]  }
 0x6e9   :  { %v12133_v60 = vmax.bf16 %v15888_v38, %v15880_v46  ;;  %v11536_v16 = vpop.f32.mrb[85].mxu1  ;;  %v11768_v21 = vadd.f32 %v17555_v33, %v23815_v47 }
 0x6ea   :  { %v12131_v39 = vmax.bf16 %v15886_v63, %v15878_v9  ;;  %v17556_v48 = vpop.f32.mrb[86].mxu1  ;;  %v11766_v17 = vadd.f32 %v23815_v47, %v11536_v16  ;;  %v18265_v9 = vld [vmem:[%s24335_s5 + $0x1c0] sm:$0xff]  }
 0x6eb   :  { %16458 = vmatpush3.bf16.msra.mxu1 %v18252_v54  ;;  %v11539_v12 = vpop.f32.mrb[87].mxu1  ;;  %v23917_v13 = vmax.bf16 %v12133_v60, %v12132_v42  ;;  %v11769_v24 = vadd.f32 %v17556_v48, %v23815_v47  ;;  %v11832_v45 = vmax.f32 %v11768_v21, 0.0 }
 0x6ec   :  { %v23919_v61 = vmax.bf16 %v12131_v39, %v12130_v40  ;;  %16459 = vmatprep.subr.bf16.mxu1 %v18253_v0  ;;  %v11767_v22 = vadd.f32 %v23815_v47, %v11539_v12  ;;  %v11830_v34 = vmax.f32 %v11766_v17, 0.0 }
 0x6ed   :  { %v11833_v19 = vmax.f32 %v11769_v24, 0.0  ;;  %v15891_v37 = vpack.c.bf16 %v11832_v45, %v11832_v45 }
 0x6ee   :  { %v11831_v2 = vmax.f32 %v11767_v22, 0.0  ;;  %v15889_v6 = vpack.c.bf16 %v11830_v34, %v11830_v34 }
 0x6ef   :  { %16460 = vmatpush3.bf16.msra.mxu1 %v18254_v1  ;;  %v15892_v3 = vpack.c.bf16 %v11833_v19, %v11833_v19 }
 0x6f0   :  { %v17559_v15 = vpop.f32.mrb[88].mxu1  ;;  %16461 = vmatprep.subr.bf16.mxu1 %v18255_v62  ;;  %v15890_v51 = vpack.c.bf16 %v11831_v2, %v11831_v2 }
 0x6f1   :  { %v11552_v26 = vpop.f32.mrb[89].mxu1  ;;  %v11772_v43 = vadd.f32 %v17559_v15, %v23815_v47  ;;  %v18266_v15 = vld [vmem:[%s24335_s5 + $0x180] sm:$0xff]  }
 0x6f2   :  { %v17560_v58 = vpop.f32.mrb[90].mxu1  ;;  %v11770_v5 = vadd.f32 %v23815_v47, %v11552_v26 }
 0x6f3   :  { %16462 = vmatpush3.bf16.msra.mxu1 %v18256_v41  ;;  %v11555_v29 = vpop.f32.mrb[91].mxu1  ;;  %v11773_v23 = vadd.f32 %v17560_v58, %v23815_v47  ;;  %v11836_v40 = vmax.f32 %v11772_v43, 0.0 }
 0x6f4   :  { %16463 = vmatprep.subr.bf16.mxu1 %v18257_v8  ;;  %v11771_v46 = vadd.f32 %v23815_v47, %v11555_v29  ;;  %v11834_v60 = vmax.f32 %v11770_v5, 0.0 }
 0x6f5   :  { %v11837_v12 = vmax.f32 %v11773_v23, 0.0  ;;  %v15895_v21 = vpack.c.bf16 %v11836_v40, %v11836_v40 }
 0x6f6   :  { %v11835_v26 = vmax.f32 %v11771_v46, 0.0  ;;  %v18277_v46 = vld [vmem:[%s24335_s5 + $0x1f0] sm:$0xff]  }
 0x6f7   :  { %16464 = vmatpush3.bf16.msra.mxu1 %v18258_v14 }
 0x6f8   :  { %v17563_v59 = vpop.f32.mrb[92].mxu1  ;;  %16465 = vmatprep.subr.bf16.mxu1 %v18259_v53  ;;  %v18267_v53 = vld [vmem:[%s24335_s5 + $0x1c8] sm:$0xff]   ;;  %v15894_v34 = vpack.c.bf16 %v11835_v26, %v11835_v26 }
 0x6f9   :  { %v11776_v20 = vadd.f32 %v17563_v59, %v23815_v47  ;;  %v11568_v57 = vpop.f32.mrb[93].mxu1 }
 0x6fa   :  { %v11774_v7 = vadd.f32 %v23815_v47, %v11568_v57  ;;  %v17564_v30 = vpop.f32.mrb[94].mxu1  ;;  %v18268_v57 = vld [vmem:[%s24335_s5 + $0x188] sm:$0xff]  }
 0x6fb   :  { %v11840_v11 = vmax.f32 %v11776_v20, 0.0  ;;  %v11777_v36 = vadd.f32 %v17564_v30, %v23815_v47  ;;  %16466 = vmatpush3.bf16.msra.mxu1 %v18260_v18  ;;  %v11571_v4 = vpop.f32.mrb[95].mxu1  ;;  %v15893_v18 = vpack.c.bf16 %v11834_v60, %v11834_v60 }
 0x6fc   :  { %v11838_v27 = vmax.f32 %v11774_v7, 0.0  ;;  %v11775_v50 = vadd.f32 %v23815_v47, %v11571_v4  ;;  %16467 = vmatprep.subr.bf16.mxu1 %v18261_v44  ;;  %v15896_v44 = vpack.c.bf16 %v11837_v12, %v11837_v12 }
 0x6fd   :  { %v15899_v49 = vpack.c.bf16 %v11840_v11, %v11840_v11  ;;  %v11841_v31 = vmax.f32 %v11777_v36, 0.0  ;;  %v18269_v11 = vld [vmem:[%s24335_s5 + $0x1d0] sm:$0xff]  }
 0x6fe   :  { %v15897_v32 = vpack.c.bf16 %v11838_v27, %v11838_v27  ;;  %v11839_v35 = vmax.f32 %v11775_v50, 0.0 }
 0x6ff   :  { %v12136_v55 = vmax.bf16 %v15899_v49, %v15891_v37  ;;  %v15900_v28 = vpack.c.bf16 %v11841_v31, %v11841_v31  ;;  %16468 = vmatpush3.bf16.msra.mxu1 %v18262_v56  ;;  %v18272_v37 = vld [vmem:[%s24335_s5 + $0x198] sm:$0xff]   ;;  %v18273_v49 = vld [vmem:[%s24335_s5 + $0x1e0] sm:$0xff]  }
 0x700   :  { %v12134_v42 = vmax.bf16 %v15897_v32, %v15889_v6  ;;  %v15898_v38 = vpack.c.bf16 %v11839_v35, %v11839_v35  ;;  %v17567_v54 = vpop.f32.mrb[96].mxu1  ;;  %16469 = vmatprep.subr.bf16.mxu1 %v18263_v52  ;;  %v18271_v52 = vld [vmem:[%s24335_s5 + $0x1d8] sm:$0xff]   ;;  %v18274_v32 = vld [vmem:[%s24335_s5 + $0x1a0] sm:$0xff]   ;;  %v18275_v35 = vld [vmem:[%s24335_s5 + $0x1e8] sm:$0xff]  }
 0x701   :  { %v12137_v63 = vmax.bf16 %v15900_v28, %v15892_v3  ;;  %v11780_v33 = vadd.f32 %v17567_v54, %v23815_v47  ;;  %v11584_v0 = vpop.f32.mrb[97].mxu1  ;;  %v18276_v28 = vld [vmem:[%s24335_s5 + $0x1a8] sm:$0xff]  }
 0x702   :  { %v12135_v16 = vmax.bf16 %v15898_v38, %v15890_v51  ;;  %v11778_v39 = vadd.f32 %v23815_v47, %v11584_v0  ;;  %v17568_v48 = vpop.f32.mrb[98].mxu1 }
 0x703   :  { %v11844_v1 = vmax.f32 %v11780_v33, 0.0  ;;  %v11781_v62 = vadd.f32 %v17568_v48, %v23815_v47  ;;  %16470 = vmatpush3.bf16.msra.mxu1 %v18264_v10  ;;  %v11587_v41 = vpop.f32.mrb[99].mxu1  ;;  %v23972_v8 = vmax.bf16 %v12137_v63, %v12136_v55 }
 0x704   :  { %v23974_v58 = vmax.bf16 %v12135_v16, %v12134_v42  ;;  %v11842_v29 = vmax.f32 %v11778_v39, 0.0  ;;  %v11779_v14 = vadd.f32 %v23815_v47, %v11587_v41  ;;  %16477 = vmatprep.subr.bf16.mxu1 %v18265_v9  ;;  %v18278_v39 = vld [vmem:[%s24335_s5 + $0x1b0] sm:$0xff]  }
 0x705   :  { %v15903_v17 = vpack.c.bf16 %v11844_v1, %v11844_v1  ;;  %v11845_v24 = vmax.f32 %v11781_v62, 0.0  ;;  %v18279_v62 = vld [vmem:[%s24335_s5 + $0x1f8] sm:$0xff]  }
 0x706   :  { %v15901_v22 = vpack.c.bf16 %v11842_v29, %v11842_v29  ;;  %v11843_v59 = vmax.f32 %v11779_v14, 0.0  ;;  %13310 = vmatmul.mubr.bf16.vlgmr.msra.gmra.mrb[124].mxu1 %v23901_v25 }
 0x707   :  { %v12140_v45 = vmax.bf16 %v15903_v17, %v15895_v21  ;;  %v15904_v20 = vpack.c.bf16 %v11845_v24, %v11845_v24  ;;  %16478 = vmatpush3.bf16.msra.mxu1 %v18266_v15  ;;  %13349 = vmatprep.mubr.bf16.mxu1 %v23917_v13  ;;  %v18270_v13 = vld [vmem:[%s24335_s5 + $0x190] sm:$0xff]  }
 0x708   :  { %v12138_v7 = vmax.bf16 %v15901_v22, %v15893_v18  ;;  %v15902_v30 = vpack.c.bf16 %v11843_v59, %v11843_v59  ;;  %v17571_v19 = vpop.f32.mrb[100].mxu1  ;;  %16479 = vmatprep.subr.bf16.mxu1 %v18267_v53 }
 0x709   :  { %v12141_v25 = vmax.bf16 %v15904_v20, %v15896_v44  ;;  %v11600_v36 = vpop.f32.mrb[101].mxu1  ;;  %v11784_v3 = vadd.f32 %v17571_v19, %v23815_v47  ;;  %v18280_v44 = vld [vmem:[%s24335_s5 + $0x1b8] sm:$0xff]  }
 0x70a   :  { %v12139_v4 = vmax.bf16 %v15902_v30, %v15894_v34  ;;  %v17572_v56 = vpop.f32.mrb[102].mxu1  ;;  %v11782_v23 = vadd.f32 %v23815_v47, %v11600_v36  ;;  %v18281_v30 = vld [vmem:[%s24335_s5 + $0x240] sm:$0xff]  }
 0x70b   :  { %16480 = vmatpush3.bf16.msra.mxu1 %v18268_v57  ;;  %v11603_v2 = vpop.f32.mrb[103].mxu1  ;;  %v23991_v27 = vmax.bf16 %v12141_v25, %v12140_v45  ;;  %v11785_v55 = vadd.f32 %v17572_v56, %v23815_v47  ;;  %v11848_v42 = vmax.f32 %v11784_v3, 0.0 }
 0x70c   :  { %v23993_v50 = vmax.bf16 %v12139_v4, %v12138_v7  ;;  %16481 = vmatprep.subr.bf16.mxu1 %v18269_v11  ;;  %v11783_v10 = vadd.f32 %v23815_v47, %v11603_v2  ;;  %v11846_v9 = vmax.f32 %v11782_v23, 0.0  ;;  %v18283_v23 = vld [vmem:[%s24335_s5 + $0x248] sm:$0xff]  }
 0x70d   :  { %v11849_v33 = vmax.f32 %v11785_v55, 0.0  ;;  %v15907_v41 = vpack.c.bf16 %v11848_v42, %v11848_v42 }
 0x70e   :  { %v11847_v48 = vmax.f32 %v11783_v10, 0.0  ;;  %v15905_v14 = vpack.c.bf16 %v11846_v9, %v11846_v9 }
 0x70f   :  { %16482 = vmatpush3.bf16.msra.mxu1 %v18270_v13  ;;  %v15908_v24 = vpack.c.bf16 %v11849_v33, %v11849_v33 }
 0x710   :  { %v17575_v43 = vpop.f32.mrb[104].mxu1  ;;  %16483 = vmatprep.subr.bf16.mxu1 %v18271_v52  ;;  %v15906_v45 = vpack.c.bf16 %v11847_v48, %v11847_v48  ;;  %v18287_v48 = vld [vmem:[%s24335_s5 + $0x258] sm:$0xff]  }
 0x711   :  { %v11616_v31 = vpop.f32.mrb[105].mxu1  ;;  %v11788_v15 = vadd.f32 %v17575_v43, %v23815_v47 }
 0x712   :  { %v17576_v6 = vpop.f32.mrb[106].mxu1  ;;  %v11786_v53 = vadd.f32 %v23815_v47, %v11616_v31  ;;  %v18282_v31 = vld [vmem:[%s24335_s5 + $0x200] sm:$0xff]  }
 0x713   :  { %16484 = vmatpush3.bf16.msra.mxu1 %v18272_v37  ;;  %v11619_v5 = vpop.f32.mrb[107].mxu1  ;;  %v11789_v18 = vadd.f32 %v17576_v6, %v23815_v47  ;;  %v11852_v19 = vmax.f32 %v11788_v15, 0.0  ;;  %v18292_v15 = vld [vmem:[%s24335_s5 + $0x228] sm:$0xff]  }
 0x714   :  { %16485 = vmatprep.subr.bf16.mxu1 %v18273_v49  ;;  %v11787_v20 = vadd.f32 %v23815_v47, %v11619_v5  ;;  %v11850_v4 = vmax.f32 %v11786_v53, 0.0  ;;  %v18296_v53 = vld [vmem:[%s24335_s5 + $0x238] sm:$0xff]  }
 0x715   :  { %v11853_v52 = vmax.f32 %v11789_v18, 0.0  ;;  %v15911_v55 = vpack.c.bf16 %v11852_v19, %v11852_v19  ;;  %v18300_v18 = vld [vmem:[%s24335_s5 + $0x288] sm:$0xff]   ;;  %v18312_v19 = vld [vmem:[%s24335_s5 + $0x2b8] sm:$0xff]  }
 0x716   :  { %v11851_v5 = vmax.f32 %v11787_v20, 0.0  ;;  %v18307_v20 = vld [vmem:[%s24335_s5 + $0x2e8] sm:$0xff]  }
 0x717   :  { %16486 = vmatpush3.bf16.msra.mxu1 %v18274_v32 }
 0x718   :  { %v17579_v51 = vpop.f32.mrb[108].mxu1  ;;  %16487 = vmatprep.subr.bf16.mxu1 %v18275_v35 }
 0x719   :  { %v11792_v38 = vadd.f32 %v17579_v51, %v23815_v47  ;;  %v11632_v54 = vpop.f32.mrb[109].mxu1  ;;  %v15909_v51 = vpack.c.bf16 %v11850_v4, %v11850_v4  ;;  %v18316_v4 = vld [vmem:[%s24335_s5 + $0x308] sm:$0xff]  }
 0x71a   :  { %v11790_v40 = vadd.f32 %v23815_v47, %v11632_v54  ;;  %v17580_v63 = vpop.f32.mrb[110].mxu1 }
 0x71b   :  { %v11856_v0 = vmax.f32 %v11792_v38, 0.0  ;;  %v11793_v60 = vadd.f32 %v17580_v63, %v23815_v47  ;;  %16488 = vmatpush3.bf16.msra.mxu1 %v18276_v28  ;;  %v11635_v16 = vpop.f32.mrb[111].mxu1  ;;  %v15912_v38 = vpack.c.bf16 %v11853_v52, %v11853_v52  ;;  %v18321_v52 = vld [vmem:[%s24335_s5 + $0x360] sm:$0xff]  }
 0x71c   :  { %v11854_v12 = vmax.f32 %v11790_v40, 0.0  ;;  %v11791_v1 = vadd.f32 %v23815_v47, %v11635_v16  ;;  %16489 = vmatprep.subr.bf16.mxu1 %v18277_v46  ;;  %v15910_v40 = vpack.c.bf16 %v11851_v5, %v11851_v5  ;;  %v18286_v16 = vld [vmem:[%s24335_s5 + $0x210] sm:$0xff]   ;;  %v18327_v5 = vld [vmem:[%s24335_s5 + $0x378] sm:$0xff]  }
 0x71d   :  { %v15915_v26 = vpack.c.bf16 %v11856_v0, %v11856_v0  ;;  %v11857_v29 = vmax.f32 %v11793_v60, 0.0  ;;  %v18285_v0 = vld [vmem:[%s24335_s5 + $0x250] sm:$0xff]  }
 0x71e   :  { %v15913_v21 = vpack.c.bf16 %v11854_v12, %v11854_v12  ;;  %v11855_v17 = vmax.f32 %v11791_v1, 0.0  ;;  %v18288_v12 = vld [vmem:[%s24335_s5 + $0x218] sm:$0xff]   ;;  %v18289_v1 = vld [vmem:[%s24335_s5 + $0x260] sm:$0xff]  }
 0x71f   :  { %v12144_v22 = vmax.bf16 %v15915_v26, %v15907_v41  ;;  %v15916_v59 = vpack.c.bf16 %v11857_v29, %v11857_v29  ;;  %16490 = vmatpush3.bf16.msra.mxu1 %v18278_v39  ;;  %v18291_v41 = vld [vmem:[%s24335_s5 + $0x268] sm:$0xff]   ;;  %v18293_v26 = vld [vmem:[%s24335_s5 + $0x270] sm:$0xff]  }
 0x720   :  { %v12142_v57 = vmax.bf16 %v15913_v21, %v15905_v14  ;;  %v15914_v34 = vpack.c.bf16 %v11855_v17, %v11855_v17  ;;  %v17583_v7 = vpop.f32.mrb[112].mxu1  ;;  %16491 = vmatprep.subr.bf16.mxu1 %v18279_v62  ;;  %v18290_v62 = vld [vmem:[%s24335_s5 + $0x220] sm:$0xff]   ;;  %v18294_v29 = vld [vmem:[%s24335_s5 + $0x230] sm:$0xff]   ;;  %v18295_v14 = vld [vmem:[%s24335_s5 + $0x278] sm:$0xff]  }
 0x721   :  { %v12145_v11 = vmax.bf16 %v15916_v59, %v15908_v24  ;;  %v11796_v25 = vadd.f32 %v17583_v7, %v23815_v47  ;;  %v11648_v36 = vpop.f32.mrb[113].mxu1  ;;  %v18297_v21 = vld [vmem:[%s24335_s5 + $0x2c0] sm:$0xff]   ;;  %v18299_v24 = vld [vmem:[%s24335_s5 + $0x2c8] sm:$0xff]   ;;  %v18302_v59 = vld [vmem:[%s24335_s5 + $0x290] sm:$0xff]  }
 0x722   :  { %v12143_v56 = vmax.bf16 %v15914_v34, %v15906_v45  ;;  %v11794_v2 = vadd.f32 %v23815_v47, %v11648_v36  ;;  %v17584_v13 = vpop.f32.mrb[114].mxu1  ;;  %v18298_v17 = vld [vmem:[%s24335_s5 + $0x280] sm:$0xff]   ;;  %v18309_v34 = vld [vmem:[%s24335_s5 + $0x2f0] sm:$0xff]   ;;  %v18315_v36 = vld [vmem:[%s24335_s5 + $0x348] sm:$0xff]  }
 0x723   :  { %v11860_v37 = vmax.f32 %v11796_v25, 0.0  ;;  %v11797_v43 = vadd.f32 %v17584_v13, %v23815_v47  ;;  %16492 = vmatpush3.bf16.msra.mxu1 %v18280_v44  ;;  %v11651_v49 = vpop.f32.mrb[115].mxu1  ;;  %v24046_v6 = vmax.bf16 %v12145_v11, %v12144_v22  ;;  %v18301_v22 = vld [vmem:[%s24335_s5 + $0x2d0] sm:$0xff]   ;;  %v18305_v44 = vld [vmem:[%s24335_s5 + $0x2e0] sm:$0xff]   ;;  %v18320_v13 = vld [vmem:[%s24335_s5 + $0x318] sm:$0xff]  }
 0x724   :  { %v24048_v32 = vmax.bf16 %v12143_v56, %v12142_v57  ;;  %v11858_v35 = vmax.f32 %v11794_v2, 0.0  ;;  %v11795_v3 = vadd.f32 %v23815_v47, %v11651_v49  ;;  %16499 = vmatprep.subr.bf16.mxu1 %v18281_v30  ;;  %v18284_v47 = vld [vmem:[%s24335_s5 + $0x208] sm:$0xff]   ;;  %v18306_v45 = vld [vmem:[%s24335_s5 + $0x2a0] sm:$0xff]   ;;  %v18310_v7 = vld [vmem:[%s24335_s5 + $0x2b0] sm:$0xff]  }
 0x725   :  { %v15919_v28 = vpack.c.bf16 %v11860_v37, %v11860_v37  ;;  %v11861_v10 = vmax.f32 %v11797_v43, 0.0  ;;  %v18308_v57 = vld [vmem:[%s24335_s5 + $0x2a8] sm:$0xff]   ;;  %v18311_v30 = vld [vmem:[%s24335_s5 + $0x2f8] sm:$0xff]   ;;  %v18313_v11 = vld [vmem:[%s24335_s5 + $0x340] sm:$0xff]  }
 0x726   :  { %v15917_v46 = vpack.c.bf16 %v11858_v35, %v11858_v35  ;;  %v11859_v42 = vmax.f32 %v11795_v3, 0.0  ;;  %13350 = vmatmul.mubr.bf16.vlgmr.msra.gmra.mrb[128].mxu1 %v23919_v61  ;;  %v18314_v25 = vld [vmem:[%s24335_s5 + $0x300] sm:$0xff]   ;;  %v18317_v56 = vld [vmem:[%s24335_s5 + $0x350] sm:$0xff]   ;;  %v18323_v43 = vld [vmem:[%s24335_s5 + $0x368] sm:$0xff]  }
 0x727   :  { %v12148_v54 = vmax.bf16 %v15919_v28, %v15911_v55  ;;  %v15920_v9 = vpack.c.bf16 %v11861_v10, %v11861_v10  ;;  %16500 = vmatpush3.bf16.msra.mxu1 %v18282_v31  ;;  %13389 = vmatprep.mubr.bf16.mxu1 %v23972_v8  ;;  %v18318_v2 = vld [vmem:[%s24335_s5 + $0x310] sm:$0xff]   ;;  %v18322_v37 = vld [vmem:[%s24335_s5 + $0x320] sm:$0xff]   ;;  %v18324_v49 = vld [vmem:[%s24335_s5 + $0x328] sm:$0xff]  }
 0x728   :  { %v12146_v63 = vmax.bf16 %v15917_v46, %v15909_v51  ;;  %v15918_v33 = vpack.c.bf16 %v11859_v42, %v11859_v42  ;;  %16501 = vmatprep.subr.bf16.mxu1 %v18283_v23  ;;  %v18325_v31 = vld [vmem:[%s24335_s5 + $0x370] sm:$0xff]   ;;  %v18328_v35 = vld [vmem:[%s24335_s5 + $0x338] sm:$0xff]   ;;  %v18329_v3 = vld [vmem:[%s24335_s5 + $0x3c0] sm:$0xff]  }
 0x729   :  { %v12149_v60 = vmax.bf16 %v15920_v9, %v15912_v38  ;;  %v18330_v23 = vld [vmem:[%s24335_s5 + $0x380] sm:$0xff]   ;;  %v18331_v55 = vld [vmem:[%s24335_s5 + $0x3c8] sm:$0xff]   ;;  %v18333_v10 = vld [vmem:[%s24335_s5 + $0x3d0] sm:$0xff]  }
 0x72a   :  { %v12147_v61 = vmax.bf16 %v15918_v33, %v15910_v40  ;;  %v18332_v28 = vld [vmem:[%s24335_s5 + $0x388] sm:$0xff]   ;;  %v18334_v51 = vld [vmem:[%s24335_s5 + $0x390] sm:$0xff]   ;;  %v18336_v46 = vld [vmem:[%s24335_s5 + $0x398] sm:$0xff]  }
 0x72b   :  { %16502 = vmatpush3.bf16.msra.mxu1 %v18284_v47  ;;  %v24065_v8 = vmax.bf16 %v12149_v60, %v12148_v54  ;;  %v18337_v42 = vld [vmem:[%s24335_s5 + $0x3e0] sm:$0xff]   ;;  %v18339_v54 = vld [vmem:[%s24335_s5 + $0x3e8] sm:$0xff]   ;;  %v18341_v47 = vld [vmem:[%s24335_s5 + $0x3f0] sm:$0xff]  }
 0x72c   :  { %v24067_v39 = vmax.bf16 %v12147_v61, %v12146_v63  ;;  %16503 = vmatprep.subr.bf16.mxu1 %v18285_v0  ;;  %v18338_v38 = vld [vmem:[%s24335_s5 + $0x3a0] sm:$0xff]   ;;  %v18340_v9 = vld [vmem:[%s24335_s5 + $0x3a8] sm:$0xff]   ;;  %v18342_v60 = vld [vmem:[%s24335_s5 + $0x3b0] sm:$0xff]  }
 0x72f   :  { %16504 = vmatpush3.bf16.msra.mxu1 %v18286_v16  ;;  %v18343_v16 = vld [vmem:[%s24335_s5 + $0x3f8] sm:$0xff]  }
 0x730   :  { %16505 = vmatprep.subr.bf16.mxu1 %v18287_v48  ;;  %v15134_v48 = vld [vmem:[%s24337_s6] ss:$0 sm:$0xff] }
 0x733   :  { %16506 = vmatpush3.bf16.msra.mxu1 %v18288_v12 }
 0x734   :  { %16507 = vmatprep.subr.bf16.mxu1 %v18289_v1 }
 0x737   :  { %16508 = vmatpush3.bf16.msra.mxu1 %v18290_v62 }
 0x738   :  { %16509 = vmatprep.subr.bf16.mxu1 %v18291_v41 }
 0x73b   :  { %16510 = vmatpush3.bf16.msra.mxu1 %v18292_v15 }
 0x73c   :  { %16511 = vmatprep.subr.bf16.mxu1 %v18293_v26 }
 0x73f   :  { %16512 = vmatpush3.bf16.msra.mxu1 %v18294_v29 }
 0x740   :  { %16513 = vmatprep.subr.bf16.mxu1 %v18295_v14 }
 0x743   :  { %16514 = vmatpush3.bf16.msra.mxu1 %v18296_v53 }
 0x744   :  { %16521 = vmatprep.subr.bf16.mxu1 %v18297_v21 }
 0x746   :  { %13390 = vmatmul.mubr.bf16.vlgmr.msra.gmra.mrb[132].mxu1 %v23974_v58  ;;  %v18303_v58 = vld [vmem:[%s24335_s5 + $0x2d8] sm:$0xff]  }
 0x747   :  { %16522 = vmatpush3.bf16.msra.mxu1 %v18298_v17  ;;  %13429 = vmatprep.mubr.bf16.mxu1 %v23991_v27  ;;  %v18304_v27 = vld [vmem:[%s24335_s5 + $0x298] sm:$0xff]  }
 0x748   :  { %16523 = vmatprep.subr.bf16.mxu1 %v18299_v24 }
 0x74b   :  { %16524 = vmatpush3.bf16.msra.mxu1 %v18300_v18 }
 0x74c   :  { %16525 = vmatprep.subr.bf16.mxu1 %v18301_v22  ;;  %v18374_v22 = vmov 0.0  }
 0x74f   :  { %16526 = vmatpush3.bf16.msra.mxu1 %v18302_v59  ;;  %v18346_v59 = vld [vmem:[%s24338_s7 + $0x8] sm:$0xff]  }
 0x750   :  { %16527 = vmatprep.subr.bf16.mxu1 %v18303_v58  ;;  %v18347_v58 = vld [vmem:[%s24338_s7 + $0x10] sm:$0xff]  }
 0x753   :  { %16528 = vmatpush3.bf16.msra.mxu1 %v18304_v27  ;;  %v18348_v27 = vld [vmem:[%s24338_s7 + $0x18] sm:$0xff]  }
 0x754   :  { %16529 = vmatprep.subr.bf16.mxu1 %v18305_v44  ;;  %v18349_v44 = vld [vmem:[%s24338_s7 + $0x20] sm:$0xff]  }
 0x757   :  { %16530 = vmatpush3.bf16.msra.mxu1 %v18306_v45  ;;  %v18350_v45 = vld [vmem:[%s24338_s7 + $0x28] sm:$0xff]  }
 0x758   :  { %16531 = vmatprep.subr.bf16.mxu1 %v18307_v20 }
 0x75b   :  { %16532 = vmatpush3.bf16.msra.mxu1 %v18308_v57 }
 0x75c   :  { %16533 = vmatprep.subr.bf16.mxu1 %v18309_v34 }
 0x75f   :  { %16534 = vmatpush3.bf16.msra.mxu1 %v18310_v7 }
 0x760   :  { %16535 = vmatprep.subr.bf16.mxu1 %v18311_v30 }
 0x763   :  { %16536 = vmatpush3.bf16.msra.mxu1 %v18312_v19 }
 0x764   :  { %16543 = vmatprep.subr.bf16.mxu1 %v18313_v11  ;;  %v18351_v11 = vld [vmem:[%s24338_s7 + $0x30] sm:$0xff]  }
 0x766   :  { %13430 = vmatmul.mubr.bf16.vlgmr.msra.gmra.mrb[136].mxu1 %v23993_v50  ;;  %v18319_v50 = vld [vmem:[%s24335_s5 + $0x358] sm:$0xff]  }
 0x767   :  { %16544 = vmatpush3.bf16.msra.mxu1 %v18314_v25  ;;  %13469 = vmatprep.mubr.bf16.mxu1 %v24046_v6  ;;  %v18326_v6 = vld [vmem:[%s24335_s5 + $0x330] sm:$0xff]   ;;  %v18352_v25 = vld [vmem:[%s24338_s7 + $0x38] sm:$0xff]  }
 0x768   :  { %16545 = vmatprep.subr.bf16.mxu1 %v18315_v36 }
 0x76b   :  { %16546 = vmatpush3.bf16.msra.mxu1 %v18316_v4 }
 0x76c   :  { %16547 = vmatprep.subr.bf16.mxu1 %v18317_v56 }
 0x76f   :  { %16548 = vmatpush3.bf16.msra.mxu1 %v18318_v2 }
 0x770   :  { %16549 = vmatprep.subr.bf16.mxu1 %v18319_v50 }
 0x773   :  { %16550 = vmatpush3.bf16.msra.mxu1 %v18320_v13 }
 0x774   :  { %16551 = vmatprep.subr.bf16.mxu1 %v18321_v52 }
 0x777   :  { %16552 = vmatpush3.bf16.msra.mxu1 %v18322_v37 }
 0x778   :  { %16553 = vmatprep.subr.bf16.mxu1 %v18323_v43 }
 0x77b   :  { %16554 = vmatpush3.bf16.msra.mxu1 %v18324_v49 }
 0x77c   :  { %16555 = vmatprep.subr.bf16.mxu1 %v18325_v31 }
 0x77f   :  { %16556 = vmatpush3.bf16.msra.mxu1 %v18326_v6 }
 0x780   :  { %16557 = vmatprep.subr.bf16.mxu1 %v18327_v5 }
 0x783   :  { %16558 = vmatpush3.bf16.msra.mxu1 %v18328_v35 }
 0x784   :  { %16565 = vmatprep.subr.bf16.mxu1 %v18329_v3 }
 0x786   :  { %13470 = vmatmul.mubr.bf16.vlgmr.msra.gmra.mrb[140].mxu1 %v24048_v32  ;;  %v18335_v32 = vld [vmem:[%s24335_s5 + $0x3d8] sm:$0xff]  }
 0x787   :  { %16566 = vmatpush3.bf16.msra.mxu1 %v18330_v23  ;;  %13509 = vmatprep.mubr.bf16.mxu1 %v24065_v8  ;;  %v18344_v8 = vld [vmem:[%s24335_s5 + $0x3b8] sm:$0xff]  }
 0x788   :  { %16567 = vmatprep.subr.bf16.mxu1 %v18331_v55 }
 0x78b   :  { %16568 = vmatpush3.bf16.msra.mxu1 %v18332_v28 }
 0x78c   :  { %16569 = vmatprep.subr.bf16.mxu1 %v18333_v10 }
 0x78f   :  { %16570 = vmatpush3.bf16.msra.mxu1 %v18334_v51 }
 0x790   :  { %16571 = vmatprep.subr.bf16.mxu1 %v18335_v32 }
 0x793   :  { %16572 = vmatpush3.bf16.msra.mxu1 %v18336_v46 }
 0x794   :  { %16573 = vmatprep.subr.bf16.mxu1 %v18337_v42 }
 0x797   :  { %16574 = vmatpush3.bf16.msra.mxu1 %v18338_v38 }
 0x798   :  { %16575 = vmatprep.subr.bf16.mxu1 %v18339_v54 }
 0x799   :  { %v16427_v40 = vpop.f32.mrb[116].mxu1 }
 0x79a   :  { %v16428_v63 = vpop.f32.mrb[117].mxu1 }
 0x79b   :  { %v16429_v33 = vadd.f32 %v16428_v63, %v16427_v40  ;;  %16576 = vmatpush3.bf16.msra.mxu1 %v18340_v9  ;;  %v16430_v0 = vpop.f32.mrb[118].mxu1  ;;  %v18353_v9 = vld [vmem:[%s24339_s9] sm:$0xff]   ;;  %v18354_v40 = vld [vmem:[%s24339_s9 + $0x8] sm:$0xff]   ;;  %v18355_v63 = vld [vmem:[%s24339_s9 + $0x10] sm:$0xff]  }
 0x79c   :  { %v16431_v61 = vpop.f32.mrb[119].mxu1  ;;  %16577 = vmatprep.subr.bf16.mxu1 %v18341_v47  ;;  %v18357_v0 = vld [vmem:[%s24339_s9 + $0x20] sm:$0xff]  }
 0x79d   :  { %v13232_v62 = vadd.f32 %v16429_v33, %v15134_v48  ;;  %v18356_v33 = vld [vmem:[%s24339_s9 + $0x18] sm:$0xff]   ;;  %v18359_v61 = vld [vmem:[%s24339_s9 + $0x30] sm:$0xff]  }
 0x79f   :  { %16578 = vmatpush3.bf16.msra.mxu1 %v18342_v60  ;;  %v18358_v60 = vld [vmem:[%s24339_s9 + $0x28] sm:$0xff]  }
 0x7a0   :  { %16579 = vmatprep.subr.bf16.mxu1 %v18343_v16  ;;  %v18360_v16 = vld [vmem:[%s24339_s9 + $0x38] sm:$0xff]  }
 0x7a3   :  { %16580 = vmatpush3.bf16.msra.mxu1 %v18344_v8  ;;  %v15263_v8 = vld [vmem:[%s24340_s8] ss:$0 sm:$0xff] }
 0x7a4   :  { %17585 = vmatprep.subr.bf16.mxu1 %v18374_v22 }
 0x7a6   :  { %13510 = vmatmul.mubr.bf16.vlgmr.msra.gmra.mrb[144].mxu1 %v24067_v39  ;;  %v18345_v39 = vld [vmem:[%s24338_s7] sm:$0xff]  }
 0x7a7   :  { %17586 = vmatpush3.bf16.msra.mxu1 %v18345_v39  ;;  %17601 = vmatprep.mubr.msk.bf16.mxu1 %vm18375_vm0, %v18374_v22 }
 0x7a8   :  { %17587 = vmatprep.subr.bf16.mxu1 %v18374_v22 }
 0x7ab   :  { %17588 = vmatpush3.bf16.msra.mxu1 %v18346_v59 }
 0x7ac   :  { %17589 = vmatprep.subr.bf16.mxu1 %v18374_v22 }
 0x7af   :  { %17590 = vmatpush3.bf16.msra.mxu1 %v18347_v58 }
 0x7b0   :  { %17591 = vmatprep.subr.bf16.mxu1 %v18374_v22 }
 0x7b3   :  { %17592 = vmatpush3.bf16.msra.mxu1 %v18348_v27 }
 0x7b4   :  { %17593 = vmatprep.subr.bf16.mxu1 %v18374_v22 }
 0x7b7   :  { %17594 = vmatpush3.bf16.msra.mxu1 %v18349_v44 }
 0x7b8   :  { %17595 = vmatprep.subr.bf16.mxu1 %v18374_v22 }
 0x7b9   :  { %v16449_v12 = vpop.f32.mrb[120].mxu1 }
 0x7ba   :  { %v16450_v1 = vpop.f32.mrb[121].mxu1 }
 0x7bb   :  { %v16451_v41 = vadd.f32 %v16450_v1, %v16449_v12  ;;  %v16452_v15 = vpop.f32.mrb[122].mxu1  ;;  %17596 = vmatpush3.bf16.msra.mxu1 %v18350_v45 }
 0x7bc   :  { %v16453_v26 = vpop.f32.mrb[123].mxu1  ;;  %17597 = vmatprep.subr.bf16.mxu1 %v18374_v22 }
 0x7bd   :  { %v13272_v29 = vadd.f32 %v16451_v41, %v13232_v62 }
 0x7bf   :  { %17598 = vmatpush3.bf16.msra.mxu1 %v18351_v11 }
 0x7c0   :  { %17599 = vmatprep.subr.bf16.mxu1 %v18374_v22 }
 0x7c3   :  { %17600 = vmatpush3.bf16.msra.mxu1 %v18352_v25 }
 0x7c4   :  { %17605 = vmatprep.subr.bf16.mxu1 %v18374_v22 }
 0x7d9   :  { %v16471_v14 = vpop.f32.mrb[124].mxu1 }
 0x7da   :  { %v16472_v53 = vpop.f32.mrb[125].mxu1 }
 0x7db   :  { %v16473_v21 = vadd.f32 %v16472_v53, %v16471_v14  ;;  %v16474_v17 = vpop.f32.mrb[126].mxu1  ;;  %v24647_v53 = vld [vmem:[#allocation2_spill] sm:$0xff] }
 0x7dc   :  { %v16475_v24 = vpop.f32.mrb[127].mxu1  ;;  %vm13743_vm4 = vcmp.lt.s32.totalorder %v24647_v53, 10 }
 0x7dd   :  { %v13312_v18 = vadd.f32 %v16473_v21, %v13272_v29  ;;  %v15272_v29 = vld [vmem:[%s24341_s10] ss:$0 sm:$0xff] }
 0x7f9   :  { %v16493_v20 = vpop.f32.mrb[128].mxu1 }
 0x7fa   :  { %v16494_v57 = vpop.f32.mrb[129].mxu1 }
 0x7fb   :  { %v16495_v34 = vadd.f32 %v16494_v57, %v16493_v20  ;;  %v16496_v7 = vpop.f32.mrb[130].mxu1 }
 0x7fc   :  { %v16497_v30 = vpop.f32.mrb[131].mxu1 }
 0x7fd   :  { %v13352_v19 = vadd.f32 %v16495_v34, %v13312_v18 }
 0x819   :  { %v16515_v36 = vpop.f32.mrb[132].mxu1 }
 0x81a   :  { %v16516_v4 = vpop.f32.mrb[133].mxu1 }
 0x81b   :  { %v16517_v56 = vadd.f32 %v16516_v4, %v16515_v36  ;;  %v16518_v2 = vpop.f32.mrb[134].mxu1 }
 0x81c   :  { %v16519_v50 = vpop.f32.mrb[135].mxu1 }
 0x81d   :  { %v13392_v13 = vadd.f32 %v16517_v56, %v13352_v19 }
 0x839   :  { %v16537_v52 = vpop.f32.mrb[136].mxu1 }
 0x83a   :  { %v16538_v37 = vpop.f32.mrb[137].mxu1 }
 0x83b   :  { %v16539_v43 = vadd.f32 %v16538_v37, %v16537_v52  ;;  %v16540_v49 = vpop.f32.mrb[138].mxu1 }
 0x83c   :  { %v16541_v31 = vpop.f32.mrb[139].mxu1 }
 0x83d   :  { %v13432_v6 = vadd.f32 %v16539_v43, %v13392_v13 }
 0x859   :  { %v16559_v5 = vpop.f32.mrb[140].mxu1 }
 0x85a   :  { %v16560_v35 = vpop.f32.mrb[141].mxu1 }
 0x85b   :  { %v16561_v3 = vadd.f32 %v16560_v35, %v16559_v5  ;;  %v16562_v23 = vpop.f32.mrb[142].mxu1 }
 0x85c   :  { %v16563_v55 = vpop.f32.mrb[143].mxu1 }
 0x85d   :  { %v13472_v28 = vadd.f32 %v16561_v3, %v13432_v6 }
 0x879   :  { %v16581_v10 = vpop.f32.mrb[144].mxu1 }
 0x87a   :  { %v16582_v51 = vpop.f32.mrb[145].mxu1 }
 0x87b   :  { %v16583_v32 = vadd.f32 %v16582_v51, %v16581_v10  ;;  %v16584_v46 = vpop.f32.mrb[146].mxu1 }
 0x87c   :  { %v16585_v42 = vpop.f32.mrb[147].mxu1 }
 0x87d   :  { %v13512_v38 = vadd.f32 %v16583_v32, %v13472_v28 }
 0x87f   :  { %v13517_v54 = vmax.f32 %v13512_v38, 0.0 }
 0x881   :  { %v13518_v47 = vpack.c.bf16 %v13517_v54, %v13517_v54 }
 0x883   :  { %17602 = vmatmul.mubr.bf16.vlgmr.msra.gmra.mrb[148].mxu1 %v13518_v47 }
 0x884   :  { %17606 = vmatpush3.bf16.msra.mxu1 %v18353_v9  ;;  %17621 = vmatprep.mubr.msk.bf16.mxu1 %vm18375_vm0, %v18374_v22 }
 0x885   :  { %17607 = vmatprep.subr.bf16.mxu1 %v18374_v22 }
 0x888   :  { %17608 = vmatpush3.bf16.msra.mxu1 %v18354_v40 }
 0x889   :  { %17609 = vmatprep.subr.bf16.mxu1 %v18374_v22 }
 0x88c   :  { %17610 = vmatpush3.bf16.msra.mxu1 %v18355_v63 }
 0x88d   :  { %17611 = vmatprep.subr.bf16.mxu1 %v18374_v22 }
 0x890   :  { %17612 = vmatpush3.bf16.msra.mxu1 %v18356_v33 }
 0x891   :  { %17613 = vmatprep.subr.bf16.mxu1 %v18374_v22 }
 0x894   :  { %17614 = vmatpush3.bf16.msra.mxu1 %v18357_v0 }
 0x895   :  { %17615 = vmatprep.subr.bf16.mxu1 %v18374_v22 }
 0x898   :  { %17616 = vmatpush3.bf16.msra.mxu1 %v18358_v60 }
 0x899   :  { %17617 = vmatprep.subr.bf16.mxu1 %v18374_v22 }
 0x89c   :  { %17618 = vmatpush3.bf16.msra.mxu1 %v18359_v61 }
 0x89d   :  { %17619 = vmatprep.subr.bf16.mxu1 %v18374_v22 }
 0x8a0   :  { %17620 = vmatpush3.bf16.msra.mxu1 %v18360_v16 }
 0x956   :  { %v13624_v48 = vpop.f32.mrb[148].mxu1 }
 0x957   :  { %v13625_v12 = vadd.f32 %v15263_v8, %v13624_v48  ;;  %v17603_v1 = vpop.f32.mrb[149].mxu1 }
 0x958   :  { %v13627_v62 = vpop.f32.mrb[150].mxu1 }
 0x959   :  { %v13630_v41 = vmax.f32 %v13625_v12, 0.0  ;;  %v17604_v15 = vpop.f32.mrb[151].mxu1 }
 0x95b   :  { %v13631_v26 = vpack.c.bf16 %v13630_v41, %v13630_v41 }
 0x95d   :  { %17622 = vmatmul.mubr.bf16.vlgmr.msra.gmra.mrb[152].mxu1 %v13631_v26 }
 0xa30   :  { %v13737_v14 = vpop.f32.mrb[152].mxu1 }
 0xa31   :  { %v13738_v21 = vadd.f32 %v15272_v29, %v13737_v14  ;;  %v17623_v17 = vpop.f32.mrb[153].mxu1 }
 0xa32   :  { %v13740_v24 = vpop.f32.mrb[154].mxu1 }
 0xa33   :  { %v17624_v18 = vpop.f32.mrb[155].mxu1  ;;  %v13744_v22 = vsel %vm13743_vm4, %v13738_v21, -1e+30 }
 0xa34   :  { %13745 = vmax.xlane.f32.xlu0 %v13744_v22 }
 0xac1   :  { %v13746_v39 = vpop.xlane.xlu0 %13745 }
 0xac2   :  { %v13747_v59 = vsub.f32 %v13744_v22, %v13746_v39 }
 0xac4   :  { %v13748_v58 = vmul.f32 1.442695, %v13747_v59 }
 0xac6   :  { %18361 = vpow2.f32 %v13748_v58 }
 0xad0   :  { %v18362_v27 = vpop.eup %18361 }
 0xad1   :  { %v13750_v44 = vsel %vm13743_vm4, %v18362_v27, 0.0 }
 0xad2   :  { %13751 = vadd.xlane.f32.xlu0 %v13750_v44 }
 0xb5f   :  { %v13752_v45 = vpop.xlane.xlu0 %13751 }
 0xb60   :  { %18363 = vlog2.f32 %v13752_v45 }
 0xb6a   :  { %v18364_v20 = vpop.eup %18363 }
 0xb6b   :  { %v13754_v57 = vmul.f32 0.6931472, %v18364_v20 }
 0xb6d   :  { %v13755_v34 = vadd.f32 %v13754_v57, %v13746_v39 }
 0xb6f   :  { %v13756_v7 = vsub.f32 %v13738_v21, %v13755_v34 }
 0xb71   :  { %13757 = vst [vmem:[%s24342_s11] sm:$0xff] %v13756_v7 }

</bundles_post_ra>
